<compile_context>
chip_gen: v6e
topology: v6e:2x2x1
jax: 0.10.0
libtpu: 0.0.40
codegen_flags: <defaults>
</compile_context>

<pallas_src>
import functools

import jax
import jax.numpy as jnp
from jax.experimental import pallas as pl
from jax.experimental.pallas import tpu as pltpu

F32 = jnp.float32
BF16 = jnp.bfloat16
LN_EPS = 1e-5
_SQRT_HALF = 0.7071067811865476
NEG_INF = -1e30


# ----------------------------- in-kernel helpers -----------------------------

def _layernorm_f32(x, g, b):
    mu = jnp.mean(x, axis=-1, keepdims=True)
    var = jnp.mean(jnp.square(x - mu), axis=-1, keepdims=True)
    return (x - mu) * jax.lax.rsqrt(var + LN_EPS) * g + b


def _gelu_exact(x):
    # exact (erf) GELU, matching torch.nn.GELU()
    return 0.5 * x * (1.0 + jax.lax.erf(x * jnp.float32(_SQRT_HALF)))


# ----------------------------- the fused forward kernel -----------------------------

def _vit_forward_kernel(xp_ref, pw_ref, addend_ref,
                        ln1g_ref, ln1b_ref, qkvw_ref, projw_ref, projb_ref,
                        ln2g_ref, ln2b_ref, fc1w_ref, fc1b_ref, fc2w_ref, fc2b_ref,
                        hg_ref, hb_ref, vw_ref, vb_ref, mw_ref, mb_ref,
                        o_ref, *, depth, heads, dim_head, n_tokens):
    # ---- patch embedding; CLS token + pos emb + patch bias fused via `addend` ----
    x = jnp.dot(xp_ref[0].astype(BF16), pw_ref[...],
                preferred_element_type=F32) + addend_ref[...]          # (S_pad, dim) f32
    s_pad, dim = x.shape
    inner = heads * dim_head

    # mask for padded key columns (tokens >= n_tokens are padding rows)
    key_id = jax.lax.broadcasted_iota(jnp.int32, (1, s_pad), 1)
    neg_mask = jnp.where(key_id >= n_tokens, NEG_INF, 0.0).astype(F32)  # (1, S_pad)

    for l in range(depth):                                              # unrolled over depth
        # ---------------- attention block:  x = x + proj(attn(LN1(x))) ----------------
        xn = _layernorm_f32(x, ln1g_ref[l], ln1b_ref[l])
        qkv = jnp.dot(xn.astype(BF16), qkvw_ref[l],
                      preferred_element_type=F32)                       # (S_pad, 3*inner)
        q = qkv[:, :inner]                # scale already folded into the Q weight columns
        k = qkv[:, inner:2 * inner]
        v = qkv[:, 2 * inner:]
        proj_w = projw_ref[l]                                           # (inner, dim) bf16

        attn_out = None
        for h in range(heads):                                          # unrolled over heads
            sl = slice(h * dim_head, (h + 1) * dim_head)
            qh = q[:, sl].astype(BF16)
            kh = k[:, sl].astype(BF16)
            vh = v[:, sl].astype(BF16)
            s = jax.lax.dot_general(qh, kh, (((1,), (1,)), ((), ())),
                                    preferred_element_type=F32)         # (S_pad, S_pad)
            s = s + neg_mask
            m = jnp.max(s, axis=-1, keepdims=True)
            e = jnp.exp(s - m)
            p = e * pl.reciprocal(jnp.sum(e, axis=-1, keepdims=True), approx=True)
            oh = jnp.dot(p.astype(BF16), vh, preferred_element_type=F32)        # (S_pad, dh)
            # accumulate directly against the matching proj_w row slice (no concat)
            contrib = jnp.dot(oh.astype(BF16), proj_w[sl, :],
                              preferred_element_type=F32)                        # (S_pad, dim)
            attn_out = contrib if attn_out is None else attn_out + contrib
        x = x + attn_out + projb_ref[l]

        # ---------------- MLP block:  x = x + FC2(GELU(FC1(LN2(x)))) ----------------
        xn = _layernorm_f32(x, ln2g_ref[l], ln2b_ref[l])
        h1 = jnp.dot(xn.astype(BF16), fc1w_ref[l],
                     preferred_element_type=F32) + fc1b_ref[l]
        h1 = _gelu_exact(h1)
        x = x + jnp.dot(h1.astype(BF16), fc2w_ref[l],
                        preferred_element_type=F32) + fc2b_ref[l]

    # ---------------- classifier head (CLS row only) ----------------
    cls = x[0:1, :]                                                     # (1, dim)
    cn = _layernorm_f32(cls, hg_ref[...], hb_ref[...])
    l1 = jnp.dot(cn.astype(BF16), vw_ref[...], preferred_element_type=F32) + vb_ref[...]
    r = jnp.maximum(l1, 0.0)
    l2 = jnp.dot(r.astype(BF16), mw_ref[...], preferred_element_type=F32) + mb_ref[...]
    m = jnp.max(l2, axis=-1, keepdims=True)
    e = jnp.exp(l2 - m)
    # exact division so rows sum to 1.0 within f32 rounding
    o_ref[0] = (e / jnp.sum(e, axis=-1, keepdims=True)).astype(o_ref.dtype)


# ----------------------------- wrapper -----------------------------

def _const_index_map(ndim):
    zeros = (0,) * ndim

    def imap(b):
        return zeros

    return imap


def model_forward(x, params, cfg):
    B, C, H, W = x.shape
    p = cfg["patch_size"]
    h, w = H // p, W // p
    n = h * w
    patch_dim = C * p * p
    s_pad = cfg["seq_pad"]
    pd_pad = cfg["patch_dim_pad"]
    classes = cfg["classes"]

    # 'b c (h p1) (w p2) -> b (h w) (p1 p2 c)', then zero-pad to (S_pad, pd_pad);
    # row 0 is reserved for the CLS token (its zero patch contributes 0 to the matmul).
    xp = x.reshape(B, C, h, p, w, p).transpose(0, 2, 4, 3, 5, 1).reshape(B, n, patch_dim)
    xp_pad = jnp.zeros((B, s_pad, pd_pad), x.dtype).at[:, 1:n + 1, :patch_dim].set(xp)

    operands = (
        xp_pad,
        params["patch_w"], params["tok_addend"],
        params["ln1_g"], params["ln1_b"], params["qkv_w"], params["proj_w"], params["proj_b"],
        params["ln2_g"], params["ln2_b"], params["fc1_w"], params["fc1_b"],
        params["fc2_w"], params["fc2_b"],
        params["vhead_ln_g"], params["vhead_ln_b"], params["vhead_w"], params["vhead_b"],
        params["mlp_w"], params["mlp_b"],
    )

    in_specs = [pl.BlockSpec((1, s_pad, pd_pad), lambda b: (b, 0, 0))]
    in_specs += [pl.BlockSpec(a.shape, _const_index_map(a.ndim)) for a in operands[1:]]

    out = pl.pallas_call(
        functools.partial(_vit_forward_kernel,
                          depth=cfg["depth"], heads=cfg["heads"],
                          dim_head=cfg["dim_head"], n_tokens=n + 1),
        grid=(B,),
        in_specs=in_specs,
        out_specs=pl.BlockSpec((1, 1, classes), lambda b: (b, 0, 0)),
        out_shape=jax.ShapeDtypeStruct((B, 1, classes), F32),
        compiler_params=pltpu.CompilerParams(
            dimension_semantics=("parallel",),
            vmem_limit_bytes=32 * 1024 * 1024),
    )(*operands)
    return out.reshape(B, classes)


# ----------------------------- params / main -----------------------------

def init_params(key, cfg):
    def nrm(k, shape, s=0.02):
        return jax.random.normal(k, shape, F32) * s

    dim, heads, dh = cfg["dim"], cfg["heads"], cfg["dim_head"]
    mlp, depth = cfg["mlp_dim"], cfg["depth"]
    inner = heads * dh
    p = cfg["patch_size"]
    patch_dim = cfg["channels"] * p * p
    pd_pad = cfg["patch_dim_pad"]
    n = (cfg["image_size"] // p) ** 2
    s_pad = cfg["seq_pad"]
    vc, vc_pad = cfg["vit_classes"], cfg["vit_classes_pad"]
    classes = cfg["classes"]
    scale = dh ** -0.5

    keys = iter(jax.random.split(key, 6 + 4 * depth))

    patch_w = nrm(next(keys), (patch_dim, dim))
    patch_b = jnp.zeros((dim,), F32)
    cls_token = nrm(next(keys), (dim,))
    pos_emb = nrm(next(keys), (n + 1, dim))

    # lane-dense K for the patch matmul (extra rows are zero -> exact)
    patch_w_pad = jnp.zeros((pd_pad, dim), F32).at[:patch_dim].set(patch_w).astype(BF16)

    # additive term fused into the patch-embed epilogue:
    #   row 0 -> cls_token + pos[0];  rows 1..n -> patch_b + pos[1..n];  padding rows -> 0
    addend = jnp.zeros((s_pad, dim), F32)
    addend = addend.at[0].set(cls_token + pos_emb[0])
    addend = addend.at[1:n + 1].set(patch_b + pos_emb[1:n + 1])

    qkv_ws, proj_ws, fc1_ws, fc2_ws = [], [], [], []
    for _ in range(depth):
        qw = nrm(next(keys), (dim, 3 * inner))
        qw = qw.at[:, :inner].multiply(scale)          # fold attention scale into Q weights
        qkv_ws.append(qw.astype(BF16))
        proj_ws.append(nrm(next(keys), (inner, dim)).astype(BF16))
        fc1_ws.append(nrm(next(keys), (dim, mlp)).astype(BF16))
        fc2_ws.append(nrm(next(keys), (mlp, dim)).astype(BF16))

    # head: vit_classes padded 1000 -> 1024 with zero columns/rows (numerically exact)
    vhead_w = nrm(next(keys), (dim, vc))
    vhead_w_pad = jnp.zeros((dim, vc_pad), F32).at[:, :vc].set(vhead_w).astype(BF16)
    mlp_w = nrm(next(keys), (vc, classes))
    mlp_w_pad = jnp.zeros((vc_pad, classes), F32).at[:vc].set(mlp_w).astype(BF16)

    return dict(
        patch_w=patch_w_pad,
        tok_addend=addend,
        ln1_g=jnp.ones((depth, 1, dim), F32), ln1_b=jnp.zeros((depth, 1, dim), F32),
        qkv_w=jnp.stack(qkv_ws),
        proj_w=jnp.stack(proj_ws), proj_b=jnp.zeros((depth, 1, dim), F32),
        ln2_g=jnp.ones((depth, 1, dim), F32), ln2_b=jnp.zeros((depth, 1, dim), F32),
        fc1_w=jnp.stack(fc1_ws), fc1_b=jnp.zeros((depth, 1, mlp), F32),
        fc2_w=jnp.stack(fc2_ws), fc2_b=jnp.zeros((depth, 1, dim), F32),
        vhead_ln_g=jnp.ones((1, dim), F32), vhead_ln_b=jnp.zeros((1, dim), F32),
        vhead_w=vhead_w_pad, vhead_b=jnp.zeros((1, vc_pad), F32),
        mlp_w=mlp_w_pad, mlp_b=jnp.zeros((1, classes), F32),
    )


if __name__ == "__main__":
    # Scaled-down (but structurally faithful) ViT config:
    # image 28, patch 4 -> 49 patches (+CLS = 50 tokens, padded to 64);
    # dim/depth/heads/mlp reduced for speed so the weight-resident megakernel stays tiny.
    cfg = dict(image_size=28, patch_size=4, channels=3,
               dim=256, depth=2, heads=4, dim_head=64, mlp_dim=512,
               vit_classes=1000, classes=10)
    n_patches = (cfg["image_size"] // cfg["patch_size"]) ** 2
    cfg["seq_pad"] = ((n_patches + 1 + 15) // 16) * 16                       # 50 -> 64
    cfg["patch_dim_pad"] = -(-(cfg["channels"] * cfg["patch_size"] ** 2) // 128) * 128  # 48 -> 128
    cfg["vit_classes_pad"] = -(-cfg["vit_classes"] // 128) * 128             # 1000 -> 1024

    key = jax.random.PRNGKey(0)
    kx, kp = jax.random.split(key)
    x = jax.random.normal(kx, (2, cfg["channels"], cfg["image_size"], cfg["image_size"]),
                          F32)   # NCHW, like PyTorch
    params = init_params(kp, cfg)

    fwd = jax.jit(lambda a: model_forward(a, params, cfg))
    out = jax.block_until_ready(fwd(x))

    assert out.shape == (2, cfg["classes"])
    assert bool(jnp.all(jnp.isfinite(out)))
    assert bool(jnp.allclose(jnp.sum(out, axis=-1), 1.0, atol=1e-4))
    print("KERNEL_OK")
</pallas_src>

<mosaic_0001>
module attributes {stable_mosaic.version = 11 : i64} {
  func.func @_vit_forward_kernel(%arg0: i32, %arg1: memref<1x64x128xf32, #tpu.memory_space<vmem>>, %arg2: memref<128x256xbf16, #tpu.memory_space<vmem>>, %arg3: memref<64x256xf32, #tpu.memory_space<vmem>>, %arg4: memref<2x1x256xf32, #tpu.memory_space<vmem>>, %arg5: memref<2x1x256xf32, #tpu.memory_space<vmem>>, %arg6: memref<2x256x768xbf16, #tpu.memory_space<vmem>>, %arg7: memref<2x256x256xbf16, #tpu.memory_space<vmem>>, %arg8: memref<2x1x256xf32, #tpu.memory_space<vmem>>, %arg9: memref<2x1x256xf32, #tpu.memory_space<vmem>>, %arg10: memref<2x1x256xf32, #tpu.memory_space<vmem>>, %arg11: memref<2x256x512xbf16, #tpu.memory_space<vmem>>, %arg12: memref<2x1x512xf32, #tpu.memory_space<vmem>>, %arg13: memref<2x512x256xbf16, #tpu.memory_space<vmem>>, %arg14: memref<2x1x256xf32, #tpu.memory_space<vmem>>, %arg15: memref<1x256xf32, #tpu.memory_space<vmem>>, %arg16: memref<1x256xf32, #tpu.memory_space<vmem>>, %arg17: memref<256x1024xbf16, #tpu.memory_space<vmem>>, %arg18: memref<1x1024xf32, #tpu.memory_space<vmem>>, %arg19: memref<1024x10xbf16, #tpu.memory_space<vmem>>, %arg20: memref<1x10xf32, #tpu.memory_space<vmem>>, %arg21: memref<1x1x10xf32, #tpu.memory_space<vmem>>) attributes {dimension_semantics = [#tpu.dimension_semantics<parallel>], iteration_bounds = array<i64: 2>, scalar_prefetch = 0 : i64, scratch_operands = 0 : i64, tpu.core_type = #tpu.core_type<tc>, window_params = [{transform_indices = @transform_0, window_bounds = array<i64: 1, 64, 128>}, {pipeline_mode = #tpu.pipeline_mode<synchronous>, transform_indices = @transform_1, window_bounds = array<i64: 128, 256>}, {pipeline_mode = #tpu.pipeline_mode<synchronous>, transform_indices = @transform_2, window_bounds = array<i64: 64, 256>}, {pipeline_mode = #tpu.pipeline_mode<synchronous>, transform_indices = @transform_3, window_bounds = array<i64: 2, 1, 256>}, {pipeline_mode = #tpu.pipeline_mode<synchronous>, transform_indices = @transform_4, window_bounds = array<i64: 2, 1, 256>}, {pipeline_mode = #tpu.pipeline_mode<synchronous>, transform_indices = @transform_5, window_bounds = array<i64: 2, 256, 768>}, {pipeline_mode = #tpu.pipeline_mode<synchronous>, transform_indices = @transform_6, window_bounds = array<i64: 2, 256, 256>}, {pipeline_mode = #tpu.pipeline_mode<synchronous>, transform_indices = @transform_7, window_bounds = array<i64: 2, 1, 256>}, {pipeline_mode = #tpu.pipeline_mode<synchronous>, transform_indices = @transform_8, window_bounds = array<i64: 2, 1, 256>}, {pipeline_mode = #tpu.pipeline_mode<synchronous>, transform_indices = @transform_9, window_bounds = array<i64: 2, 1, 256>}, {pipeline_mode = #tpu.pipeline_mode<synchronous>, transform_indices = @transform_10, window_bounds = array<i64: 2, 256, 512>}, {pipeline_mode = #tpu.pipeline_mode<synchronous>, transform_indices = @transform_11, window_bounds = array<i64: 2, 1, 512>}, {pipeline_mode = #tpu.pipeline_mode<synchronous>, transform_indices = @transform_12, window_bounds = array<i64: 2, 512, 256>}, {pipeline_mode = #tpu.pipeline_mode<synchronous>, transform_indices = @transform_13, window_bounds = array<i64: 2, 1, 256>}, {pipeline_mode = #tpu.pipeline_mode<synchronous>, transform_indices = @transform_14, window_bounds = array<i64: 1, 256>}, {pipeline_mode = #tpu.pipeline_mode<synchronous>, transform_indices = @transform_15, window_bounds = array<i64: 1, 256>}, {pipeline_mode = #tpu.pipeline_mode<synchronous>, transform_indices = @transform_16, window_bounds = array<i64: 256, 1024>}, {pipeline_mode = #tpu.pipeline_mode<synchronous>, transform_indices = @transform_17, window_bounds = array<i64: 1, 1024>}, {pipeline_mode = #tpu.pipeline_mode<synchronous>, transform_indices = @transform_18, window_bounds = array<i64: 1024, 10>}, {pipeline_mode = #tpu.pipeline_mode<synchronous>, transform_indices = @transform_19, window_bounds = array<i64: 1, 10>}, {transform_indices = @transform_20, window_bounds = array<i64: 1, 1, 10>}]} {
    %c0 = arith.constant 0 : index
    %c0_0 = arith.constant 0 : index
    %c0_1 = arith.constant 0 : index
    %0 = vector.load %arg1[%c0, %c0_0, %c0_1] : memref<1x64x128xf32, #tpu.memory_space<vmem>>, vector<1x64x128xf32>
    %1 = vector.shape_cast %0 : vector<1x64x128xf32> to vector<64x128xf32>
    %2 = arith.truncf %1 : vector<64x128xf32> to vector<64x128xbf16>
    %c0_2 = arith.constant 0 : index
    %c0_3 = arith.constant 0 : index
    %3 = vector.load %arg2[%c0_2, %c0_3] : memref<128x256xbf16, #tpu.memory_space<vmem>>, vector<128x256xbf16>
    %cst = arith.constant dense<0.000000e+00> : vector<64x256xf32>
    %4 = tpu.matmul %2, %3, %cst {dimension_numbers = #tpu.dot_dimension_numbers<[1], [0], [0], [1], [0, 0, 1, 1], [], []>} : vector<64x128xbf16>, vector<128x256xbf16>, vector<64x256xf32> -> vector<64x256xf32>
    %c0_4 = arith.constant 0 : index
    %c0_5 = arith.constant 0 : index
    %5 = vector.load %arg3[%c0_4, %c0_5] : memref<64x256xf32, #tpu.memory_space<vmem>>, vector<64x256xf32>
    %6 = arith.addf %4, %5 : vector<64x256xf32>
    %7 = tpu.iota {dimensions = array<i32: 1>} : vector<1x64xi32>
    %c50_i32 = arith.constant 50 : i32
    %8 = vector.broadcast %c50_i32 : i32 to vector<1x64xi32>
    %9 = arith.cmpi sge, %7, %8 : vector<1x64xi32>
    %cst_6 = arith.constant -1.000000e+30 : f32
    %cst_7 = arith.constant 0.000000e+00 : f32
    %10 = vector.broadcast %cst_6 : f32 to vector<1x64xf32>
    %11 = vector.broadcast %cst_7 : f32 to vector<1x64xf32>
    %12 = arith.select %9, %10, %11 : vector<1x64xi1>, vector<1x64xf32>
    %c0_8 = arith.constant 0 : index
    %c0_9 = arith.constant 0 : index
    %c0_10 = arith.constant 0 : index
    %13 = vector.load %arg4[%c0_8, %c0_9, %c0_10] : memref<2x1x256xf32, #tpu.memory_space<vmem>>, vector<1x1x256xf32>
    %14 = vector.shape_cast %13 : vector<1x1x256xf32> to vector<1x256xf32>
    %c0_11 = arith.constant 0 : index
    %c0_12 = arith.constant 0 : index
    %c0_13 = arith.constant 0 : index
    %15 = vector.load %arg5[%c0_11, %c0_12, %c0_13] : memref<2x1x256xf32, #tpu.memory_space<vmem>>, vector<1x1x256xf32>
    %16 = vector.shape_cast %15 : vector<1x1x256xf32> to vector<1x256xf32>
    %cst_14 = arith.constant dense<0.000000e+00> : vector<64xf32>
    %17 = vector.multi_reduction <add>, %6, %cst_14 [1] : vector<64x256xf32> to vector<64xf32>
    %18 = vector.shape_cast %17 : vector<64xf32> to vector<64x1xf32>
    %cst_15 = arith.constant 2.560000e+02 : f32
    %19 = vector.broadcast %cst_15 : f32 to vector<64x1xf32>
    %20 = arith.divf %18, %19 : vector<64x1xf32>
    %21 = vector.broadcast %20 : vector<64x1xf32> to vector<64x256xf32>
    %22 = arith.subf %6, %21 : vector<64x256xf32>
    %23 = arith.mulf %22, %22 : vector<64x256xf32>
    %cst_16 = arith.constant dense<0.000000e+00> : vector<64xf32>
    %24 = vector.multi_reduction <add>, %23, %cst_16 [1] : vector<64x256xf32> to vector<64xf32>
    %25 = vector.shape_cast %24 : vector<64xf32> to vector<64x1xf32>
    %cst_17 = arith.constant 2.560000e+02 : f32
    %26 = vector.broadcast %cst_17 : f32 to vector<64x1xf32>
    %27 = arith.divf %25, %26 : vector<64x1xf32>
    %28 = vector.broadcast %20 : vector<64x1xf32> to vector<64x256xf32>
    %29 = arith.subf %6, %28 : vector<64x256xf32>
    %cst_18 = arith.constant 9.99999974E-6 : f32
    %30 = vector.broadcast %cst_18 : f32 to vector<64x1xf32>
    %31 = arith.addf %27, %30 : vector<64x1xf32>
    %32 = math.rsqrt %31 : vector<64x1xf32>
    %33 = vector.broadcast %32 : vector<64x1xf32> to vector<64x256xf32>
    %34 = arith.mulf %29, %33 : vector<64x256xf32>
    %35 = vector.broadcast %14 : vector<1x256xf32> to vector<64x256xf32>
    %36 = arith.mulf %34, %35 : vector<64x256xf32>
    %37 = vector.broadcast %16 : vector<1x256xf32> to vector<64x256xf32>
    %38 = arith.addf %36, %37 : vector<64x256xf32>
    %39 = arith.truncf %38 : vector<64x256xf32> to vector<64x256xbf16>
    %c0_19 = arith.constant 0 : index
    %c0_20 = arith.constant 0 : index
    %c0_21 = arith.constant 0 : index
    %40 = vector.load %arg6[%c0_19, %c0_20, %c0_21] : memref<2x256x768xbf16, #tpu.memory_space<vmem>>, vector<1x256x768xbf16>
    %41 = vector.shape_cast %40 : vector<1x256x768xbf16> to vector<256x768xbf16>
    %cst_22 = arith.constant dense<0.000000e+00> : vector<64x768xf32>
    %42 = tpu.matmul %39, %41, %cst_22 {dimension_numbers = #tpu.dot_dimension_numbers<[1], [0], [0], [1], [0, 0, 1, 1], [], []>} : vector<64x256xbf16>, vector<256x768xbf16>, vector<64x768xf32> -> vector<64x768xf32>
    %43 = vector.extract_strided_slice %42 {offsets = [0, 0], sizes = [64, 256], strides = [1, 1]} : vector<64x768xf32> to vector<64x256xf32>
    %44 = vector.extract_strided_slice %42 {offsets = [0, 256], sizes = [64, 256], strides = [1, 1]} : vector<64x768xf32> to vector<64x256xf32>
    %45 = vector.extract_strided_slice %42 {offsets = [0, 512], sizes = [64, 256], strides = [1, 1]} : vector<64x768xf32> to vector<64x256xf32>
    %c0_23 = arith.constant 0 : index
    %c0_24 = arith.constant 0 : index
    %c0_25 = arith.constant 0 : index
    %46 = vector.load %arg7[%c0_23, %c0_24, %c0_25] : memref<2x256x256xbf16, #tpu.memory_space<vmem>>, vector<1x256x256xbf16>
    %47 = vector.shape_cast %46 : vector<1x256x256xbf16> to vector<256x256xbf16>
    %48 = vector.extract_strided_slice %43 {offsets = [0, 0], sizes = [64, 64], strides = [1, 1]} : vector<64x256xf32> to vector<64x64xf32>
    %49 = arith.truncf %48 : vector<64x64xf32> to vector<64x64xbf16>
    %50 = vector.extract_strided_slice %44 {offsets = [0, 0], sizes = [64, 64], strides = [1, 1]} : vector<64x256xf32> to vector<64x64xf32>
    %51 = arith.truncf %50 : vector<64x64xf32> to vector<64x64xbf16>
    %52 = vector.extract_strided_slice %45 {offsets = [0, 0], sizes = [64, 64], strides = [1, 1]} : vector<64x256xf32> to vector<64x64xf32>
    %53 = arith.truncf %52 : vector<64x64xf32> to vector<64x64xbf16>
    %cst_26 = arith.constant dense<0.000000e+00> : vector<64x64xf32>
    %54 = tpu.matmul %49, %51, %cst_26 {dimension_numbers = #tpu.dot_dimension_numbers<[1], [1], [0], [0], [0, 0, 1, 0], [], []>} : vector<64x64xbf16>, vector<64x64xbf16>, vector<64x64xf32> -> vector<64x64xf32>
    %55 = vector.broadcast %12 : vector<1x64xf32> to vector<64x64xf32>
    %56 = arith.addf %54, %55 : vector<64x64xf32>
    %cst_27 = arith.constant dense<0xFF800000> : vector<64xf32>
    %57 = vector.multi_reduction <maximumf>, %56, %cst_27 [1] : vector<64x64xf32> to vector<64xf32>
    %58 = vector.shape_cast %57 : vector<64xf32> to vector<64x1xf32>
    %59 = vector.broadcast %58 : vector<64x1xf32> to vector<64x64xf32>
    %60 = arith.subf %56, %59 : vector<64x64xf32>
    %61 = math.exp %60 : vector<64x64xf32>
    %cst_28 = arith.constant dense<0.000000e+00> : vector<64xf32>
    %62 = vector.multi_reduction <add>, %61, %cst_28 [1] : vector<64x64xf32> to vector<64xf32>
    %63 = vector.shape_cast %62 : vector<64xf32> to vector<64x1xf32>
    %64 = tpu.reciprocal %63 {approx = true} : vector<64x1xf32> -> vector<64x1xf32>
    %65 = vector.broadcast %64 : vector<64x1xf32> to vector<64x64xf32>
    %66 = arith.mulf %61, %65 : vector<64x64xf32>
    %67 = arith.truncf %66 : vector<64x64xf32> to vector<64x64xbf16>
    %cst_29 = arith.constant dense<0.000000e+00> : vector<64x64xf32>
    %68 = tpu.matmul %67, %53, %cst_29 {dimension_numbers = #tpu.dot_dimension_numbers<[1], [0], [0], [1], [0, 0, 1, 1], [], []>} : vector<64x64xbf16>, vector<64x64xbf16>, vector<64x64xf32> -> vector<64x64xf32>
    %69 = arith.truncf %68 : vector<64x64xf32> to vector<64x64xbf16>
    %70 = vector.extract_strided_slice %47 {offsets = [0, 0], sizes = [64, 256], strides = [1, 1]} : vector<256x256xbf16> to vector<64x256xbf16>
    %cst_30 = arith.constant dense<0.000000e+00> : vector<64x256xf32>
    %71 = tpu.matmul %69, %70, %cst_30 {dimension_numbers = #tpu.dot_dimension_numbers<[1], [0], [0], [1], [0, 0, 1, 1], [], []>} : vector<64x64xbf16>, vector<64x256xbf16>, vector<64x256xf32> -> vector<64x256xf32>
    %72 = vector.extract_strided_slice %43 {offsets = [0, 64], sizes = [64, 64], strides = [1, 1]} : vector<64x256xf32> to vector<64x64xf32>
    %73 = arith.truncf %72 : vector<64x64xf32> to vector<64x64xbf16>
    %74 = vector.extract_strided_slice %44 {offsets = [0, 64], sizes = [64, 64], strides = [1, 1]} : vector<64x256xf32> to vector<64x64xf32>
    %75 = arith.truncf %74 : vector<64x64xf32> to vector<64x64xbf16>
    %76 = vector.extract_strided_slice %45 {offsets = [0, 64], sizes = [64, 64], strides = [1, 1]} : vector<64x256xf32> to vector<64x64xf32>
    %77 = arith.truncf %76 : vector<64x64xf32> to vector<64x64xbf16>
    %cst_31 = arith.constant dense<0.000000e+00> : vector<64x64xf32>
    %78 = tpu.matmul %73, %75, %cst_31 {dimension_numbers = #tpu.dot_dimension_numbers<[1], [1], [0], [0], [0, 0, 1, 0], [], []>} : vector<64x64xbf16>, vector<64x64xbf16>, vector<64x64xf32> -> vector<64x64xf32>
    %79 = vector.broadcast %12 : vector<1x64xf32> to vector<64x64xf32>
    %80 = arith.addf %78, %79 : vector<64x64xf32>
    %cst_32 = arith.constant dense<0xFF800000> : vector<64xf32>
    %81 = vector.multi_reduction <maximumf>, %80, %cst_32 [1] : vector<64x64xf32> to vector<64xf32>
    %82 = vector.shape_cast %81 : vector<64xf32> to vector<64x1xf32>
    %83 = vector.broadcast %82 : vector<64x1xf32> to vector<64x64xf32>
    %84 = arith.subf %80, %83 : vector<64x64xf32>
    %85 = math.exp %84 : vector<64x64xf32>
    %cst_33 = arith.constant dense<0.000000e+00> : vector<64xf32>
    %86 = vector.multi_reduction <add>, %85, %cst_33 [1] : vector<64x64xf32> to vector<64xf32>
    %87 = vector.shape_cast %86 : vector<64xf32> to vector<64x1xf32>
    %88 = tpu.reciprocal %87 {approx = true} : vector<64x1xf32> -> vector<64x1xf32>
    %89 = vector.broadcast %88 : vector<64x1xf32> to vector<64x64xf32>
    %90 = arith.mulf %85, %89 : vector<64x64xf32>
    %91 = arith.truncf %90 : vector<64x64xf32> to vector<64x64xbf16>
    %cst_34 = arith.constant dense<0.000000e+00> : vector<64x64xf32>
    %92 = tpu.matmul %91, %77, %cst_34 {dimension_numbers = #tpu.dot_dimension_numbers<[1], [0], [0], [1], [0, 0, 1, 1], [], []>} : vector<64x64xbf16>, vector<64x64xbf16>, vector<64x64xf32> -> vector<64x64xf32>
    %93 = arith.truncf %92 : vector<64x64xf32> to vector<64x64xbf16>
    %94 = vector.extract_strided_slice %47 {offsets = [64, 0], sizes = [64, 256], strides = [1, 1]} : vector<256x256xbf16> to vector<64x256xbf16>
    %cst_35 = arith.constant dense<0.000000e+00> : vector<64x256xf32>
    %95 = tpu.matmul %93, %94, %cst_35 {dimension_numbers = #tpu.dot_dimension_numbers<[1], [0], [0], [1], [0, 0, 1, 1], [], []>} : vector<64x64xbf16>, vector<64x256xbf16>, vector<64x256xf32> -> vector<64x256xf32>
    %96 = arith.addf %71, %95 : vector<64x256xf32>
    %97 = vector.extract_strided_slice %43 {offsets = [0, 128], sizes = [64, 64], strides = [1, 1]} : vector<64x256xf32> to vector<64x64xf32>
    %98 = arith.truncf %97 : vector<64x64xf32> to vector<64x64xbf16>
    %99 = vector.extract_strided_slice %44 {offsets = [0, 128], sizes = [64, 64], strides = [1, 1]} : vector<64x256xf32> to vector<64x64xf32>
    %100 = arith.truncf %99 : vector<64x64xf32> to vector<64x64xbf16>
    %101 = vector.extract_strided_slice %45 {offsets = [0, 128], sizes = [64, 64], strides = [1, 1]} : vector<64x256xf32> to vector<64x64xf32>
    %102 = arith.truncf %101 : vector<64x64xf32> to vector<64x64xbf16>
    %cst_36 = arith.constant dense<0.000000e+00> : vector<64x64xf32>
    %103 = tpu.matmul %98, %100, %cst_36 {dimension_numbers = #tpu.dot_dimension_numbers<[1], [1], [0], [0], [0, 0, 1, 0], [], []>} : vector<64x64xbf16>, vector<64x64xbf16>, vector<64x64xf32> -> vector<64x64xf32>
    %104 = vector.broadcast %12 : vector<1x64xf32> to vector<64x64xf32>
    %105 = arith.addf %103, %104 : vector<64x64xf32>
    %cst_37 = arith.constant dense<0xFF800000> : vector<64xf32>
    %106 = vector.multi_reduction <maximumf>, %105, %cst_37 [1] : vector<64x64xf32> to vector<64xf32>
    %107 = vector.shape_cast %106 : vector<64xf32> to vector<64x1xf32>
    %108 = vector.broadcast %107 : vector<64x1xf32> to vector<64x64xf32>
    %109 = arith.subf %105, %108 : vector<64x64xf32>
    %110 = math.exp %109 : vector<64x64xf32>
    %cst_38 = arith.constant dense<0.000000e+00> : vector<64xf32>
    %111 = vector.multi_reduction <add>, %110, %cst_38 [1] : vector<64x64xf32> to vector<64xf32>
    %112 = vector.shape_cast %111 : vector<64xf32> to vector<64x1xf32>
    %113 = tpu.reciprocal %112 {approx = true} : vector<64x1xf32> -> vector<64x1xf32>
    %114 = vector.broadcast %113 : vector<64x1xf32> to vector<64x64xf32>
    %115 = arith.mulf %110, %114 : vector<64x64xf32>
    %116 = arith.truncf %115 : vector<64x64xf32> to vector<64x64xbf16>
    %cst_39 = arith.constant dense<0.000000e+00> : vector<64x64xf32>
    %117 = tpu.matmul %116, %102, %cst_39 {dimension_numbers = #tpu.dot_dimension_numbers<[1], [0], [0], [1], [0, 0, 1, 1], [], []>} : vector<64x64xbf16>, vector<64x64xbf16>, vector<64x64xf32> -> vector<64x64xf32>
    %118 = arith.truncf %117 : vector<64x64xf32> to vector<64x64xbf16>
    %119 = vector.extract_strided_slice %47 {offsets = [128, 0], sizes = [64, 256], strides = [1, 1]} : vector<256x256xbf16> to vector<64x256xbf16>
    %cst_40 = arith.constant dense<0.000000e+00> : vector<64x256xf32>
    %120 = tpu.matmul %118, %119, %cst_40 {dimension_numbers = #tpu.dot_dimension_numbers<[1], [0], [0], [1], [0, 0, 1, 1], [], []>} : vector<64x64xbf16>, vector<64x256xbf16>, vector<64x256xf32> -> vector<64x256xf32>
    %121 = arith.addf %96, %120 : vector<64x256xf32>
    %122 = vector.extract_strided_slice %43 {offsets = [0, 192], sizes = [64, 64], strides = [1, 1]} : vector<64x256xf32> to vector<64x64xf32>
    %123 = arith.truncf %122 : vector<64x64xf32> to vector<64x64xbf16>
    %124 = vector.extract_strided_slice %44 {offsets = [0, 192], sizes = [64, 64], strides = [1, 1]} : vector<64x256xf32> to vector<64x64xf32>
    %125 = arith.truncf %124 : vector<64x64xf32> to vector<64x64xbf16>
    %126 = vector.extract_strided_slice %45 {offsets = [0, 192], sizes = [64, 64], strides = [1, 1]} : vector<64x256xf32> to vector<64x64xf32>
    %127 = arith.truncf %126 : vector<64x64xf32> to vector<64x64xbf16>
    %cst_41 = arith.constant dense<0.000000e+00> : vector<64x64xf32>
    %128 = tpu.matmul %123, %125, %cst_41 {dimension_numbers = #tpu.dot_dimension_numbers<[1], [1], [0], [0], [0, 0, 1, 0], [], []>} : vector<64x64xbf16>, vector<64x64xbf16>, vector<64x64xf32> -> vector<64x64xf32>
    %129 = vector.broadcast %12 : vector<1x64xf32> to vector<64x64xf32>
    %130 = arith.addf %128, %129 : vector<64x64xf32>
    %cst_42 = arith.constant dense<0xFF800000> : vector<64xf32>
    %131 = vector.multi_reduction <maximumf>, %130, %cst_42 [1] : vector<64x64xf32> to vector<64xf32>
    %132 = vector.shape_cast %131 : vector<64xf32> to vector<64x1xf32>
    %133 = vector.broadcast %132 : vector<64x1xf32> to vector<64x64xf32>
    %134 = arith.subf %130, %133 : vector<64x64xf32>
    %135 = math.exp %134 : vector<64x64xf32>
    %cst_43 = arith.constant dense<0.000000e+00> : vector<64xf32>
    %136 = vector.multi_reduction <add>, %135, %cst_43 [1] : vector<64x64xf32> to vector<64xf32>
    %137 = vector.shape_cast %136 : vector<64xf32> to vector<64x1xf32>
    %138 = tpu.reciprocal %137 {approx = true} : vector<64x1xf32> -> vector<64x1xf32>
    %139 = vector.broadcast %138 : vector<64x1xf32> to vector<64x64xf32>
    %140 = arith.mulf %135, %139 : vector<64x64xf32>
    %141 = arith.truncf %140 : vector<64x64xf32> to vector<64x64xbf16>
    %cst_44 = arith.constant dense<0.000000e+00> : vector<64x64xf32>
    %142 = tpu.matmul %141, %127, %cst_44 {dimension_numbers = #tpu.dot_dimension_numbers<[1], [0], [0], [1], [0, 0, 1, 1], [], []>} : vector<64x64xbf16>, vector<64x64xbf16>, vector<64x64xf32> -> vector<64x64xf32>
    %143 = arith.truncf %142 : vector<64x64xf32> to vector<64x64xbf16>
    %144 = vector.extract_strided_slice %47 {offsets = [192, 0], sizes = [64, 256], strides = [1, 1]} : vector<256x256xbf16> to vector<64x256xbf16>
    %cst_45 = arith.constant dense<0.000000e+00> : vector<64x256xf32>
    %145 = tpu.matmul %143, %144, %cst_45 {dimension_numbers = #tpu.dot_dimension_numbers<[1], [0], [0], [1], [0, 0, 1, 1], [], []>} : vector<64x64xbf16>, vector<64x256xbf16>, vector<64x256xf32> -> vector<64x256xf32>
    %146 = arith.addf %121, %145 : vector<64x256xf32>
    %147 = arith.addf %6, %146 : vector<64x256xf32>
    %c0_46 = arith.constant 0 : index
    %c0_47 = arith.constant 0 : index
    %c0_48 = arith.constant 0 : index
    %148 = vector.load %arg8[%c0_46, %c0_47, %c0_48] : memref<2x1x256xf32, #tpu.memory_space<vmem>>, vector<1x1x256xf32>
    %149 = vector.shape_cast %148 : vector<1x1x256xf32> to vector<1x256xf32>
    %150 = vector.broadcast %149 : vector<1x256xf32> to vector<64x256xf32>
    %151 = arith.addf %147, %150 : vector<64x256xf32>
    %c0_49 = arith.constant 0 : index
    %c0_50 = arith.constant 0 : index
    %c0_51 = arith.constant 0 : index
    %152 = vector.load %arg9[%c0_49, %c0_50, %c0_51] : memref<2x1x256xf32, #tpu.memory_space<vmem>>, vector<1x1x256xf32>
    %153 = vector.shape_cast %152 : vector<1x1x256xf32> to vector<1x256xf32>
    %c0_52 = arith.constant 0 : index
    %c0_53 = arith.constant 0 : index
    %c0_54 = arith.constant 0 : index
    %154 = vector.load %arg10[%c0_52, %c0_53, %c0_54] : memref<2x1x256xf32, #tpu.memory_space<vmem>>, vector<1x1x256xf32>
    %155 = vector.shape_cast %154 : vector<1x1x256xf32> to vector<1x256xf32>
    %cst_55 = arith.constant dense<0.000000e+00> : vector<64xf32>
    %156 = vector.multi_reduction <add>, %151, %cst_55 [1] : vector<64x256xf32> to vector<64xf32>
    %157 = vector.shape_cast %156 : vector<64xf32> to vector<64x1xf32>
    %cst_56 = arith.constant 2.560000e+02 : f32
    %158 = vector.broadcast %cst_56 : f32 to vector<64x1xf32>
    %159 = arith.divf %157, %158 : vector<64x1xf32>
    %160 = vector.broadcast %159 : vector<64x1xf32> to vector<64x256xf32>
    %161 = arith.subf %151, %160 : vector<64x256xf32>
    %162 = arith.mulf %161, %161 : vector<64x256xf32>
    %cst_57 = arith.constant dense<0.000000e+00> : vector<64xf32>
    %163 = vector.multi_reduction <add>, %162, %cst_57 [1] : vector<64x256xf32> to vector<64xf32>
    %164 = vector.shape_cast %163 : vector<64xf32> to vector<64x1xf32>
    %cst_58 = arith.constant 2.560000e+02 : f32
    %165 = vector.broadcast %cst_58 : f32 to vector<64x1xf32>
    %166 = arith.divf %164, %165 : vector<64x1xf32>
    %167 = vector.broadcast %159 : vector<64x1xf32> to vector<64x256xf32>
    %168 = arith.subf %151, %167 : vector<64x256xf32>
    %cst_59 = arith.constant 9.99999974E-6 : f32
    %169 = vector.broadcast %cst_59 : f32 to vector<64x1xf32>
    %170 = arith.addf %166, %169 : vector<64x1xf32>
    %171 = math.rsqrt %170 : vector<64x1xf32>
    %172 = vector.broadcast %171 : vector<64x1xf32> to vector<64x256xf32>
    %173 = arith.mulf %168, %172 : vector<64x256xf32>
    %174 = vector.broadcast %153 : vector<1x256xf32> to vector<64x256xf32>
    %175 = arith.mulf %173, %174 : vector<64x256xf32>
    %176 = vector.broadcast %155 : vector<1x256xf32> to vector<64x256xf32>
    %177 = arith.addf %175, %176 : vector<64x256xf32>
    %178 = arith.truncf %177 : vector<64x256xf32> to vector<64x256xbf16>
    %c0_60 = arith.constant 0 : index
    %c0_61 = arith.constant 0 : index
    %c0_62 = arith.constant 0 : index
    %179 = vector.load %arg11[%c0_60, %c0_61, %c0_62] : memref<2x256x512xbf16, #tpu.memory_space<vmem>>, vector<1x256x512xbf16>
    %180 = vector.shape_cast %179 : vector<1x256x512xbf16> to vector<256x512xbf16>
    %cst_63 = arith.constant dense<0.000000e+00> : vector<64x512xf32>
    %181 = tpu.matmul %178, %180, %cst_63 {dimension_numbers = #tpu.dot_dimension_numbers<[1], [0], [0], [1], [0, 0, 1, 1], [], []>} : vector<64x256xbf16>, vector<256x512xbf16>, vector<64x512xf32> -> vector<64x512xf32>
    %c0_64 = arith.constant 0 : index
    %c0_65 = arith.constant 0 : index
    %c0_66 = arith.constant 0 : index
    %182 = vector.load %arg12[%c0_64, %c0_65, %c0_66] : memref<2x1x512xf32, #tpu.memory_space<vmem>>, vector<1x1x512xf32>
    %183 = vector.shape_cast %182 : vector<1x1x512xf32> to vector<1x512xf32>
    %184 = vector.broadcast %183 : vector<1x512xf32> to vector<64x512xf32>
    %185 = arith.addf %181, %184 : vector<64x512xf32>
    %cst_67 = arith.constant 5.000000e-01 : f32
    %186 = vector.broadcast %cst_67 : f32 to vector<64x512xf32>
    %187 = arith.mulf %186, %185 : vector<64x512xf32>
    %cst_68 = arith.constant 0.707106769 : f32
    %188 = vector.broadcast %cst_68 : f32 to vector<64x512xf32>
    %189 = arith.mulf %185, %188 : vector<64x512xf32>
    %190 = math.erf %189 : vector<64x512xf32>
    %cst_69 = arith.constant 1.000000e+00 : f32
    %191 = vector.broadcast %cst_69 : f32 to vector<64x512xf32>
    %192 = arith.addf %191, %190 : vector<64x512xf32>
    %193 = arith.mulf %187, %192 : vector<64x512xf32>
    %194 = arith.truncf %193 : vector<64x512xf32> to vector<64x512xbf16>
    %c0_70 = arith.constant 0 : index
    %c0_71 = arith.constant 0 : index
    %c0_72 = arith.constant 0 : index
    %195 = vector.load %arg13[%c0_70, %c0_71, %c0_72] : memref<2x512x256xbf16, #tpu.memory_space<vmem>>, vector<1x512x256xbf16>
    %196 = vector.shape_cast %195 : vector<1x512x256xbf16> to vector<512x256xbf16>
    %cst_73 = arith.constant dense<0.000000e+00> : vector<64x256xf32>
    %197 = tpu.matmul %194, %196, %cst_73 {dimension_numbers = #tpu.dot_dimension_numbers<[1], [0], [0], [1], [0, 0, 1, 1], [], []>} : vector<64x512xbf16>, vector<512x256xbf16>, vector<64x256xf32> -> vector<64x256xf32>
    %198 = arith.addf %151, %197 : vector<64x256xf32>
    %c0_74 = arith.constant 0 : index
    %c0_75 = arith.constant 0 : index
    %c0_76 = arith.constant 0 : index
    %199 = vector.load %arg14[%c0_74, %c0_75, %c0_76] : memref<2x1x256xf32, #tpu.memory_space<vmem>>, vector<1x1x256xf32>
    %200 = vector.shape_cast %199 : vector<1x1x256xf32> to vector<1x256xf32>
    %201 = vector.broadcast %200 : vector<1x256xf32> to vector<64x256xf32>
    %202 = arith.addf %198, %201 : vector<64x256xf32>
    %c1 = arith.constant 1 : index
    %c0_77 = arith.constant 0 : index
    %c0_78 = arith.constant 0 : index
    %203 = vector.load %arg4[%c1, %c0_77, %c0_78] : memref<2x1x256xf32, #tpu.memory_space<vmem>>, vector<1x1x256xf32>
    %204 = vector.shape_cast %203 : vector<1x1x256xf32> to vector<1x256xf32>
    %c1_79 = arith.constant 1 : index
    %c0_80 = arith.constant 0 : index
    %c0_81 = arith.constant 0 : index
    %205 = vector.load %arg5[%c1_79, %c0_80, %c0_81] : memref<2x1x256xf32, #tpu.memory_space<vmem>>, vector<1x1x256xf32>
    %206 = vector.shape_cast %205 : vector<1x1x256xf32> to vector<1x256xf32>
    %cst_82 = arith.constant dense<0.000000e+00> : vector<64xf32>
    %207 = vector.multi_reduction <add>, %202, %cst_82 [1] : vector<64x256xf32> to vector<64xf32>
    %208 = vector.shape_cast %207 : vector<64xf32> to vector<64x1xf32>
    %cst_83 = arith.constant 2.560000e+02 : f32
    %209 = vector.broadcast %cst_83 : f32 to vector<64x1xf32>
    %210 = arith.divf %208, %209 : vector<64x1xf32>
    %211 = vector.broadcast %210 : vector<64x1xf32> to vector<64x256xf32>
    %212 = arith.subf %202, %211 : vector<64x256xf32>
    %213 = arith.mulf %212, %212 : vector<64x256xf32>
    %cst_84 = arith.constant dense<0.000000e+00> : vector<64xf32>
    %214 = vector.multi_reduction <add>, %213, %cst_84 [1] : vector<64x256xf32> to vector<64xf32>
    %215 = vector.shape_cast %214 : vector<64xf32> to vector<64x1xf32>
    %cst_85 = arith.constant 2.560000e+02 : f32
    %216 = vector.broadcast %cst_85 : f32 to vector<64x1xf32>
    %217 = arith.divf %215, %216 : vector<64x1xf32>
    %218 = vector.broadcast %210 : vector<64x1xf32> to vector<64x256xf32>
    %219 = arith.subf %202, %218 : vector<64x256xf32>
    %cst_86 = arith.constant 9.99999974E-6 : f32
    %220 = vector.broadcast %cst_86 : f32 to vector<64x1xf32>
    %221 = arith.addf %217, %220 : vector<64x1xf32>
    %222 = math.rsqrt %221 : vector<64x1xf32>
    %223 = vector.broadcast %222 : vector<64x1xf32> to vector<64x256xf32>
    %224 = arith.mulf %219, %223 : vector<64x256xf32>
    %225 = vector.broadcast %204 : vector<1x256xf32> to vector<64x256xf32>
    %226 = arith.mulf %224, %225 : vector<64x256xf32>
    %227 = vector.broadcast %206 : vector<1x256xf32> to vector<64x256xf32>
    %228 = arith.addf %226, %227 : vector<64x256xf32>
    %229 = arith.truncf %228 : vector<64x256xf32> to vector<64x256xbf16>
    %c1_87 = arith.constant 1 : index
    %c0_88 = arith.constant 0 : index
    %c0_89 = arith.constant 0 : index
    %230 = vector.load %arg6[%c1_87, %c0_88, %c0_89] : memref<2x256x768xbf16, #tpu.memory_space<vmem>>, vector<1x256x768xbf16>
    %231 = vector.shape_cast %230 : vector<1x256x768xbf16> to vector<256x768xbf16>
    %cst_90 = arith.constant dense<0.000000e+00> : vector<64x768xf32>
    %232 = tpu.matmul %229, %231, %cst_90 {dimension_numbers = #tpu.dot_dimension_numbers<[1], [0], [0], [1], [0, 0, 1, 1], [], []>} : vector<64x256xbf16>, vector<256x768xbf16>, vector<64x768xf32> -> vector<64x768xf32>
    %233 = vector.extract_strided_slice %232 {offsets = [0, 0], sizes = [64, 256], strides = [1, 1]} : vector<64x768xf32> to vector<64x256xf32>
    %234 = vector.extract_strided_slice %232 {offsets = [0, 256], sizes = [64, 256], strides = [1, 1]} : vector<64x768xf32> to vector<64x256xf32>
    %235 = vector.extract_strided_slice %232 {offsets = [0, 512], sizes = [64, 256], strides = [1, 1]} : vector<64x768xf32> to vector<64x256xf32>
    %c1_91 = arith.constant 1 : index
    %c0_92 = arith.constant 0 : index
    %c0_93 = arith.constant 0 : index
    %236 = vector.load %arg7[%c1_91, %c0_92, %c0_93] : memref<2x256x256xbf16, #tpu.memory_space<vmem>>, vector<1x256x256xbf16>
    %237 = vector.shape_cast %236 : vector<1x256x256xbf16> to vector<256x256xbf16>
    %238 = vector.extract_strided_slice %233 {offsets = [0, 0], sizes = [64, 64], strides = [1, 1]} : vector<64x256xf32> to vector<64x64xf32>
    %239 = arith.truncf %238 : vector<64x64xf32> to vector<64x64xbf16>
    %240 = vector.extract_strided_slice %234 {offsets = [0, 0], sizes = [64, 64], strides = [1, 1]} : vector<64x256xf32> to vector<64x64xf32>
    %241 = arith.truncf %240 : vector<64x64xf32> to vector<64x64xbf16>
    %242 = vector.extract_strided_slice %235 {offsets = [0, 0], sizes = [64, 64], strides = [1, 1]} : vector<64x256xf32> to vector<64x64xf32>
    %243 = arith.truncf %242 : vector<64x64xf32> to vector<64x64xbf16>
    %cst_94 = arith.constant dense<0.000000e+00> : vector<64x64xf32>
    %244 = tpu.matmul %239, %241, %cst_94 {dimension_numbers = #tpu.dot_dimension_numbers<[1], [1], [0], [0], [0, 0, 1, 0], [], []>} : vector<64x64xbf16>, vector<64x64xbf16>, vector<64x64xf32> -> vector<64x64xf32>
    %245 = vector.broadcast %12 : vector<1x64xf32> to vector<64x64xf32>
    %246 = arith.addf %244, %245 : vector<64x64xf32>
    %cst_95 = arith.constant dense<0xFF800000> : vector<64xf32>
    %247 = vector.multi_reduction <maximumf>, %246, %cst_95 [1] : vector<64x64xf32> to vector<64xf32>
    %248 = vector.shape_cast %247 : vector<64xf32> to vector<64x1xf32>
    %249 = vector.broadcast %248 : vector<64x1xf32> to vector<64x64xf32>
    %250 = arith.subf %246, %249 : vector<64x64xf32>
    %251 = math.exp %250 : vector<64x64xf32>
    %cst_96 = arith.constant dense<0.000000e+00> : vector<64xf32>
    %252 = vector.multi_reduction <add>, %251, %cst_96 [1] : vector<64x64xf32> to vector<64xf32>
    %253 = vector.shape_cast %252 : vector<64xf32> to vector<64x1xf32>
    %254 = tpu.reciprocal %253 {approx = true} : vector<64x1xf32> -> vector<64x1xf32>
    %255 = vector.broadcast %254 : vector<64x1xf32> to vector<64x64xf32>
    %256 = arith.mulf %251, %255 : vector<64x64xf32>
    %257 = arith.truncf %256 : vector<64x64xf32> to vector<64x64xbf16>
    %cst_97 = arith.constant dense<0.000000e+00> : vector<64x64xf32>
    %258 = tpu.matmul %257, %243, %cst_97 {dimension_numbers = #tpu.dot_dimension_numbers<[1], [0], [0], [1], [0, 0, 1, 1], [], []>} : vector<64x64xbf16>, vector<64x64xbf16>, vector<64x64xf32> -> vector<64x64xf32>
    %259 = arith.truncf %258 : vector<64x64xf32> to vector<64x64xbf16>
    %260 = vector.extract_strided_slice %237 {offsets = [0, 0], sizes = [64, 256], strides = [1, 1]} : vector<256x256xbf16> to vector<64x256xbf16>
    %cst_98 = arith.constant dense<0.000000e+00> : vector<64x256xf32>
    %261 = tpu.matmul %259, %260, %cst_98 {dimension_numbers = #tpu.dot_dimension_numbers<[1], [0], [0], [1], [0, 0, 1, 1], [], []>} : vector<64x64xbf16>, vector<64x256xbf16>, vector<64x256xf32> -> vector<64x256xf32>
    %262 = vector.extract_strided_slice %233 {offsets = [0, 64], sizes = [64, 64], strides = [1, 1]} : vector<64x256xf32> to vector<64x64xf32>
    %263 = arith.truncf %262 : vector<64x64xf32> to vector<64x64xbf16>
    %264 = vector.extract_strided_slice %234 {offsets = [0, 64], sizes = [64, 64], strides = [1, 1]} : vector<64x256xf32> to vector<64x64xf32>
    %265 = arith.truncf %264 : vector<64x64xf32> to vector<64x64xbf16>
    %266 = vector.extract_strided_slice %235 {offsets = [0, 64], sizes = [64, 64], strides = [1, 1]} : vector<64x256xf32> to vector<64x64xf32>
    %267 = arith.truncf %266 : vector<64x64xf32> to vector<64x64xbf16>
    %cst_99 = arith.constant dense<0.000000e+00> : vector<64x64xf32>
    %268 = tpu.matmul %263, %265, %cst_99 {dimension_numbers = #tpu.dot_dimension_numbers<[1], [1], [0], [0], [0, 0, 1, 0], [], []>} : vector<64x64xbf16>, vector<64x64xbf16>, vector<64x64xf32> -> vector<64x64xf32>
    %269 = vector.broadcast %12 : vector<1x64xf32> to vector<64x64xf32>
    %270 = arith.addf %268, %269 : vector<64x64xf32>
    %cst_100 = arith.constant dense<0xFF800000> : vector<64xf32>
    %271 = vector.multi_reduction <maximumf>, %270, %cst_100 [1] : vector<64x64xf32> to vector<64xf32>
    %272 = vector.shape_cast %271 : vector<64xf32> to vector<64x1xf32>
    %273 = vector.broadcast %272 : vector<64x1xf32> to vector<64x64xf32>
    %274 = arith.subf %270, %273 : vector<64x64xf32>
    %275 = math.exp %274 : vector<64x64xf32>
    %cst_101 = arith.constant dense<0.000000e+00> : vector<64xf32>
    %276 = vector.multi_reduction <add>, %275, %cst_101 [1] : vector<64x64xf32> to vector<64xf32>
    %277 = vector.shape_cast %276 : vector<64xf32> to vector<64x1xf32>
    %278 = tpu.reciprocal %277 {approx = true} : vector<64x1xf32> -> vector<64x1xf32>
    %279 = vector.broadcast %278 : vector<64x1xf32> to vector<64x64xf32>
    %280 = arith.mulf %275, %279 : vector<64x64xf32>
    %281 = arith.truncf %280 : vector<64x64xf32> to vector<64x64xbf16>
    %cst_102 = arith.constant dense<0.000000e+00> : vector<64x64xf32>
    %282 = tpu.matmul %281, %267, %cst_102 {dimension_numbers = #tpu.dot_dimension_numbers<[1], [0], [0], [1], [0, 0, 1, 1], [], []>} : vector<64x64xbf16>, vector<64x64xbf16>, vector<64x64xf32> -> vector<64x64xf32>
    %283 = arith.truncf %282 : vector<64x64xf32> to vector<64x64xbf16>
    %284 = vector.extract_strided_slice %237 {offsets = [64, 0], sizes = [64, 256], strides = [1, 1]} : vector<256x256xbf16> to vector<64x256xbf16>
    %cst_103 = arith.constant dense<0.000000e+00> : vector<64x256xf32>
    %285 = tpu.matmul %283, %284, %cst_103 {dimension_numbers = #tpu.dot_dimension_numbers<[1], [0], [0], [1], [0, 0, 1, 1], [], []>} : vector<64x64xbf16>, vector<64x256xbf16>, vector<64x256xf32> -> vector<64x256xf32>
    %286 = arith.addf %261, %285 : vector<64x256xf32>
    %287 = vector.extract_strided_slice %233 {offsets = [0, 128], sizes = [64, 64], strides = [1, 1]} : vector<64x256xf32> to vector<64x64xf32>
    %288 = arith.truncf %287 : vector<64x64xf32> to vector<64x64xbf16>
    %289 = vector.extract_strided_slice %234 {offsets = [0, 128], sizes = [64, 64], strides = [1, 1]} : vector<64x256xf32> to vector<64x64xf32>
    %290 = arith.truncf %289 : vector<64x64xf32> to vector<64x64xbf16>
    %291 = vector.extract_strided_slice %235 {offsets = [0, 128], sizes = [64, 64], strides = [1, 1]} : vector<64x256xf32> to vector<64x64xf32>
    %292 = arith.truncf %291 : vector<64x64xf32> to vector<64x64xbf16>
    %cst_104 = arith.constant dense<0.000000e+00> : vector<64x64xf32>
    %293 = tpu.matmul %288, %290, %cst_104 {dimension_numbers = #tpu.dot_dimension_numbers<[1], [1], [0], [0], [0, 0, 1, 0], [], []>} : vector<64x64xbf16>, vector<64x64xbf16>, vector<64x64xf32> -> vector<64x64xf32>
    %294 = vector.broadcast %12 : vector<1x64xf32> to vector<64x64xf32>
    %295 = arith.addf %293, %294 : vector<64x64xf32>
    %cst_105 = arith.constant dense<0xFF800000> : vector<64xf32>
    %296 = vector.multi_reduction <maximumf>, %295, %cst_105 [1] : vector<64x64xf32> to vector<64xf32>
    %297 = vector.shape_cast %296 : vector<64xf32> to vector<64x1xf32>
    %298 = vector.broadcast %297 : vector<64x1xf32> to vector<64x64xf32>
    %299 = arith.subf %295, %298 : vector<64x64xf32>
    %300 = math.exp %299 : vector<64x64xf32>
    %cst_106 = arith.constant dense<0.000000e+00> : vector<64xf32>
    %301 = vector.multi_reduction <add>, %300, %cst_106 [1] : vector<64x64xf32> to vector<64xf32>
    %302 = vector.shape_cast %301 : vector<64xf32> to vector<64x1xf32>
    %303 = tpu.reciprocal %302 {approx = true} : vector<64x1xf32> -> vector<64x1xf32>
    %304 = vector.broadcast %303 : vector<64x1xf32> to vector<64x64xf32>
    %305 = arith.mulf %300, %304 : vector<64x64xf32>
    %306 = arith.truncf %305 : vector<64x64xf32> to vector<64x64xbf16>
    %cst_107 = arith.constant dense<0.000000e+00> : vector<64x64xf32>
    %307 = tpu.matmul %306, %292, %cst_107 {dimension_numbers = #tpu.dot_dimension_numbers<[1], [0], [0], [1], [0, 0, 1, 1], [], []>} : vector<64x64xbf16>, vector<64x64xbf16>, vector<64x64xf32> -> vector<64x64xf32>
    %308 = arith.truncf %307 : vector<64x64xf32> to vector<64x64xbf16>
    %309 = vector.extract_strided_slice %237 {offsets = [128, 0], sizes = [64, 256], strides = [1, 1]} : vector<256x256xbf16> to vector<64x256xbf16>
    %cst_108 = arith.constant dense<0.000000e+00> : vector<64x256xf32>
    %310 = tpu.matmul %308, %309, %cst_108 {dimension_numbers = #tpu.dot_dimension_numbers<[1], [0], [0], [1], [0, 0, 1, 1], [], []>} : vector<64x64xbf16>, vector<64x256xbf16>, vector<64x256xf32> -> vector<64x256xf32>
    %311 = arith.addf %286, %310 : vector<64x256xf32>
    %312 = vector.extract_strided_slice %233 {offsets = [0, 192], sizes = [64, 64], strides = [1, 1]} : vector<64x256xf32> to vector<64x64xf32>
    %313 = arith.truncf %312 : vector<64x64xf32> to vector<64x64xbf16>
    %314 = vector.extract_strided_slice %234 {offsets = [0, 192], sizes = [64, 64], strides = [1, 1]} : vector<64x256xf32> to vector<64x64xf32>
    %315 = arith.truncf %314 : vector<64x64xf32> to vector<64x64xbf16>
    %316 = vector.extract_strided_slice %235 {offsets = [0, 192], sizes = [64, 64], strides = [1, 1]} : vector<64x256xf32> to vector<64x64xf32>
    %317 = arith.truncf %316 : vector<64x64xf32> to vector<64x64xbf16>
    %cst_109 = arith.constant dense<0.000000e+00> : vector<64x64xf32>
    %318 = tpu.matmul %313, %315, %cst_109 {dimension_numbers = #tpu.dot_dimension_numbers<[1], [1], [0], [0], [0, 0, 1, 0], [], []>} : vector<64x64xbf16>, vector<64x64xbf16>, vector<64x64xf32> -> vector<64x64xf32>
    %319 = vector.broadcast %12 : vector<1x64xf32> to vector<64x64xf32>
    %320 = arith.addf %318, %319 : vector<64x64xf32>
    %cst_110 = arith.constant dense<0xFF800000> : vector<64xf32>
    %321 = vector.multi_reduction <maximumf>, %320, %cst_110 [1] : vector<64x64xf32> to vector<64xf32>
    %322 = vector.shape_cast %321 : vector<64xf32> to vector<64x1xf32>
    %323 = vector.broadcast %322 : vector<64x1xf32> to vector<64x64xf32>
    %324 = arith.subf %320, %323 : vector<64x64xf32>
    %325 = math.exp %324 : vector<64x64xf32>
    %cst_111 = arith.constant dense<0.000000e+00> : vector<64xf32>
    %326 = vector.multi_reduction <add>, %325, %cst_111 [1] : vector<64x64xf32> to vector<64xf32>
    %327 = vector.shape_cast %326 : vector<64xf32> to vector<64x1xf32>
    %328 = tpu.reciprocal %327 {approx = true} : vector<64x1xf32> -> vector<64x1xf32>
    %329 = vector.broadcast %328 : vector<64x1xf32> to vector<64x64xf32>
    %330 = arith.mulf %325, %329 : vector<64x64xf32>
    %331 = arith.truncf %330 : vector<64x64xf32> to vector<64x64xbf16>
    %cst_112 = arith.constant dense<0.000000e+00> : vector<64x64xf32>
    %332 = tpu.matmul %331, %317, %cst_112 {dimension_numbers = #tpu.dot_dimension_numbers<[1], [0], [0], [1], [0, 0, 1, 1], [], []>} : vector<64x64xbf16>, vector<64x64xbf16>, vector<64x64xf32> -> vector<64x64xf32>
    %333 = arith.truncf %332 : vector<64x64xf32> to vector<64x64xbf16>
    %334 = vector.extract_strided_slice %237 {offsets = [192, 0], sizes = [64, 256], strides = [1, 1]} : vector<256x256xbf16> to vector<64x256xbf16>
    %cst_113 = arith.constant dense<0.000000e+00> : vector<64x256xf32>
    %335 = tpu.matmul %333, %334, %cst_113 {dimension_numbers = #tpu.dot_dimension_numbers<[1], [0], [0], [1], [0, 0, 1, 1], [], []>} : vector<64x64xbf16>, vector<64x256xbf16>, vector<64x256xf32> -> vector<64x256xf32>
    %336 = arith.addf %311, %335 : vector<64x256xf32>
    %337 = arith.addf %202, %336 : vector<64x256xf32>
    %c1_114 = arith.constant 1 : index
    %c0_115 = arith.constant 0 : index
    %c0_116 = arith.constant 0 : index
    %338 = vector.load %arg8[%c1_114, %c0_115, %c0_116] : memref<2x1x256xf32, #tpu.memory_space<vmem>>, vector<1x1x256xf32>
    %339 = vector.shape_cast %338 : vector<1x1x256xf32> to vector<1x256xf32>
    %340 = vector.broadcast %339 : vector<1x256xf32> to vector<64x256xf32>
    %341 = arith.addf %337, %340 : vector<64x256xf32>
    %c1_117 = arith.constant 1 : index
    %c0_118 = arith.constant 0 : index
    %c0_119 = arith.constant 0 : index
    %342 = vector.load %arg9[%c1_117, %c0_118, %c0_119] : memref<2x1x256xf32, #tpu.memory_space<vmem>>, vector<1x1x256xf32>
    %343 = vector.shape_cast %342 : vector<1x1x256xf32> to vector<1x256xf32>
    %c1_120 = arith.constant 1 : index
    %c0_121 = arith.constant 0 : index
    %c0_122 = arith.constant 0 : index
    %344 = vector.load %arg10[%c1_120, %c0_121, %c0_122] : memref<2x1x256xf32, #tpu.memory_space<vmem>>, vector<1x1x256xf32>
    %345 = vector.shape_cast %344 : vector<1x1x256xf32> to vector<1x256xf32>
    %cst_123 = arith.constant dense<0.000000e+00> : vector<64xf32>
    %346 = vector.multi_reduction <add>, %341, %cst_123 [1] : vector<64x256xf32> to vector<64xf32>
    %347 = vector.shape_cast %346 : vector<64xf32> to vector<64x1xf32>
    %cst_124 = arith.constant 2.560000e+02 : f32
    %348 = vector.broadcast %cst_124 : f32 to vector<64x1xf32>
    %349 = arith.divf %347, %348 : vector<64x1xf32>
    %350 = vector.broadcast %349 : vector<64x1xf32> to vector<64x256xf32>
    %351 = arith.subf %341, %350 : vector<64x256xf32>
    %352 = arith.mulf %351, %351 : vector<64x256xf32>
    %cst_125 = arith.constant dense<0.000000e+00> : vector<64xf32>
    %353 = vector.multi_reduction <add>, %352, %cst_125 [1] : vector<64x256xf32> to vector<64xf32>
    %354 = vector.shape_cast %353 : vector<64xf32> to vector<64x1xf32>
    %cst_126 = arith.constant 2.560000e+02 : f32
    %355 = vector.broadcast %cst_126 : f32 to vector<64x1xf32>
    %356 = arith.divf %354, %355 : vector<64x1xf32>
    %357 = vector.broadcast %349 : vector<64x1xf32> to vector<64x256xf32>
    %358 = arith.subf %341, %357 : vector<64x256xf32>
    %cst_127 = arith.constant 9.99999974E-6 : f32
    %359 = vector.broadcast %cst_127 : f32 to vector<64x1xf32>
    %360 = arith.addf %356, %359 : vector<64x1xf32>
    %361 = math.rsqrt %360 : vector<64x1xf32>
    %362 = vector.broadcast %361 : vector<64x1xf32> to vector<64x256xf32>
    %363 = arith.mulf %358, %362 : vector<64x256xf32>
    %364 = vector.broadcast %343 : vector<1x256xf32> to vector<64x256xf32>
    %365 = arith.mulf %363, %364 : vector<64x256xf32>
    %366 = vector.broadcast %345 : vector<1x256xf32> to vector<64x256xf32>
    %367 = arith.addf %365, %366 : vector<64x256xf32>
    %368 = arith.truncf %367 : vector<64x256xf32> to vector<64x256xbf16>
    %c1_128 = arith.constant 1 : index
    %c0_129 = arith.constant 0 : index
    %c0_130 = arith.constant 0 : index
    %369 = vector.load %arg11[%c1_128, %c0_129, %c0_130] : memref<2x256x512xbf16, #tpu.memory_space<vmem>>, vector<1x256x512xbf16>
    %370 = vector.shape_cast %369 : vector<1x256x512xbf16> to vector<256x512xbf16>
    %cst_131 = arith.constant dense<0.000000e+00> : vector<64x512xf32>
    %371 = tpu.matmul %368, %370, %cst_131 {dimension_numbers = #tpu.dot_dimension_numbers<[1], [0], [0], [1], [0, 0, 1, 1], [], []>} : vector<64x256xbf16>, vector<256x512xbf16>, vector<64x512xf32> -> vector<64x512xf32>
    %c1_132 = arith.constant 1 : index
    %c0_133 = arith.constant 0 : index
    %c0_134 = arith.constant 0 : index
    %372 = vector.load %arg12[%c1_132, %c0_133, %c0_134] : memref<2x1x512xf32, #tpu.memory_space<vmem>>, vector<1x1x512xf32>
    %373 = vector.shape_cast %372 : vector<1x1x512xf32> to vector<1x512xf32>
    %374 = vector.broadcast %373 : vector<1x512xf32> to vector<64x512xf32>
    %375 = arith.addf %371, %374 : vector<64x512xf32>
    %cst_135 = arith.constant 5.000000e-01 : f32
    %376 = vector.broadcast %cst_135 : f32 to vector<64x512xf32>
    %377 = arith.mulf %376, %375 : vector<64x512xf32>
    %cst_136 = arith.constant 0.707106769 : f32
    %378 = vector.broadcast %cst_136 : f32 to vector<64x512xf32>
    %379 = arith.mulf %375, %378 : vector<64x512xf32>
    %380 = math.erf %379 : vector<64x512xf32>
    %cst_137 = arith.constant 1.000000e+00 : f32
    %381 = vector.broadcast %cst_137 : f32 to vector<64x512xf32>
    %382 = arith.addf %381, %380 : vector<64x512xf32>
    %383 = arith.mulf %377, %382 : vector<64x512xf32>
    %384 = arith.truncf %383 : vector<64x512xf32> to vector<64x512xbf16>
    %c1_138 = arith.constant 1 : index
    %c0_139 = arith.constant 0 : index
    %c0_140 = arith.constant 0 : index
    %385 = vector.load %arg13[%c1_138, %c0_139, %c0_140] : memref<2x512x256xbf16, #tpu.memory_space<vmem>>, vector<1x512x256xbf16>
    %386 = vector.shape_cast %385 : vector<1x512x256xbf16> to vector<512x256xbf16>
    %cst_141 = arith.constant dense<0.000000e+00> : vector<64x256xf32>
    %387 = tpu.matmul %384, %386, %cst_141 {dimension_numbers = #tpu.dot_dimension_numbers<[1], [0], [0], [1], [0, 0, 1, 1], [], []>} : vector<64x512xbf16>, vector<512x256xbf16>, vector<64x256xf32> -> vector<64x256xf32>
    %388 = arith.addf %341, %387 : vector<64x256xf32>
    %c1_142 = arith.constant 1 : index
    %c0_143 = arith.constant 0 : index
    %c0_144 = arith.constant 0 : index
    %389 = vector.load %arg14[%c1_142, %c0_143, %c0_144] : memref<2x1x256xf32, #tpu.memory_space<vmem>>, vector<1x1x256xf32>
    %390 = vector.shape_cast %389 : vector<1x1x256xf32> to vector<1x256xf32>
    %391 = vector.broadcast %390 : vector<1x256xf32> to vector<64x256xf32>
    %392 = arith.addf %388, %391 : vector<64x256xf32>
    %393 = vector.extract_strided_slice %392 {offsets = [0, 0], sizes = [1, 256], strides = [1, 1]} : vector<64x256xf32> to vector<1x256xf32>
    %c0_145 = arith.constant 0 : index
    %c0_146 = arith.constant 0 : index
    %394 = vector.load %arg15[%c0_145, %c0_146] : memref<1x256xf32, #tpu.memory_space<vmem>>, vector<1x256xf32>
    %c0_147 = arith.constant 0 : index
    %c0_148 = arith.constant 0 : index
    %395 = vector.load %arg16[%c0_147, %c0_148] : memref<1x256xf32, #tpu.memory_space<vmem>>, vector<1x256xf32>
    %cst_149 = arith.constant dense<0.000000e+00> : vector<1xf32>
    %396 = vector.multi_reduction <add>, %393, %cst_149 [1] : vector<1x256xf32> to vector<1xf32>
    %397 = vector.shape_cast %396 : vector<1xf32> to vector<1x1xf32>
    %cst_150 = arith.constant 2.560000e+02 : f32
    %398 = vector.broadcast %cst_150 : f32 to vector<1x1xf32>
    %399 = arith.divf %397, %398 : vector<1x1xf32>
    %400 = vector.broadcast %399 : vector<1x1xf32> to vector<1x256xf32>
    %401 = arith.subf %393, %400 : vector<1x256xf32>
    %402 = arith.mulf %401, %401 : vector<1x256xf32>
    %cst_151 = arith.constant dense<0.000000e+00> : vector<1xf32>
    %403 = vector.multi_reduction <add>, %402, %cst_151 [1] : vector<1x256xf32> to vector<1xf32>
    %404 = vector.shape_cast %403 : vector<1xf32> to vector<1x1xf32>
    %cst_152 = arith.constant 2.560000e+02 : f32
    %405 = vector.broadcast %cst_152 : f32 to vector<1x1xf32>
    %406 = arith.divf %404, %405 : vector<1x1xf32>
    %407 = vector.broadcast %399 : vector<1x1xf32> to vector<1x256xf32>
    %408 = arith.subf %393, %407 : vector<1x256xf32>
    %cst_153 = arith.constant 9.99999974E-6 : f32
    %409 = vector.broadcast %cst_153 : f32 to vector<1x1xf32>
    %410 = arith.addf %406, %409 : vector<1x1xf32>
    %411 = math.rsqrt %410 : vector<1x1xf32>
    %412 = vector.broadcast %411 : vector<1x1xf32> to vector<1x256xf32>
    %413 = arith.mulf %408, %412 : vector<1x256xf32>
    %414 = arith.mulf %413, %394 : vector<1x256xf32>
    %415 = arith.addf %414, %395 : vector<1x256xf32>
    %416 = arith.truncf %415 : vector<1x256xf32> to vector<1x256xbf16>
    %c0_154 = arith.constant 0 : index
    %c0_155 = arith.constant 0 : index
    %417 = vector.load %arg17[%c0_154, %c0_155] : memref<256x1024xbf16, #tpu.memory_space<vmem>>, vector<256x1024xbf16>
    %cst_156 = arith.constant dense<0.000000e+00> : vector<1x1024xf32>
    %418 = tpu.matmul %416, %417, %cst_156 {dimension_numbers = #tpu.dot_dimension_numbers<[1], [0], [0], [1], [0, 0, 1, 1], [], []>} : vector<1x256xbf16>, vector<256x1024xbf16>, vector<1x1024xf32> -> vector<1x1024xf32>
    %c0_157 = arith.constant 0 : index
    %c0_158 = arith.constant 0 : index
    %419 = vector.load %arg18[%c0_157, %c0_158] : memref<1x1024xf32, #tpu.memory_space<vmem>>, vector<1x1024xf32>
    %420 = arith.addf %418, %419 : vector<1x1024xf32>
    %cst_159 = arith.constant 0.000000e+00 : f32
    %421 = vector.broadcast %cst_159 : f32 to vector<1x1024xf32>
    %422 = arith.maximumf %420, %421 : vector<1x1024xf32>
    %423 = arith.truncf %422 : vector<1x1024xf32> to vector<1x1024xbf16>
    %c0_160 = arith.constant 0 : index
    %c0_161 = arith.constant 0 : index
    %424 = vector.load %arg19[%c0_160, %c0_161] : memref<1024x10xbf16, #tpu.memory_space<vmem>>, vector<1024x10xbf16>
    %cst_162 = arith.constant dense<0.000000e+00> : vector<1x10xf32>
    %425 = tpu.matmul %423, %424, %cst_162 {dimension_numbers = #tpu.dot_dimension_numbers<[1], [0], [0], [1], [0, 0, 1, 1], [], []>} : vector<1x1024xbf16>, vector<1024x10xbf16>, vector<1x10xf32> -> vector<1x10xf32>
    %c0_163 = arith.constant 0 : index
    %c0_164 = arith.constant 0 : index
    %426 = vector.load %arg20[%c0_163, %c0_164] : memref<1x10xf32, #tpu.memory_space<vmem>>, vector<1x10xf32>
    %427 = arith.addf %425, %426 : vector<1x10xf32>
    %cst_165 = arith.constant dense<0xFF800000> : vector<1xf32>
    %428 = vector.multi_reduction <maximumf>, %427, %cst_165 [1] : vector<1x10xf32> to vector<1xf32>
    %429 = vector.shape_cast %428 : vector<1xf32> to vector<1x1xf32>
    %430 = vector.broadcast %429 : vector<1x1xf32> to vector<1x10xf32>
    %431 = arith.subf %427, %430 : vector<1x10xf32>
    %432 = math.exp %431 : vector<1x10xf32>
    %cst_166 = arith.constant dense<0.000000e+00> : vector<1xf32>
    %433 = vector.multi_reduction <add>, %432, %cst_166 [1] : vector<1x10xf32> to vector<1xf32>
    %434 = vector.shape_cast %433 : vector<1xf32> to vector<1x1xf32>
    %435 = vector.broadcast %434 : vector<1x1xf32> to vector<1x10xf32>
    %436 = arith.divf %432, %435 : vector<1x10xf32>
    %c0_167 = arith.constant 0 : index
    %c0_168 = arith.constant 0 : index
    %c0_169 = arith.constant 0 : index
    %437 = vector.load %arg21[%c0_167, %c0_168, %c0_169] : memref<1x1x10xf32, #tpu.memory_space<vmem>>, vector<1x1x10xf32>
    %438 = vector.shape_cast %437 : vector<1x1x10xf32> to vector<1x10xf32>
    %439 = vector.shape_cast %436 : vector<1x10xf32> to vector<1x1x10xf32>
    tpu.vector_store %arg21[%c0_167, %c0_168, %c0_169], %439 {strides = array<i32>} : memref<1x1x10xf32, #tpu.memory_space<vmem>>, vector<1x1x10xf32>,
    return
  }
  func.func @transform_0(%arg0: i32) -> (i32, i32, i32) {
    %c0_i32 = arith.constant 0 : i32
    %c0_i32_0 = arith.constant 0 : i32
    %c0_i32_1 = arith.constant 0 : i32
    return %arg0, %c0_i32, %c0_i32_0 : i32, i32, i32
  }
  func.func @transform_1(%arg0: i32) -> (i32, i32) {
    %c0_i32 = arith.constant 0 : i32
    %c0_i32_0 = arith.constant 0 : i32
    %c0_i32_1 = arith.constant 0 : i32
    return %c0_i32, %c0_i32_0 : i32, i32
  }
  func.func @transform_2(%arg0: i32) -> (i32, i32) {
    %c0_i32 = arith.constant 0 : i32
    %c0_i32_0 = arith.constant 0 : i32
    %c0_i32_1 = arith.constant 0 : i32
    return %c0_i32, %c0_i32_0 : i32, i32
  }
  func.func @transform_3(%arg0: i32) -> (i32, i32, i32) {
    %c0_i32 = arith.constant 0 : i32
    %c0_i32_0 = arith.constant 0 : i32
    %c0_i32_1 = arith.constant 0 : i32
    %c0_i32_2 = arith.constant 0 : i32
    return %c0_i32, %c0_i32_0, %c0_i32_1 : i32, i32, i32
  }
  func.func @transform_4(%arg0: i32) -> (i32, i32, i32) {
    %c0_i32 = arith.constant 0 : i32
    %c0_i32_0 = arith.constant 0 : i32
    %c0_i32_1 = arith.constant 0 : i32
    %c0_i32_2 = arith.constant 0 : i32
    return %c0_i32, %c0_i32_0, %c0_i32_1 : i32, i32, i32
  }
  func.func @transform_5(%arg0: i32) -> (i32, i32, i32) {
    %c0_i32 = arith.constant 0 : i32
    %c0_i32_0 = arith.constant 0 : i32
    %c0_i32_1 = arith.constant 0 : i32
    %c0_i32_2 = arith.constant 0 : i32
    return %c0_i32, %c0_i32_0, %c0_i32_1 : i32, i32, i32
  }
  func.func @transform_6(%arg0: i32) -> (i32, i32, i32) {
    %c0_i32 = arith.constant 0 : i32
    %c0_i32_0 = arith.constant 0 : i32
    %c0_i32_1 = arith.constant 0 : i32
    %c0_i32_2 = arith.constant 0 : i32
    return %c0_i32, %c0_i32_0, %c0_i32_1 : i32, i32, i32
  }
  func.func @transform_7(%arg0: i32) -> (i32, i32, i32) {
    %c0_i32 = arith.constant 0 : i32
    %c0_i32_0 = arith.constant 0 : i32
    %c0_i32_1 = arith.constant 0 : i32
    %c0_i32_2 = arith.constant 0 : i32
    return %c0_i32, %c0_i32_0, %c0_i32_1 : i32, i32, i32
  }
  func.func @transform_8(%arg0: i32) -> (i32, i32, i32) {
    %c0_i32 = arith.constant 0 : i32
    %c0_i32_0 = arith.constant 0 : i32
    %c0_i32_1 = arith.constant 0 : i32
    %c0_i32_2 = arith.constant 0 : i32
    return %c0_i32, %c0_i32_0, %c0_i32_1 : i32, i32, i32
  }
  func.func @transform_9(%arg0: i32) -> (i32, i32, i32) {
    %c0_i32 = arith.constant 0 : i32
    %c0_i32_0 = arith.constant 0 : i32
    %c0_i32_1 = arith.constant 0 : i32
    %c0_i32_2 = arith.constant 0 : i32
    return %c0_i32, %c0_i32_0, %c0_i32_1 : i32, i32, i32
  }
  func.func @transform_10(%arg0: i32) -> (i32, i32, i32) {
    %c0_i32 = arith.constant 0 : i32
    %c0_i32_0 = arith.constant 0 : i32
    %c0_i32_1 = arith.constant 0 : i32
    %c0_i32_2 = arith.constant 0 : i32
    return %c0_i32, %c0_i32_0, %c0_i32_1 : i32, i32, i32
  }
  func.func @transform_11(%arg0: i32) -> (i32, i32, i32) {
    %c0_i32 = arith.constant 0 : i32
    %c0_i32_0 = arith.constant 0 : i32
    %c0_i32_1 = arith.constant 0 : i32
    %c0_i32_2 = arith.constant 0 : i32
    return %c0_i32, %c0_i32_0, %c0_i32_1 : i32, i32, i32
  }
  func.func @transform_12(%arg0: i32) -> (i32, i32, i32) {
    %c0_i32 = arith.constant 0 : i32
    %c0_i32_0 = arith.constant 0 : i32
    %c0_i32_1 = arith.constant 0 : i32
    %c0_i32_2 = arith.constant 0 : i32
    return %c0_i32, %c0_i32_0, %c0_i32_1 : i32, i32, i32
  }
  func.func @transform_13(%arg0: i32) -> (i32, i32, i32) {
    %c0_i32 = arith.constant 0 : i32
    %c0_i32_0 = arith.constant 0 : i32
    %c0_i32_1 = arith.constant 0 : i32
    %c0_i32_2 = arith.constant 0 : i32
    return %c0_i32, %c0_i32_0, %c0_i32_1 : i32, i32, i32
  }
  func.func @transform_14(%arg0: i32) -> (i32, i32) {
    %c0_i32 = arith.constant 0 : i32
    %c0_i32_0 = arith.constant 0 : i32
    %c0_i32_1 = arith.constant 0 : i32
    return %c0_i32, %c0_i32_0 : i32, i32
  }
  func.func @transform_15(%arg0: i32) -> (i32, i32) {
    %c0_i32 = arith.constant 0 : i32
    %c0_i32_0 = arith.constant 0 : i32
    %c0_i32_1 = arith.constant 0 : i32
    return %c0_i32, %c0_i32_0 : i32, i32
  }
  func.func @transform_16(%arg0: i32) -> (i32, i32) {
    %c0_i32 = arith.constant 0 : i32
    %c0_i32_0 = arith.constant 0 : i32
    %c0_i32_1 = arith.constant 0 : i32
    return %c0_i32, %c0_i32_0 : i32, i32
  }
  func.func @transform_17(%arg0: i32) -> (i32, i32) {
    %c0_i32 = arith.constant 0 : i32
    %c0_i32_0 = arith.constant 0 : i32
    %c0_i32_1 = arith.constant 0 : i32
    return %c0_i32, %c0_i32_0 : i32, i32
  }
  func.func @transform_18(%arg0: i32) -> (i32, i32) {
    %c0_i32 = arith.constant 0 : i32
    %c0_i32_0 = arith.constant 0 : i32
    %c0_i32_1 = arith.constant 0 : i32
    return %c0_i32, %c0_i32_0 : i32, i32
  }
  func.func @transform_19(%arg0: i32) -> (i32, i32) {
    %c0_i32 = arith.constant 0 : i32
    %c0_i32_0 = arith.constant 0 : i32
    %c0_i32_1 = arith.constant 0 : i32
    return %c0_i32, %c0_i32_0 : i32, i32
  }
  func.func @transform_20(%arg0: i32) -> (i32, i32, i32) {
    %c0_i32 = arith.constant 0 : i32
    %c0_i32_0 = arith.constant 0 : i32
    %c0_i32_1 = arith.constant 0 : i32
    return %arg0, %c0_i32, %c0_i32_0 : i32, i32, i32
  }
}

</mosaic_0001>

<bundles_post_ra>
// kernel: _lambda_.1
= control target key start
LH: loop header
LB: loop body
LE: loop exit
PB: predicated region body
PF: predicated region fallthrough
CT: control target
= control target key end

     0   :  { %s18906_s0 = inlined_call_operand.vmem [shape: f32[2,64,128], index: 0, kind: input, shape index: {}]   ;;  %s18907_s1 = inlined_call_operand.vmem [shape: bf16[128,256], index: 1, kind: input, shape index: {}]   ;;  %s18908_s2 = inlined_call_operand.vmem [shape: f32[64,256], index: 2, kind: input, shape index: {}]   ;;  %s18909_s3 = inlined_call_operand.vmem [shape: f32[2,1,256], index: 3, kind: input, shape index: {}, may-alias: {3,8}]   ;;  %s18910_s4 = inlined_call_operand.vmem [shape: f32[2,1,256], index: 4, kind: input, shape index: {}, may-alias: {4,7,9,13}]   ;;  %s18911_s5 = inlined_call_operand.vmem [shape: bf16[2,256,768], index: 5, kind: input, shape index: {}]   ;;  %s18912_s6 = inlined_call_operand.hbm [shape: bf16[2,256,256], index: 6, kind: input, shape index: {}]   ;;  %s18913_s7 = inlined_call_operand.vmem [shape: f32[2,1,256], index: 7, kind: input, shape index: {}, may-alias: {4,7,9,13}]   ;;  %s18914_s8 = inlined_call_operand.vmem [shape: f32[2,1,256], index: 8, kind: input, shape index: {}, may-alias: {3,8}]   ;;  %s18915_s9 = inlined_call_operand.vmem [shape: f32[2,1,256], index: 9, kind: input, shape index: {}, may-alias: {4,7,9,13}]   ;;  %s18916_s10 = inlined_call_operand.vmem [shape: bf16[2,256,512], index: 10, kind: input, shape index: {}]   ;;  %s18917_s11 = inlined_call_operand.vmem [shape: f32[2,1,512], index: 11, kind: input, shape index: {}]   ;;  %s18918_s12 = inlined_call_operand.vmem [shape: bf16[2,512,256], index: 12, kind: input, shape index: {}]   ;;  %s18919_s13 = inlined_call_operand.vmem [shape: f32[2,1,256], index: 13, kind: input, shape index: {}, may-alias: {4,7,9,13}]   ;;  %s18920_s14 = inlined_call_operand.vmem [shape: f32[1,256], index: 14, kind: input, shape index: {}]   ;;  %s18921_s15 = inlined_call_operand.vmem [shape: f32[1,256], index: 15, kind: input, shape index: {}]   ;;  %s18922_s16 = inlined_call_operand.vmem [shape: bf16[256,1024], index: 16, kind: input, shape index: {}]   ;;  %s18923_s17 = inlined_call_operand.vmem [shape: f32[1,1024], index: 17, kind: input, shape index: {}]   ;;  %s18924_s18 = inlined_call_operand.hbm [shape: bf16[1024,10], index: 18, kind: input, shape index: {}]   ;;  %s18925_s19 = inlined_call_operand.vmem [shape: f32[1,10], index: 19, kind: input, shape index: {}]   ;;  %s18926_s20 = inlined_call_operand.hbm [shape: f32[2,1,10], index: 20, kind: output, shape index: {}]  }
   0x1   :  { %18992 = sst [smem:[#allocation35_spill]] %s18906_s0 }
   0x2   :  { %18993 = sst [smem:[#allocation36_spill]] %s18907_s1 }
   0x3   :  { %18994 = sst [smem:[#allocation37_spill]] %s18908_s2 }
   0x4   :  { %18995 = sst [smem:[#allocation38_spill]] %s18909_s3 }
   0x5   :  { %18996 = sst [smem:[#allocation39_spill]] %s18910_s4 }
   0x6   :  { %18997 = sst [smem:[#allocation40_spill]] %s18911_s5 }
   0x7   :  { %18998 = sst [smem:[#allocation41_spill]] %s18912_s6 }
   0x8   :  { %18999 = sst [smem:[#allocation42_spill]] %s18926_s20 }
   0x9   :  { %25 = vsyncpa [#allocation3], 0 }
   0xa   :  { %26 = vsyncpa [#allocation6], 0 }
   0xb   :  { %27 = vsyncpa [#allocation4], 0 }
   0xc   :  { %29 = vsyncpa [#allocation4 + $0x1], 0  ;;  %s14294_s1 = smov 0   ;;  %s14296_s22 = smov 0  }
   0xd   :  { %s14298_s23 = smov 0   ;;  %s14300_s24 = smov 0  }
   0xe LB: > { %19000 = sst [smem:[#allocation11_spill]] %s14165_s1  ;;  %s14315_s2 = sadd.s32 4294967295, %s14177_s24   ;;  %s14177_s24 = sphi %s14300_s24, %s19119_s24   ;;  %s14173_s23 = sphi %s14298_s23, %s19121_s23   ;;  %s14169_s22 = sphi %s14296_s22, %s19123_s22   ;;  %s14165_s1 = sphi %s14294_s1, %s19122_s1  }
   0xf   : > { %19001 = sst [smem:[#allocation12_spill]] %s14173_s23  ;;  %s11115_s25 = sadd.s32 4294967294, %s14177_s24  }
  0x10   : > { %19002 = sst [smem:[#allocation13_spill]] %s14177_s24  ;;  %s14319_s3 = sadd.s32 1, %s14177_s24  }
  0x11   : > { %19003 = sst [smem:[#allocation14_spill]] %s14319_s3  ;;  %s467_s26 = sadd.s32 1, %s14173_s23 }
  0x12   : > { %s464_s27 = ssub.s32 %s14177_s24, %s14319_s3  ;;  %p477_p0 = scmp.ne.s32.totalorder %s14173_s23, %s14169_s22 }
  0x13   : > { %p465_p1 = scmp.eq.s32.totalorder %s464_s27, 0  ;;  %p478_p2 = scmp.eq.s32.totalorder %s14315_s2, 1 }
  0x14   : > { %p483_p3 = scmp.ne.s32.totalorder %s14169_s22, %s14165_s1  ;;  %p484_p4 = scmp.eq.s32.totalorder %s11115_s25, 1 }
  0x15   : > { %s14330_s28 = scalar_select %p465_p1, %s14173_s23, %s467_s26  }
  0x16   : > { %p14332_p5 = por %p478_p2, %p477_p0  ;;  %p14336_p6 = por %p484_p4, %p483_p3 }
  0x17   : > { %19004 = sst [smem:[#allocation15_spill]] %s14330_s28  ;;  %p11116_p7 = scmp.ge.s32.totalorder %s14177_s24, 1 }
  0x18   : > { %s19006_s29 = scalar_select %p14336_p6, 1, 0 }
  0x19   : > { %p491_p8 = scmp.lt.s32.totalorder %s14177_s24, 3  ;;  %p18935_p9 = scmp.eq.s32.totalorder %s14315_s2, 0 }
  0x1a   : > { %19007 = sst [smem:[#allocation16_spill]] %s19006_s29  ;;  %s14179_s0 = smov [#allocation2]  }
  0x1b   : > { %p14343_p10 = pnand %p11116_p7, %p491_p8  ;;  %s518_s21 = sshll.u32 %s14179_s0, 4  ;;  %s519_s21 = int_to_ptr.vmem [resolvable:$true] %s518_s21 }
  0x1c   : > { %s14180_s26 = smov [#allocation5]   ;;  %s14068_s28 = scalar_lea.vmem %s519_s21, 8192 }
  0x1d   : > { %p12690_p11 = pneg %p14343_p10  ;;  %s564_s27 = sshll.u32 %s14180_s26, 4  ;;  %s565_s27 = int_to_ptr.vmem [resolvable:$true] %s564_s27 }
  0x1e   : > { %p14069_p0 = scmp.ne.s32.totalorder %s519_s21, %s14068_s28  ;;  %p14076_p3 = scmp.lt.s32.totalorder %s519_s21, %s519_s21 }
  0x1f   : > { %p14351_p12 = pnand %p18935_p9, %p12690_p11  ;;  %p14077_p4 = scmp.lt.s32.totalorder %s14068_s28, %s14068_s28 }
  0x21   : > { %p14059_p13 = pneg %p14351_p12  ;;  %p14078_p7 = por %p14077_p4, %p14076_p3 }
  0x23   : > { %p14071_p1 = pnand %p14069_p0, %p14059_p13 }
  0x25   : > { %p14072_p2 = pneg %p14071_p1 }
  0x27   : > { %p14079_p8 = pnand %p14078_p7, %p14072_p2 }
  0x29   : > { %14082 = shalt.err (!%p14079_p8)
}
  0x2a   : > { %s14181_s0 = smov 128   ;;  %s14182_s23 = smov 8  }
  0x2b   : > { %s19010_s6 = sld [smem:[#allocation41_spill]]  ;;  %s14094_s29 = scalar_lea.vmem %s565_s27, 8192 }
  0x2c   : > { %p14095_p11 = scmp.ne.s32.totalorder %s565_s27, %s14094_s29  ;;  %p14102_p9 = scmp.lt.s32.totalorder %s565_s27, %s565_s27 }
  0x2d   : > { %p14103_p6 = scmp.lt.s32.totalorder %s14094_s29, %s14094_s29 }
  0x2e   : > { %p14097_p0 = pnand %p14095_p11, %p14059_p13 }
  0x2f   : > { %p14104_p3 = por %p14103_p6, %p14102_p9 }
  0x30   : > { %p14098_p1 = pneg %p14097_p0 }
  0x31   : > { %12693 = dma.hbm_to_vmem [thread:$0]  (!%p14351_p12), %s19010_s6, 8192, %s519_s21, [#allocation3], %s14181_s0, %s14181_s0, %s14182_s23  }
  0x32   : > { %p14105_p2 = pnand %p14104_p3, %p14098_p1 }
  0x34   : > { %14108 = shalt.err (!%p14105_p2)
}
  0x35   : > { %s14183_s28 = smov 64   ;;  %s14184_s1 = smov 4  }
  0x36   : > { %12696 = dma.hbm_to_vmem [thread:$0]  (!%p14351_p12), %s18924_s18, 8192, %s565_s27, [#allocation6], %s14183_s28, %s14183_s28, %s14184_s1  }
  0x37   : > { %591 = sbr.rel (%p14343_p10) target bundleno = 9352 (0x2488), region = 100 }
  0x3c   : > { %p19011_p4 = scmp.eq.s32.totalorder %s14315_s2, 0 }
  0x3e   : > { %14152 = dma.done.wait (%p19011_p4), [#allocation3], 8192   ;;  %p19012_p13 = pmov %p19011_p4 }
  0x3f   : > { %p19013_p6 = pmov %p19011_p4 }
  0x40   : > { %14154 = vsyncadd (%p19012_p13), [#allocation3], 4294959104 }
  0x41   : > { %14156 = dma.done.wait (%p19013_p6), [#allocation6], 8192   ;;  %p19014_p9 = pmov %p19011_p4 }
  0x42   : > { %v18939_v0 = vmov 0   ;;  %s19015_s23 = sld [smem:[#allocation36_spill]]  ;;  %p652_p10 = scmp.lt.s32.totalorder %s14315_s2, 1  ;;  %vm1891_vm0 = vcmask 523264   ;;  %vm9300_vm2 = vcmask 1040384   ;;  %vm11012_vm3 = vcmask 73728  }
  0x43   : > { %14158 = vsyncadd (%p19014_p9), [#allocation6], 4294959104  ;;  %814 = vmatprep.mubr.bf16.mxu0 %v18939_v0  ;;  %s19017_s6 = sld [smem:[#allocation35_spill]]  ;;  %s18957_s30 = smov 64  }
  0x44   : > { %s653_s28 = scalar_select %p652_p10, %s14315_s2, 1 }
  0x45   : > { %s19018_s24 = sld [smem:[#allocation37_spill]]  ;;  %s19090_s21 = smov 64  }
  0x46   : > { %s12175_s29 = sshll.u32 %s653_s28, 6  ;;  %s19034_s5 = sld [smem:[#allocation40_spill]] }
  0x47   : > { %s650_s0 = sand.u32 1, %s14169_s22   ;;  %s12172_s26 = sshll.u32 %s14315_s2, 4 }
  0x48   : > { %s19016_s3 = smov %s19015_s23  ;;  %v12747_v1 = vld [vmem:[%s19015_s23 + $0x74] ss:$8 sps:$4 sm:$0xff]   ;;  %s651_s1 = scalar_lea.vmem [#allocation7], %s650_s0 }
  0x49   : > { %v12749_v2 = vld [vmem:[%s19016_s3 + $0x70] ss:$8 sps:$4 sm:$0xff]   ;;  %782 = vmatprep.subr.bf16.mxu0 %v12747_v1  ;;  %v12750_v3 = vld [vmem:[%s19016_s3 + $0x64] ss:$8 sps:$4 sm:$0xff]   ;;  %v12752_v4 = vld [vmem:[%s19016_s3 + $0x60] ss:$8 sps:$4 sm:$0xff]   ;;  %s656_s20 = scalar_lea.vmem %s19017_s6, %s12175_s29 }
  0x4a   : > { %783 = vmatpush1.bf16.msra.mxu0 %v12749_v2  ;;  %v12753_v5 = vld [vmem:[%s19016_s3 + $0x54] ss:$8 sps:$4 sm:$0xff]   ;;  %v12755_v6 = vld [vmem:[%s19016_s3 + $0x50] ss:$8 sps:$4 sm:$0xff]   ;;  %v12756_v7 = vld [vmem:[%s19016_s3 + $0x44] ss:$8 sps:$4 sm:$0xff]  }
  0x4b   : > { %784 = vmatprep.subr.bf16.mxu0 %v12750_v3  ;;  %v12758_v8 = vld [vmem:[%s19016_s3 + $0x40] ss:$8 sps:$4 sm:$0xff]   ;;  %v12759_v9 = vld [vmem:[%s19016_s3 + $0x34] ss:$8 sps:$4 sm:$0xff]   ;;  %v12761_v10 = vld [vmem:[%s19016_s3 + $0x30] ss:$8 sps:$4 sm:$0xff]   ;;  %s19019_s29 = smov %s19018_s24 }
  0x4c   : > { %v12762_v11 = vld [vmem:[%s19016_s3 + $0x24] ss:$8 sps:$4 sm:$0xff]   ;;  %v12764_v12 = vld [vmem:[%s19016_s3 + $0x20] ss:$8 sps:$4 sm:$0xff]   ;;  %v12765_v13 = vld [vmem:[%s19016_s3 + $0x14] ss:$8 sps:$4 sm:$0xff]  }
  0x4d   : > { %v12767_v14 = vld [vmem:[%s19016_s3 + $0x10] ss:$8 sps:$4 sm:$0xff]   ;;  %v12768_v15 = vld [vmem:[%s19016_s3 + $0x4] ss:$8 sps:$4 sm:$0xff]   ;;  %v12770_v16 = vld [vmem:[%s19016_s3] ss:$8 sps:$4 sm:$0xff]  }
  0x4e   : > { %785 = vmatpush1.bf16.msra.mxu0 %v12752_v4  ;;  %v658_v17 = vld [vmem:[%s656_s20] sm:$0xff]  ;;  %v659_v18 = vld [vmem:[%s656_s20 + $0x8] sm:$0xff]  ;;  %v660_v20 = vld [vmem:[%s656_s20 + $0x10] sm:$0xff]  ;;  %s19037_s6 = sld [smem:[#allocation39_spill]]  ;;  %s11038_s23 = sshll.u32 %s651_s1, 4  ;;  %s11039_s23 = int_to_ptr.vmem [resolvable:$true] %s11038_s23 }
  0x4f   : > { %786 = vmatprep.subr.bf16.mxu0 %v12753_v5  ;;  %v666_v19 = vpack.c.bf16 %v659_v18, %v658_v17  ;;  %v661_v21 = vld [vmem:[%s656_s20 + $0x18] sm:$0xff]  ;;  %v662_v23 = vld [vmem:[%s656_s20 + $0x20] sm:$0xff]  ;;  %v663_v24 = vld [vmem:[%s656_s20 + $0x28] sm:$0xff]  ;;  %s11026_s25 = scalar_lea.sflag [#allocation4], %s650_s0  ;;  %s14109_s27 = scalar_lea.vmem %s11039_s23, 16 }
  0x50   : > { %v667_v22 = vpack.c.bf16 %v661_v21, %v660_v20  ;;  %v668_v25 = vpack.c.bf16 %v663_v24, %v662_v23  ;;  %v664_v26 = vld [vmem:[%s656_s20 + $0x30] sm:$0xff]  ;;  %v665_v27 = vld [vmem:[%s656_s20 + $0x38] sm:$0xff]  ;;  %v686_v29 = vld [vmem:[%s19018_s24] sm:$0xff]  ;;  %s19036_s20 = sld [smem:[#allocation38_spill]]  ;;  %p14110_p12 = scmp.ne.s32.totalorder %s11039_s23, %s14109_s27 }
  0x51   : > { %v669_v28 = vpack.c.bf16 %v665_v27, %v664_v26  ;;  %v687_v30 = vld [vmem:[%s19019_s29 + $0x8] sm:$0xff]  ;;  %v688_v33 = vld [vmem:[%s19019_s29 + $0x10] sm:$0xff]  ;;  %v689_v34 = vld [vmem:[%s19019_s29 + $0x18] sm:$0xff]  ;;  %s19113_s24 = sld [smem:[#allocation42_spill]] }
  0x52   : > { %787 = vmatpush1.bf16.msra.mxu0 %v12755_v6  ;;  %v690_v42 = vld [vmem:[%s19019_s29 + $0x20] sm:$0xff]  ;;  %v691_v44 = vld [vmem:[%s19019_s29 + $0x28] sm:$0xff]  ;;  %v692_v49 = vld [vmem:[%s19019_s29 + $0x30] sm:$0xff]  ;;  %p14111_p7 = pnand %p14110_p12, %p14332_p5 }
  0x53   : > { %788 = vmatprep.subr.bf16.mxu0 %v12756_v7  ;;  %v693_v51 = vld [vmem:[%s19019_s29 + $0x38] sm:$0xff]  ;;  %v694_v56 = vld [vmem:[%s19019_s29 + $0x40] sm:$0xff]  ;;  %v695_v58 = vld [vmem:[%s19019_s29 + $0x48] sm:$0xff] }
  0x54   : > { %v696_v63 = vld [vmem:[%s19019_s29 + $0x50] sm:$0xff]  ;;  %v697_v2 = vld [vmem:[%s19019_s29 + $0x58] sm:$0xff]  ;;  %v698_v7 = vld [vmem:[%s19019_s29 + $0x60] sm:$0xff]  ;;  %p14112_p8 = pneg %p14111_p7 }
  0x55   : > { %v12773_v23 = vld [vmem:[%s19034_s5 + $0x150] ss:$24 sps:$4 sm:$0xff]   ;;  %v12777_v26 = vld [vmem:[%s19034_s5 + $0x124] ss:$24 sps:$4 sm:$0xff]  }
  0x56   : > { %789 = vmatpush1.bf16.msra.mxu0 %v12758_v8  ;;  %v12774_v24 = vld [vmem:[%s19034_s5 + $0x158] ss:$24 sps:$4 sm:$0xff]   ;;  %v12782_v27 = vld [vmem:[%s19034_s5 + $0x12c] ss:$24 sps:$4 sm:$0xff]  }
  0x57   : > { %790 = vmatprep.subr.bf16.mxu0 %v12759_v9  ;;  %v699_v9 = vld [vmem:[%s19019_s29 + $0x68] sm:$0xff]  ;;  %s19114_s3 = smov %s19113_s24 }
  0x5a   : > { %791 = vmatpush1.bf16.msra.mxu0 %v12761_v10 }
  0x5b   : > { %792 = vmatprep.subr.bf16.mxu0 %v12762_v11 }
  0x5e   : > { %793 = vmatpush1.bf16.msra.mxu0 %v12764_v12 }
  0x5f   : > { %794 = vmatprep.subr.bf16.mxu0 %v12765_v13 }
  0x62   : > { %795 = vmatpush1.bf16.msra.mxu0 %v12767_v14  ;;  %v700_v14 = vld [vmem:[%s19019_s29 + $0x70] sm:$0xff] }
  0x63   : > { %796 = vmatprep.subr.bf16.mxu0 %v12768_v15 }
  0x66   : > { %797 = vmatpush1.bf16.msra.mxu0 %v12770_v16  ;;  %v701_v16 = vld [vmem:[%s19019_s29 + $0x78] sm:$0xff] }
  0x69   : > { %815 = vmatmul.mubr.bf16.vlgmr.msra.gmra.mxu0 %v666_v19 }
  0x6a   : > { %824 = vmatprep.mubr.bf16.mxu0 %v18939_v0 }
  0x71   : > { %825 = vmatmul.mubr.bf16.gmra.mxu0 %v667_v22  ;;  %v12771_v22 = vld [vmem:[%s19034_s5 + $0x154] ss:$24 sps:$4 sm:$0xff]  }
  0x72   : > { %834 = vmatprep.mubr.bf16.mxu0 %v18939_v0  ;;  %1628 = vmatprep.subr.bf16.mxu1 %v12771_v22 }
  0x73   : > { %1629 = vmatpush1.bf16.msra.mxu1 %v12773_v23 }
  0x74   : > { %1630 = vmatprep.subr.bf16.mxu1 %v12777_v26 }
  0x79   : > { %835 = vmatmul.mubr.bf16.gmra.mxu0 %v668_v25  ;;  %v12776_v25 = vld [vmem:[%s19034_s5 + $0x15c] ss:$24 sps:$4 sm:$0xff]  }
  0x7a   : > { %844 = vmatprep.mubr.bf16.mxu0 %v18939_v0  ;;  %1701 = vmatprep.subr.bf16.mxu0 %v12776_v25 }
  0x7b   : > { %1702 = vmatpush1.bf16.msra.mxu0 %v12774_v24 }
  0x7c   : > { %1703 = vmatprep.subr.bf16.mxu0 %v12782_v27 }
  0x81   : > { %845 = vmatmul.mubr.bf16.gmra.mxu0 %v669_v28  ;;  %v12779_v28 = vld [vmem:[%s19034_s5 + $0x120] ss:$24 sps:$4 sm:$0xff]  }
  0x82   : > { %1631 = vmatpush1.bf16.msra.mxu1 %v12779_v28 }
 0x129   : > { %v816_v31 = vpop.f32.mrf.mxu0 }
 0x12a   : > { %v14452_v35 = vadd.f32 %v816_v31, %v686_v29  ;;  %v12780_v29 = vld [vmem:[%s19034_s5 + $0x128] ss:$24 sps:$4 sm:$0xff]   ;;  %v12788_v31 = vld [vmem:[%s19034_s5 + $0xfc] ss:$24 sps:$4 sm:$0xff]  }
 0x12b   : > { %v818_v32 = vpop.f32.mrf.mxu0  ;;  %1704 = vmatpush1.bf16.msra.mxu0 %v12780_v29 }
 0x12c   : > { %v14454_v36 = vadd.f32 %v818_v32, %v687_v30  ;;  %v12783_v30 = vld [vmem:[%s19034_s5 + $0xf4] ss:$24 sps:$4 sm:$0xff]   ;;  %v12785_v32 = vld [vmem:[%s19034_s5 + $0xf0] ss:$24 sps:$4 sm:$0xff]   ;;  %1705 = vmatprep.subr.bf16.mxu0 %v12788_v31 }
 0x12d   : > { %v820_v37 = vpop.f32.mrf.mxu0  ;;  %1632 = vmatprep.subr.bf16.mxu1 %v12783_v30 }
 0x12e   : > { %v861_v38 = vadd.f32 %v14454_v36, %v14452_v35  ;;  %v14458_v40 = vadd.f32 %v820_v37, %v688_v33  ;;  %v12786_v33 = vld [vmem:[%s19034_s5 + $0xf8] ss:$24 sps:$4 sm:$0xff]   ;;  %v12794_v37 = vld [vmem:[%s19034_s5 + $0xcc] ss:$24 sps:$4 sm:$0xff]   ;;  %1633 = vmatpush1.bf16.msra.mxu1 %v12785_v32 }
 0x12f   : > { %v822_v39 = vpop.f32.mrf.mxu0  ;;  %1706 = vmatpush1.bf16.msra.mxu0 %v12786_v33 }
 0x130   : > { %19020 = vst [vmem:[#allocation17_spill] sm:$0xff] %v14458_v40  ;;  %v14460_v41 = vadd.f32 %v822_v39, %v689_v34  ;;  %862 = vadd.xlane.f32.xlu0 %v861_v38  ;;  %v12789_v34 = vld [vmem:[%s19034_s5 + $0xc4] ss:$24 sps:$4 sm:$0xff]   ;;  %v12791_v38 = vld [vmem:[%s19034_s5 + $0xc0] ss:$24 sps:$4 sm:$0xff]   ;;  %1707 = vmatprep.subr.bf16.mxu0 %v12794_v37 }
 0x131   : > { %v826_v43 = vpop.f32.mrf.mxu0  ;;  %1634 = vmatprep.subr.bf16.mxu1 %v12789_v34  ;;  %v12792_v39 = vld [vmem:[%s19034_s5 + $0xc8] ss:$24 sps:$4 sm:$0xff]  }
 0x132   : > { %19021 = vst [vmem:[#allocation18_spill] sm:$0xff] %v14460_v41  ;;  %v864_v45 = vadd.f32 %v14460_v41, %v14458_v40  ;;  %v14470_v47 = vadd.f32 %v826_v43, %v690_v42  ;;  %v12795_v42 = vld [vmem:[%s19034_s5 + $0x94] ss:$24 sps:$4 sm:$0xff]   ;;  %1635 = vmatpush1.bf16.msra.mxu1 %v12791_v38 }
 0x133   : > { %v828_v46 = vpop.f32.mrf.mxu0  ;;  %v12800_v43 = vld [vmem:[%s19034_s5 + $0x9c] ss:$24 sps:$4 sm:$0xff]   ;;  %1708 = vmatpush1.bf16.msra.mxu0 %v12792_v39  ;;  %1636 = vmatprep.subr.bf16.mxu1 %v12795_v42 }
 0x134   : > { %19022 = vst [vmem:[#allocation19_spill] sm:$0xff] %v14470_v47  ;;  %v14472_v48 = vadd.f32 %v828_v46, %v691_v44  ;;  %865 = vadd.xlane.f32.xlu0 %v864_v45  ;;  %v12797_v44 = vld [vmem:[%s19034_s5 + $0x90] ss:$24 sps:$4 sm:$0xff]   ;;  %v12801_v46 = vld [vmem:[%s19034_s5 + $0x64] ss:$24 sps:$4 sm:$0xff]   ;;  %1709 = vmatprep.subr.bf16.mxu0 %v12800_v43 }
 0x135   : > { %v830_v50 = vpop.f32.mrf.mxu0  ;;  %v12798_v45 = vld [vmem:[%s19034_s5 + $0x98] ss:$24 sps:$4 sm:$0xff]  }
 0x136   : > { %19023 = vst [vmem:[#allocation20_spill] sm:$0xff] %v14472_v48  ;;  %v867_v52 = vadd.f32 %v14472_v48, %v14470_v47  ;;  %v14482_v54 = vadd.f32 %v830_v50, %v692_v49  ;;  %v12806_v49 = vld [vmem:[%s19034_s5 + $0x6c] ss:$24 sps:$4 sm:$0xff]   ;;  %1637 = vmatpush1.bf16.msra.mxu1 %v12797_v44  ;;  %v12803_v50 = vld [vmem:[%s19034_s5 + $0x60] ss:$24 sps:$4 sm:$0xff]  }
 0x137   : > { %v832_v53 = vpop.f32.mrf.mxu0  ;;  %1710 = vmatpush1.bf16.msra.mxu0 %v12798_v45  ;;  %1638 = vmatprep.subr.bf16.mxu1 %v12801_v46 }
 0x138   : > { %19024 = vst [vmem:[#allocation21_spill] sm:$0xff] %v14482_v54  ;;  %v14484_v55 = vadd.f32 %v832_v53, %v693_v51  ;;  %868 = vadd.xlane.f32.xlu1 %v867_v52  ;;  %v12804_v51 = vld [vmem:[%s19034_s5 + $0x68] ss:$24 sps:$4 sm:$0xff]   ;;  %v12807_v52 = vld [vmem:[%s19034_s5 + $0x34] ss:$24 sps:$4 sm:$0xff]   ;;  %1711 = vmatprep.subr.bf16.mxu0 %v12806_v49 }
 0x139   : > { %v836_v57 = vpop.f32.mrf.mxu0  ;;  %v12812_v53 = vld [vmem:[%s19034_s5 + $0x3c] ss:$24 sps:$4 sm:$0xff]  }
 0x13a   : > { %19025 = vst [vmem:[#allocation22_spill] sm:$0xff] %v14484_v55  ;;  %v870_v59 = vadd.f32 %v14484_v55, %v14482_v54  ;;  %v14494_v61 = vadd.f32 %v836_v57, %v694_v56  ;;  %1639 = vmatpush1.bf16.msra.mxu1 %v12803_v50  ;;  %v12809_v56 = vld [vmem:[%s19034_s5 + $0x30] ss:$24 sps:$4 sm:$0xff]   ;;  %v12825_v49 = vld [vmem:[%s19034_s5 + $0x2a4] ss:$24 sps:$4 sm:$0xff]  }
 0x13b   : > { %v838_v60 = vpop.f32.mrf.mxu0  ;;  %1712 = vmatpush1.bf16.msra.mxu0 %v12804_v51  ;;  %1640 = vmatprep.subr.bf16.mxu1 %v12807_v52  ;;  %v12810_v57 = vld [vmem:[%s19034_s5 + $0x38] ss:$24 sps:$4 sm:$0xff]   ;;  %v12830_v52 = vld [vmem:[%s19034_s5 + $0x2ac] ss:$24 sps:$4 sm:$0xff]  }
 0x13c   : > { %19026 = vst [vmem:[#allocation23_spill] sm:$0xff] %v14494_v61  ;;  %v14496_v62 = vadd.f32 %v838_v60, %v695_v58  ;;  %871 = vadd.xlane.f32.xlu1 %v870_v59  ;;  %v12813_v58 = vld [vmem:[%s19034_s5 + $0x4] ss:$24 sps:$4 sm:$0xff]   ;;  %1713 = vmatprep.subr.bf16.mxu0 %v12812_v53  ;;  %v12815_v60 = vld [vmem:[%s19034_s5] ss:$24 sps:$4 sm:$0xff]  }
 0x13d   : > { %v840_v1 = vpop.f32.mrf.mxu0  ;;  %v12818_v59 = vld [vmem:[%s19034_s5 + $0xc] ss:$24 sps:$4 sm:$0xff]   ;;  %v12827_v51 = vld [vmem:[%s19034_s5 + $0x2a0] ss:$24 sps:$4 sm:$0xff]  }
 0x13e   : > { %19027 = vst [vmem:[#allocation24_spill] sm:$0xff] %v14496_v62  ;;  %v873_v3 = vadd.f32 %v14496_v62, %v14494_v61  ;;  %v14506_v5 = vadd.f32 %v840_v1, %v696_v63  ;;  %1641 = vmatpush1.bf16.msra.mxu1 %v12809_v56  ;;  %v12816_v63 = vld [vmem:[%s19034_s5 + $0x8] ss:$24 sps:$4 sm:$0xff]   ;;  %v12819_v1 = vld [vmem:[%s19034_s5 + $0x2d4] ss:$24 sps:$4 sm:$0xff]  }
 0x13f   : > { %v842_v4 = vpop.f32.mrf.mxu0  ;;  %1714 = vmatpush1.bf16.msra.mxu0 %v12810_v57  ;;  %1642 = vmatprep.subr.bf16.mxu1 %v12813_v58  ;;  %v12828_v58 = vld [vmem:[%s19034_s5 + $0x2a8] ss:$24 sps:$4 sm:$0xff]  }
 0x140   : > { %19028 = vst [vmem:[#allocation25_spill] sm:$0xff] %v14506_v5  ;;  %v14508_v6 = vadd.f32 %v842_v4, %v697_v2  ;;  %874 = vadd.xlane.f32.xlu0 %v873_v3  ;;  %1715 = vmatprep.subr.bf16.mxu0 %v12818_v59  ;;  %v12824_v2 = vld [vmem:[%s19034_s5 + $0x2dc] ss:$24 sps:$4 sm:$0xff]   ;;  %v12821_v3 = vld [vmem:[%s19034_s5 + $0x2d0] ss:$24 sps:$4 sm:$0xff]  }
 0x141   : > { %v846_v8 = vpop.f32.mrf.mxu0  ;;  %v12822_v4 = vld [vmem:[%s19034_s5 + $0x2d8] ss:$24 sps:$4 sm:$0xff]  }
 0x142   : > { %19029 = vst [vmem:[#allocation26_spill] sm:$0xff] %v14508_v6  ;;  %v876_v10 = vadd.f32 %v14508_v6, %v14506_v5  ;;  %v14518_v12 = vadd.f32 %v846_v8, %v698_v7  ;;  %1643 = vmatpush1.bf16.msra.mxu1 %v12815_v60 }
 0x143   : > { %v848_v11 = vpop.f32.mrf.mxu0  ;;  %1716 = vmatpush1.bf16.msra.mxu0 %v12816_v63  ;;  %1644 = vmatprep.subr.bf16.mxu1 %v12819_v1  ;;  %v12831_v1 = vld [vmem:[%s19034_s5 + $0x274] ss:$24 sps:$4 sm:$0xff]  }
 0x144   : > { %19030 = vst [vmem:[#allocation27_spill] sm:$0xff] %v14518_v12  ;;  %v14520_v13 = vadd.f32 %v848_v11, %v699_v9  ;;  %877 = vadd.xlane.f32.xlu1 %v876_v10  ;;  %1717 = vmatprep.subr.bf16.mxu0 %v12824_v2 }
 0x145   : > { %v850_v15 = vpop.f32.mrf.mxu0 }
 0x146   : > { %19031 = vst [vmem:[#allocation28_spill] sm:$0xff] %v14520_v13  ;;  %v879_v17 = vadd.f32 %v14520_v13, %v14518_v12  ;;  %v14530_v19 = vadd.f32 %v850_v15, %v700_v14  ;;  %1645 = vmatpush2.bf16.msra.mxu1 %v12821_v3  ;;  %v12833_v3 = vld [vmem:[%s19034_s5 + $0x270] ss:$24 sps:$4 sm:$0xff]  }
 0x147   : > { %v852_v18 = vpop.f32.mrf.mxu0  ;;  %1718 = vmatpush2.bf16.msra.mxu0 %v12822_v4  ;;  %1646 = vmatprep.subr.bf16.mxu1 %v12825_v49  ;;  %v12836_v4 = vld [vmem:[%s19034_s5 + $0x27c] ss:$24 sps:$4 sm:$0xff]  }
 0x148   : > { %19032 = vst [vmem:[#allocation29_spill] sm:$0xff] %v14530_v19  ;;  %v14532_v20 = vadd.f32 %v852_v18, %v701_v16  ;;  %880 = vadd.xlane.f32.xlu0 %v879_v17  ;;  %1719 = vmatprep.subr.bf16.mxu0 %v12830_v52  ;;  %v12849_v52 = vld [vmem:[%s19034_s5 + $0x1e4] ss:$24 sps:$4 sm:$0xff]  }
 0x14a   : > { %19033 = vst [vmem:[#allocation30_spill] sm:$0xff] %v14532_v20  ;;  %v882_v21 = vadd.f32 %v14532_v20, %v14530_v19  ;;  %1647 = vmatpush2.bf16.msra.mxu1 %v12827_v51 }
 0x14b   : > { %1720 = vmatpush2.bf16.msra.mxu0 %v12828_v58  ;;  %1648 = vmatprep.subr.bf16.mxu1 %v12831_v1  ;;  %v12855_v58 = vld [vmem:[%s19034_s5 + $0x1b4] ss:$24 sps:$4 sm:$0xff]  }
 0x14c   : > { %883 = vadd.xlane.f32.xlu1 %v882_v21  ;;  %1721 = vmatprep.subr.bf16.mxu0 %v12836_v4  ;;  %v12860_v1 = vld [vmem:[%s19034_s5 + $0x1bc] ss:$24 sps:$4 sm:$0xff]   ;;  %v12863_v4 = vld [vmem:[%s19034_s5 + $0x180] ss:$24 sps:$4 sm:$0xff]  }
 0x14e   : > { %1649 = vmatpush2.bf16.msra.mxu1 %v12833_v3  ;;  %v12861_v3 = vld [vmem:[%s19034_s5 + $0x184] ss:$24 sps:$4 sm:$0xff]  }
 0x1b9   : > { %v863_v7 = vpop.xlane.xlu0 %862 }
 0x1ba   : > { %v886_v8 = vmul.f32 0.00390625, %v863_v7 }
 0x1bc   : > { %v14645_v9 = vsub.f32 %v14452_v35, %v886_v8  ;;  %v14648_v10 = vsub.f32 %v14454_v36, %v886_v8 }
 0x1bd   : > { %v866_v11 = vpop.xlane.xlu0 %865 }
 0x1be   : > { %v887_v14 = vmul.f32 0.00390625, %v866_v11  ;;  %v910_v15 = vmul.f32 %v14645_v9, %v14645_v9  ;;  %v911_v16 = vmul.f32 %v14648_v10, %v14648_v10 }
 0x1c0   : > { %v14655_v17 = vsub.f32 %v14458_v40, %v887_v14  ;;  %v14658_v18 = vsub.f32 %v14460_v41, %v887_v14  ;;  %v926_v21 = vadd.f32 %v911_v16, %v910_v15  ;;  %v12834_v14 = vld [vmem:[%s19034_s5 + $0x278] ss:$24 sps:$4 sm:$0xff]  }
 0x1c1   : > { %v869_v22 = vpop.xlane.xlu1 %868  ;;  %1722 = vmatpush2.bf16.msra.mxu0 %v12834_v14 }
 0x1c2   : > { %v888_v23 = vmul.f32 0.00390625, %v869_v22  ;;  %927 = vadd.xlane.f32.xlu0 %v926_v21  ;;  %v912_v24 = vmul.f32 %v14655_v17, %v14655_v17  ;;  %v913_v25 = vmul.f32 %v14658_v18, %v14658_v18  ;;  %v12837_v22 = vld [vmem:[%s19034_s5 + $0x244] ss:$24 sps:$4 sm:$0xff]  }
 0x1c3   : > { %1650 = vmatprep.subr.bf16.mxu1 %v12837_v22 }
 0x1c4   : > { %v14665_v26 = vsub.f32 %v14470_v47, %v888_v23  ;;  %v14668_v27 = vsub.f32 %v14472_v48, %v888_v23  ;;  %v929_v28 = vadd.f32 %v913_v25, %v912_v24  ;;  %v12839_v24 = vld [vmem:[%s19034_s5 + $0x240] ss:$24 sps:$4 sm:$0xff]   ;;  %v12842_v25 = vld [vmem:[%s19034_s5 + $0x24c] ss:$24 sps:$4 sm:$0xff]  }
 0x1c5   : > { %v872_v29 = vpop.xlane.xlu1 %871  ;;  %1651 = vmatpush2.bf16.msra.mxu1 %v12839_v24  ;;  %1723 = vmatprep.subr.bf16.mxu0 %v12842_v25  ;;  %v855_v25 = vlaneseq }
 0x1c6   : > { %v889_v30 = vmul.f32 0.00390625, %v872_v29  ;;  %930 = vadd.xlane.f32.xlu1 %v929_v28  ;;  %v914_v31 = vmul.f32 %v14665_v26, %v14665_v26  ;;  %v915_v32 = vmul.f32 %v14668_v27, %v14668_v27 }
 0x1c8   : > { %v14675_v33 = vsub.f32 %v14482_v54, %v889_v30  ;;  %v14678_v34 = vsub.f32 %v14484_v55, %v889_v30  ;;  %v932_v37 = vadd.f32 %v915_v32, %v914_v31  ;;  %v12840_v31 = vld [vmem:[%s19034_s5 + $0x248] ss:$24 sps:$4 sm:$0xff]  }
 0x1c9   : > { %v875_v38 = vpop.xlane.xlu0 %874  ;;  %1724 = vmatpush2.bf16.msra.mxu0 %v12840_v31  ;;  %v14812_v31 = vshrl.u32 %v855_v25, 7 }
 0x1ca   : > { %v890_v39 = vmul.f32 0.00390625, %v875_v38  ;;  %933 = vadd.xlane.f32.xlu0 %v932_v37  ;;  %v916_v42 = vmul.f32 %v14675_v33, %v14675_v33  ;;  %v917_v43 = vmul.f32 %v14678_v34, %v14678_v34 }
 0x1cb   : > { %19035 = vst [vmem:[#allocation31_spill] sm:$0xff] %v14812_v31 }
 0x1cc   : > { %v14685_v44 = vsub.f32 %v14494_v61, %v890_v39  ;;  %v14688_v45 = vsub.f32 %v14496_v62, %v890_v39  ;;  %v935_v46 = vadd.f32 %v917_v43, %v916_v42  ;;  %v12843_v39 = vld [vmem:[%s19034_s5 + $0x214] ss:$24 sps:$4 sm:$0xff]   ;;  %v12845_v42 = vld [vmem:[%s19034_s5 + $0x210] ss:$24 sps:$4 sm:$0xff]  }
 0x1cd   : > { %v878_v50 = vpop.xlane.xlu1 %877  ;;  %v12848_v43 = vld [vmem:[%s19034_s5 + $0x21c] ss:$24 sps:$4 sm:$0xff]   ;;  %1652 = vmatprep.subr.bf16.mxu1 %v12843_v39 }
 0x1ce   : > { %v891_v53 = vmul.f32 0.00390625, %v878_v50  ;;  %936 = vadd.xlane.f32.xlu1 %v935_v46  ;;  %v918_v56 = vmul.f32 %v14685_v44, %v14685_v44  ;;  %v919_v57 = vmul.f32 %v14688_v45, %v14688_v45  ;;  %v12846_v50 = vld [vmem:[%s19034_s5 + $0x218] ss:$24 sps:$4 sm:$0xff]   ;;  %1653 = vmatpush2.bf16.msra.mxu1 %v12845_v42 }
 0x1cf   : > { %1725 = vmatprep.subr.bf16.mxu0 %v12848_v43  ;;  %1654 = vmatprep.subr.bf16.mxu1 %v12849_v52  ;;  %v14815_v43 = vsub.s32 1, %v14812_v31 }
 0x1d0   : > { %v14707_v59 = vsub.f32 %v14506_v5, %v891_v53  ;;  %v14710_v60 = vsub.f32 %v14508_v6, %v891_v53  ;;  %v938_v63 = vadd.f32 %v919_v57, %v918_v56  ;;  %1726 = vmatpush2.bf16.msra.mxu0 %v12846_v50  ;;  %v12851_v53 = vld [vmem:[%s19034_s5 + $0x1e0] ss:$24 sps:$4 sm:$0xff]   ;;  %v12854_v56 = vld [vmem:[%s19034_s5 + $0x1ec] ss:$24 sps:$4 sm:$0xff]  }
 0x1d1   : > { %v881_v2 = vpop.xlane.xlu0 %880  ;;  %v12852_v57 = vld [vmem:[%s19034_s5 + $0x1e8] ss:$24 sps:$4 sm:$0xff]   ;;  %1727 = vmatprep.subr.bf16.mxu0 %v12854_v56 }
 0x1d2   : > { %v892_v7 = vmul.f32 0.00390625, %v881_v2  ;;  %939 = vadd.xlane.f32.xlu0 %v938_v63  ;;  %v920_v8 = vmul.f32 %v14707_v59, %v14707_v59  ;;  %v921_v11 = vmul.f32 %v14710_v60, %v14710_v60  ;;  %1655 = vmatpush2.bf16.msra.mxu1 %v12851_v53  ;;  %v12857_v63 = vld [vmem:[%s19034_s5 + $0x1b0] ss:$24 sps:$4 sm:$0xff]   ;;  %v859_v50 = vld [vmem:[%s19036_s20] sm:$0x3] }
 0x1d3   : > { %1656 = vmatprep.subr.bf16.mxu1 %v12855_v58  ;;  %v12858_v2 = vld [vmem:[%s19034_s5 + $0x1b8] ss:$24 sps:$4 sm:$0xff]   ;;  %v14824_v56 = vrot.slane %v859_v50, %v14815_v43 }
 0x1d4   : > { %v14729_v15 = vsub.f32 %v14518_v12, %v892_v7  ;;  %v14732_v16 = vsub.f32 %v14520_v13, %v892_v7  ;;  %v941_v21 = vadd.f32 %v921_v11, %v920_v8  ;;  %1728 = vmatpush2.bf16.msra.mxu0 %v12852_v57  ;;  %v12866_v7 = vld [vmem:[%s19034_s5 + $0x18c] ss:$24 sps:$4 sm:$0xff]   ;;  %v12864_v8 = vld [vmem:[%s19034_s5 + $0x188] ss:$24 sps:$4 sm:$0xff]  }
 0x1d5   : > { %v884_v23 = vpop.xlane.xlu1 %883  ;;  %1729 = vmatprep.subr.bf16.mxu0 %v12860_v1  ;;  %v12869_v11 = vld [vmem:[%s19034_s5 + $0x164] ss:$24 sps:$4 sm:$0xff]  }
 0x1d6   : > { %v893_v28 = vmul.f32 0.00390625, %v884_v23  ;;  %942 = vadd.xlane.f32.xlu1 %v941_v21  ;;  %v922_v29 = vmul.f32 %v14729_v15, %v14729_v15  ;;  %v923_v30 = vmul.f32 %v14732_v16, %v14732_v16  ;;  %1657 = vmatpush2.bf16.msra.mxu1 %v12857_v63  ;;  %v860_v63 = vld [vmem:[%s19037_s6] sm:$0x3] }
 0x1d7   : > { %1658 = vmatprep.subr.bf16.mxu1 %v12861_v3 }
 0x1d8   : > { %v14751_v32 = vsub.f32 %v14530_v19, %v893_v28  ;;  %v14754_v37 = vsub.f32 %v14532_v20, %v893_v28  ;;  %v944_v38 = vadd.f32 %v923_v30, %v922_v29  ;;  %1730 = vmatpush2.bf16.msra.mxu0 %v12858_v2 }
 0x1d9   : > { %1731 = vmatprep.subr.bf16.mxu0 %v12866_v7 }
 0x1da   : > { %945 = vadd.xlane.f32.xlu0 %v944_v38  ;;  %v924_v46 = vmul.f32 %v14751_v32, %v14751_v32  ;;  %v925_v49 = vmul.f32 %v14754_v37, %v14754_v37  ;;  %1659 = vmatpush2.bf16.msra.mxu1 %v12863_v4 }
 0x1db   : > { %1774 = vmatprep.subr.bf16.mxu1 %v12869_v11  ;;  %v14836_v11 = vrot.slane %v860_v63, %v14815_v43 }
 0x1dc   : > { %v947_v51 = vadd.f32 %v925_v49, %v924_v46  ;;  %1732 = vmatpush2.bf16.msra.mxu0 %v12864_v8  ;;  %v14818_v46 = vsub.s32 0, %v14812_v31 }
 0x1de   : > { %948 = vadd.xlane.f32.xlu1 %v947_v51  ;;  %v14827_v57 = vrot.slane %v859_v50, %v14818_v46 }
 0x24b   : > { %v928_v14 = vpop.xlane.xlu0 %927 }
 0x24c   : > { %v950_v21 = vmul.f32 0.00390625, %v928_v14 }
 0x24e   : > { %v958_v22 = vadd.f32 1e-05, %v950_v21  ;;  %v14840_v21 = vrot.slane %v860_v63, %v14818_v46 }
 0x24f   : > { %v931_v23 = vpop.xlane.xlu1 %930 }
 0x250   : > { %13603 = vrsqrt.f32 %v958_v22  ;;  %v951_v24 = vmul.f32 0.00390625, %v931_v23 }
 0x252   : > { %v959_v28 = vadd.f32 1e-05, %v951_v24 }
 0x253   : > { %v934_v29 = vpop.xlane.xlu0 %933 }
 0x254   : > { %13605 = vrsqrt.f32 %v959_v28  ;;  %v952_v30 = vmul.f32 0.00390625, %v934_v29 }
 0x256   : > { %v960_v38 = vadd.f32 1e-05, %v952_v30 }
 0x257   : > { %v937_v39 = vpop.xlane.xlu1 %936 }
 0x258   : > { %13607 = vrsqrt.f32 %v960_v38  ;;  %v953_v42 = vmul.f32 0.00390625, %v937_v39 }
 0x25a   : > { %v961_v49 = vadd.f32 1e-05, %v953_v42 }
 0x25b   : > { %v940_v51 = vpop.xlane.xlu0 %939 }
 0x25c   : > { %13609 = vrsqrt.f32 %v961_v49  ;;  %v954_v52 = vmul.f32 0.00390625, %v940_v51 }
 0x25d   : > { %v13604_v53 = vpop.eup %13603 }
 0x25e   : > { %v962_v58 = vadd.f32 1e-05, %v954_v52  ;;  %v975_v1 = vmul.f32 %v13604_v53, %v14648_v10  ;;  %v974_v2 = vmul.f32 %v13604_v53, %v14645_v9 }
 0x25f   : > { %v943_v3 = vpop.xlane.xlu1 %942 }
 0x260   : > { %13611 = vrsqrt.f32 %v962_v58  ;;  %v955_v4 = vmul.f32 0.00390625, %v943_v3  ;;  %v1002_v8 = vmul.f32 %v14824_v56, %v975_v1  ;;  %v1001_v14 = vmul.f32 %v14827_v57, %v974_v2  ;;  %v12867_v58 = vld [vmem:[%s19034_s5 + $0x160] ss:$24 sps:$4 sm:$0xff]   ;;  %v12872_v2 = vld [vmem:[%s19034_s5 + $0x134] ss:$24 sps:$4 sm:$0xff]  }
 0x261   : > { %v13606_v7 = vpop.eup %13605 }
 0x262   : > { %v963_v22 = vadd.f32 1e-05, %v955_v4  ;;  %v977_v23 = vmul.f32 %v13606_v7, %v14658_v18  ;;  %v976_v10 = vmul.f32 %v13606_v7, %v14655_v17  ;;  %v1029_v38 = vadd.f32 %v14836_v11, %v1002_v8  ;;  %v12870_v8 = vld [vmem:[%s19034_s5 + $0x130] ss:$24 sps:$4 sm:$0xff]  }
 0x263   : > { %v946_v9 = vpop.xlane.xlu0 %945  ;;  %v1028_v39 = vadd.f32 %v14840_v21, %v1001_v14 }
 0x264   : > { %13613 = vrsqrt.f32 %v963_v22  ;;  %v956_v24 = vmul.f32 0.00390625, %v946_v9  ;;  %v1004_v28 = vmul.f32 %v14824_v56, %v977_v23  ;;  %v1003_v29 = vmul.f32 %v14827_v57, %v976_v10 }
 0x265   : > { %v13608_v30 = vpop.eup %13607 }
 0x266   : > { %v964_v42 = vadd.f32 1e-05, %v956_v24  ;;  %v1031_v49 = vadd.f32 %v14836_v11, %v1004_v28  ;;  %v1030_v50 = vadd.f32 %v14840_v21, %v1003_v29  ;;  %v979_v18 = vmul.f32 %v13608_v30, %v14668_v27 }
 0x267   : > { %v949_v17 = vpop.xlane.xlu1 %948  ;;  %v978_v51 = vmul.f32 %v13608_v30, %v14665_v26 }
 0x268   : > { %13615 = vrsqrt.f32 %v964_v42  ;;  %v957_v52 = vmul.f32 0.00390625, %v949_v17  ;;  %v14852_v53 = vpack.c.bf16 %v1031_v49, %v1029_v38  ;;  %v14857_v63 = vpack.c.bf16 %v1030_v50, %v1028_v39  ;;  %v12873_v38 = vld [vmem:[%s19034_s5 + $0x100] ss:$24 sps:$4 sm:$0xff]   ;;  %v12878_v49 = vld [vmem:[%s19034_s5 + $0xd4] ss:$24 sps:$4 sm:$0xff]  }
 0x269   : > { %v13610_v1 = vpop.eup %13609  ;;  %v1006_v27 = vmul.f32 %v14824_v56, %v979_v18  ;;  %v1005_v3 = vmul.f32 %v14827_v57, %v978_v51  ;;  %v12876_v17 = vld [vmem:[%s19034_s5 + $0xd0] ss:$24 sps:$4 sm:$0xff]  }
 0x26a   : > { %v965_v26 = vadd.f32 1e-05, %v957_v52  ;;  %1660 = vmatprep.mubr.bf16.mxu1 %v14852_v53  ;;  %1733 = vmatprep.mubr.bf16.mxu0 %v14852_v53  ;;  %v981_v4 = vmul.f32 %v13610_v1, %v14678_v34  ;;  %v980_v7 = vmul.f32 %v13610_v1, %v14675_v33  ;;  %v12875_v33 = vld [vmem:[%s19034_s5 + $0x104] ss:$24 sps:$4 sm:$0xff]  }
 0x26b   : > { %1661 = vmatmul.mubr.bf16.vlgmr.msra.gmra.mxu1 %v14857_v63  ;;  %1734 = vmatmul.mubr.bf16.vlgmr.msra.gmra.mxu0 %v14857_v63  ;;  %v1033_v34 = vadd.f32 %v14836_v11, %v1006_v27  ;;  %v1032_v10 = vadd.f32 %v14840_v21, %v1005_v3 }
 0x26c   : > { %13617 = vrsqrt.f32 %v965_v26  ;;  %1775 = vmatpush1.bf16.msra.mxu1 %v12867_v58  ;;  %v1008_v14 = vmul.f32 %v14824_v56, %v981_v4  ;;  %v1007_v22 = vmul.f32 %v14827_v57, %v980_v7  ;;  %v12879_v7 = vld [vmem:[%s19034_s5 + $0xa0] ss:$24 sps:$4 sm:$0xff]  }
 0x26d   : > { %v13612_v23 = vpop.eup %13611  ;;  %1776 = vmatprep.subr.bf16.mxu1 %v12872_v2 }
 0x26e   : > { %v1035_v9 = vadd.f32 %v14836_v11, %v1008_v14  ;;  %v1034_v24 = vadd.f32 %v14840_v21, %v1007_v22  ;;  %v983_v28 = vmul.f32 %v13612_v23, %v14688_v45  ;;  %v982_v29 = vmul.f32 %v13612_v23, %v14685_v44  ;;  %v12884_v22 = vld [vmem:[%s19034_s5 + $0x74] ss:$24 sps:$4 sm:$0xff]  }
 0x270   : > { %1777 = vmatpush1.bf16.msra.mxu1 %v12870_v8  ;;  %v14884_v30 = vpack.c.bf16 %v1035_v9, %v1033_v34  ;;  %v14889_v39 = vpack.c.bf16 %v1034_v24, %v1032_v10  ;;  %v1010_v50 = vmul.f32 %v14824_v56, %v983_v28  ;;  %v1009_v45 = vmul.f32 %v14827_v57, %v982_v29 }
 0x271   : > { %v13614_v42 = vpop.eup %13613  ;;  %1778 = vmatprep.subr.bf16.mxu1 %v12875_v33  ;;  %v12882_v33 = vld [vmem:[%s19034_s5 + $0x70] ss:$24 sps:$4 sm:$0xff]  }
 0x272   : > { %1670 = vmatprep.mubr.bf16.mxu1 %v14884_v30  ;;  %1743 = vmatprep.mubr.bf16.mxu0 %v14884_v30  ;;  %v985_v44 = vmul.f32 %v13614_v42, %v14710_v60  ;;  %v984_v18 = vmul.f32 %v13614_v42, %v14707_v59  ;;  %v1037_v1 = vadd.f32 %v14836_v11, %v1010_v50  ;;  %v12881_v59 = vld [vmem:[%s19034_s5 + $0xa4] ss:$24 sps:$4 sm:$0xff]   ;;  %v12890_v42 = vld [vmem:[%s19034_s5 + $0x14] ss:$24 sps:$4 sm:$0xff]  }
 0x273   : > { %1671 = vmatmul.mubr.bf16.gmra.mxu1 %v14889_v39  ;;  %1744 = vmatmul.mubr.bf16.gmra.mxu0 %v14889_v39  ;;  %v1036_v60 = vadd.f32 %v14840_v21, %v1009_v45  ;;  %v12896_v50 = vld [vmem:[%s19034_s5 + $0x2b4] ss:$24 sps:$4 sm:$0xff]   ;;  %v12899_v45 = vld [vmem:[%s19034_s5 + $0x284] ss:$24 sps:$4 sm:$0xff]  }
 0x274   : > { %1779 = vmatpush1.bf16.msra.mxu1 %v12873_v38  ;;  %v1012_v51 = vmul.f32 %v14824_v56, %v985_v44  ;;  %v1011_v52 = vmul.f32 %v14827_v57, %v984_v18  ;;  %v12897_v44 = vld [vmem:[%s19034_s5 + $0x280] ss:$24 sps:$4 sm:$0xff]   ;;  %v12902_v18 = vld [vmem:[%s19034_s5 + $0x254] ss:$24 sps:$4 sm:$0xff]  }
 0x275   : > { %v13616_v58 = vpop.eup %13615  ;;  %1780 = vmatprep.subr.bf16.mxu1 %v12878_v49  ;;  %v12891_v49 = vld [vmem:[%s19034_s5 + $0x2e0] ss:$24 sps:$4 sm:$0xff]  }
 0x276   : > { %v1039_v2 = vadd.f32 %v14836_v11, %v1012_v51  ;;  %v1038_v27 = vadd.f32 %v14840_v21, %v1011_v52  ;;  %v987_v3 = vmul.f32 %v13616_v58, %v14732_v16  ;;  %v986_v26 = vmul.f32 %v13616_v58, %v14729_v15  ;;  %v12905_v51 = vld [vmem:[%s19034_s5 + $0x224] ss:$24 sps:$4 sm:$0xff]   ;;  %v12903_v52 = vld [vmem:[%s19034_s5 + $0x220] ss:$24 sps:$4 sm:$0xff]   ;;  %v12908_v58 = vld [vmem:[%s19034_s5 + $0x1f4] ss:$24 sps:$4 sm:$0xff]  }
 0x278   : > { %1781 = vmatpush1.bf16.msra.mxu1 %v12876_v17  ;;  %v14916_v4 = vpack.c.bf16 %v1039_v2, %v1037_v1  ;;  %v14921_v8 = vpack.c.bf16 %v1038_v27, %v1036_v60  ;;  %v1014_v23 = vmul.f32 %v14824_v56, %v987_v3  ;;  %v1013_v34 = vmul.f32 %v14827_v57, %v986_v26  ;;  %v12900_v17 = vld [vmem:[%s19034_s5 + $0x250] ss:$24 sps:$4 sm:$0xff]   ;;  %v12909_v60 = vld [vmem:[%s19034_s5 + $0x1c0] ss:$24 sps:$4 sm:$0xff]   ;;  %v12914_v2 = vld [vmem:[%s19034_s5 + $0x194] ss:$24 sps:$4 sm:$0xff]  }
 0x279   : > { %v13618_v14 = vpop.eup %13617  ;;  %1782 = vmatprep.subr.bf16.mxu1 %v12881_v59  ;;  %v12906_v1 = vld [vmem:[%s19034_s5 + $0x1f0] ss:$24 sps:$4 sm:$0xff]   ;;  %v12911_v59 = vld [vmem:[%s19034_s5 + $0x1c4] ss:$24 sps:$4 sm:$0xff]  }
 0x27a   : > { %1680 = vmatprep.mubr.bf16.mxu1 %v14916_v4  ;;  %1753 = vmatprep.mubr.bf16.mxu0 %v14916_v4  ;;  %v989_v15 = vmul.f32 %v13618_v14, %v14754_v37  ;;  %v988_v16 = vmul.f32 %v13618_v14, %v14751_v32  ;;  %v12887_v32 = vld [vmem:[%s19034_s5 + $0x44] ss:$24 sps:$4 sm:$0xff]   ;;  %v1041_v37 = vadd.f32 %v14836_v11, %v1014_v23  ;;  %v12912_v27 = vld [vmem:[%s19034_s5 + $0x190] ss:$24 sps:$4 sm:$0xff]  }
 0x27b   : > { %1681 = vmatmul.mubr.bf16.gmra.mxu1 %v14921_v8  ;;  %1754 = vmatmul.mubr.bf16.gmra.mxu0 %v14921_v8  ;;  %v1040_v28 = vadd.f32 %v14840_v21, %v1013_v34 }
 0x27c   : > { %1783 = vmatpush1.bf16.msra.mxu1 %v12879_v7  ;;  %v1016_v10 = vmul.f32 %v14824_v56, %v989_v15  ;;  %v1015_v9 = vmul.f32 %v14827_v57, %v988_v16  ;;  %v12885_v56 = vld [vmem:[%s19034_s5 + $0x40] ss:$24 sps:$4 sm:$0xff]  }
 0x27d   : > { %1784 = vmatprep.subr.bf16.mxu1 %v12884_v22 }
 0x27e   : > { %v1043_v24 = vadd.f32 %v14836_v11, %v1016_v10  ;;  %v1042_v29 = vadd.f32 %v14840_v21, %v1015_v9  ;;  %v12888_v11 = vld [vmem:[%s19034_s5 + $0x10] ss:$24 sps:$4 sm:$0xff]   ;;  %v12893_v21 = vld [vmem:[%s19034_s5 + $0x2e4] ss:$24 sps:$4 sm:$0xff]  }
 0x280   : > { %1785 = vmatpush1.bf16.msra.mxu1 %v12882_v33  ;;  %v1051_v38 = vpack.c.bf16 %v1043_v24, %v1041_v37  ;;  %v1050_v57 = vpack.c.bf16 %v1042_v29, %v1040_v28 }
 0x281   : > { %1786 = vmatprep.subr.bf16.mxu1 %v12887_v32 }
 0x282   : > { %1690 = vmatprep.mubr.bf16.mxu1 %v1051_v38  ;;  %1763 = vmatprep.mubr.bf16.mxu0 %v1051_v38 }
 0x283   : > { %1691 = vmatmul.mubr.bf16.gmra.mxu1 %v1050_v57  ;;  %1764 = vmatmul.mubr.bf16.gmra.mxu0 %v1050_v57 }
 0x284   : > { %1787 = vmatpush1.bf16.msra.mxu1 %v12885_v56  ;;  %1806 = vmatprep.mubr.bf16.mxu1 %v14852_v53  ;;  %v12894_v53 = vld [vmem:[%s19034_s5 + $0x2b0] ss:$24 sps:$4 sm:$0xff]  }
 0x285   : > { %1788 = vmatprep.subr.bf16.mxu1 %v12890_v42 }
 0x288   : > { %1789 = vmatpush1.bf16.msra.mxu1 %v12888_v11 }
 0x289   : > { %1790 = vmatprep.subr.bf16.mxu1 %v12893_v21 }
 0x28c   : > { %1791 = vmatpush2.bf16.msra.mxu1 %v12891_v49 }
 0x28d   : > { %1792 = vmatprep.subr.bf16.mxu1 %v12896_v50 }
 0x290   : > { %1793 = vmatpush2.bf16.msra.mxu1 %v12894_v53 }
 0x291   : > { %1794 = vmatprep.subr.bf16.mxu1 %v12899_v45 }
 0x294   : > { %1795 = vmatpush2.bf16.msra.mxu1 %v12897_v44 }
 0x295   : > { %1796 = vmatprep.subr.bf16.mxu1 %v12902_v18 }
 0x298   : > { %1797 = vmatpush2.bf16.msra.mxu1 %v12900_v17 }
 0x299   : > { %1798 = vmatprep.subr.bf16.mxu1 %v12905_v51 }
 0x29c   : > { %1799 = vmatpush2.bf16.msra.mxu1 %v12903_v52 }
 0x29d   : > { %1800 = vmatprep.subr.bf16.mxu1 %v12908_v58 }
 0x2a0   : > { %1801 = vmatpush2.bf16.msra.mxu1 %v12906_v1 }
 0x2a1   : > { %1802 = vmatprep.subr.bf16.mxu1 %v12911_v59 }
 0x2a4   : > { %1803 = vmatpush2.bf16.msra.mxu1 %v12909_v60 }
 0x2a5   : > { %1804 = vmatprep.subr.bf16.mxu1 %v12914_v2 }
 0x2a8   : > { %1805 = vmatpush2.bf16.msra.mxu1 %v12912_v27 }
 0x2ab   : > { %1807 = vmatmul.mubr.bf16.vlgmr.msra.gmra.mxu1 %v14857_v63 }
 0x2ac   : > { %1816 = vmatprep.mubr.bf16.mxu1 %v14884_v30 }
 0x2b3   : > { %1817 = vmatmul.mubr.bf16.gmra.mxu1 %v14889_v39 }
 0x2b4   : > { %1826 = vmatprep.mubr.bf16.mxu1 %v14916_v4 }
 0x2bb   : > { %1827 = vmatmul.mubr.bf16.gmra.mxu1 %v14921_v8 }
 0x2bc   : > { %1836 = vmatprep.mubr.bf16.mxu1 %v1051_v38 }
 0x2c3   : > { %1837 = vmatmul.mubr.bf16.gmra.mxu1 %v1050_v57 }
 0x32b   : > { %v1662_v3 = vpop.f32.mrf.mxu1  ;;  %v1735_v26 = vpop.f32.mrf.mxu0 }
 0x32d   : > { %v15009_v7 = vpop.f32.mrf.mxu1  ;;  %v15011_v14 = vpop.f32.mrf.mxu0 }
 0x32f   : > { %v1666_v22 = vpop.f32.mrf.mxu1  ;;  %v1739_v23 = vpop.f32.mrf.mxu0 }
 0x330   : > { %v1879_v63 = vpack.c.bf16 %v1666_v22, %v1662_v3  ;;  %v1883_v45 = vpack.c.bf16 %v1739_v23, %v1735_v26 }
 0x331   : > { %v15013_v15 = vpop.f32.mrf.mxu1  ;;  %v15015_v30 = vpop.f32.mrf.mxu0 }
 0x332   : > { %12400 = vmatprep.mubr.msk.bf16.mxu0 %vm1891_vm0, %v1879_v63  ;;  %v1905_v2 = vsel %vm1891_vm0, %v1883_v45, 0 }
 0x333   : > { %v1672_v39 = vpop.f32.mrf.mxu1  ;;  %v1745_v4 = vpop.f32.mrf.mxu0 }
 0x335   : > { %v15018_v8 = vpop.f32.mrf.mxu1  ;;  %v15020_v16 = vpop.f32.mrf.mxu0 }
 0x337   : > { %v1676_v34 = vpop.f32.mrf.mxu1  ;;  %v1749_v33 = vpop.f32.mrf.mxu0 }
 0x338   : > { %v1884_v21 = vpack.c.bf16 %v1749_v33, %v1745_v4  ;;  %v1880_v51 = vpack.c.bf16 %v1676_v34, %v1672_v39 }
 0x339   : > { %v15022_v10 = vpop.f32.mrf.mxu1  ;;  %v15024_v9 = vpop.f32.mrf.mxu0 }
 0x33a   : > { %v1908_v60 = vsel %vm1891_vm0, %v1884_v21, 0 }
 0x33b   : > { %v1682_v32 = vpop.f32.mrf.mxu1  ;;  %v1755_v37 = vpop.f32.mrf.mxu0 }
 0x33d   : > { %v15026_v24 = vpop.f32.mrf.mxu1  ;;  %v15028_v28 = vpop.f32.mrf.mxu0 }
 0x33f   : > { %v1686_v29 = vpop.f32.mrf.mxu1  ;;  %v1759_v38 = vpop.f32.mrf.mxu0 }
 0x340   : > { %v1885_v56 = vpack.c.bf16 %v1759_v38, %v1755_v37  ;;  %v1881_v58 = vpack.c.bf16 %v1686_v29, %v1682_v32 }
 0x341   : > { %v15030_v57 = vpop.f32.mrf.mxu1  ;;  %v15032_v42 = vpop.f32.mrf.mxu0 }
 0x342   : > { %2174 = vrot.lane.b32.xlu1 %v1885_v56, %s18957_s30  ;;  %v1911_v59 = vsel %vm1891_vm0, %v1885_v56, 0 }
 0x343   : > { %v1765_v11 = vpop.f32.mrf.mxu0  ;;  %v1692_v49 = vpop.f32.mrf.mxu1 }
 0x345   : > { %v15035_v50 = vpop.f32.mrf.mxu0  ;;  %v15038_v18 = vpop.f32.mrf.mxu1 }
 0x346   : > { %2172 = vrot.lane.b32.xlu1 %v1884_v21, %s18957_s30 }
 0x347   : > { %v1769_v53 = vpop.f32.mrf.mxu0  ;;  %v1696_v52 = vpop.f32.mrf.mxu1 }
 0x348   : > { %v1886_v44 = vpack.c.bf16 %v1769_v53, %v1765_v11  ;;  %v1882_v1 = vpack.c.bf16 %v1696_v52, %v1692_v49 }
 0x349   : > { %v15054_v27 = vpop.f32.mrf.mxu1 }
 0x34a   : > { %2170 = vrot.lane.b32.xlu1 %v1883_v45, %s18957_s30  ;;  %2176 = vrot.lane.b32.xlu0 %v1886_v44, %s18957_s30  ;;  %v1914_v17 = vsel %vm1891_vm0, %v1886_v44, 0 }
 0x34b   : > { %12648 = vmatprep.subr.msk.bf16.mxu0 %vm1891_vm0, %v1886_v44 }
 0x34c   : > { %12393 = vmatpush3.bf16.xpose.msra.mxu0 %v1914_v17 }
 0x34d   : > { %12649 = vmatprep.subr.msk.bf16.mxu0 %vm1891_vm0, %v1885_v56 }
 0x34e   : > { %2160 = vrot.lane.b32.xlu1 %v1880_v51, %s18957_s30  ;;  %2158 = vrot.lane.b32.xlu0 %v1879_v63, %s18957_s30 }
 0x352   : > { %2162 = vrot.lane.b32.xlu0 %v1881_v58, %s18957_s30  ;;  %2164 = vrot.lane.b32.xlu1 %v1882_v1, %s18957_s30 }
 0x354   : > { %12395 = vmatpush3.bf16.xpose.msra.mxu0 %v1911_v59 }
 0x355   : > { %12650 = vmatprep.subr.msk.bf16.mxu0 %vm1891_vm0, %v1884_v21 }
 0x35c   : > { %12397 = vmatpush3.bf16.xpose.msra.mxu0 %v1908_v60 }
 0x35d   : > { %12651 = vmatprep.subr.msk.bf16.mxu0 %vm1891_vm0, %v1883_v45 }
 0x364   : > { %12399 = vmatpush3.bf16.xpose.msra.mxu0 %v1905_v2  ;;  %v12917_v2 = vld [vmem:[#allocation2 + $0x34] ss:$8 sps:$4 sm:$0xff]  }
 0x36b   : > { %v1808_v3 = vpop.f32.mrf.mxu1  ;;  %12401 = vmatmul.mubr.msk.bf16.vlgmr.msra.gmra.mxu0 %vm1891_vm0, %v1880_v51 }
 0x36c   : > { %12404 = vmatprep.mubr.msk.bf16.mxu0 %vm1891_vm0, %v1881_v58 }
 0x36d   : > { %v15058_v26 = vpop.f32.mrf.mxu1 }
 0x36f   : > { %v1812_v22 = vpop.f32.mrf.mxu1 }
 0x370   : > { %v15082_v45 = vpack.c.bf16 %v1812_v22, %v1808_v3  ;;  %v12915_v22 = vld [vmem:[#allocation2 + $0x30] ss:$8 sps:$4 sm:$0xff]  }
 0x371   : > { %v15060_v23 = vpop.f32.mrf.mxu1 }
 0x373   : > { %v1818_v63 = vpop.f32.mrf.mxu1  ;;  %12405 = vmatmul.mubr.msk.bf16.gmra.mxu0 %vm1891_vm0, %v1882_v1 }
 0x375   : > { %v15063_v39 = vpop.f32.mrf.mxu1 }
 0x377   : > { %v1822_v4 = vpop.f32.mrf.mxu1 }
 0x378   : > { %v15078_v53 = vpack.c.bf16 %v1822_v4, %v1818_v63  ;;  %v12920_v63 = vld [vmem:[#allocation2 + $0x24] ss:$8 sps:$4 sm:$0xff]  }
 0x379   : > { %v15065_v34 = vpop.f32.mrf.mxu1 }
 0x37b   : > { %v1828_v33 = vpop.f32.mrf.mxu1 }
 0x37d   : > { %v15067_v32 = vpop.f32.mrf.mxu1 }
 0x37f   : > { %v1832_v37 = vpop.f32.mrf.mxu1 }
 0x380   : > { %v15073_v49 = vpack.c.bf16 %v1832_v37, %v1828_v33  ;;  %v12918_v37 = vld [vmem:[#allocation2 + $0x20] ss:$8 sps:$4 sm:$0xff]  }
 0x381   : > { %v15069_v29 = vpop.f32.mrf.mxu1 }
 0x383   : > { %v1838_v38 = vpop.f32.mrf.mxu1 }
 0x385   : > { %v1840_v56 = vpop.f32.mrf.mxu1 }
 0x387   : > { %v1842_v11 = vpop.f32.mrf.mxu1 }
 0x388   : > { %v15071_v21 = vpack.c.bf16 %v1842_v11, %v1838_v38  ;;  %v12923_v38 = vld [vmem:[#allocation2 + $0x14] ss:$8 sps:$4 sm:$0xff]   ;;  %v12921_v11 = vld [vmem:[#allocation2 + $0x10] ss:$8 sps:$4 sm:$0xff]  }
 0x38a   : > { %12408 = vmatprep.subr.bf16.mxu0 %v15071_v21 }
 0x38b   : > { %12409 = vmatpush3.bf16.msra.mxu0 %v15071_v21 }
 0x38c   : > { %12410 = vmatprep.subr.bf16.mxu0 %v15073_v49 }
 0x38f   : > { %12411 = vmatpush3.bf16.msra.mxu0 %v15073_v49 }
 0x390   : > { %12412 = vmatprep.subr.bf16.mxu0 %v15078_v53 }
 0x393   : > { %12413 = vmatpush3.bf16.msra.mxu0 %v15078_v53 }
 0x394   : > { %12414 = vmatprep.subr.bf16.mxu0 %v15082_v45 }
 0x397   : > { %12415 = vmatpush3.bf16.msra.mxu0 %v15082_v45 }
 0x3b4   : > { %v2175_v51 = vpop.permute.xlu1 %2174 }
 0x3b5   : > { %v2197_v58 = vsel %vm1891_vm0, %v2175_v51, 0 }
 0x3b8   : > { %v2173_v1 = vpop.permute.xlu1 %2172 }
 0x3b9   : > { %v2194_v59 = vsel %vm1891_vm0, %v2173_v1, 0 }
 0x3bc   : > { %v2177_v44 = vpop.permute.xlu0 %2176  ;;  %v2171_v60 = vpop.permute.xlu1 %2170 }
 0x3bd   : > { %12652 = vmatprep.subr.msk.bf16.mxu1 %vm1891_vm0, %v2177_v44  ;;  %v2200_v17 = vsel %vm1891_vm0, %v2177_v44, 0  ;;  %v2191_v3 = vsel %vm1891_vm0, %v2171_v60, 0  ;;  %v12926_v44 = vld [vmem:[#allocation2 + $0x4] ss:$8 sps:$4 sm:$0xff]  }
 0x3be   : > { %12425 = vmatpush3.bf16.xpose.msra.mxu1 %v2200_v17 }
 0x3bf   : > { %12653 = vmatprep.subr.msk.bf16.mxu1 %vm1891_vm0, %v2175_v51  ;;  %v1844_v51 = vpop.f32.mrf.mxu1 }
 0x3c0   : > { %v2159_v52 = vpop.permute.xlu0 %2158  ;;  %v2161_v4 = vpop.permute.xlu1 %2160 }
 0x3c1   : > { %12432 = vmatprep.mubr.msk.bf16.mxu1 %vm1891_vm0, %v2159_v52  ;;  %v12924_v52 = vld [vmem:[#allocation2] ss:$8 sps:$4 sm:$0xff]  }
 0x3c4   : > { %v2163_v33 = vpop.permute.xlu0 %2162  ;;  %v2165_v17 = vpop.permute.xlu1 %2164 }
 0x3c6   : > { %12427 = vmatpush3.bf16.xpose.msra.mxu1 %v2197_v58  ;;  %v15100_v58 = vpack.c.bf16 %v1844_v51, %v1840_v56 }
 0x3c7   : > { %12654 = vmatprep.subr.msk.bf16.mxu1 %vm1891_vm0, %v2173_v1  ;;  %v856_v1 = vand.u32 127, %v855_v25 }
 0x3c9   : > { %vm857_vm1 = vcmp.ge.s32.totalorder %v856_v1, 50 }
 0x3ce   : > { %12429 = vmatpush3.bf16.xpose.msra.mxu1 %v2194_v59  ;;  %v15104_v59 = vpop.f32.mrf.mxu0 }
 0x3cf   : > { %12655 = vmatprep.subr.msk.bf16.mxu1 %vm1891_vm0, %v2171_v60 }
 0x3d6   : > { %12431 = vmatpush3.bf16.xpose.msra.mxu1 %v2191_v3 }
 0x3d7   : > { %2641 = vmatprep.subr.bf16.mxu1 %v12917_v2  ;;  %v14187_v2 = vmov 0.0  }
 0x3d8   : > { %v15106_v3 = vsel %vm857_vm1, -1e+30, %v14187_v2 }
 0x3d9   : > { %19038 = vst [vmem:[#allocation32_spill] sm:$0xff] %v15106_v3 }
 0x3dd   : > { %12433 = vmatmul.mubr.msk.bf16.vlgmr.msra.gmra.mxu1 %vm1891_vm0, %v2161_v4 }
 0x3de   : > { %12436 = vmatprep.mubr.msk.bf16.mxu1 %vm1891_vm0, %v2163_v33  ;;  %2642 = vmatpush1.bf16.msra.mxu1 %v12915_v22 }
 0x3df   : > { %2643 = vmatprep.subr.bf16.mxu1 %v12920_v63 }
 0x3e2   : > { %2644 = vmatpush1.bf16.msra.mxu1 %v12918_v37 }
 0x3e3   : > { %2645 = vmatprep.subr.bf16.mxu1 %v12923_v38 }
 0x3e5   : > { %12437 = vmatmul.mubr.msk.bf16.gmra.mxu1 %vm1891_vm0, %v2165_v17 }
 0x3e6   : > { %2646 = vmatpush1.bf16.msra.mxu1 %v12921_v11  ;;  %2665 = vmatprep.mubr.bf16.mxu1 %v18939_v0 }
 0x3e7   : > { %2647 = vmatprep.subr.bf16.mxu1 %v12926_v44 }
 0x3ea   : > { %2648 = vmatpush1.bf16.msra.mxu1 %v12924_v52 }
 0x3eb   : > { %12472 = vmatprep.subr.bf16.mxu1 %v15100_v58 }
 0x42b   : > { %v12402_v60 = vpop.f32.mrf.mxu0 }
 0x42c   : > { %v15112_v56 = vadd.f32 %v12402_v60, %v15106_v3 }
 0x42d   : > { %v1950_v22 = vpop.f32.mrf.mxu0 }
 0x42e   : > { %v15109_v63 = vadd.f32 %v1950_v22, %v15106_v3  ;;  %v1987_v44 = vsel %vm1891_vm0, %v15112_v56, -inf }
 0x42f   : > { %v12403_v4 = vpop.f32.mrf.mxu0 }
 0x430   : > { %v1981_v33 = vsel %vm1891_vm0, %v15109_v63, -inf  ;;  %v1962_v11 = vadd.f32 %v12403_v4, %v15106_v3 }
 0x431   : > { %v1953_v37 = vpop.f32.mrf.mxu0  ;;  %1982 = vmax.xlane.f32.xlu0 %v1981_v33 }
 0x432   : > { %v15117_v25 = vadd.f32 %v1953_v37, %v15106_v3  ;;  %v1990_v60 = vsel %vm1891_vm0, %v1962_v11, -inf }
 0x433   : > { %v12406_v38 = vpop.f32.mrf.mxu0 }
 0x434   : > { %v1984_v17 = vsel %vm1891_vm0, %v15117_v25, -inf  ;;  %v15125_v1 = vadd.f32 %v12406_v38, %v15106_v3 }
 0x435   : > { %1988 = vmax.xlane.f32.xlu0 %v1987_v44  ;;  %1985 = vmax.xlane.f32.xlu1 %v1984_v17  ;;  %v1966_v51 = vpop.f32.mrf.mxu0 }
 0x436   : > { %v15130_v4 = vadd.f32 %v1966_v51, %v15106_v3  ;;  %v1999_v37 = vsel %vm1891_vm0, %v15125_v1, -inf }
 0x437   : > { %v12407_v52 = vpop.f32.mrf.mxu0 }
 0x438   : > { %v1978_v33 = vadd.f32 %v12407_v52, %v15106_v3  ;;  %v1993_v17 = vsel %vm1891_vm0, %v15130_v4, -inf }
 0x439   : > { %1991 = vmax.xlane.f32.xlu0 %v1990_v60  ;;  %v1969_v2 = vpop.f32.mrf.mxu0 }
 0x43a   : > { %v1970_v22 = vadd.f32 %v1969_v2, %v15106_v3  ;;  %v2002_v38 = vsel %vm1891_vm0, %v1978_v33, -inf }
 0x43c   : > { %v1996_v44 = vsel %vm1891_vm0, %v1970_v22, -inf }
 0x43d   : > { %2000 = vmax.xlane.f32.xlu0 %v1999_v37  ;;  %1997 = vmax.xlane.f32.xlu1 %v1996_v44 }
 0x441   : > { %2003 = vmax.xlane.f32.xlu1 %v2002_v38  ;;  %1994 = vmax.xlane.f32.xlu0 %v1993_v17 }
 0x49d   : > { %v12434_v60 = vpop.f32.mrf.mxu1 }
 0x49e   : > { %v15140_v51 = vadd.f32 %v12434_v60, %v15106_v3 }
 0x49f   : > { %v2236_v2 = vpop.f32.mrf.mxu1 }
 0x4a0   : > { %v15143_v52 = vadd.f32 %v2236_v2, %v15106_v3  ;;  %v2273_v0 = vsel %vm1891_vm0, %v15140_v51, -inf }
 0x4a1   : > { %2274 = vmax.xlane.f32.xlu0 %v2273_v0  ;;  %v12435_v37 = vpop.f32.mrf.mxu1 }
 0x4a2   : > { %v2267_v38 = vsel %vm1891_vm0, %v15143_v52, -inf  ;;  %v15153_v60 = vadd.f32 %v12435_v37, %v15106_v3 }
 0x4a3   : > { %v2239_v44 = vpop.f32.mrf.mxu1 }
 0x4a4   : > { %v15148_v31 = vadd.f32 %v2239_v44, %v15106_v3  ;;  %v2276_v37 = vsel %vm1891_vm0, %v15153_v60, -inf }
 0x4a5   : > { %v12438_v17 = vpop.f32.mrf.mxu1  ;;  %2268 = vmax.xlane.f32.xlu0 %v2267_v38 }
 0x4a6   : > { %v15156_v2 = vadd.f32 %v12438_v17, %v15106_v3  ;;  %v2270_v20 = vsel %vm1891_vm0, %v15148_v31, -inf }
 0x4a7   : > { %v2252_v0 = vpop.f32.mrf.mxu1  ;;  %2271 = vmax.xlane.f32.xlu1 %v2270_v20 }
 0x4a8   : > { %v15161_v19 = vadd.f32 %v2252_v0, %v15106_v3  ;;  %v2285_v44 = vsel %vm1891_vm0, %v15156_v2, -inf }
 0x4a9   : > { %v12439_v13 = vpop.f32.mrf.mxu1  ;;  %2286 = vmax.xlane.f32.xlu0 %v2285_v44 }
 0x4aa   : > { %v2279_v12 = vsel %vm1891_vm0, %v15161_v19, -inf  ;;  %v15173_v20 = vadd.f32 %v12439_v13, %v15106_v3 }
 0x4ab   : > { %v2255_v38 = vpop.f32.mrf.mxu1  ;;  %2277 = vmax.xlane.f32.xlu1 %v2276_v37 }
 0x4ac   : > { %v15168_v17 = vadd.f32 %v2255_v38, %v15106_v3  ;;  %v2288_v44 = vsel %vm1891_vm0, %v15173_v20, -inf }
 0x4ad   : > { %2280 = vmax.xlane.f32.xlu0 %v2279_v12 }
 0x4ae   : > { %v2282_v0 = vsel %vm1891_vm0, %v15168_v17, -inf }
 0x4af   : > { %2283 = vmax.xlane.f32.xlu1 %v2282_v0 }
 0x4b3   : > { %2289 = vmax.xlane.f32.xlu1 %v2288_v44 }
 0x4ba   : > { %v1983_v6 = vpop.xlane.xlu0 %1982 }
 0x4bb   : > { %v2005_v40 = vsub.f32 %v15109_v63, %v1983_v6 }
 0x4be   : > { %v1989_v37 = vpop.xlane.xlu0 %1988  ;;  %v1986_v5 = vpop.xlane.xlu1 %1985 }
 0x4bf   : > { %v2006_v38 = vsub.f32 %v15117_v25, %v1986_v5  ;;  %v2007_v0 = vsub.f32 %v15112_v56, %v1989_v37 }
 0x4c1   : > { %v2015_v12 = vmul.f32 1.442695, %v2006_v38  ;;  %v2017_v47 = vmul.f32 1.442695, %v2007_v0 }
 0x4c2   : > { %v1992_v62 = vpop.xlane.xlu0 %1991 }
 0x4c3   : > { %v2008_v61 = vsub.f32 %v1962_v11, %v1992_v62  ;;  %2369 = vrot.lane.b32.xlu0 %v15071_v21, %s18957_s30  ;;  %v2013_v62 = vmul.f32 1.442695, %v2005_v40 }
 0x4c5   : > { %v2019_v13 = vmul.f32 1.442695, %v2008_v61 }
 0x4c6   : > { %v1998_v55 = vpop.xlane.xlu1 %1997  ;;  %v2001_v41 = vpop.xlane.xlu0 %2000 }
 0x4c7   : > { %13619 = vpow2.f32 %v2019_v13  ;;  %v2010_v54 = vsub.f32 %v1970_v22, %v1998_v55  ;;  %v2011_v21 = vsub.f32 %v15125_v1, %v2001_v41 }
 0x4c8   : > { %13621 = vpow2.f32 %v2015_v12 }
 0x4c9   : > { %v2023_v5 = vmul.f32 1.442695, %v2010_v54  ;;  %v2025_v56 = vmul.f32 1.442695, %v2011_v21 }
 0x4ca   : > { %v2004_v48 = vpop.xlane.xlu1 %2003  ;;  %v1995_v61 = vpop.xlane.xlu0 %1994 }
 0x4cb   : > { %v2012_v44 = vsub.f32 %v1978_v33, %v2004_v48  ;;  %v2009_v55 = vsub.f32 %v15130_v4, %v1995_v61 }
 0x4cd   : > { %v2027_v25 = vmul.f32 1.442695, %v2012_v44  ;;  %v2021_v54 = vmul.f32 1.442695, %v2009_v55 }
 0x4cf   : > { %13623 = vpow2.f32 %v2027_v25 }
 0x4d0   : > { %13625 = vpow2.f32 %v2017_v47 }
 0x4d1   : > { %13627 = vpow2.f32 %v2023_v5 }
 0x4d2   : > { %13629 = vpow2.f32 %v2013_v62 }
 0x4d3   : > { %13631 = vpow2.f32 %v2025_v56 }
 0x4d4   : > { %v15185_v11 = vpop.eup %13619  ;;  %13633 = vpow2.f32 %v2021_v54 }
 0x4d5   : > { %v2038_v48 = vsel %vm1891_vm0, %v15185_v11, 0.0  ;;  %v15190_v22 = vpop.eup %13621 }
 0x4d6   : > { %2039 = vadd.xlane.f32.xlu1 %v2038_v48  ;;  %v2032_v40 = vsel %vm1891_vm0, %v15190_v22, 0.0 }
 0x4da   : > { %2033 = vadd.xlane.f32.xlu1 %v2032_v40 }
 0x4dc   : > { %v15194_v41 = vpop.eup %13623 }
 0x4dd   : > { %v15196_v47 = vpop.eup %13625  ;;  %v2050_v6 = vsel %vm1891_vm0, %v15194_v41, 0.0 }
 0x4de   : > { %v15200_v63 = vpop.eup %13627  ;;  %2051 = vadd.xlane.f32.xlu1 %v2050_v6  ;;  %v2035_v4 = vsel %vm1891_vm0, %v15196_v47, 0.0 }
 0x4df   : > { %v2044_v1 = vsel %vm1891_vm0, %v15200_v63, 0.0  ;;  %v15206_v33 = vpop.eup %13629 }
 0x4e0   : > { %v2029_v37 = vsel %vm1891_vm0, %v15206_v33, 0.0  ;;  %v15210_v38 = vpop.eup %13631 }
 0x4e1   : > { %v2047_v12 = vsel %vm1891_vm0, %v15210_v38, 0.0  ;;  %v15214_v13 = vpop.eup %13633 }
 0x4e2   : > { %2045 = vadd.xlane.f32.xlu1 %v2044_v1  ;;  %2036 = vadd.xlane.f32.xlu0 %v2035_v4  ;;  %v2041_v0 = vsel %vm1891_vm0, %v15214_v13, 0.0 }
 0x4e6   : > { %2030 = vadd.xlane.f32.xlu0 %v2029_v37 }
 0x4ea   : > { %2048 = vadd.xlane.f32.xlu0 %v2047_v12 }
 0x4ee   : > { %2042 = vadd.xlane.f32.xlu0 %v2041_v0 }
 0x52a   : > { %v2275_v44 = vpop.xlane.xlu0 %2274 }
 0x52b   : > { %v2293_v5 = vsub.f32 %v15140_v51, %v2275_v44 }
 0x52d   : > { %v2303_v25 = vmul.f32 1.442695, %v2293_v5 }
 0x52e   : > { %v2269_v62 = vpop.xlane.xlu0 %2268 }
 0x52f   : > { %13635 = vpow2.f32 %v2303_v25  ;;  %v2291_v21 = vsub.f32 %v15143_v52, %v2269_v62 }
 0x530   : > { %v2272_v61 = vpop.xlane.xlu1 %2271 }
 0x531   : > { %v2299_v56 = vmul.f32 1.442695, %v2291_v21  ;;  %v2292_v48 = vsub.f32 %v15148_v31, %v2272_v61 }
 0x532   : > { %v2287_v55 = vpop.xlane.xlu0 %2286 }
 0x533   : > { %13637 = vpow2.f32 %v2299_v56  ;;  %v2301_v1 = vmul.f32 1.442695, %v2292_v48  ;;  %v2297_v4 = vsub.f32 %v15156_v2, %v2287_v55 }
 0x534   : > { %v2278_v54 = vpop.xlane.xlu1 %2277 }
 0x535   : > { %v2294_v40 = vsub.f32 %v15153_v60, %v2278_v54  ;;  %v2311_v52 = vmul.f32 1.442695, %v2297_v4 }
 0x536   : > { %v2281_v6 = vpop.xlane.xlu0 %2280 }
 0x537   : > { %v2305_v37 = vmul.f32 1.442695, %v2294_v40  ;;  %v2295_v0 = vsub.f32 %v15161_v19, %v2281_v6 }
 0x538   : > { %v2284_v51 = vpop.xlane.xlu1 %2283 }
 0x539   : > { %13639 = vpow2.f32 %v2305_v37  ;;  %v2307_v2 = vmul.f32 1.442695, %v2295_v0  ;;  %v2296_v19 = vsub.f32 %v15168_v17, %v2284_v51 }
 0x53a   : > { %v15223_v12 = vpop.permute.xlu0 %2369  ;;  %13641 = vpow2.f32 %v2301_v1 }
 0x53b   : > { %12440 = vmatprep.subr.bf16.mxu0 %v15223_v12  ;;  %13643 = vpow2.f32 %v2311_v52  ;;  %v2309_v56 = vmul.f32 1.442695, %v2296_v19 }
 0x53c   : > { %v15227_v44 = vpop.eup %13635  ;;  %v2290_v31 = vpop.xlane.xlu1 %2289  ;;  %13645 = vpow2.f32 %v2307_v2 }
 0x53d   : > { %v2321_v60 = vsel %vm1891_vm0, %v15227_v44, 0.0  ;;  %v2298_v5 = vsub.f32 %v15173_v20, %v2290_v31 }
 0x53e   : > { %2322 = vadd.xlane.f32.xlu0 %v2321_v60 }
 0x53f   : > { %v2313_v21 = vmul.f32 1.442695, %v2298_v5 }
 0x540   : > { %v15232_v25 = vpop.eup %13637 }
 0x541   : > { %v2315_v62 = vsel %vm1891_vm0, %v15232_v25, 0.0  ;;  %13647 = vpow2.f32 %v2313_v21 }
 0x542   : > { %2316 = vadd.xlane.f32.xlu0 %v2315_v62  ;;  %13649 = vpow2.f32 %v2309_v56 }
 0x546   : > { %v15237_v61 = vpop.eup %13639 }
 0x547   : > { %v2324_v55 = vsel %vm1891_vm0, %v15237_v61, 0.0  ;;  %v15241_v48 = vpop.eup %13641 }
 0x548   : > { %2325 = vadd.xlane.f32.xlu1 %v2324_v55  ;;  %v2318_v20 = vsel %vm1891_vm0, %v15241_v48, 0.0  ;;  %v15245_v54 = vpop.eup %13643 }
 0x549   : > { %v2333_v17 = vsel %vm1891_vm0, %v15245_v54, 0.0  ;;  %v15249_v40 = vpop.eup %13645 }
 0x54a   : > { %v2327_v6 = vsel %vm1891_vm0, %v15249_v40, 0.0 }
 0x54c   : > { %2319 = vadd.xlane.f32.xlu1 %v2318_v20 }
 0x54e   : > { %v15253_v1 = vpop.eup %13647 }
 0x54f   : > { %v2336_v4 = vsel %vm1891_vm0, %v15253_v1, 0.0  ;;  %v15257_v37 = vpop.eup %13649 }
 0x550   : > { %2334 = vadd.xlane.f32.xlu1 %v2333_v17  ;;  %v2330_v51 = vsel %vm1891_vm0, %v15257_v37, 0.0 }
 0x554   : > { %2328 = vadd.xlane.f32.xlu1 %v2327_v6 }
 0x558   : > { %2365 = vrot.lane.b32.xlu0 %v15078_v53, %s18957_s30  ;;  %2337 = vadd.xlane.f32.xlu1 %v2336_v4 }
 0x55c   : > { %2363 = vrot.lane.b32.xlu0 %v15082_v45, %s18957_s30  ;;  %2331 = vadd.xlane.f32.xlu1 %v2330_v51 }
 0x55f   : > { %v2040_v52 = vpop.xlane.xlu1 %2039 }
 0x563   : > { %v2034_v0 = vpop.xlane.xlu1 %2033 }
 0x567   : > { %v2052_v60 = vpop.xlane.xlu1 %2051 }
 0x56b   : > { %v2037_v31 = vpop.xlane.xlu0 %2036  ;;  %v2046_v53 = vpop.xlane.xlu1 %2045 }
 0x56c   : > { %13651 = vrcp.f32 %v2037_v31 }
 0x56d   : > { %2367 = vrot.lane.b32.xlu1 %v15073_v49, %s18957_s30  ;;  %13653 = vrcp.f32 %v2034_v0 }
 0x56e   : > { %13655 = vrcp.f32 %v2040_v52 }
 0x56f   : > { %v2031_v2 = vpop.xlane.xlu0 %2030 }
 0x570   : > { %13657 = vrcp.f32 %v2031_v2 }
 0x573   : > { %v2049_v5 = vpop.xlane.xlu0 %2048 }
 0x574   : > { %13659 = vrcp.f32 %v2049_v5 }
 0x575   : > { %13661 = vrcp.f32 %v2046_v53 }
 0x576   : > { %13663 = vrcp.f32 %v2052_v60 }
 0x577   : > { %v2043_v62 = vpop.xlane.xlu0 %2042 }
 0x578   : > { %13665 = vrcp.f32 %v2043_v62 }
 0x579   : > { %v13652_v45 = vpop.eup %13651 }
 0x57a   : > { %v13654_v19 = vpop.eup %13653  ;;  %v2063_v55 = vmul.f32 %v13652_v45, %v15196_v47 }
 0x57b   : > { %v13656_v21 = vpop.eup %13655  ;;  %v2062_v49 = vmul.f32 %v13654_v19, %v15190_v22 }
 0x57c   : > { %v2064_v17 = vmul.f32 %v13656_v21, %v15185_v11 }
 0x57d   : > { %v13658_v56 = vpop.eup %13657 }
 0x57e   : > { %v2061_v20 = vmul.f32 %v13658_v56, %v15206_v33  ;;  %v2070_v4 = vpack.c.bf16 %v2064_v17, %v2063_v55 }
 0x580   : > { %v2069_v6 = vpack.c.bf16 %v2062_v49, %v2061_v20 }
 0x581   : > { %v13660_v51 = vpop.eup %13659 }
 0x582   : > { %12416 = vmatprep.mubr.msk.bf16.mxu0 %vm1891_vm0, %v2069_v6  ;;  %v13662_v52 = vpop.eup %13661  ;;  %v2067_v47 = vmul.f32 %v13660_v51, %v15210_v38 }
 0x583   : > { %12417 = vmatmul.mubr.msk.bf16.vlgmr.msra.gmra.mxu0 %vm1891_vm0, %v2070_v4  ;;  %v13664_v0 = vpop.eup %13663  ;;  %v2066_v22 = vmul.f32 %v13662_v52, %v15200_v63 }
 0x584   : > { %12441 = vmatpush3.bf16.msra.mxu0 %v15223_v12  ;;  %v2068_v11 = vmul.f32 %v13664_v0, %v15194_v41 }
 0x585   : > { %v13666_v31 = vpop.eup %13665 }
 0x586   : > { %v2065_v33 = vmul.f32 %v13666_v31, %v15214_v13  ;;  %v2072_v2 = vpack.c.bf16 %v2068_v11, %v2067_v47  ;;  %v12927_v31 = vld [vmem:[#allocation2 + $0x70] ss:$8 sps:$4 sm:$0xff]   ;;  %v12932_v11 = vld [vmem:[#allocation2 + $0x64] ss:$8 sps:$4 sm:$0xff]  }
 0x588   : > { %v2071_v60 = vpack.c.bf16 %v2066_v22, %v2065_v33 }
 0x58a   : > { %12420 = vmatprep.mubr.msk.bf16.mxu0 %vm1891_vm0, %v2071_v60 }
 0x58b   : > { %12421 = vmatmul.mubr.msk.bf16.gmra.mxu0 %vm1891_vm0, %v2072_v2 }
 0x5c7   : > { %v2323_v53 = vpop.xlane.xlu0 %2322 }
 0x5cb   : > { %v2317_v5 = vpop.xlane.xlu0 %2316 }
 0x5cc   : > { %13667 = vrcp.f32 %v2317_v5  ;;  %v12935_v5 = vld [vmem:[#allocation2 + $0x54] ss:$8 sps:$4 sm:$0xff]  }
 0x5cf   : > { %v2366_v20 = vpop.permute.xlu0 %2365 }
 0x5d1   : > { %v2326_v62 = vpop.xlane.xlu1 %2325 }
 0x5d3   : > { %v2364_v4 = vpop.permute.xlu0 %2363 }
 0x5d5   : > { %v2320_v12 = vpop.xlane.xlu1 %2319 }
 0x5d6   : > { %13669 = vrcp.f32 %v2320_v12 }
 0x5d7   : > { %13671 = vrcp.f32 %v2326_v62 }
 0x5d8   : > { %13673 = vrcp.f32 %v2323_v53  ;;  %v12930_v53 = vld [vmem:[#allocation2 + $0x60] ss:$8 sps:$4 sm:$0xff]  }
 0x5d9   : > { %v2335_v45 = vpop.xlane.xlu1 %2334  ;;  %v13668_v13 = vpop.eup %13667 }
 0x5da   : > { %v2347_v41 = vmul.f32 %v13668_v13, %v15232_v25  ;;  %v15295_v13 = vpack.c.bf16 %v15104_v59, %v15035_v50  ;;  %v15309_v59 = vpack.c.bf16 %v15065_v34, %v15063_v39 }
 0x5dd   : > { %v2329_v38 = vpop.xlane.xlu1 %2328 }
 0x5de   : > { %13675 = vrcp.f32 %v2329_v38  ;;  %v19039_v38 = vmov 0  }
 0x5e1   : > { %v2338_v19 = vpop.xlane.xlu1 %2337 }
 0x5e3   : > { %v13670_v63 = vpop.eup %13669 }
 0x5e4   : > { %v2348_v21 = vmul.f32 %v13670_v63, %v15241_v48  ;;  %v13672_v17 = vpop.eup %13671  ;;  %v12929_v48 = vld [vmem:[#allocation2 + $0x74] ss:$8 sps:$4 sm:$0xff]  }
 0x5e5   : > { %v2332_v56 = vpop.xlane.xlu1 %2331  ;;  %v13674_v6 = vpop.eup %13673  ;;  %v2350_v25 = vmul.f32 %v13672_v17, %v15237_v61 }
 0x5e6   : > { %13677 = vrcp.f32 %v2332_v56  ;;  %v2355_v55 = vpack.c.bf16 %v2348_v21, %v2347_v41  ;;  %v2349_v52 = vmul.f32 %v13674_v6, %v15227_v44  ;;  %v15301_v56 = vpack.c.bf16 %v15069_v29, %v15067_v32 }
 0x5e7   : > { %13679 = vrcp.f32 %v2338_v19  ;;  %v15315_v29 = vpack.c.bf16 %v15060_v23, %v15058_v26 }
 0x5e8   : > { %12448 = vmatprep.mubr.msk.bf16.mxu0 %vm1891_vm0, %v2355_v55  ;;  %13681 = vrcp.f32 %v2335_v45  ;;  %v2356_v47 = vpack.c.bf16 %v2350_v25, %v2349_v52  ;;  %v12936_v45 = vld [vmem:[#allocation2 + $0x40] ss:$8 sps:$4 sm:$0xff]   ;;  %v15327_v25 = vpack.c.bf16 %v15032_v42, %v15028_v28 }
 0x5e9   : > { %v2368_v49 = vpop.permute.xlu1 %2367 }
 0x5ea   : > { %12442 = vmatprep.subr.bf16.mxu0 %v2368_v49  ;;  %v2737_v28 = vsel %vm1891_vm0, %v15327_v25, 0 }
 0x5eb   : > { %12443 = vmatpush3.bf16.msra.mxu0 %v2368_v49  ;;  %v13676_v51 = vpop.eup %13675 }
 0x5ec   : > { %12444 = vmatprep.subr.bf16.mxu0 %v2366_v20  ;;  %v2351_v33 = vmul.f32 %v13676_v51, %v15249_v40  ;;  %v12933_v40 = vld [vmem:[#allocation2 + $0x50] ss:$8 sps:$4 sm:$0xff]  }
 0x5ef   : > { %12445 = vmatpush3.bf16.msra.mxu0 %v2366_v20 }
 0x5f0   : > { %12446 = vmatprep.subr.bf16.mxu0 %v2364_v4 }
 0x5f3   : > { %v13678_v0 = vpop.eup %13677  ;;  %12447 = vmatpush3.bf16.msra.mxu0 %v2364_v4 }
 0x5f4   : > { %2516 = vmatprep.subr.bf16.mxu0 %v12929_v48  ;;  %v2352_v22 = vmul.f32 %v13678_v0, %v15257_v37  ;;  %v13680_v60 = vpop.eup %13679  ;;  %v12938_v37 = vld [vmem:[#allocation2 + $0x44] ss:$8 sps:$4 sm:$0xff]   ;;  %v2740_v48 = vsel %vm1891_vm0, %v15295_v13, 0 }
 0x5f5   : > { %v13682_v61 = vpop.eup %13681  ;;  %v2354_v44 = vmul.f32 %v13680_v60, %v15253_v1 }
 0x5f6   : > { %12449 = vmatmul.mubr.msk.bf16.vlgmr.msra.gmra.mxu0 %vm1891_vm0, %v2356_v47  ;;  %v2357_v2 = vpack.c.bf16 %v2352_v22, %v2351_v33  ;;  %v2353_v62 = vmul.f32 %v13682_v61, %v15245_v54  ;;  %v15347_v33 = vpack.c.bf16 %v15015_v30, %v15011_v14  ;;  %v15357_v22 = vpack.c.bf16 %v15013_v15, %v15009_v7 }
 0x5f7   : > { %2517 = vmatpush1.bf16.msra.mxu0 %v12927_v31  ;;  %v15337_v31 = vpack.c.bf16 %v15024_v9, %v15020_v16  ;;  %v15366_v30 = vpack.c.bf16 %v15022_v10, %v15018_v8  ;;  %v15378_v7 = vpack.c.bf16 %v15054_v27, %v15038_v18 }
 0x5f8   : > { %12452 = vmatprep.mubr.msk.bf16.mxu0 %vm1891_vm0, %v2357_v2  ;;  %2518 = vmatprep.subr.bf16.mxu0 %v12932_v11  ;;  %v2358_v12 = vpack.c.bf16 %v2354_v44, %v2353_v62  ;;  %v2731_v14 = vsel %vm1891_vm0, %v15347_v33, 0  ;;  %v15370_v11 = vpack.c.bf16 %v15030_v57, %v15026_v24 }
 0x5f9   : > { %v2734_v16 = vsel %vm1891_vm0, %v15337_v31, 0 }
 0x5fb   : > { %2519 = vmatpush1.bf16.msra.mxu0 %v12930_v53 }
 0x5fc   : > { %2520 = vmatprep.subr.bf16.mxu0 %v12935_v5 }
 0x5fe   : > { %12453 = vmatmul.mubr.msk.bf16.gmra.mxu0 %vm1891_vm0, %v2358_v12 }
 0x5ff   : > { %2521 = vmatpush1.bf16.msra.mxu0 %v12933_v40  ;;  %2540 = vmatprep.mubr.bf16.mxu0 %v19039_v38 }
 0x600   : > { %2522 = vmatprep.subr.bf16.mxu0 %v12938_v37 }
 0x603   : > { %2523 = vmatpush1.bf16.msra.mxu0 %v12936_v45 }
 0x604   : > { %12656 = vmatprep.subr.msk.bf16.mxu0 %vm1891_vm0, %v15295_v13 }
 0x643   : > { %v12418_v54 = vpop.f32.mrf.mxu0 }
 0x645   : > { %v2119_v1 = vpop.f32.mrf.mxu0 }
 0x647   : > { %v12419_v19 = vpop.f32.mrf.mxu0 }
 0x648   : > { %v2151_v55 = vpack.c.bf16 %v12419_v19, %v12418_v54 }
 0x649   : > { %v2122_v63 = vpop.f32.mrf.mxu0 }
 0x64a   : > { %v2150_v41 = vpack.c.bf16 %v2122_v63, %v2119_v1 }
 0x64b   : > { %v12422_v21 = vpop.f32.mrf.mxu0 }
 0x64c   : > { %11273 = vmatmul.mubr.msk.bf16.vlgmr.msra.gmra.mxu1 %vm1891_vm0, %v2150_v41 }
 0x64d   : > { %12473 = vmatpush3.bf16.msra.mxu1 %v15100_v58  ;;  %2675 = vmatprep.mubr.bf16.mxu1 %v19039_v38  ;;  %v2135_v50 = vpop.f32.mrf.mxu0 }
 0x64e   : > { %12474 = vmatprep.subr.bf16.mxu1 %v15301_v56 }
 0x64f   : > { %v12423_v32 = vpop.f32.mrf.mxu0 }
 0x650   : > { %v2153_v20 = vpack.c.bf16 %v12423_v32, %v12422_v21 }
 0x651   : > { %12475 = vmatpush3.bf16.msra.mxu1 %v15301_v56  ;;  %v2138_v39 = vpop.f32.mrf.mxu0 }
 0x652   : > { %12476 = vmatprep.subr.bf16.mxu1 %v15309_v59  ;;  %v2152_v34 = vpack.c.bf16 %v2138_v39, %v2135_v50 }
 0x654   : > { %11274 = vmatmul.mubr.msk.bf16.gmra.mxu1 %vm1891_vm0, %v2151_v55 }
 0x655   : > { %12477 = vmatpush3.bf16.msra.mxu1 %v15309_v59  ;;  %2685 = vmatprep.mubr.bf16.mxu1 %v19039_v38 }
 0x656   : > { %12478 = vmatprep.subr.bf16.mxu1 %v15315_v29 }
 0x659   : > { %12479 = vmatpush3.bf16.msra.mxu1 %v15315_v29 }
 0x65c   : > { %11275 = vmatmul.mubr.msk.bf16.gmra.mxu1 %vm1891_vm0, %v2152_v34 }
 0x65d   : > { %2695 = vmatprep.mubr.bf16.mxu1 %v19039_v38 }
 0x664   : > { %11276 = vmatmul.mubr.msk.bf16.gmra.mxu1 %vm1891_vm0, %v2153_v20 }
 0x6b6   : > { %v12450_v26 = vpop.f32.mrf.mxu0 }
 0x6b8   : > { %v2421_v23 = vpop.f32.mrf.mxu0 }
 0x6ba   : > { %v12451_v49 = vpop.f32.mrf.mxu0 }
 0x6bb   : > { %v2453_v52 = vpack.c.bf16 %v12451_v49, %v12450_v26 }
 0x6bc   : > { %v2424_v17 = vpop.f32.mrf.mxu0 }
 0x6bd   : > { %v2452_v6 = vpack.c.bf16 %v2424_v17, %v2421_v23 }
 0x6be   : > { %v12454_v4 = vpop.f32.mrf.mxu0 }
 0x6bf   : > { %11261 = vmatmul.mubr.msk.bf16.vlgmr.msra.gmra.mxu0 %vm1891_vm0, %v2452_v6 }
 0x6c0   : > { %12457 = vmatpush3.bf16.xpose.msra.mxu0 %v2740_v48  ;;  %2550 = vmatprep.mubr.bf16.mxu0 %v19039_v38  ;;  %v2437_v51 = vpop.f32.mrf.mxu0 }
 0x6c1   : > { %12657 = vmatprep.subr.msk.bf16.mxu0 %vm1891_vm0, %v15327_v25 }
 0x6c2   : > { %v12455_v0 = vpop.f32.mrf.mxu0 }
 0x6c3   : > { %v2455_v9 = vpack.c.bf16 %v12455_v0, %v12454_v4 }
 0x6c4   : > { %v2440_v42 = vpop.f32.mrf.mxu0 }
 0x6c5   : > { %v2454_v47 = vpack.c.bf16 %v2440_v42, %v2437_v51 }
 0x6c7   : > { %11262 = vmatmul.mubr.msk.bf16.gmra.mxu0 %vm1891_vm0, %v2453_v52 }
 0x6c8   : > { %12459 = vmatpush3.bf16.xpose.msra.mxu0 %v2737_v28  ;;  %2560 = vmatprep.mubr.bf16.mxu0 %v19039_v38 }
 0x6c9   : > { %12658 = vmatprep.subr.msk.bf16.mxu0 %vm1891_vm0, %v15337_v31 }
 0x6cf   : > { %11263 = vmatmul.mubr.msk.bf16.gmra.mxu0 %vm1891_vm0, %v2454_v47 }
 0x6d0   : > { %12461 = vmatpush3.bf16.xpose.msra.mxu0 %v2734_v16  ;;  %2570 = vmatprep.mubr.bf16.mxu0 %v19039_v38 }
 0x6d1   : > { %12659 = vmatprep.subr.msk.bf16.mxu0 %vm1891_vm0, %v15347_v33 }
 0x6d7   : > { %11264 = vmatmul.mubr.msk.bf16.gmra.mxu0 %vm1891_vm0, %v2455_v9 }
 0x6d8   : > { %12463 = vmatpush3.bf16.xpose.msra.mxu0 %v2731_v14  ;;  %12464 = vmatprep.mubr.msk.bf16.mxu0 %vm1891_vm0, %v15357_v22 }
 0x6df   : > { %12465 = vmatmul.mubr.msk.bf16.vlgmr.msra.gmra.mxu0 %vm1891_vm0, %v15366_v30 }
 0x6e0   : > { %12468 = vmatprep.mubr.msk.bf16.mxu0 %vm1891_vm0, %v15370_v11 }
 0x6e7   : > { %12469 = vmatmul.mubr.msk.bf16.gmra.mxu0 %vm1891_vm0, %v15378_v7 }
 0x6e8   : > { %3064 = vmatprep.mubr.bf16.mxu0 %v19039_v38 }
 0x77f   : > { %v15383_v15 = vpop.f32.mrf.mxu0 }
 0x781   : > { %v15385_v8 = vpop.f32.mrf.mxu0 }
 0x783   : > { %v15387_v10 = vpop.f32.mrf.mxu0 }
 0x785   : > { %v15389_v24 = vpop.f32.mrf.mxu0 }
 0x787   : > { %v15391_v57 = vpop.f32.mrf.mxu0 }
 0x789   : > { %v15393_v60 = vpop.f32.mrf.mxu0 }
 0x78b   : > { %v15395_v2 = vpop.f32.mrf.mxu0 }
 0x78d   : > { %v15397_v18 = vpop.f32.mrf.mxu0 }
 0x78f   : > { %v15399_v27 = vpop.f32.mrf.mxu0 }
 0x791   : > { %v15401_v61 = vpop.f32.mrf.mxu0 }
 0x793   : > { %v15403_v53 = vpop.f32.mrf.mxu0 }
 0x795   : > { %v15405_v44 = vpop.f32.mrf.mxu0 }
 0x797   : > { %v15407_v5 = vpop.f32.mrf.mxu0 }
 0x799   : > { %v15409_v62 = vpop.f32.mrf.mxu0 }
 0x79b   : > { %v15411_v40 = vpop.f32.mrf.mxu0 }
 0x79d   : > { %v15413_v12 = vpop.f32.mrf.mxu0 }
 0x79f   : > { %v12466_v37 = vpop.f32.mrf.mxu0 }
 0x7a0   : > { %v2785_v19 = vadd.f32 %v12466_v37, %v15106_v3 }
 0x7a1   : > { %v2776_v45 = vpop.f32.mrf.mxu0 }
 0x7a2   : > { %v2777_v54 = vadd.f32 %v2776_v45, %v15106_v3  ;;  %v2813_v39 = vsel %vm1891_vm0, %v2785_v19, -inf }
 0x7a3   : > { %v12467_v1 = vpop.f32.mrf.mxu0 }
 0x7a4   : > { %v2807_v63 = vsel %vm1891_vm0, %v2777_v54, -inf  ;;  %v2788_v55 = vadd.f32 %v12467_v1, %v15106_v3 }
 0x7a5   : > { %v2779_v41 = vpop.f32.mrf.mxu0  ;;  %2808 = vmax.xlane.f32.xlu0 %v2807_v63 }
 0x7a6   : > { %v2780_v21 = vadd.f32 %v2779_v41, %v15106_v3  ;;  %v2816_v23 = vsel %vm1891_vm0, %v2788_v55, -inf }
 0x7a7   : > { %v12470_v50 = vpop.f32.mrf.mxu0 }
 0x7a8   : > { %v2810_v32 = vsel %vm1891_vm0, %v2780_v21, -inf  ;;  %v2801_v6 = vadd.f32 %v12470_v50, %v15106_v3 }
 0x7a9   : > { %v2792_v34 = vpop.f32.mrf.mxu0  ;;  %2811 = vmax.xlane.f32.xlu1 %v2810_v32  ;;  %2814 = vmax.xlane.f32.xlu0 %v2813_v39 }
 0x7aa   : > { %v2793_v26 = vadd.f32 %v2792_v34, %v15106_v3  ;;  %v2825_v0 = vsel %vm1891_vm0, %v2801_v6, -inf }
 0x7ab   : > { %v12471_v20 = vpop.f32.mrf.mxu0 }
 0x7ac   : > { %v2804_v4 = vadd.f32 %v12471_v20, %v15106_v3  ;;  %v2819_v51 = vsel %vm1891_vm0, %v2793_v26, -inf }
 0x7ad   : > { %v2795_v49 = vpop.f32.mrf.mxu0  ;;  %2817 = vmax.xlane.f32.xlu0 %v2816_v23 }
 0x7ae   : > { %v15425_v17 = vadd.f32 %v2795_v49, %v15106_v3  ;;  %v2828_v52 = vsel %vm1891_vm0, %v2804_v4, -inf }
 0x7b0   : > { %v2822_v48 = vsel %vm1891_vm0, %v15425_v17, -inf }
 0x7b1   : > { %2823 = vmax.xlane.f32.xlu1 %v2822_v48  ;;  %2820 = vmax.xlane.f32.xlu0 %v2819_v51 }
 0x7b5   : > { %2829 = vmax.xlane.f32.xlu1 %v2828_v52  ;;  %2826 = vmax.xlane.f32.xlu0 %v2825_v0 }
 0x82e   : > { %v2809_v28 = vpop.xlane.xlu0 %2808 }
 0x82f   : > { %v2831_v42 = vsub.f32 %v2777_v54, %v2809_v28 }
 0x831   : > { %v2839_v45 = vmul.f32 1.442695, %v2831_v42 }
 0x832   : > { %v2812_v47 = vpop.xlane.xlu1 %2811  ;;  %v2815_v16 = vpop.xlane.xlu0 %2814 }
 0x833   : > { %v2833_v9 = vsub.f32 %v2785_v19, %v2815_v16  ;;  %v2832_v14 = vsub.f32 %v2780_v21, %v2812_v47 }
 0x835   : > { %v2843_v37 = vmul.f32 1.442695, %v2833_v9  ;;  %v2841_v41 = vmul.f32 1.442695, %v2832_v14 }
 0x836   : > { %v2818_v1 = vpop.xlane.xlu0 %2817 }
 0x837   : > { %v2834_v63 = vsub.f32 %v2788_v55, %v2818_v1  ;;  %13683 = vpow2.f32 %v2843_v37 }
 0x838   : > { %13685 = vpow2.f32 %v2839_v45 }
 0x839   : > { %v2845_v50 = vmul.f32 1.442695, %v2834_v63 }
 0x83a   : > { %v2821_v32 = vpop.xlane.xlu0 %2820  ;;  %v2824_v47 = vpop.xlane.xlu1 %2823 }
 0x83b   : > { %13687 = vpow2.f32 %v2845_v50  ;;  %v2835_v39 = vsub.f32 %v2793_v26, %v2821_v32  ;;  %v2836_v14 = vsub.f32 %v15425_v17, %v2824_v47  ;;  %v12944_v17 = vld [vmem:[#allocation2 + $0xa4] ss:$8 sps:$4 sm:$0xff]  }
 0x83c   : > { %13689 = vpow2.f32 %v2841_v41 }
 0x83d   : > { %v2847_v54 = vmul.f32 1.442695, %v2835_v39  ;;  %v2849_v45 = vmul.f32 1.442695, %v2836_v14 }
 0x83e   : > { %v2827_v34 = vpop.xlane.xlu0 %2826  ;;  %v2830_v16 = vpop.xlane.xlu1 %2829 }
 0x83f   : > { %v2837_v20 = vsub.f32 %v2801_v6, %v2827_v34  ;;  %v2838_v9 = vsub.f32 %v2804_v4, %v2830_v16  ;;  %v12942_v4 = vld [vmem:[#allocation2 + $0xa0] ss:$8 sps:$4 sm:$0xff]  }
 0x841   : > { %v2851_v23 = vmul.f32 1.442695, %v2837_v20  ;;  %v2853_v37 = vmul.f32 1.442695, %v2838_v9 }
 0x843   : > { %13691 = vpow2.f32 %v2851_v23 }
 0x844   : > { %v15434_v49 = vpop.eup %13683  ;;  %13693 = vpow2.f32 %v2847_v54 }
 0x845   : > { %v2861_v19 = vsel %vm1891_vm0, %v15434_v49, 0.0  ;;  %v15438_v21 = vpop.eup %13685  ;;  %13695 = vpow2.f32 %v2853_v37 }
 0x846   : > { %2862 = vadd.xlane.f32.xlu0 %v2861_v19  ;;  %v2855_v26 = vsel %vm1891_vm0, %v15438_v21, 0.0  ;;  %13697 = vpow2.f32 %v2849_v45 }
 0x848   : > { %v13688_v55 = vpop.eup %13687 }
 0x849   : > { %v2864_v48 = vsel %vm1891_vm0, %v13688_v55, 0.0  ;;  %v13690_v51 = vpop.eup %13689 }
 0x84a   : > { %2865 = vadd.xlane.f32.xlu1 %v2864_v48  ;;  %2856 = vadd.xlane.f32.xlu0 %v2855_v26  ;;  %v2858_v6 = vsel %vm1891_vm0, %v13690_v51, 0.0 }
 0x84e   : > { %2859 = vadd.xlane.f32.xlu1 %v2858_v6 }
 0x850   : > { %v15444_v52 = vpop.eup %13691 }
 0x851   : > { %v2873_v0 = vsel %vm1891_vm0, %v15444_v52, 0.0  ;;  %v15448_v28 = vpop.eup %13693 }
 0x852   : > { %2874 = vadd.xlane.f32.xlu0 %v2873_v0  ;;  %v2867_v42 = vsel %vm1891_vm0, %v15448_v28, 0.0 }
 0x856   : > { %2868 = vadd.xlane.f32.xlu0 %v2867_v42 }
 0x85f   : > { %3141 = vrot.lane.b32.xlu1 %v15327_v25, %s18957_s30  ;;  %v15463_v25 = vpop.eup %13695 }
 0x860   : > { %v15467_v1 = vpop.eup %13697 }
 0x863   : > { %3139 = vrot.lane.b32.xlu1 %v15337_v31, %s18957_s30  ;;  %v2876_v31 = vsel %vm1891_vm0, %v15463_v25, 0.0 }
 0x86c   : > { %3143 = vrot.lane.b32.xlu0 %v15295_v13, %s18957_s30  ;;  %v2870_v13 = vsel %vm1891_vm0, %v15467_v1, 0.0 }
 0x870   : > { %3125 = vrot.lane.b32.xlu0 %v15357_v22, %s18957_s30  ;;  %v12939_v22 = vld [vmem:[#allocation2 + $0xb0] ss:$8 sps:$4 sm:$0xff]  }
 0x874   : > { %3129 = vrot.lane.b32.xlu0 %v15370_v11, %s18957_s30  ;;  %v12941_v11 = vld [vmem:[#allocation2 + $0xb4] ss:$8 sps:$4 sm:$0xff]  }
 0x875   : > { %3040 = vmatprep.subr.bf16.mxu0 %v12941_v11 }
 0x876   : > { %3041 = vmatpush1.bf16.msra.mxu0 %v12939_v22 }
 0x877   : > { %3042 = vmatprep.subr.bf16.mxu0 %v12944_v17 }
 0x87a   : > { %3043 = vmatpush1.bf16.msra.mxu0 %v12942_v4 }
 0x887   : > { %2877 = vadd.xlane.f32.xlu1 %v2876_v31 }
 0x88b   : > { %2871 = vadd.xlane.f32.xlu1 %v2870_v13 }
 0x89c   : > { %3137 = vrot.lane.b32.xlu1 %v15347_v33, %s18957_s30 }
 0x8a0   : > { %3127 = vrot.lane.b32.xlu1 %v15366_v30, %s18957_s30 }
 0x8a4   : > { %3131 = vrot.lane.b32.xlu1 %v15378_v7, %s18957_s30 }
 0x8cf   : > { %v2863_v63 = vpop.xlane.xlu0 %2862 }
 0x8d3   : > { %v2866_v41 = vpop.xlane.xlu1 %2865  ;;  %v2857_v50 = vpop.xlane.xlu0 %2856 }
 0x8d4   : > { %13699 = vrcp.f32 %v2866_v41 }
 0x8d5   : > { %13701 = vrcp.f32 %v2857_v50 }
 0x8d6   : > { %13703 = vrcp.f32 %v2863_v63 }
 0x8d7   : > { %v2860_v33 = vpop.xlane.xlu1 %2859 }
 0x8d8   : > { %13705 = vrcp.f32 %v2860_v33  ;;  %v12945_v33 = vld [vmem:[#allocation2 + $0x90] ss:$8 sps:$4 sm:$0xff]  }
 0x8db   : > { %v2875_v30 = vpop.xlane.xlu0 %2874  ;;  %v3142_v47 = vpop.permute.xlu1 %3141 }
 0x8df   : > { %v2869_v32 = vpop.xlane.xlu0 %2868  ;;  %v3140_v16 = vpop.permute.xlu1 %3139 }
 0x8e1   : > { %v13700_v39 = vpop.eup %13699 }
 0x8e2   : > { %v13702_v7 = vpop.eup %13701  ;;  %v2890_v54 = vmul.f32 %v13700_v39, %v13688_v55  ;;  %v3164_v55 = vsel %vm1891_vm0, %v3142_v47, 0  ;;  %v15500_v39 = vpop.f32.mrf.mxu1 }
 0x8e3   : > { %v13704_v34 = vpop.eup %13703  ;;  %v3144_v20 = vpop.permute.xlu0 %3143  ;;  %v2887_v19 = vmul.f32 %v13702_v7, %v15438_v21 }
 0x8e4   : > { %12660 = vmatprep.subr.msk.bf16.mxu1 %vm1891_vm0, %v3144_v20  ;;  %v2889_v26 = vmul.f32 %v13704_v34, %v15434_v49  ;;  %v3167_v42 = vsel %vm1891_vm0, %v3144_v20, 0  ;;  %v3161_v49 = vsel %vm1891_vm0, %v3140_v16, 0  ;;  %v15502_v7 = vpop.f32.mrf.mxu1 }
 0x8e5   : > { %v13706_v23 = vpop.eup %13705 }
 0x8e6   : > { %v2888_v48 = vmul.f32 %v13706_v23, %v13690_v51  ;;  %v2896_v0 = vpack.c.bf16 %v2890_v54, %v2889_v26  ;;  %v15504_v34 = vpop.f32.mrf.mxu1 }
 0x8e7   : > { %v3126_v50 = vpop.permute.xlu0 %3125 }
 0x8e8   : > { %v2895_v6 = vpack.c.bf16 %v2888_v48, %v2887_v19  ;;  %v15506_v20 = vpop.f32.mrf.mxu1 }
 0x8ea   : > { %12480 = vmatprep.mubr.msk.bf16.mxu1 %vm1891_vm0, %v2895_v6  ;;  %v15508_v23 = vpop.f32.mrf.mxu1 }
 0x8eb   : > { %12481 = vmatmul.mubr.msk.bf16.vlgmr.msra.gmra.mxu1 %vm1891_vm0, %v2896_v0 }
 0x8ec   : > { %12489 = vmatpush3.bf16.xpose.msra.mxu1 %v3167_v42  ;;  %v15510_v54 = vpop.f32.mrf.mxu1 }
 0x8ed   : > { %12661 = vmatprep.subr.msk.bf16.mxu1 %vm1891_vm0, %v3142_v47 }
 0x8ee   : > { %v15512_v19 = vpop.f32.mrf.mxu1 }
 0x8f0   : > { %v15514_v48 = vpop.f32.mrf.mxu1 }
 0x8f2   : > { %v15516_v26 = vpop.f32.mrf.mxu1 }
 0x8f4   : > { %12491 = vmatpush3.bf16.xpose.msra.mxu1 %v3164_v55  ;;  %v15518_v6 = vpop.f32.mrf.mxu1 }
 0x8f5   : > { %12662 = vmatprep.subr.msk.bf16.mxu1 %vm1891_vm0, %v3140_v16 }
 0x8f6   : > { %v15520_v0 = vpop.f32.mrf.mxu1 }
 0x8f8   : > { %v15522_v42 = vpop.f32.mrf.mxu1 }
 0x8fa   : > { %v15524_v47 = vpop.f32.mrf.mxu1 }
 0x8fc   : > { %12493 = vmatpush3.bf16.xpose.msra.mxu1 %v3161_v49  ;;  %v15526_v55 = vpop.f32.mrf.mxu1 }
 0x8fe   : > { %v15528_v16 = vpop.f32.mrf.mxu1 }
 0x900   : > { %v15530_v49 = vpop.f32.mrf.mxu1 }
 0x910   : > { %v2878_v21 = vpop.xlane.xlu1 %2877 }
 0x911   : > { %13707 = vrcp.f32 %v2878_v21 }
 0x912   : > { %13709 = vrcp.f32 %v2869_v32  ;;  %v3130_v32 = vpop.permute.xlu0 %3129 }
 0x913   : > { %13711 = vrcp.f32 %v2875_v30  ;;  %v12947_v30 = vld [vmem:[#allocation2 + $0x94] ss:$8 sps:$4 sm:$0xff]  }
 0x914   : > { %v2872_v51 = vpop.xlane.xlu1 %2871  ;;  %3044 = vmatprep.subr.bf16.mxu0 %v12947_v30 }
 0x915   : > { %13713 = vrcp.f32 %v2872_v51  ;;  %3045 = vmatpush1.bf16.msra.mxu0 %v12945_v33 }
 0x918   : > { %v3138_v9 = vpop.permute.xlu1 %3137 }
 0x919   : > { %12663 = vmatprep.subr.msk.bf16.mxu1 %vm1891_vm0, %v3138_v9  ;;  %v3158_v14 = vsel %vm1891_vm0, %v3138_v9, 0 }
 0x91a   : > { %12495 = vmatpush3.bf16.xpose.msra.mxu1 %v3158_v14 }
 0x91e   : > { %v13708_v37 = vpop.eup %13707 }
 0x91f   : > { %v13710_v45 = vpop.eup %13709  ;;  %v2894_v22 = vmul.f32 %v13708_v37, %v15463_v25  ;;  %v3128_v25 = vpop.permute.xlu1 %3127 }
 0x920   : > { %v13712_v31 = vpop.eup %13711  ;;  %v2891_v11 = vmul.f32 %v13710_v45, %v15448_v28  ;;  %v12948_v28 = vld [vmem:[#allocation2 + $0x80] ss:$8 sps:$4 sm:$0xff]  }
 0x921   : > { %v2893_v4 = vmul.f32 %v13712_v31, %v15444_v52 }
 0x922   : > { %v13714_v13 = vpop.eup %13713 }
 0x923   : > { %v2892_v17 = vmul.f32 %v13714_v13, %v15467_v1  ;;  %v2898_v41 = vpack.c.bf16 %v2894_v22, %v2893_v4  ;;  %v12950_v1 = vld [vmem:[#allocation2 + $0x84] ss:$8 sps:$4 sm:$0xff]   ;;  %v3132_v52 = vpop.permute.xlu1 %3131 }
 0x924   : > { %3046 = vmatprep.subr.bf16.mxu0 %v12950_v1 }
 0x925   : > { %v2897_v63 = vpack.c.bf16 %v2892_v17, %v2891_v11  ;;  %3047 = vmatpush1.bf16.msra.mxu0 %v12948_v28 }
 0x927   : > { %12484 = vmatprep.mubr.msk.bf16.mxu1 %vm1891_vm0, %v2897_v63 }
 0x928   : > { %12485 = vmatmul.mubr.msk.bf16.gmra.mxu1 %vm1891_vm0, %v2898_v41 }
 0x929   : > { %12496 = vmatprep.mubr.msk.bf16.mxu1 %vm1891_vm0, %v3126_v50 }
 0x930   : > { %12497 = vmatmul.mubr.msk.bf16.vlgmr.msra.gmra.mxu1 %vm1891_vm0, %v3128_v25 }
 0x931   : > { %12500 = vmatprep.mubr.msk.bf16.mxu1 %vm1891_vm0, %v3130_v32 }
 0x938   : > { %12501 = vmatmul.mubr.msk.bf16.gmra.mxu1 %vm1891_vm0, %v3132_v52 }
 0x939   : > { %3507 = vmatprep.mubr.bf16.mxu1 %v19039_v38 }
 0x9ab   : > { %v12482_v21 = vpop.f32.mrf.mxu1 }
 0x9ad   : > { %v2945_v51 = vpop.f32.mrf.mxu1 }
 0x9af   : > { %v12483_v9 = vpop.f32.mrf.mxu1 }
 0x9b0   : > { %v2977_v45 = vpack.c.bf16 %v12483_v9, %v12482_v21 }
 0x9b1   : > { %v2948_v14 = vpop.f32.mrf.mxu1 }
 0x9b2   : > { %v2976_v37 = vpack.c.bf16 %v2948_v14, %v2945_v51 }
 0x9b4   : > { %11293 = vmatmul.mubr.msk.bf16.vlgmr.msra.gmra.mxu0 %vm1891_vm0, %v2976_v37 }
 0x9b5   : > { %3074 = vmatprep.mubr.bf16.mxu0 %v19039_v38 }
 0x9bc   : > { %11294 = vmatmul.mubr.msk.bf16.gmra.mxu0 %vm1891_vm0, %v2977_v45 }
 0x9bd   : > { %3084 = vmatprep.mubr.bf16.mxu0 %v19039_v38 }
 0x9e8   : > { %v12486_v31 = vpop.f32.mrf.mxu1 }
 0x9ea   : > { %v2961_v13 = vpop.f32.mrf.mxu1 }
 0x9ec   : > { %v12487_v22 = vpop.f32.mrf.mxu1 }
 0x9ed   : > { %v2979_v32 = vpack.c.bf16 %v12487_v22, %v12486_v31 }
 0x9ee   : > { %v2964_v11 = vpop.f32.mrf.mxu1 }
 0x9ef   : > { %v2978_v17 = vpack.c.bf16 %v2964_v11, %v2961_v13 }
 0x9f0   : > { %v12498_v4 = vpop.f32.mrf.mxu1 }
 0x9f1   : > { %11295 = vmatmul.mubr.msk.bf16.gmra.mxu0 %vm1891_vm0, %v2978_v17  ;;  %v3212_v33 = vadd.f32 %v12498_v4, %v15106_v3 }
 0x9f2   : > { %v3203_v63 = vpop.f32.mrf.mxu1  ;;  %3094 = vmatprep.mubr.bf16.mxu0 %v19039_v38 }
 0x9f3   : > { %v3204_v41 = vadd.f32 %v3203_v63, %v15106_v3  ;;  %v3240_v51 = vsel %vm1891_vm0, %v3212_v33, -inf }
 0x9f4   : > { %v12499_v50 = vpop.f32.mrf.mxu1 }
 0x9f5   : > { %v3234_v30 = vsel %vm1891_vm0, %v3204_v41, -inf  ;;  %v3215_v52 = vadd.f32 %v12499_v50, %v15106_v3 }
 0x9f6   : > { %v3206_v25 = vpop.f32.mrf.mxu1  ;;  %3235 = vmax.xlane.f32.xlu0 %v3234_v30  ;;  %v2668_v30 = vadd.f32 %v15500_v39, %v15383_v15 }
 0x9f7   : > { %v3207_v28 = vadd.f32 %v3206_v25, %v15106_v3  ;;  %v3243_v45 = vsel %vm1891_vm0, %v3215_v52, -inf }
 0x9f8   : > { %v12502_v1 = vpop.f32.mrf.mxu1 }
 0x9f9   : > { %11296 = vmatmul.mubr.msk.bf16.gmra.mxu0 %vm1891_vm0, %v2979_v32  ;;  %v3237_v21 = vsel %vm1891_vm0, %v3207_v28, -inf  ;;  %v3228_v22 = vadd.f32 %v12502_v1, %v15106_v3  ;;  %v2670_v32 = vadd.f32 %v15502_v7, %v15385_v8  ;;  %v2680_v8 = vadd.f32 %v15510_v54, %v15393_v60 }
 0x9fa   : > { %3238 = vmax.xlane.f32.xlu1 %v3237_v21  ;;  %3241 = vmax.xlane.f32.xlu0 %v3240_v51  ;;  %v3219_v9 = vpop.f32.mrf.mxu1  ;;  %v2672_v51 = vadd.f32 %v15504_v34, %v15387_v10  ;;  %v2682_v10 = vadd.f32 %v15512_v19, %v15395_v2 }
 0x9fb   : > { %v3220_v37 = vadd.f32 %v3219_v9, %v15106_v3  ;;  %v3252_v50 = vsel %vm1891_vm0, %v3228_v22, -inf }
 0x9fc   : > { %v12503_v14 = vpop.f32.mrf.mxu1 }
 0x9fd   : > { %v3231_v11 = vadd.f32 %v12503_v14, %v15106_v3  ;;  %v3246_v4 = vsel %vm1891_vm0, %v3220_v37, -inf }
 0x9fe   : > { %3244 = vmax.xlane.f32.xlu0 %v3243_v45  ;;  %v3222_v31 = vpop.f32.mrf.mxu1 }
 0x9ff   : > { %v15549_v13 = vadd.f32 %v3222_v31, %v15106_v3  ;;  %v3255_v63 = vsel %vm1891_vm0, %v3231_v11, -inf }
 0xa01   : > { %v3249_v17 = vsel %vm1891_vm0, %v15549_v13, -inf }
 0xa02   : > { %3250 = vmax.xlane.f32.xlu1 %v3249_v17  ;;  %3247 = vmax.xlane.f32.xlu0 %v3246_v4 }
 0xa06   : > { %3256 = vmax.xlane.f32.xlu1 %v3255_v63  ;;  %3253 = vmax.xlane.f32.xlu0 %v3252_v50 }
 0xa1c   : > { %3336 = vrot.lane.b32.xlu0 %v15100_v58, %s18957_s30  ;;  %v2678_v58 = vadd.f32 %v15508_v23, %v15391_v57 }
 0xa74   : > { %v3066_v25 = vpop.f32.mrf.mxu0 }
 0xa75   : > { %v15564_v1 = vadd.f32 %v3066_v25, %v2668_v30 }
 0xa76   : > { %v3068_v21 = vpop.f32.mrf.mxu0 }
 0xa77   : > { %v15568_v9 = vadd.f32 %v3068_v21, %v2670_v32 }
 0xa78   : > { %v3070_v14 = vpop.f32.mrf.mxu0 }
 0xa79   : > { %v15570_v45 = vadd.f32 %v3070_v14, %v2672_v51 }
 0xa7a   : > { %v15572_v31 = vpop.f32.mrf.mxu0 }
 0xa7c   : > { %v3076_v15 = vpop.f32.mrf.mxu0 }
 0xa7d   : > { %v15578_v39 = vadd.f32 %v3076_v15, %v2678_v58 }
 0xa7e   : > { %v3078_v7 = vpop.f32.mrf.mxu0 }
 0xa7f   : > { %v15582_v34 = vadd.f32 %v3078_v7, %v2680_v8  ;;  %v3236_v17 = vpop.xlane.xlu0 %3235 }
 0xa80   : > { %v3080_v4 = vpop.f32.mrf.mxu0  ;;  %v3258_v50 = vsub.f32 %v3204_v41, %v3236_v17 }
 0xa81   : > { %v15584_v63 = vadd.f32 %v3080_v4, %v2682_v10 }
 0xa82   : > { %v3266_v21 = vmul.f32 1.442695, %v3258_v50 }
 0xa83   : > { %v3239_v30 = vpop.xlane.xlu1 %3238  ;;  %v3242_v25 = vpop.xlane.xlu0 %3241 }
 0xa84   : > { %v3260_v57 = vsub.f32 %v3212_v33, %v3242_v25  ;;  %v3259_v23 = vsub.f32 %v3207_v28, %v3239_v30 }
 0xa86   : > { %v3270_v32 = vmul.f32 1.442695, %v3260_v57  ;;  %v3268_v51 = vmul.f32 1.442695, %v3259_v23 }
 0xa87   : > { %v3245_v60 = vpop.xlane.xlu0 %3244 }
 0xa88   : > { %v3261_v54 = vsub.f32 %v3215_v52, %v3245_v60  ;;  %13715 = vpow2.f32 %v3270_v32 }
 0xa89   : > { %13717 = vpow2.f32 %v3266_v21 }
 0xa8a   : > { %v3272_v14 = vmul.f32 1.442695, %v3261_v54 }
 0xa8b   : > { %v3251_v2 = vpop.xlane.xlu1 %3250  ;;  %v3248_v19 = vpop.xlane.xlu0 %3247 }
 0xa8c   : > { %13719 = vpow2.f32 %v3272_v14  ;;  %v3262_v58 = vsub.f32 %v3220_v37, %v3248_v19  ;;  %v3263_v17 = vsub.f32 %v15549_v13, %v3251_v2  ;;  %v15617_v2 = vpop.f32.mrf.mxu0 }
 0xa8d   : > { %13721 = vpow2.f32 %v3268_v51 }
 0xa8e   : > { %v3274_v10 = vmul.f32 1.442695, %v3262_v58  ;;  %v3276_v25 = vmul.f32 1.442695, %v3263_v17  ;;  %v2688_v58 = vadd.f32 %v15516_v26, %v15399_v27 }
 0xa8f   : > { %v3254_v15 = vpop.xlane.xlu0 %3253  ;;  %v3257_v8 = vpop.xlane.xlu1 %3256 }
 0xa90   : > { %v3264_v41 = vsub.f32 %v3228_v22, %v3254_v15  ;;  %v3265_v33 = vsub.f32 %v3231_v11, %v3257_v8  ;;  %v2690_v8 = vadd.f32 %v15518_v6, %v15401_v61  ;;  %v2698_v61 = vadd.f32 %v15524_v47, %v15407_v5  ;;  %v12953_v5 = vld [vmem:[#allocation2 + $0xf4] ss:$8 sps:$4 sm:$0xff]   ;;  %v12956_v47 = vld [vmem:[#allocation2 + $0xe4] ss:$8 sps:$4 sm:$0xff]  }
 0xa91   : > { %3483 = vmatprep.subr.bf16.mxu1 %v12953_v5 }
 0xa92   : > { %v3278_v7 = vmul.f32 1.442695, %v3264_v41  ;;  %v3280_v4 = vmul.f32 1.442695, %v3265_v33 }
 0xa93   : > { %v3337_v28 = vpop.permute.xlu0 %3336 }
 0xa94   : > { %12504 = vmatprep.subr.bf16.mxu0 %v3337_v28  ;;  %13723 = vpow2.f32 %v3278_v7 }
 0xa95   : > { %12505 = vmatpush3.bf16.msra.mxu0 %v3337_v28  ;;  %v15586_v52 = vpop.eup %13715  ;;  %13725 = vpow2.f32 %v3274_v10  ;;  %v2692_v10 = vadd.f32 %v15520_v0, %v15403_v53  ;;  %v2702_v0 = vadd.f32 %v15528_v16, %v15411_v40 }
 0xa96   : > { %v3288_v50 = vsel %vm1891_vm0, %v15586_v52, 0.0  ;;  %v15591_v37 = vpop.eup %13717  ;;  %13727 = vpow2.f32 %v3280_v4 }
 0xa97   : > { %3289 = vadd.xlane.f32.xlu0 %v3288_v50  ;;  %v3282_v13 = vsel %vm1891_vm0, %v15591_v37, 0.0  ;;  %13729 = vpow2.f32 %v3276_v25 }
 0xa99   : > { %v15593_v22 = vpop.eup %13719 }
 0xa9a   : > { %v3291_v11 = vsel %vm1891_vm0, %v15593_v22, 0.0  ;;  %v15597_v30 = vpop.eup %13721 }
 0xa9b   : > { %3292 = vadd.xlane.f32.xlu1 %v3291_v11  ;;  %3283 = vadd.xlane.f32.xlu0 %v3282_v13  ;;  %v3285_v57 = vsel %vm1891_vm0, %v15597_v30, 0.0 }
 0xa9f   : > { %3286 = vadd.xlane.f32.xlu1 %v3285_v57 }
 0xaa1   : > { %v15603_v23 = vpop.eup %13723 }
 0xaa2   : > { %v3300_v32 = vsel %vm1891_vm0, %v15603_v23, 0.0  ;;  %v15607_v21 = vpop.eup %13725 }
 0xaa3   : > { %3301 = vadd.xlane.f32.xlu1 %v3300_v32  ;;  %v3294_v60 = vsel %vm1891_vm0, %v15607_v21, 0.0  ;;  %v15611_v54 = vpop.eup %13727 }
 0xaa4   : > { %v3303_v51 = vsel %vm1891_vm0, %v15611_v54, 0.0  ;;  %v15615_v14 = vpop.eup %13729 }
 0xaa5   : > { %v3297_v19 = vsel %vm1891_vm0, %v15615_v14, 0.0 }
 0xaa7   : > { %3295 = vadd.xlane.f32.xlu1 %v3294_v60 }
 0xaab   : > { %3304 = vadd.xlane.f32.xlu1 %v3303_v51 }
 0xaaf   : > { %3298 = vadd.xlane.f32.xlu1 %v3297_v19 }
 0xab1   : > { %v3086_v15 = vpop.f32.mrf.mxu0  ;;  %3332 = vrot.lane.b32.xlu0 %v15309_v59, %s18957_s30  ;;  %v2700_v59 = vadd.f32 %v15526_v55, %v15409_v62  ;;  %v12954_v62 = vld [vmem:[#allocation2 + $0xe0] ss:$8 sps:$4 sm:$0xff]  }
 0xab2   : > { %v15625_v41 = vadd.f32 %v3086_v15, %v2688_v58 }
 0xab3   : > { %v3088_v7 = vpop.f32.mrf.mxu0 }
 0xab4   : > { %v15631_v33 = vadd.f32 %v3088_v7, %v2690_v8 }
 0xab5   : > { %v3090_v28 = vpop.f32.mrf.mxu0  ;;  %3330 = vrot.lane.b32.xlu0 %v15315_v29, %s18957_s30  ;;  %v12951_v29 = vld [vmem:[#allocation2 + $0xf0] ss:$8 sps:$4 sm:$0xff]  }
 0xab6   : > { %v15633_v17 = vadd.f32 %v3090_v28, %v2692_v10  ;;  %3484 = vmatpush1.bf16.msra.mxu1 %v12951_v29 }
 0xab7   : > { %v15637_v27 = vpop.f32.mrf.mxu0  ;;  %3485 = vmatprep.subr.bf16.mxu1 %v12956_v47 }
 0xab9   : > { %v3096_v26 = vpop.f32.mrf.mxu0 }
 0xaba   : > { %v15643_v6 = vadd.f32 %v3096_v26, %v2698_v61  ;;  %3486 = vmatpush1.bf16.msra.mxu1 %v12954_v62 }
 0xabb   : > { %v3098_v53 = vpop.f32.mrf.mxu0 }
 0xabc   : > { %v15647_v4 = vadd.f32 %v3098_v53, %v2700_v59 }
 0xabd   : > { %v3100_v50 = vpop.f32.mrf.mxu0 }
 0xabe   : > { %v15649_v11 = vadd.f32 %v3100_v50, %v2702_v0 }
 0xac0   : > { %3334 = vrot.lane.b32.xlu1 %v15301_v56, %s18957_s30 }
 0xb20   : > { %v3290_v55 = vpop.xlane.xlu0 %3289 }
 0xb24   : > { %v3293_v25 = vpop.xlane.xlu1 %3292  ;;  %v3284_v13 = vpop.xlane.xlu0 %3283 }
 0xb25   : > { %13731 = vrcp.f32 %v3284_v13  ;;  %v15665_v13 = vpop.f32.mrf.mxu0 }
 0xb28   : > { %v3287_v40 = vpop.xlane.xlu1 %3286  ;;  %v3333_v8 = vpop.permute.xlu0 %3332 }
 0xb29   : > { %13733 = vrcp.f32 %v3287_v40 }
 0xb2a   : > { %13735 = vrcp.f32 %v3293_v25  ;;  %v12959_v25 = vld [vmem:[#allocation2 + $0xd4] ss:$8 sps:$4 sm:$0xff]  }
 0xb2b   : > { %13737 = vrcp.f32 %v3290_v55  ;;  %3487 = vmatprep.subr.bf16.mxu1 %v12959_v25 }
 0xb2c   : > { %v3302_v16 = vpop.xlane.xlu1 %3301  ;;  %v3331_v61 = vpop.permute.xlu0 %3330 }
 0xb30   : > { %v3296_v57 = vpop.xlane.xlu1 %3295 }
 0xb31   : > { %13739 = vrcp.f32 %v3296_v57 }
 0xb32   : > { %v13732_v32 = vpop.eup %13731 }
 0xb33   : > { %v3314_v51 = vmul.f32 %v13732_v32, %v15591_v37 }
 0xb34   : > { %v3305_v60 = vpop.xlane.xlu1 %3304 }
 0xb36   : > { %v13734_v56 = vpop.eup %13733 }
 0xb37   : > { %v3315_v19 = vmul.f32 %v13734_v56, %v15597_v30  ;;  %v13736_v10 = vpop.eup %13735 }
 0xb38   : > { %v3299_v58 = vpop.xlane.xlu1 %3298  ;;  %v13738_v28 = vpop.eup %13737  ;;  %v3317_v37 = vmul.f32 %v13736_v10, %v15593_v22 }
 0xb39   : > { %v3322_v15 = vpack.c.bf16 %v3315_v19, %v3314_v51  ;;  %13741 = vrcp.f32 %v3299_v58  ;;  %v3316_v26 = vmul.f32 %v13738_v28, %v15586_v52  ;;  %v12957_v52 = vld [vmem:[#allocation2 + $0xd0] ss:$8 sps:$4 sm:$0xff]   ;;  %v2674_v28 = vadd.f32 %v15506_v20, %v15389_v24  ;;  %v19040_v20 = vld [vmem:[#allocation17_spill] sm:$0xff] }
 0xb3a   : > { %13743 = vrcp.f32 %v3305_v60  ;;  %3488 = vmatpush1.bf16.msra.mxu1 %v12957_v52 }
 0xb3b   : > { %12512 = vmatprep.mubr.msk.bf16.mxu0 %vm1891_vm0, %v3322_v15  ;;  %13745 = vrcp.f32 %v3302_v16  ;;  %v3323_v53 = vpack.c.bf16 %v3317_v37, %v3316_v26 }
 0xb3c   : > { %v3335_v7 = vpop.permute.xlu1 %3334 }
 0xb3d   : > { %12506 = vmatprep.subr.bf16.mxu0 %v3335_v7 }
 0xb3e   : > { %12507 = vmatpush3.bf16.msra.mxu0 %v3335_v7  ;;  %v13740_v30 = vpop.eup %13739  ;;  %v3580_v7 = vld [vmem:[%s18913_s7] sm:$0x3] }
 0xb3f   : > { %12508 = vmatprep.subr.bf16.mxu0 %v3333_v8  ;;  %v3318_v0 = vmul.f32 %v13740_v30, %v15607_v21  ;;  %v12962_v21 = vld [vmem:[#allocation2 + $0xc4] ss:$8 sps:$4 sm:$0xff]   ;;  %v15682_v30 = vrot.slane %v3580_v7, %v14818_v46 }
 0xb40   : > { %3489 = vmatprep.subr.bf16.mxu1 %v12962_v21  ;;  %v19042_v21 = vld [vmem:[#allocation19_spill] sm:$0xff] }
 0xb42   : > { %12509 = vmatpush3.bf16.msra.mxu0 %v3333_v8 }
 0xb43   : > { %12510 = vmatprep.subr.bf16.mxu0 %v3331_v61 }
 0xb46   : > { %v13742_v59 = vpop.eup %13741  ;;  %12511 = vmatpush3.bf16.msra.mxu0 %v3331_v61 }
 0xb47   : > { %v3319_v50 = vmul.f32 %v13742_v59, %v15615_v14  ;;  %v13744_v29 = vpop.eup %13743  ;;  %v12960_v14 = vld [vmem:[#allocation2 + $0xc0] ss:$8 sps:$4 sm:$0xff]   ;;  %v15686_v59 = vrot.slane %v3580_v7, %v14815_v43 }
 0xb48   : > { %v13746_v47 = vpop.eup %13745  ;;  %v3321_v22 = vmul.f32 %v13744_v29, %v15611_v54  ;;  %3490 = vmatpush1.bf16.msra.mxu1 %v12960_v14 }
 0xb49   : > { %12513 = vmatmul.mubr.msk.bf16.vlgmr.msra.gmra.mxu0 %vm1891_vm0, %v3323_v53  ;;  %v3324_v5 = vpack.c.bf16 %v3319_v50, %v3318_v0  ;;  %v3320_v62 = vmul.f32 %v13746_v47, %v15603_v23  ;;  %v3108_v0 = vadd.f32 %v15572_v31, %v2674_v28 }
 0xb4b   : > { %12516 = vmatprep.mubr.msk.bf16.mxu0 %vm1891_vm0, %v3324_v5  ;;  %v3325_v55 = vpack.c.bf16 %v3321_v22, %v3320_v62  ;;  %v19041_v22 = vld [vmem:[#allocation18_spill] sm:$0xff] }
 0xb51   : > { %12517 = vmatmul.mubr.msk.bf16.gmra.mxu0 %vm1891_vm0, %v3325_v55 }
 0xc09   : > { %v12514_v40 = vpop.f32.mrf.mxu0 }
 0xc0b   : > { %v3388_v16 = vpop.f32.mrf.mxu0 }
 0xc0d   : > { %v12515_v57 = vpop.f32.mrf.mxu0 }
 0xc0e   : > { %v3420_v56 = vpack.c.bf16 %v12515_v57, %v12514_v40  ;;  %v19043_v57 = vld [vmem:[#allocation20_spill] sm:$0xff] }
 0xc0f   : > { %v3391_v32 = vpop.f32.mrf.mxu0 }
 0xc10   : > { %v3419_v54 = vpack.c.bf16 %v3391_v32, %v3388_v16 }
 0xc11   : > { %v12518_v60 = vpop.f32.mrf.mxu0 }
 0xc12   : > { %11313 = vmatmul.mubr.msk.bf16.vlgmr.msra.gmra.mxu1 %vm1891_vm0, %v3419_v54 }
 0xc13   : > { %3517 = vmatprep.mubr.bf16.mxu1 %v19039_v38  ;;  %v3404_v23 = vpop.f32.mrf.mxu0 }
 0xc15   : > { %v12519_v51 = vpop.f32.mrf.mxu0 }
 0xc16   : > { %v3422_v15 = vpack.c.bf16 %v12519_v51, %v12518_v60 }
 0xc17   : > { %v3407_v19 = vpop.f32.mrf.mxu0 }
 0xc18   : > { %v3421_v58 = vpack.c.bf16 %v3407_v19, %v3404_v23 }
 0xc1a   : > { %11314 = vmatmul.mubr.msk.bf16.gmra.mxu1 %vm1891_vm0, %v3420_v56  ;;  %v19044_v56 = vld [vmem:[#allocation21_spill] sm:$0xff] }
 0xc1b   : > { %3527 = vmatprep.mubr.bf16.mxu1 %v19039_v38 }
 0xc22   : > { %11315 = vmatmul.mubr.msk.bf16.gmra.mxu1 %vm1891_vm0, %v3421_v58 }
 0xc23   : > { %3537 = vmatprep.mubr.bf16.mxu1 %v19039_v38 }
 0xc2a   : > { %11316 = vmatmul.mubr.msk.bf16.gmra.mxu1 %vm1891_vm0, %v3422_v15 }
 0xcd2   : > { %v3509_v8 = vpop.f32.mrf.mxu1 }
 0xcd3   : > { %v3548_v10 = vadd.f32 %v3509_v8, %v15564_v1  ;;  %v2694_v8 = vadd.f32 %v15522_v42, %v15405_v44 }
 0xcd4   : > { %v3511_v61 = vpop.f32.mrf.mxu1 }
 0xcd5   : > { %v3564_v37 = vadd.f32 %v3548_v10, %v14452_v35  ;;  %v3549_v26 = vadd.f32 %v3511_v61, %v15568_v9  ;;  %v19047_v61 = vld [vmem:[#allocation23_spill] sm:$0xff] }
 0xcd6   : > { %v3513_v53 = vpop.f32.mrf.mxu1 }
 0xcd7   : > { %v3565_v50 = vadd.f32 %v3549_v26, %v14454_v36  ;;  %v3550_v1 = vadd.f32 %v3513_v53, %v15570_v45  ;;  %v15692_v24 = vadd.f32 %v15682_v30, %v3564_v37  ;;  %v2684_v45 = vadd.f32 %v15514_v48, %v15397_v18 }
 0xcd8   : > { %v3515_v29 = vpop.f32.mrf.mxu1 }
 0xcd9   : > { %v15695_v35 = vadd.f32 %v15686_v59, %v3565_v50  ;;  %v3566_v5 = vadd.f32 %v3550_v1, %v19040_v20  ;;  %v3551_v9 = vadd.f32 %v3515_v29, %v3108_v0  ;;  %v19048_v0 = vld [vmem:[#allocation24_spill] sm:$0xff] }
 0xcda   : > { %v3519_v47 = vpop.f32.mrf.mxu1 }
 0xcdb   : > { %v3567_v62 = vadd.f32 %v3551_v9, %v19041_v22  ;;  %v3552_v55 = vadd.f32 %v3519_v47, %v15578_v39  ;;  %v3610_v36 = vadd.f32 %v15695_v35, %v15692_v24  ;;  %v15705_v52 = vadd.f32 %v15682_v30, %v3566_v5  ;;  %v19051_v5 = vld [vmem:[#allocation25_spill] sm:$0xff] }
 0xcdc   : > { %v3521_v31 = vpop.f32.mrf.mxu1  ;;  %v3112_v39 = vadd.f32 %v15617_v2, %v2684_v45  ;;  %v19045_v2 = vld [vmem:[#allocation22_spill] sm:$0xff] }
 0xcdd   : > { %v15708_v25 = vadd.f32 %v15686_v59, %v3567_v62  ;;  %v3568_v14 = vadd.f32 %v3552_v55, %v19042_v21  ;;  %v3553_v40 = vadd.f32 %v3521_v31, %v15582_v34  ;;  %3611 = vadd.xlane.f32.xlu0 %v3610_v36  ;;  %v2704_v55 = vadd.f32 %v15530_v49, %v15413_v12  ;;  %v19055_v21 = vld [vmem:[#allocation27_spill] sm:$0xff] }
 0xcde   : > { %v3523_v16 = vpop.f32.mrf.mxu1 }
 0xcdf   : > { %v3569_v32 = vadd.f32 %v3553_v40, %v19043_v57  ;;  %v3554_v54 = vadd.f32 %v3523_v16, %v15584_v63  ;;  %v3613_v18 = vadd.f32 %v15708_v25, %v15705_v52  ;;  %v15718_v60 = vadd.f32 %v15682_v30, %v3568_v14 }
 0xce0   : > { %v3525_v48 = vpop.f32.mrf.mxu1 }
 0xce1   : > { %v15721_v23 = vadd.f32 %v15686_v59, %v3569_v32  ;;  %v3570_v34 = vadd.f32 %v3554_v54, %v19044_v56  ;;  %v3555_v51 = vadd.f32 %v3525_v48, %v3112_v39  ;;  %3614 = vadd.xlane.f32.xlu1 %v3613_v18  ;;  %v19056_v39 = vld [vmem:[#allocation28_spill] sm:$0xff]  ;;  %v19059_v48 = vld [vmem:[#allocation29_spill] sm:$0xff] }
 0xce2   : > { %v3529_v19 = vpop.f32.mrf.mxu1 }
 0xce3   : > { %v3571_v58 = vadd.f32 %v3555_v51, %v19045_v2  ;;  %v3556_v15 = vadd.f32 %v3529_v19, %v15625_v41  ;;  %v3616_v63 = vadd.f32 %v15721_v23, %v15718_v60  ;;  %v15731_v10 = vadd.f32 %v15682_v30, %v3570_v34  ;;  %v19060_v34 = vld [vmem:[#allocation30_spill] sm:$0xff] }
 0xce4   : > { %v3531_v7 = vpop.f32.mrf.mxu1  ;;  %v3116_v41 = vadd.f32 %v15637_v27, %v2694_v8  ;;  %v19052_v27 = vld [vmem:[#allocation26_spill] sm:$0xff] }
 0xce5   : > { %v15734_v28 = vadd.f32 %v15686_v59, %v3571_v58  ;;  %v3572_v37 = vadd.f32 %v3556_v15, %v19047_v61  ;;  %v3557_v26 = vadd.f32 %v3531_v7, %v15631_v33  ;;  %3617 = vadd.xlane.f32.xlu0 %v3616_v63  ;;  %v12963_v58 = vld [vmem:[%s18916_s10 + $0xe0] ss:$16 sps:$4 sm:$0xff]   ;;  %v12965_v15 = vld [vmem:[%s18916_s10 + $0xe4] ss:$16 sps:$4 sm:$0xff]   ;;  %v12974_v8 = vld [vmem:[%s18916_s10 + $0xcc] ss:$16 sps:$4 sm:$0xff]  }
 0xce6   : > { %v3533_v53 = vpop.f32.mrf.mxu1  ;;  %v12971_v63 = vld [vmem:[%s18916_s10 + $0xc4] ss:$16 sps:$4 sm:$0xff]   ;;  %4206 = vmatprep.subr.bf16.mxu0 %v12965_v15  ;;  %v12969_v7 = vld [vmem:[%s18916_s10 + $0xc0] ss:$16 sps:$4 sm:$0xff]   ;;  %v12972_v61 = vld [vmem:[%s18916_s10 + $0xc8] ss:$16 sps:$4 sm:$0xff]  }
 0xce7   : > { %19046 = vst [vmem:[#allocation17_spill] sm:$0xff] %v15734_v28  ;;  %v3573_v50 = vadd.f32 %v3557_v26, %v19048_v0  ;;  %v3558_v1 = vadd.f32 %v3533_v53, %v15633_v17  ;;  %v3619_v44 = vadd.f32 %v15734_v28, %v15731_v10  ;;  %v15744_v29 = vadd.f32 %v15682_v30, %v3572_v37  ;;  %v12977_v37 = vld [vmem:[%s18916_s10 + $0xa4] ss:$16 sps:$4 sm:$0xff]   ;;  %v12980_v26 = vld [vmem:[%s18916_s10 + $0xac] ss:$16 sps:$4 sm:$0xff]  }
 0xce8   : > { %v3535_v42 = vpop.f32.mrf.mxu1  ;;  %4207 = vmatpush1.bf16.msra.mxu0 %v12963_v58  ;;  %v12975_v53 = vld [vmem:[%s18916_s10 + $0xa0] ss:$16 sps:$4 sm:$0xff]   ;;  %v12983_v0 = vld [vmem:[%s18916_s10 + $0x84] ss:$16 sps:$4 sm:$0xff]  }
 0xce9   : > { %19049 = vst [vmem:[#allocation18_spill] sm:$0xff] %v15744_v29  ;;  %v15747_v20 = vadd.f32 %v15686_v59, %v3573_v50  ;;  %v3574_v33 = vadd.f32 %v3558_v1, %v19051_v5  ;;  %v3559_v9 = vadd.f32 %v3535_v42, %v3116_v41  ;;  %3620 = vadd.xlane.f32.xlu0 %v3619_v44  ;;  %v12978_v41 = vld [vmem:[%s18916_s10 + $0xa8] ss:$16 sps:$4 sm:$0xff]   ;;  %v12986_v50 = vld [vmem:[%s18916_s10 + $0x8c] ss:$16 sps:$4 sm:$0xff]  }
 0xcea   : > { %v3539_v47 = vpop.f32.mrf.mxu1  ;;  %4208 = vmatprep.subr.bf16.mxu0 %v12971_v63  ;;  %v12981_v1 = vld [vmem:[%s18916_s10 + $0x80] ss:$16 sps:$4 sm:$0xff]   ;;  %v12984_v44 = vld [vmem:[%s18916_s10 + $0x88] ss:$16 sps:$4 sm:$0xff]   ;;  %v12989_v42 = vld [vmem:[%s18916_s10 + $0x64] ss:$16 sps:$4 sm:$0xff]  }
 0xceb   : > { %19050 = vst [vmem:[#allocation19_spill] sm:$0xff] %v15747_v20  ;;  %v3575_v22 = vadd.f32 %v3559_v9, %v19052_v27  ;;  %v3560_v62 = vadd.f32 %v3539_v47, %v15643_v6  ;;  %v3622_v17 = vadd.f32 %v15747_v20, %v15744_v29  ;;  %v15757_v45 = vadd.f32 %v15682_v30, %v3574_v33  ;;  %v12992_v5 = vld [vmem:[%s18916_s10 + $0x6c] ss:$16 sps:$4 sm:$0xff]   ;;  %v12987_v33 = vld [vmem:[%s18916_s10 + $0x60] ss:$16 sps:$4 sm:$0xff]  }
 0xcec   : > { %v3541_v36 = vpop.f32.mrf.mxu1  ;;  %v3120_v6 = vadd.f32 %v15665_v13, %v2704_v55  ;;  %4209 = vmatpush1.bf16.msra.mxu0 %v12969_v7  ;;  %v12990_v9 = vld [vmem:[%s18916_s10 + $0x68] ss:$16 sps:$4 sm:$0xff]   ;;  %v12995_v47 = vld [vmem:[%s18916_s10 + $0x44] ss:$16 sps:$4 sm:$0xff]   ;;  %v12998_v27 = vld [vmem:[%s18916_s10 + $0x4c] ss:$16 sps:$4 sm:$0xff]  }
 0xced   : > { %19053 = vst [vmem:[#allocation20_spill] sm:$0xff] %v15757_v45  ;;  %v15760_v31 = vadd.f32 %v15686_v59, %v3575_v22  ;;  %v3576_v14 = vadd.f32 %v3560_v62, %v19055_v21  ;;  %v3561_v40 = vadd.f32 %v3541_v36, %v15647_v4  ;;  %3623 = vadd.xlane.f32.xlu0 %v3622_v17  ;;  %v12993_v22 = vld [vmem:[%s18916_s10 + $0x40] ss:$16 sps:$4 sm:$0xff]   ;;  %v12996_v62 = vld [vmem:[%s18916_s10 + $0x48] ss:$16 sps:$4 sm:$0xff]  }
 0xcee   : > { %v3543_v16 = vpop.f32.mrf.mxu1  ;;  %4210 = vmatprep.subr.bf16.mxu0 %v12977_v37  ;;  %v13001_v17 = vld [vmem:[%s18916_s10 + $0x24] ss:$16 sps:$4 sm:$0xff]   ;;  %v13004_v55 = vld [vmem:[%s18916_s10 + $0x2c] ss:$16 sps:$4 sm:$0xff]   ;;  %v12999_v36 = vld [vmem:[%s18916_s10 + $0x20] ss:$16 sps:$4 sm:$0xff]  }
 0xcef   : > { %19054 = vst [vmem:[#allocation21_spill] sm:$0xff] %v15760_v31  ;;  %v3577_v57 = vadd.f32 %v3561_v40, %v19056_v39  ;;  %v3562_v32 = vadd.f32 %v3543_v16, %v15649_v11  ;;  %v3625_v12 = vadd.f32 %v15760_v31, %v15757_v45  ;;  %v15770_v54 = vadd.f32 %v15682_v30, %v3576_v14  ;;  %v13002_v21 = vld [vmem:[%s18916_s10 + $0x28] ss:$16 sps:$4 sm:$0xff]   ;;  %v13007_v14 = vld [vmem:[%s18916_s10 + $0x4] ss:$16 sps:$4 sm:$0xff]  }
 0xcf0   : > { %v3545_v49 = vpop.f32.mrf.mxu1  ;;  %4211 = vmatpush1.bf16.msra.mxu0 %v12975_v53  ;;  %v13010_v40 = vld [vmem:[%s18916_s10 + $0xc] ss:$16 sps:$4 sm:$0xff]   ;;  %v13005_v16 = vld [vmem:[%s18916_s10] ss:$16 sps:$4 sm:$0xff]   ;;  %v13013_v39 = vld [vmem:[%s18916_s10 + $0x1e4] ss:$16 sps:$4 sm:$0xff]  }
 0xcf1   : > { %19057 = vst [vmem:[#allocation22_spill] sm:$0xff] %v15770_v54  ;;  %v15773_v18 = vadd.f32 %v15686_v59, %v3577_v57  ;;  %v3578_v4 = vadd.f32 %v3562_v32, %v19059_v48  ;;  %v3563_v56 = vadd.f32 %v3545_v49, %v3120_v6  ;;  %3626 = vadd.xlane.f32.xlu1 %v3625_v12  ;;  %v13008_v6 = vld [vmem:[%s18916_s10 + $0x8] ss:$16 sps:$4 sm:$0xff]   ;;  %v13016_v57 = vld [vmem:[%s18916_s10 + $0x1ec] ss:$16 sps:$4 sm:$0xff]  }
 0xcf2   : > { %4212 = vmatprep.subr.bf16.mxu0 %v12983_v0  ;;  %v13011_v32 = vld [vmem:[%s18916_s10 + $0x1e0] ss:$16 sps:$4 sm:$0xff]   ;;  %v13014_v12 = vld [vmem:[%s18916_s10 + $0x1e8] ss:$16 sps:$4 sm:$0xff]  }
 0xcf3   : > { %19058 = vst [vmem:[#allocation23_spill] sm:$0xff] %v15773_v18  ;;  %v3579_v13 = vadd.f32 %v3563_v56, %v19060_v34  ;;  %v3628_v51 = vadd.f32 %v15773_v18, %v15770_v54  ;;  %v15780_v11 = vadd.f32 %v15682_v30, %v3578_v4  ;;  %v12966_v30 = vld [vmem:[%s18916_s10 + $0xe8] ss:$16 sps:$4 sm:$0xff]  }
 0xcf4   : > { %4213 = vmatpush1.bf16.msra.mxu0 %v12981_v1 }
 0xcf5   : > { %19061 = vst [vmem:[#allocation24_spill] sm:$0xff] %v15780_v11  ;;  %v15783_v19 = vadd.f32 %v15686_v59, %v3579_v13  ;;  %3629 = vadd.xlane.f32.xlu0 %v3628_v51  ;;  %v12968_v59 = vld [vmem:[%s18916_s10 + $0xec] ss:$16 sps:$4 sm:$0xff]   ;;  %4214 = vmatprep.subr.bf16.mxu0 %v12989_v42 }
 0xcf6   : > { %4279 = vmatprep.subr.bf16.mxu1 %v12968_v59 }
 0xcf7   : > { %19062 = vst [vmem:[#allocation25_spill] sm:$0xff] %v15783_v19  ;;  %v3631_v2 = vadd.f32 %v15783_v19, %v15780_v11  ;;  %4280 = vmatpush1.bf16.msra.mxu1 %v12966_v30 }
 0xcf8   : > { %4281 = vmatprep.subr.bf16.mxu1 %v12974_v8  ;;  %4215 = vmatpush1.bf16.msra.mxu0 %v12987_v33 }
 0xcf9   : > { %3632 = vadd.xlane.f32.xlu1 %v3631_v2  ;;  %4216 = vmatprep.subr.bf16.mxu0 %v12995_v47 }
 0xcfb   : > { %4282 = vmatpush1.bf16.msra.mxu1 %v12972_v61 }
 0xcfc   : > { %4283 = vmatprep.subr.bf16.mxu1 %v12980_v26  ;;  %4217 = vmatpush1.bf16.msra.mxu0 %v12993_v22 }
 0xcfd   : > { %4218 = vmatprep.subr.bf16.mxu0 %v13001_v17 }
 0xcff   : > { %4284 = vmatpush1.bf16.msra.mxu1 %v12978_v41 }
 0xd00   : > { %4285 = vmatprep.subr.bf16.mxu1 %v12986_v50  ;;  %4219 = vmatpush1.bf16.msra.mxu0 %v12999_v36 }
 0xd01   : > { %4220 = vmatprep.subr.bf16.mxu0 %v13007_v14  ;;  %v13019_v14 = vld [vmem:[%s18916_s10 + $0x1c4] ss:$16 sps:$4 sm:$0xff]  }
 0xd03   : > { %4286 = vmatpush1.bf16.msra.mxu1 %v12984_v44 }
 0xd04   : > { %4287 = vmatprep.subr.bf16.mxu1 %v12992_v5  ;;  %4221 = vmatpush1.bf16.msra.mxu0 %v13005_v16  ;;  %v13017_v16 = vld [vmem:[%s18916_s10 + $0x1c0] ss:$16 sps:$4 sm:$0xff]  }
 0xd05   : > { %4222 = vmatprep.subr.bf16.mxu0 %v13013_v39 }
 0xd07   : > { %4288 = vmatpush1.bf16.msra.mxu1 %v12990_v9 }
 0xd08   : > { %4289 = vmatprep.subr.bf16.mxu1 %v12998_v27  ;;  %4223 = vmatpush2.bf16.msra.mxu0 %v13011_v32 }
 0xd09   : > { %4224 = vmatprep.subr.bf16.mxu0 %v13019_v14  ;;  %v13038_v14 = vld [vmem:[%s18916_s10 + $0x168] ss:$16 sps:$4 sm:$0xff]  }
 0xd0b   : > { %4290 = vmatpush1.bf16.msra.mxu1 %v12996_v62 }
 0xd0c   : > { %4291 = vmatprep.subr.bf16.mxu1 %v13004_v55  ;;  %4225 = vmatpush2.bf16.msra.mxu0 %v13017_v16  ;;  %v13043_v16 = vld [vmem:[%s18916_s10 + $0x144] ss:$16 sps:$4 sm:$0xff]  }
 0xd0f   : > { %4292 = vmatpush1.bf16.msra.mxu1 %v13002_v21 }
 0xd10   : > { %4293 = vmatprep.subr.bf16.mxu1 %v13010_v40  ;;  %v13022_v40 = vld [vmem:[%s18916_s10 + $0x1cc] ss:$16 sps:$4 sm:$0xff]  }
 0xd13   : > { %4294 = vmatpush1.bf16.msra.mxu1 %v13008_v6  ;;  %v13020_v6 = vld [vmem:[%s18916_s10 + $0x1c8] ss:$16 sps:$4 sm:$0xff]  }
 0xd14   : > { %4295 = vmatprep.subr.bf16.mxu1 %v13016_v57 }
 0xd17   : > { %4296 = vmatpush2.bf16.msra.mxu1 %v13014_v12 }
 0xd18   : > { %4297 = vmatprep.subr.bf16.mxu1 %v13022_v40 }
 0xd1b   : > { %4298 = vmatpush2.bf16.msra.mxu1 %v13020_v6  ;;  %v13046_v6 = vld [vmem:[%s18916_s10 + $0x14c] ss:$16 sps:$4 sm:$0xff]  }
 0xd66   : > { %v3612_v49 = vpop.xlane.xlu0 %3611 }
 0xd67   : > { %v3634_v48 = vmul.f32 0.00390625, %v3612_v49 }
 0xd69   : > { %v15896_v4 = vsub.f32 %v15692_v24, %v3634_v48  ;;  %v15899_v56 = vsub.f32 %v15695_v35, %v3634_v48 }
 0xd6a   : > { %v3615_v34 = vpop.xlane.xlu1 %3614 }
 0xd6b   : > { %v3658_v13 = vmul.f32 %v15896_v4, %v15896_v4  ;;  %v3659_v51 = vmul.f32 %v15899_v56, %v15899_v56  ;;  %v3635_v2 = vmul.f32 0.00390625, %v3615_v34 }
 0xd6d   : > { %v15906_v58 = vsub.f32 %v15705_v52, %v3635_v2  ;;  %v15909_v15 = vsub.f32 %v15708_v25, %v3635_v2  ;;  %v3674_v30 = vadd.f32 %v3659_v51, %v3658_v13  ;;  %v13025_v13 = vld [vmem:[%s18916_s10 + $0x1a4] ss:$16 sps:$4 sm:$0xff]   ;;  %v13028_v51 = vld [vmem:[%s18916_s10 + $0x1ac] ss:$16 sps:$4 sm:$0xff]   ;;  %v13023_v2 = vld [vmem:[%s18916_s10 + $0x1a0] ss:$16 sps:$4 sm:$0xff]  }
 0xd6e   : > { %v3618_v59 = vpop.xlane.xlu0 %3617  ;;  %4226 = vmatprep.subr.bf16.mxu0 %v13025_v13  ;;  %4299 = vmatprep.subr.bf16.mxu1 %v13028_v51  ;;  %v13050_v13 = vld [vmem:[%s18916_s10 + $0x128] ss:$16 sps:$4 sm:$0xff]   ;;  %v13055_v51 = vld [vmem:[%s18916_s10 + $0x104] ss:$16 sps:$4 sm:$0xff]  }
 0xd6f   : > { %v3660_v63 = vmul.f32 %v15906_v58, %v15906_v58  ;;  %v3661_v8 = vmul.f32 %v15909_v15, %v15909_v15  ;;  %v3636_v7 = vmul.f32 0.00390625, %v3618_v59  ;;  %3675 = vadd.xlane.f32.xlu0 %v3674_v30  ;;  %v13026_v30 = vld [vmem:[%s18916_s10 + $0x1a8] ss:$16 sps:$4 sm:$0xff]   ;;  %4227 = vmatpush2.bf16.msra.mxu0 %v13023_v2  ;;  %v13058_v2 = vld [vmem:[%s18916_s10 + $0x10c] ss:$16 sps:$4 sm:$0xff]  }
 0xd70   : > { %4300 = vmatpush2.bf16.msra.mxu1 %v13026_v30  ;;  %v13053_v30 = vld [vmem:[%s18916_s10 + $0x100] ss:$16 sps:$4 sm:$0xff]  }
 0xd71   : > { %v15916_v61 = vsub.f32 %v15718_v60, %v3636_v7  ;;  %v15919_v37 = vsub.f32 %v15721_v23, %v3636_v7  ;;  %v3677_v26 = vadd.f32 %v3661_v8, %v3660_v63 }
 0xd72   : > { %v3621_v53 = vpop.xlane.xlu0 %3620 }
 0xd73   : > { %v3662_v41 = vmul.f32 %v15916_v61, %v15916_v61  ;;  %v3663_v0 = vmul.f32 %v15919_v37, %v15919_v37  ;;  %v3637_v50 = vmul.f32 0.00390625, %v3621_v53  ;;  %3678 = vadd.xlane.f32.xlu1 %v3677_v26 }
 0xd75   : > { %v15926_v1 = vsub.f32 %v15731_v10, %v3637_v50  ;;  %v15929_v44 = vsub.f32 %v15734_v28, %v3637_v50  ;;  %v3680_v42 = vadd.f32 %v3663_v0, %v3662_v41  ;;  %v13031_v0 = vld [vmem:[%s18916_s10 + $0x184] ss:$16 sps:$4 sm:$0xff]   ;;  %v13034_v50 = vld [vmem:[%s18916_s10 + $0x18c] ss:$16 sps:$4 sm:$0xff]  }
 0xd76   : > { %v3624_v5 = vpop.xlane.xlu0 %3623  ;;  %4228 = vmatprep.subr.bf16.mxu0 %v13031_v0  ;;  %4301 = vmatprep.subr.bf16.mxu1 %v13034_v50 }
 0xd77   : > { %v3664_v33 = vmul.f32 %v15926_v1, %v15926_v1  ;;  %v3665_v9 = vmul.f32 %v15929_v44, %v15929_v44  ;;  %v3638_v47 = vmul.f32 0.00390625, %v3624_v5  ;;  %3681 = vadd.xlane.f32.xlu0 %v3680_v42  ;;  %v13029_v42 = vld [vmem:[%s18916_s10 + $0x180] ss:$16 sps:$4 sm:$0xff]   ;;  %v13032_v5 = vld [vmem:[%s18916_s10 + $0x188] ss:$16 sps:$4 sm:$0xff]  }
 0xd78   : > { %4229 = vmatpush2.bf16.msra.mxu0 %v13029_v42  ;;  %4302 = vmatpush2.bf16.msra.mxu1 %v13032_v5 }
 0xd79   : > { %v15936_v27 = vsub.f32 %v15744_v29, %v3638_v47  ;;  %v15939_v22 = vsub.f32 %v15747_v20, %v3638_v47  ;;  %v3683_v62 = vadd.f32 %v3665_v9, %v3664_v33 }
 0xd7a   : > { %v3627_v17 = vpop.xlane.xlu1 %3626 }
 0xd7b   : > { %v3666_v55 = vmul.f32 %v15936_v27, %v15936_v27  ;;  %v3667_v36 = vmul.f32 %v15939_v22, %v15939_v22  ;;  %v3639_v21 = vmul.f32 0.00390625, %v3627_v17  ;;  %3684 = vadd.xlane.f32.xlu1 %v3683_v62 }
 0xd7d   : > { %v15958_v39 = vsub.f32 %v15757_v45, %v3639_v21  ;;  %v15961_v57 = vsub.f32 %v15760_v31, %v3639_v21  ;;  %v3686_v32 = vadd.f32 %v3667_v36, %v3666_v55  ;;  %v13037_v55 = vld [vmem:[%s18916_s10 + $0x164] ss:$16 sps:$4 sm:$0xff]   ;;  %v13040_v36 = vld [vmem:[%s18916_s10 + $0x16c] ss:$16 sps:$4 sm:$0xff]   ;;  %v13035_v21 = vld [vmem:[%s18916_s10 + $0x160] ss:$16 sps:$4 sm:$0xff]  }
 0xd7e   : > { %v3630_v12 = vpop.xlane.xlu0 %3629  ;;  %4230 = vmatprep.subr.bf16.mxu0 %v13037_v55  ;;  %4303 = vmatprep.subr.bf16.mxu1 %v13040_v36 }
 0xd7f   : > { %v3668_v49 = vmul.f32 %v15958_v39, %v15958_v39  ;;  %v3669_v48 = vmul.f32 %v15961_v57, %v15961_v57  ;;  %v3640_v34 = vmul.f32 0.00390625, %v3630_v12  ;;  %3687 = vadd.xlane.f32.xlu0 %v3686_v32  ;;  %4231 = vmatpush2.bf16.msra.mxu0 %v13035_v21  ;;  %v13041_v32 = vld [vmem:[%s18916_s10 + $0x140] ss:$16 sps:$4 sm:$0xff]   ;;  %v13044_v12 = vld [vmem:[%s18916_s10 + $0x148] ss:$16 sps:$4 sm:$0xff]  }
 0xd80   : > { %4304 = vmatpush2.bf16.msra.mxu1 %v13038_v14  ;;  %4232 = vmatprep.subr.bf16.mxu0 %v13043_v16  ;;  %v3608_v14 = vld [vmem:[%s18914_s8] sm:$0x3] }
 0xd81   : > { %v15980_v59 = vsub.f32 %v15770_v54, %v3640_v34  ;;  %v15983_v63 = vsub.f32 %v15773_v18, %v3640_v34  ;;  %v3689_v8 = vadd.f32 %v3669_v48, %v3668_v49  ;;  %4305 = vmatprep.subr.bf16.mxu1 %v13046_v6  ;;  %v13049_v49 = vld [vmem:[%s18916_s10 + $0x124] ss:$16 sps:$4 sm:$0xff]   ;;  %v13052_v48 = vld [vmem:[%s18916_s10 + $0x12c] ss:$16 sps:$4 sm:$0xff]   ;;  %v13047_v34 = vld [vmem:[%s18916_s10 + $0x120] ss:$16 sps:$4 sm:$0xff]  }
 0xd82   : > { %v3633_v7 = vpop.xlane.xlu1 %3632 }
 0xd83   : > { %v3670_v26 = vmul.f32 %v15980_v59, %v15980_v59  ;;  %v3671_v53 = vmul.f32 %v15983_v63, %v15983_v63  ;;  %v3641_v41 = vmul.f32 0.00390625, %v3633_v7  ;;  %3690 = vadd.xlane.f32.xlu1 %v3689_v8  ;;  %4233 = vmatpush2.bf16.msra.mxu0 %v13041_v32  ;;  %v13056_v8 = vld [vmem:[%s18916_s10 + $0x108] ss:$16 sps:$4 sm:$0xff]   ;;  %v13061_v7 = vld [vmem:[%s18918_s12 + $0x74] ss:$8 sps:$4 sm:$0xff]   ;;  %v16069_v32 = vrot.slane %v3608_v14, %v14818_v46 }
 0xd84   : > { %4306 = vmatpush2.bf16.msra.mxu1 %v13044_v12  ;;  %4234 = vmatprep.subr.bf16.mxu0 %v13049_v49  ;;  %v16072_v12 = vrot.slane %v3608_v14, %v14815_v43 }
 0xd85   : > { %v16002_v33 = vsub.f32 %v15780_v11, %v3641_v41  ;;  %v16005_v9 = vsub.f32 %v15783_v19, %v3641_v41  ;;  %v3692_v47 = vadd.f32 %v3671_v53, %v3670_v26  ;;  %4307 = vmatprep.subr.bf16.mxu1 %v13052_v48  ;;  %v13064_v26 = vld [vmem:[%s18918_s12 + $0x174] ss:$8 sps:$4 sm:$0xff]  }
 0xd87   : > { %v3672_v62 = vmul.f32 %v16002_v33, %v16002_v33  ;;  %v3673_v17 = vmul.f32 %v16005_v9, %v16005_v9  ;;  %3693 = vadd.xlane.f32.xlu0 %v3692_v47  ;;  %4235 = vmatpush2.bf16.msra.mxu0 %v13047_v34  ;;  %v3609_v34 = vld [vmem:[%s18915_s9] sm:$0x3] }
 0xd88   : > { %4308 = vmatpush2.bf16.msra.mxu1 %v13050_v13  ;;  %4236 = vmatprep.subr.bf16.mxu0 %v13055_v51 }
 0xd89   : > { %v3695_v40 = vadd.f32 %v3673_v17, %v3672_v62  ;;  %4309 = vmatprep.subr.bf16.mxu1 %v13058_v2 }
 0xd8b   : > { %3696 = vadd.xlane.f32.xlu1 %v3695_v40  ;;  %4237 = vmatpush2.bf16.msra.mxu0 %v13053_v30 }
 0xd8c   : > { %4310 = vmatpush2.bf16.msra.mxu1 %v13056_v8  ;;  %4912 = vmatprep.subr.bf16.mxu0 %v13061_v7  ;;  %v16081_v7 = vrot.slane %v3609_v34, %v14818_v46 }
 0xd8d   : > { %4985 = vmatprep.subr.bf16.mxu1 %v13064_v26  ;;  %v16084_v26 = vrot.slane %v3609_v34, %v14815_v43 }
 0xdf8   : > { %v3676_v53 = vpop.xlane.xlu0 %3675 }
 0xdf9   : > { %v3698_v41 = vmul.f32 0.00390625, %v3676_v53 }
 0xdfb   : > { %v3706_v0 = vadd.f32 1e-05, %v3698_v41 }
 0xdfc   : > { %v3679_v50 = vpop.xlane.xlu1 %3678 }
 0xdfd   : > { %13747 = vrsqrt.f32 %v3706_v0  ;;  %v3699_v42 = vmul.f32 0.00390625, %v3679_v50 }
 0xdff   : > { %v3707_v5 = vadd.f32 1e-05, %v3699_v42 }
 0xe00   : > { %v3682_v47 = vpop.xlane.xlu0 %3681 }
 0xe01   : > { %13749 = vrsqrt.f32 %v3707_v5  ;;  %v3700_v62 = vmul.f32 0.00390625, %v3682_v47 }
 0xe03   : > { %v3708_v17 = vadd.f32 1e-05, %v3700_v62 }
 0xe04   : > { %v3685_v55 = vpop.xlane.xlu1 %3684 }
 0xe05   : > { %13751 = vrsqrt.f32 %v3708_v17  ;;  %v3701_v36 = vmul.f32 0.00390625, %v3685_v55 }
 0xe07   : > { %v3709_v21 = vadd.f32 1e-05, %v3701_v36 }
 0xe08   : > { %v3688_v40 = vpop.xlane.xlu0 %3687 }
 0xe09   : > { %13753 = vrsqrt.f32 %v3709_v21  ;;  %v3702_v16 = vmul.f32 0.00390625, %v3688_v40 }
 0xe0a   : > { %v13748_v6 = vpop.eup %13747 }
 0xe0b   : > { %v3722_v49 = vmul.f32 %v13748_v6, %v15896_v4  ;;  %v3710_v48 = vadd.f32 1e-05, %v3702_v16  ;;  %v3723_v13 = vmul.f32 %v13748_v6, %v15899_v56 }
 0xe0c   : > { %v3691_v51 = vpop.xlane.xlu1 %3690 }
 0xe0d   : > { %13755 = vrsqrt.f32 %v3710_v48  ;;  %v3703_v2 = vmul.f32 0.00390625, %v3691_v51  ;;  %v3750_v8 = vmul.f32 %v16072_v12, %v3723_v13  ;;  %v3749_v4 = vmul.f32 %v16069_v32, %v3722_v49  ;;  %v13059_v49 = vld [vmem:[%s18918_s12 + $0x70] ss:$8 sps:$4 sm:$0xff]   ;;  %v13070_v51 = vld [vmem:[%s18918_s12 + $0x164] ss:$8 sps:$4 sm:$0xff]  }
 0xe0e   : > { %v13750_v30 = vpop.eup %13749  ;;  %v13062_v48 = vld [vmem:[%s18918_s12 + $0x170] ss:$8 sps:$4 sm:$0xff]  }
 0xe0f   : > { %v3724_v53 = vmul.f32 %v13750_v30, %v15906_v58  ;;  %v3711_v41 = vadd.f32 1e-05, %v3703_v2  ;;  %v3725_v0 = vmul.f32 %v13750_v30, %v15909_v15  ;;  %v3777_v62 = vadd.f32 %v16084_v26, %v3750_v8 }
 0xe10   : > { %v3694_v56 = vpop.xlane.xlu0 %3693  ;;  %v3776_v17 = vadd.f32 %v16081_v7, %v3749_v4 }
 0xe11   : > { %13757 = vrsqrt.f32 %v3711_v41  ;;  %v3704_v50 = vmul.f32 0.00390625, %v3694_v56  ;;  %v3752_v42 = vmul.f32 %v16072_v12, %v3725_v0  ;;  %v3751_v5 = vmul.f32 %v16069_v32, %v3724_v53  ;;  %v13065_v41 = vld [vmem:[%s18918_s12 + $0x60] ss:$8 sps:$4 sm:$0xff]  }
 0xe12   : > { %v13752_v47 = vpop.eup %13751 }
 0xe13   : > { %v3712_v55 = vadd.f32 1e-05, %v3704_v50  ;;  %v3779_v36 = vadd.f32 %v16084_v26, %v3752_v42  ;;  %v3778_v58 = vadd.f32 %v16081_v7, %v3751_v5  ;;  %v3727_v21 = vmul.f32 %v13752_v47, %v15919_v37  ;;  %v13073_v50 = vld [vmem:[%s18918_s12 + $0x54] ss:$8 sps:$4 sm:$0xff]  }
 0xe14   : > { %v3697_v15 = vpop.xlane.xlu1 %3696  ;;  %v3726_v14 = vmul.f32 %v13752_v47, %v15916_v61  ;;  %v13067_v61 = vld [vmem:[%s18918_s12 + $0x64] ss:$8 sps:$4 sm:$0xff]  }
 0xe15   : > { %13759 = vrsqrt.f32 %v3712_v55  ;;  %v3705_v40 = vmul.f32 0.00390625, %v3697_v15  ;;  %v3793_v16 = vpack.c.bf16 %v3779_v36, %v3777_v62  ;;  %v3792_v6 = vpack.c.bf16 %v3778_v58, %v3776_v17  ;;  %v13071_v36 = vld [vmem:[%s18918_s12 + $0x50] ss:$8 sps:$4 sm:$0xff]   ;;  %v13076_v58 = vld [vmem:[%s18918_s12 + $0x154] ss:$8 sps:$4 sm:$0xff]  }
 0xe16   : > { %v13754_v34 = vpop.eup %13753  ;;  %v3754_v13 = vmul.f32 %v16072_v12, %v3727_v21  ;;  %v3753_v37 = vmul.f32 %v16069_v32, %v3726_v14 }
 0xe17   : > { %v3713_v2 = vadd.f32 1e-05, %v3705_v40  ;;  %4238 = vmatprep.mubr.bf16.mxu0 %v3793_v16  ;;  %4311 = vmatprep.mubr.bf16.mxu1 %v3793_v16  ;;  %v3729_v30 = vmul.f32 %v13754_v34, %v15929_v44  ;;  %v3728_v8 = vmul.f32 %v13754_v34, %v15926_v1  ;;  %v13068_v1 = vld [vmem:[%s18918_s12 + $0x160] ss:$8 sps:$4 sm:$0xff]  }
 0xe18   : > { %4239 = vmatmul.mubr.bf16.vlgmr.msra.gmra.mxu0 %v3792_v6  ;;  %4312 = vmatmul.mubr.bf16.vlgmr.msra.gmra.mxu1 %v3792_v6  ;;  %v3781_v56 = vadd.f32 %v16084_v26, %v3754_v13  ;;  %v3780_v44 = vadd.f32 %v16081_v7, %v3753_v37  ;;  %v13082_v6 = vld [vmem:[%s18918_s12 + $0x144] ss:$8 sps:$4 sm:$0xff]   ;;  %v13077_v34 = vld [vmem:[%s18918_s12 + $0x40] ss:$8 sps:$4 sm:$0xff]  }
 0xe19   : > { %13761 = vrsqrt.f32 %v3713_v2  ;;  %v3756_v4 = vmul.f32 %v16072_v12, %v3729_v30  ;;  %v3755_v53 = vmul.f32 %v16069_v32, %v3728_v8  ;;  %4913 = vmatpush1.bf16.msra.mxu0 %v13059_v49  ;;  %4986 = vmatpush1.bf16.msra.mxu1 %v13062_v48  ;;  %v13080_v37 = vld [vmem:[%s18918_s12 + $0x140] ss:$8 sps:$4 sm:$0xff]  }
 0xe1a   : > { %v13756_v0 = vpop.eup %13755  ;;  %4914 = vmatprep.subr.bf16.mxu0 %v13067_v61  ;;  %4987 = vmatprep.subr.bf16.mxu1 %v13070_v51  ;;  %v13085_v61 = vld [vmem:[%s18918_s12 + $0x34] ss:$8 sps:$4 sm:$0xff]  }
 0xe1b   : > { %v3783_v42 = vadd.f32 %v16084_v26, %v3756_v4  ;;  %v3782_v5 = vadd.f32 %v16081_v7, %v3755_v53  ;;  %v3731_v47 = vmul.f32 %v13756_v0, %v15939_v22  ;;  %v3730_v62 = vmul.f32 %v13756_v0, %v15936_v27  ;;  %v13074_v27 = vld [vmem:[%s18918_s12 + $0x150] ss:$8 sps:$4 sm:$0xff]   ;;  %v13079_v22 = vld [vmem:[%s18918_s12 + $0x44] ss:$8 sps:$4 sm:$0xff]   ;;  %v13088_v0 = vld [vmem:[%s18918_s12 + $0x134] ss:$8 sps:$4 sm:$0xff]  }
 0xe1d   : > { %v3795_v17 = vpack.c.bf16 %v3783_v42, %v3781_v56  ;;  %v3794_v55 = vpack.c.bf16 %v3782_v5, %v3780_v44  ;;  %4915 = vmatpush1.bf16.msra.mxu0 %v13065_v41  ;;  %v3758_v15 = vmul.f32 %v16072_v12, %v3731_v47  ;;  %v3757_v14 = vmul.f32 %v16069_v32, %v3730_v62  ;;  %v13083_v41 = vld [vmem:[%s18918_s12 + $0x30] ss:$8 sps:$4 sm:$0xff]   ;;  %v13094_v5 = vld [vmem:[%s18918_s12 + $0x124] ss:$8 sps:$4 sm:$0xff]  }
 0xe1e   : > { %v13758_v21 = vpop.eup %13757  ;;  %4988 = vmatpush1.bf16.msra.mxu1 %v13068_v1  ;;  %4916 = vmatprep.subr.bf16.mxu0 %v13073_v50 }
 0xe1f   : > { %4248 = vmatprep.mubr.bf16.mxu0 %v3795_v17  ;;  %4321 = vmatprep.mubr.bf16.mxu1 %v3795_v17  ;;  %v3733_v40 = vmul.f32 %v13758_v21, %v15961_v57  ;;  %v3732_v16 = vmul.f32 %v13758_v21, %v15958_v39  ;;  %v3785_v57 = vadd.f32 %v16084_v26, %v3758_v15  ;;  %v13097_v17 = vld [vmem:[%s18918_s12 + $0x14] ss:$8 sps:$4 sm:$0xff]   ;;  %v13095_v15 = vld [vmem:[%s18918_s12 + $0x10] ss:$8 sps:$4 sm:$0xff]  }
 0xe20   : > { %4249 = vmatmul.mubr.bf16.gmra.mxu0 %v3794_v55  ;;  %4322 = vmatmul.mubr.bf16.gmra.mxu1 %v3794_v55  ;;  %v3784_v39 = vadd.f32 %v16081_v7, %v3757_v14  ;;  %v13100_v14 = vld [vmem:[%s18918_s12 + $0x114] ss:$8 sps:$4 sm:$0xff]  }
 0xe21   : > { %v3760_v49 = vmul.f32 %v16072_v12, %v3733_v40  ;;  %v3759_v48 = vmul.f32 %v16069_v32, %v3732_v16  ;;  %4989 = vmatprep.subr.bf16.mxu1 %v13076_v58  ;;  %4917 = vmatpush1.bf16.msra.mxu0 %v13071_v36  ;;  %v13104_v40 = vld [vmem:[%s18918_s12 + $0x100] ss:$8 sps:$4 sm:$0xff]   ;;  %v13109_v16 = vld [vmem:[%s18918_s12 + $0xf4] ss:$8 sps:$4 sm:$0xff]  }
 0xe22   : > { %v13760_v13 = vpop.eup %13759  ;;  %4990 = vmatpush1.bf16.msra.mxu1 %v13074_v27  ;;  %4918 = vmatprep.subr.bf16.mxu0 %v13079_v22  ;;  %v13106_v27 = vld [vmem:[%s18918_s12 + $0x104] ss:$8 sps:$4 sm:$0xff]   ;;  %v13101_v22 = vld [vmem:[%s18918_s12] ss:$8 sps:$4 sm:$0xff]  }
 0xe23   : > { %v3787_v51 = vadd.f32 %v16084_v26, %v3760_v49  ;;  %v3786_v2 = vadd.f32 %v16081_v7, %v3759_v48  ;;  %v3735_v30 = vmul.f32 %v13760_v13, %v15983_v63  ;;  %v3734_v8 = vmul.f32 %v13760_v13, %v15980_v59  ;;  %4991 = vmatprep.subr.bf16.mxu1 %v13082_v6  ;;  %v13086_v59 = vld [vmem:[%s18918_s12 + $0x130] ss:$8 sps:$4 sm:$0xff]   ;;  %v13091_v63 = vld [vmem:[%s18918_s12 + $0x24] ss:$8 sps:$4 sm:$0xff]   ;;  %v13112_v6 = vld [vmem:[%s18918_s12 + $0x1f4] ss:$8 sps:$4 sm:$0xff]  }
 0xe24   : > { %v13107_v49 = vld [vmem:[%s18918_s12 + $0xf0] ss:$8 sps:$4 sm:$0xff]   ;;  %v13118_v13 = vld [vmem:[%s18918_s12 + $0x1e4] ss:$8 sps:$4 sm:$0xff]  }
 0xe25   : > { %v3797_v4 = vpack.c.bf16 %v3787_v51, %v3785_v57  ;;  %v3796_v53 = vpack.c.bf16 %v3786_v2, %v3784_v39  ;;  %4919 = vmatpush1.bf16.msra.mxu0 %v13077_v34  ;;  %v3762_v44 = vmul.f32 %v16072_v12, %v3735_v30  ;;  %v3761_v42 = vmul.f32 %v16069_v32, %v3734_v8  ;;  %v13110_v48 = vld [vmem:[%s18918_s12 + $0x1f0] ss:$8 sps:$4 sm:$0xff]   ;;  %v13115_v34 = vld [vmem:[%s18918_s12 + $0xe4] ss:$8 sps:$4 sm:$0xff]   ;;  %v13113_v57 = vld [vmem:[%s18918_s12 + $0xe0] ss:$8 sps:$4 sm:$0xff]  }
 0xe26   : > { %v13762_v56 = vpop.eup %13761  ;;  %4992 = vmatpush1.bf16.msra.mxu1 %v13080_v37  ;;  %4920 = vmatprep.subr.bf16.mxu0 %v13085_v61  ;;  %v13116_v39 = vld [vmem:[%s18918_s12 + $0x1e0] ss:$8 sps:$4 sm:$0xff]   ;;  %v13121_v37 = vld [vmem:[%s18918_s12 + $0xd4] ss:$8 sps:$4 sm:$0xff]   ;;  %v13119_v51 = vld [vmem:[%s18918_s12 + $0xd0] ss:$8 sps:$4 sm:$0xff]  }
 0xe27   : > { %4258 = vmatprep.mubr.bf16.mxu0 %v3797_v4  ;;  %4331 = vmatprep.mubr.bf16.mxu1 %v3797_v4  ;;  %v3737_v1 = vmul.f32 %v13762_v56, %v16005_v9  ;;  %v3736_v50 = vmul.f32 %v13762_v56, %v16002_v33  ;;  %v13089_v9 = vld [vmem:[%s18918_s12 + $0x20] ss:$8 sps:$4 sm:$0xff]   ;;  %v3788_v55 = vadd.f32 %v16081_v7, %v3761_v42  ;;  %v13124_v61 = vld [vmem:[%s18918_s12 + $0x1d4] ss:$8 sps:$4 sm:$0xff]   ;;  %v13122_v2 = vld [vmem:[%s18918_s12 + $0x1d0] ss:$8 sps:$4 sm:$0xff]  }
 0xe28   : > { %4259 = vmatmul.mubr.bf16.gmra.mxu0 %v3796_v53  ;;  %4332 = vmatmul.mubr.bf16.gmra.mxu1 %v3796_v53  ;;  %v13092_v33 = vld [vmem:[%s18918_s12 + $0x120] ss:$8 sps:$4 sm:$0xff]   ;;  %v13127_v30 = vld [vmem:[%s18918_s12 + $0xc4] ss:$8 sps:$4 sm:$0xff]   ;;  %v13131_v56 = vld [vmem:[%s18918_s12 + $0xb0] ss:$8 sps:$4 sm:$0xff]  }
 0xe29   : > { %v3764_v47 = vmul.f32 %v16072_v12, %v3737_v1  ;;  %v3763_v62 = vmul.f32 %v16069_v32, %v3736_v50  ;;  %4993 = vmatprep.subr.bf16.mxu1 %v13088_v0  ;;  %4921 = vmatpush1.bf16.msra.mxu0 %v13083_v41  ;;  %v3789_v12 = vadd.f32 %v16084_v26, %v3762_v44  ;;  %v13130_v8 = vld [vmem:[%s18918_s12 + $0x1c4] ss:$8 sps:$4 sm:$0xff]   ;;  %v13125_v4 = vld [vmem:[%s18918_s12 + $0xc0] ss:$8 sps:$4 sm:$0xff]   ;;  %v13133_v41 = vld [vmem:[%s18918_s12 + $0xb4] ss:$8 sps:$4 sm:$0xff]  }
 0xe2a   : > { %4994 = vmatpush1.bf16.msra.mxu1 %v13086_v59  ;;  %4922 = vmatprep.subr.bf16.mxu0 %v13091_v63  ;;  %v13128_v53 = vld [vmem:[%s18918_s12 + $0x1c0] ss:$8 sps:$4 sm:$0xff]   ;;  %v13136_v0 = vld [vmem:[%s18918_s12 + $0x1b4] ss:$8 sps:$4 sm:$0xff]   ;;  %v13134_v44 = vld [vmem:[%s18918_s12 + $0x1b0] ss:$8 sps:$4 sm:$0xff]  }
 0xe2b   : > { %v3791_v32 = vadd.f32 %v16084_v26, %v3764_v47  ;;  %v3790_v36 = vadd.f32 %v16081_v7, %v3763_v62  ;;  %4995 = vmatprep.subr.bf16.mxu1 %v13094_v5  ;;  %v13098_v26 = vld [vmem:[%s18918_s12 + $0x110] ss:$8 sps:$4 sm:$0xff]   ;;  %v13103_v7 = vld [vmem:[%s18918_s12 + $0x4] ss:$8 sps:$4 sm:$0xff]   ;;  %v13137_v1 = vld [vmem:[%s18918_s12 + $0xa0] ss:$8 sps:$4 sm:$0xff]  }
 0xe2c   : > { %v13139_v59 = vld [vmem:[%s18918_s12 + $0xa4] ss:$8 sps:$4 sm:$0xff]   ;;  %v13140_v50 = vld [vmem:[%s18918_s12 + $0x1a0] ss:$8 sps:$4 sm:$0xff]   ;;  %v13145_v42 = vld [vmem:[%s18918_s12 + $0x94] ss:$8 sps:$4 sm:$0xff]  }
 0xe2d   : > { %v3799_v58 = vpack.c.bf16 %v3791_v32, %v3789_v12  ;;  %v3798_v21 = vpack.c.bf16 %v3790_v36, %v3788_v55  ;;  %4923 = vmatpush1.bf16.msra.mxu0 %v13089_v9  ;;  %v13142_v63 = vld [vmem:[%s18918_s12 + $0x1a4] ss:$8 sps:$4 sm:$0xff]   ;;  %v13148_v5 = vld [vmem:[%s18918_s12 + $0x194] ss:$8 sps:$4 sm:$0xff]   ;;  %v13143_v47 = vld [vmem:[%s18918_s12 + $0x90] ss:$8 sps:$4 sm:$0xff]  }
 0xe2e   : > { %4996 = vmatpush1.bf16.msra.mxu1 %v13092_v33  ;;  %4924 = vmatprep.subr.bf16.mxu0 %v13097_v17  ;;  %v13146_v62 = vld [vmem:[%s18918_s12 + $0x190] ss:$8 sps:$4 sm:$0xff]   ;;  %v13151_v9 = vld [vmem:[%s18918_s12 + $0x84] ss:$8 sps:$4 sm:$0xff]   ;;  %v13149_v17 = vld [vmem:[%s18918_s12 + $0x80] ss:$8 sps:$4 sm:$0xff]  }
 0xe2f   : > { %4268 = vmatprep.mubr.bf16.mxu0 %v3799_v58  ;;  %4341 = vmatprep.mubr.bf16.mxu1 %v3799_v58  ;;  %v13154_v33 = vld [vmem:[%s18918_s12 + $0x184] ss:$8 sps:$4 sm:$0xff]   ;;  %v13152_v12 = vld [vmem:[%s18918_s12 + $0x180] ss:$8 sps:$4 sm:$0xff]   ;;  %v19063_v55 = vld [vmem:[#allocation31_spill] sm:$0xff] }
 0xe30   : > { %4269 = vmatmul.mubr.bf16.gmra.mxu0 %v3798_v21  ;;  %4342 = vmatmul.mubr.bf16.gmra.mxu1 %v3798_v21  ;;  %v3864_v32 = vld [vmem:[%s18917_s11] sm:$0xf]  ;;  %v16321_v36 = vsub.s32 2, %v19063_v55 }
 0xe31   : > { %4997 = vmatprep.subr.bf16.mxu1 %v13100_v14  ;;  %4925 = vmatpush1.bf16.msra.mxu0 %v13095_v15  ;;  %v16324_v58 = vrot.slane %v3864_v32, %v14818_v46  ;;  %v16327_v14 = vsub.s32 3, %v19063_v55 }
 0xe32   : > { %4998 = vmatpush1.bf16.msra.mxu1 %v13098_v26  ;;  %4926 = vmatprep.subr.bf16.mxu0 %v13103_v7  ;;  %19064 = vst [vmem:[#allocation26_spill] sm:$0xff] %v16321_v36  ;;  %v16330_v26 = vrot.slane %v3864_v32, %v16321_v36 }
 0xe33   : > { %4999 = vmatprep.subr.bf16.mxu1 %v13106_v27  ;;  %19065 = vst [vmem:[#allocation27_spill] sm:$0xff] %v16327_v14 }
 0xe35   : > { %4927 = vmatpush1.bf16.msra.mxu0 %v13101_v22  ;;  %v16333_v22 = vrot.slane %v3864_v32, %v14815_v43 }
 0xe36   : > { %5000 = vmatpush1.bf16.msra.mxu1 %v13104_v40  ;;  %4928 = vmatprep.subr.bf16.mxu0 %v13109_v16  ;;  %v16337_v16 = vrot.slane %v3864_v32, %v16327_v14 }
 0xe37   : > { %5001 = vmatprep.subr.bf16.mxu1 %v13112_v6 }
 0xe39   : > { %4929 = vmatpush2.bf16.msra.mxu0 %v13107_v49 }
 0xe3a   : > { %5002 = vmatpush2.bf16.msra.mxu1 %v13110_v48  ;;  %4930 = vmatprep.subr.bf16.mxu0 %v13115_v34 }
 0xe3b   : > { %5003 = vmatprep.subr.bf16.mxu1 %v13118_v13 }
 0xe3d   : > { %4931 = vmatpush2.bf16.msra.mxu0 %v13113_v57 }
 0xe3e   : > { %5004 = vmatpush2.bf16.msra.mxu1 %v13116_v39  ;;  %4932 = vmatprep.subr.bf16.mxu0 %v13121_v37 }
 0xe3f   : > { %5005 = vmatprep.subr.bf16.mxu1 %v13124_v61 }
 0xe41   : > { %4933 = vmatpush2.bf16.msra.mxu0 %v13119_v51 }
 0xe42   : > { %5006 = vmatpush2.bf16.msra.mxu1 %v13122_v2  ;;  %4934 = vmatprep.subr.bf16.mxu0 %v13127_v30 }
 0xe43   : > { %5007 = vmatprep.subr.bf16.mxu1 %v13130_v8 }
 0xe45   : > { %4935 = vmatpush2.bf16.msra.mxu0 %v13125_v4 }
 0xe46   : > { %5008 = vmatpush2.bf16.msra.mxu1 %v13128_v53  ;;  %4936 = vmatprep.subr.bf16.mxu0 %v13133_v41 }
 0xe47   : > { %5009 = vmatprep.subr.bf16.mxu1 %v13136_v0 }
 0xe49   : > { %4937 = vmatpush2.bf16.msra.mxu0 %v13131_v56 }
 0xe4a   : > { %5010 = vmatpush2.bf16.msra.mxu1 %v13134_v44  ;;  %4938 = vmatprep.subr.bf16.mxu0 %v13139_v59 }
 0xe4b   : > { %5011 = vmatprep.subr.bf16.mxu1 %v13142_v63 }
 0xe4d   : > { %4939 = vmatpush2.bf16.msra.mxu0 %v13137_v1 }
 0xe4e   : > { %5012 = vmatpush2.bf16.msra.mxu1 %v13140_v50  ;;  %4940 = vmatprep.subr.bf16.mxu0 %v13145_v42 }
 0xe4f   : > { %5013 = vmatprep.subr.bf16.mxu1 %v13148_v5 }
 0xe51   : > { %4941 = vmatpush2.bf16.msra.mxu0 %v13143_v47 }
 0xe52   : > { %5014 = vmatpush2.bf16.msra.mxu1 %v13146_v62  ;;  %4942 = vmatprep.subr.bf16.mxu0 %v13151_v9 }
 0xe53   : > { %5015 = vmatprep.subr.bf16.mxu1 %v13154_v33 }
 0xe55   : > { %4943 = vmatpush2.bf16.msra.mxu0 %v13149_v17 }
 0xe56   : > { %5016 = vmatpush2.bf16.msra.mxu1 %v13152_v12 }
 0xed8   : > { %v4240_v21 = vpop.f32.mrf.mxu0  ;;  %v4313_v15 = vpop.f32.mrf.mxu1 }
 0xed9   : > { %v4241_v40 = vadd.f32 %v4240_v21, %v16324_v58  ;;  %v4314_v48 = vadd.f32 %v4313_v15, %v16330_v26 }
 0xeda   : > { %v4242_v7 = vpop.f32.mrf.mxu0  ;;  %v4315_v27 = vpop.f32.mrf.mxu1 }
 0xedb   : > { %v4243_v39 = vadd.f32 %v4242_v7, %v16333_v22  ;;  %v4384_v37 = vmul.f32 0.70710677, %v4241_v40  ;;  %v4316_v61 = vadd.f32 %v4315_v27, %v16337_v16  ;;  %v4386_v30 = vmul.f32 0.70710677, %v4314_v48 }
 0xedc   : > { %v4244_v6 = vpop.f32.mrf.mxu0  ;;  %v4317_v49 = vpop.f32.mrf.mxu1  ;;  %v16354_v15 = vmul.f32 0.5, %v4241_v40 }
 0xedd   : > { %v4245_v34 = vadd.f32 %v4244_v6, %v16324_v58  ;;  %v4318_v4 = vadd.f32 %v4317_v49, %v16330_v26  ;;  %v4385_v0 = vmul.f32 0.70710677, %v4243_v39  ;;  %13763 = verf.f32 %v4384_v37 }
 0xede   : > { %v4246_v13 = vpop.f32.mrf.mxu0  ;;  %v4319_v57 = vpop.f32.mrf.mxu1  ;;  %v4387_v56 = vmul.f32 0.70710677, %v4316_v61  ;;  %13765 = verf.f32 %v4386_v30  ;;  %v16357_v49 = vmul.f32 0.5, %v4314_v48 }
 0xedf   : > { %v4388_v8 = vmul.f32 0.70710677, %v4245_v34  ;;  %v4247_v44 = vadd.f32 %v4246_v13, %v16333_v22  ;;  %v4320_v1 = vadd.f32 %v4319_v57, %v16337_v16  ;;  %v4390_v50 = vmul.f32 0.70710677, %v4318_v4 }
 0xee0   : > { %v4250_v51 = vpop.f32.mrf.mxu0  ;;  %v4323_v2 = vpop.f32.mrf.mxu1  ;;  %v16359_v13 = vmul.f32 0.5, %v4243_v39  ;;  %v4356_v39 = vmul.f32 0.5, %v4245_v34 }
 0xee1   : > { %13767 = verf.f32 %v4388_v8  ;;  %v4389_v47 = vmul.f32 0.70710677, %v4247_v44  ;;  %v4391_v17 = vmul.f32 0.70710677, %v4320_v1  ;;  %v4251_v7 = vadd.f32 %v4250_v51, %v16324_v58 }
 0xee2   : > { %v4252_v53 = vpop.f32.mrf.mxu0  ;;  %v4325_v41 = vpop.f32.mrf.mxu1  ;;  %13769 = verf.f32 %v4385_v0  ;;  %v4324_v57 = vadd.f32 %v4323_v2, %v16330_v26 }
 0xee3   : > { %13771 = verf.f32 %v4387_v56  ;;  %v4253_v62 = vadd.f32 %v4252_v53, %v16333_v22  ;;  %v4326_v12 = vadd.f32 %v4325_v41, %v16337_v16  ;;  %v16365_v53 = vmul.f32 0.5, %v4316_v61 }
 0xee4   : > { %v4254_v59 = vpop.f32.mrf.mxu0  ;;  %v4327_v63 = vpop.f32.mrf.mxu1  ;;  %13773 = verf.f32 %v4390_v50  ;;  %v4392_v56 = vmul.f32 0.70710677, %v4251_v7  ;;  %v16371_v50 = vmul.f32 0.5, %v4318_v4  ;;  %v16376_v61 = vmul.f32 0.5, %v4247_v44 }
 0xee5   : > { %13775 = verf.f32 %v4389_v47  ;;  %v4393_v30 = vmul.f32 0.70710677, %v4253_v62  ;;  %v4255_v8 = vadd.f32 %v4254_v59, %v16324_v58  ;;  %v4395_v51 = vmul.f32 0.70710677, %v4326_v12 }
 0xee6   : > { %v4256_v42 = vpop.f32.mrf.mxu0  ;;  %v4329_v5 = vpop.f32.mrf.mxu1  ;;  %13777 = verf.f32 %v4391_v17  ;;  %v4328_v41 = vadd.f32 %v4327_v63, %v16330_v26  ;;  %v16381_v47 = vmul.f32 0.5, %v4320_v1  ;;  %v16388_v44 = vmul.f32 0.5, %v4324_v57 }
 0xee7   : > { %v16349_v32 = vadd.f32 %v4256_v42, %v16333_v22  ;;  %v16352_v21 = vadd.f32 %v4329_v5, %v16337_v16  ;;  %v4394_v42 = vmul.f32 0.70710677, %v4324_v57  ;;  %v4396_v5 = vmul.f32 0.70710677, %v4255_v8 }
 0xee8   : > { %v4260_v9 = vpop.f32.mrf.mxu0  ;;  %v4333_v33 = vpop.f32.mrf.mxu1  ;;  %v16391_v55 = vmul.f32 0.5, %v4253_v62  ;;  %v16393_v1 = vmul.f32 0.5, %v4326_v12  ;;  %v16396_v36 = vmul.f32 0.5, %v4255_v8  ;;  %v16398_v14 = vmul.f32 0.5, %v4328_v41 }
 0xee9   : > { %v4397_v37 = vmul.f32 0.70710677, %v16349_v32  ;;  %v4399_v40 = vmul.f32 0.70710677, %v16352_v21  ;;  %v16369_v2 = vadd.f32 %v4260_v9, %v16324_v58  ;;  %v4398_v9 = vmul.f32 0.70710677, %v4328_v41 }
 0xeea   : > { %v4262_v27 = vpop.f32.mrf.mxu0  ;;  %v4335_v6 = vpop.f32.mrf.mxu1  ;;  %v16384_v4 = vadd.f32 %v4333_v33, %v16330_v26  ;;  %v4367_v18 = vmul.f32 0.5, %v16352_v21 }
 0xeeb   : > { %13779 = verf.f32 %v4397_v37  ;;  %v16374_v59 = vadd.f32 %v4262_v27, %v16333_v22  ;;  %v16379_v63 = vadd.f32 %v4335_v6, %v16337_v16  ;;  %v13764_v34 = vpop.eup %13763  ;;  %v16386_v27 = vmul.f32 0.5, %v4251_v7 }
 0xeec   : > { %v4264_v48 = vpop.f32.mrf.mxu0  ;;  %v4337_v0 = vpop.f32.mrf.mxu1  ;;  %13781 = verf.f32 %v4399_v40  ;;  %v4402_v38 = vmul.f32 0.70710677, %v16384_v4 }
 0xeed   : > { %13783 = verf.f32 %v4393_v30  ;;  %v13766_v40 = vpop.eup %13765  ;;  %v4400_v30 = vmul.f32 0.70710677, %v16369_v2  ;;  %v4403_v7 = vmul.f32 0.70710677, %v16379_v63  ;;  %v16403_v62 = vadd.f32 %v4264_v48, %v16324_v58 }
 0xeee   : > { %13785 = verf.f32 %v4395_v51  ;;  %v4266_v17 = vpop.f32.mrf.mxu0  ;;  %v4339_v37 = vpop.f32.mrf.mxu1  ;;  %v4401_v51 = vmul.f32 0.70710677, %v16374_v59  ;;  %v16406_v8 = vadd.f32 %v4337_v0, %v16330_v26  ;;  %v4450_v19 = vadd.f32 1.0, %v13766_v40 }
 0xeef   : > { %13787 = verf.f32 %v4392_v56  ;;  %v13768_v6 = vpop.eup %13767  ;;  %v4448_v56 = vadd.f32 1.0, %v13764_v34  ;;  %v16409_v41 = vadd.f32 %v4266_v17, %v16333_v22  ;;  %v16412_v34 = vadd.f32 %v4339_v37, %v16337_v16 }
 0xef0   : > { %13789 = verf.f32 %v4394_v42  ;;  %v13770_v33 = vpop.eup %13769  ;;  %v4270_v12 = vpop.f32.mrf.mxu0  ;;  %v4452_v3 = vadd.f32 1.0, %v13768_v6  ;;  %v4365_v48 = vmul.f32 0.5, %v16349_v32  ;;  %v4404_v17 = vmul.f32 0.70710677, %v16403_v62 }
 0xef1   : > { %13791 = verf.f32 %v4396_v5  ;;  %v13772_v57 = vpop.eup %13771  ;;  %v4343_v42 = vpop.f32.mrf.mxu1  ;;  %v4449_v11 = vadd.f32 1.0, %v13770_v33  ;;  %v16417_v0 = vmul.f32 %v4448_v56, %v16354_v15  ;;  %v4405_v40 = vmul.f32 0.70710677, %v16409_v41 }
 0xef2   : > { %13793 = verf.f32 %v4398_v9  ;;  %v13774_v5 = vpop.eup %13773  ;;  %v4451_v9 = vadd.f32 1.0, %v13772_v57  ;;  %v4272_v6 = vpop.f32.mrf.mxu0  ;;  %v16421_v37 = vmul.f32 %v4452_v3, %v4356_v39  ;;  %v4406_v32 = vmul.f32 0.70710677, %v16406_v8 }
 0xef3   : > { %13795 = verf.f32 %v4400_v30  ;;  %v13776_v30 = vpop.eup %13775  ;;  %v4454_v57 = vadd.f32 1.0, %v13774_v5  ;;  %v4407_v21 = vmul.f32 0.70710677, %v16412_v34  ;;  %v16426_v54 = vmul.f32 %v4450_v19, %v16357_v49 }
 0xef4   : > { %13797 = verf.f32 %v4401_v51  ;;  %v4345_v51 = vpop.f32.mrf.mxu1  ;;  %v13778_v33 = vpop.eup %13777  ;;  %v16432_v15 = vadd.f32 %v4270_v12, %v16324_v58  ;;  %v4483_v3 = vmul.f32 %v4451_v9, %v16365_v53  ;;  %v4453_v39 = vadd.f32 1.0, %v13776_v30 }
 0xef5   : > { %13799 = verf.f32 %v4403_v7  ;;  %v16436_v5 = vadd.f32 %v4343_v42, %v16330_v26  ;;  %v4455_v45 = vadd.f32 1.0, %v13778_v33  ;;  %v16439_v19 = vmul.f32 0.5, %v16374_v59  ;;  %v4274_v49 = vpop.f32.mrf.mxu0 }
 0xef6   : > { %13801 = verf.f32 %v4402_v38  ;;  %v16429_v38 = vmul.f32 %v4449_v11, %v16359_v13  ;;  %v4408_v11 = vmul.f32 0.70710677, %v16432_v15  ;;  %v4347_v13 = vpop.f32.mrf.mxu1  ;;  %v4486_v53 = vmul.f32 %v4454_v57, %v16371_v50 }
 0xef7   : > { %13803 = verf.f32 %v4405_v40  ;;  %v4512_v40 = vpack.c.bf16 %v16421_v37, %v16417_v0  ;;  %v4410_v42 = vmul.f32 0.70710677, %v16436_v5  ;;  %v16447_v59 = vadd.f32 %v4272_v6, %v16333_v22 }
 0xef8   : > { %v13780_v7 = vpop.eup %13779  ;;  %13805 = verf.f32 %v4407_v21  ;;  %v4485_v20 = vmul.f32 %v4453_v39, %v16376_v61  ;;  %v16454_v0 = vadd.f32 %v4274_v49, %v16324_v58  ;;  %v16457_v50 = vadd.f32 %v4347_v13, %v16330_v26 }
 0xef9   : > { %v13782_v56 = vpop.eup %13781  ;;  %13807 = verf.f32 %v4404_v17  ;;  %v4461_v30 = vadd.f32 1.0, %v13780_v7  ;;  %v16450_v17 = vadd.f32 %v4345_v51, %v16337_v16  ;;  %v4487_v57 = vmul.f32 %v4455_v45, %v16381_v47  ;;  %v4276_v7 = vpop.f32.mrf.mxu0 }
 0xefa   : > { %v13784_v31 = vpop.eup %13783  ;;  %13809 = verf.f32 %v4406_v32  ;;  %v4463_v33 = vadd.f32 1.0, %v13782_v56  ;;  %v4409_v6 = vmul.f32 0.70710677, %v16447_v59  ;;  %v4349_v51 = vpop.f32.mrf.mxu1  ;;  %v4514_v28 = vpack.c.bf16 %v4486_v53, %v16426_v54 }
 0xefb   : > { %v13786_v12 = vpop.eup %13785  ;;  %v4457_v29 = vadd.f32 1.0, %v13784_v31  ;;  %13811 = verf.f32 %v4408_v11  ;;  %v4411_v31 = vmul.f32 0.70710677, %v16450_v17  ;;  %v4412_v58 = vmul.f32 0.70710677, %v16454_v0 }
 0xefc   : > { %v13788_v9 = vpop.eup %13787  ;;  %v4459_v32 = vadd.f32 1.0, %v13786_v12  ;;  %13813 = verf.f32 %v4410_v42  ;;  %v4493_v26 = vmul.f32 %v4461_v30, %v4365_v48  ;;  %v4495_v39 = vmul.f32 %v4463_v33, %v4367_v18 }
 0xefd   : > { %v13790_v21 = vpop.eup %13789  ;;  %13815 = verf.f32 %v4409_v6  ;;  %v4414_v45 = vmul.f32 0.70710677, %v16457_v50  ;;  %v4489_v11 = vmul.f32 %v4457_v29, %v16391_v55  ;;  %v16467_v49 = vadd.f32 %v4276_v7, %v16333_v22 }
 0xefe   : > { %v13792_v37 = vpop.eup %13791  ;;  %13817 = verf.f32 %v4411_v31  ;;  %v16470_v54 = vadd.f32 %v4349_v51, %v16337_v16  ;;  %v4491_v12 = vmul.f32 %v4459_v32, %v16393_v1  ;;  %v4513_v48 = vpack.c.bf16 %v4485_v20, %v16429_v38 }
 0xeff   : > { %v13794_v56 = vpop.eup %13793  ;;  %13819 = verf.f32 %v4412_v58  ;;  %v4515_v18 = vpack.c.bf16 %v4487_v57, %v4483_v3  ;;  %v4460_v42 = vadd.f32 1.0, %v13792_v37  ;;  %v4413_v29 = vmul.f32 0.70710677, %v16467_v49 }
 0xf00   : > { %v13796_v61 = vpop.eup %13795  ;;  %v4462_v30 = vadd.f32 1.0, %v13794_v56  ;;  %13821 = verf.f32 %v4414_v45  ;;  %v4415_v22 = vmul.f32 0.70710677, %v16470_v54  ;;  %4944 = vmatprep.mubr.bf16.mxu0 %v4513_v48  ;;  %v4517_v16 = vpack.c.bf16 %v4493_v26, %v4489_v11 }
 0xf01   : > { %v13798_v47 = vpop.eup %13797  ;;  %5017 = vmatprep.mubr.bf16.mxu1 %v4515_v18  ;;  %v4519_v33 = vpack.c.bf16 %v4495_v39, %v4491_v12  ;;  %v4456_v7 = vadd.f32 1.0, %v13788_v9  ;;  %v4458_v1 = vadd.f32 1.0, %v13790_v21  ;;  %13823 = verf.f32 %v4413_v29  ;;  %4945 = vmatmul.mubr.bf16.vlgmr.msra.gmra.mxu0 %v4512_v40 }
 0xf02   : > { %v13800_v13 = vpop.eup %13799  ;;  %v4465_v55 = vadd.f32 1.0, %v13798_v47  ;;  %5018 = vmatmul.mubr.bf16.vlgmr.msra.gmra.mxu1 %v4514_v28  ;;  %v4371_v38 = vmul.f32 0.5, %v16379_v63  ;;  %v4373_v3 = vmul.f32 0.5, %v16409_v41  ;;  %13825 = verf.f32 %v4415_v22  ;;  %4954 = vmatprep.mubr.bf16.mxu0 %v4517_v16 }
 0xf03   : > { %v13802_v53 = vpop.eup %13801  ;;  %v4467_v32 = vadd.f32 1.0, %v13800_v13  ;;  %5027 = vmatprep.mubr.bf16.mxu1 %v4519_v33  ;;  %v4492_v51 = vmul.f32 %v4460_v42, %v16396_v36  ;;  %v4494_v56 = vmul.f32 %v4462_v30, %v16398_v14  ;;  %v4375_v9 = vmul.f32 0.5, %v16412_v34 }
 0xf04   : > { %v13804_v6 = vpop.eup %13803  ;;  %v4497_v28 = vmul.f32 %v4465_v55, %v16439_v19  ;;  %v4488_v63 = vmul.f32 %v4456_v7, %v16386_v27  ;;  %v4490_v41 = vmul.f32 %v4458_v1, %v16388_v44  ;;  %v4464_v34 = vadd.f32 1.0, %v13796_v61 }
 0xf05   : > { %v13806_v20 = vpop.eup %13805  ;;  %v4469_v37 = vadd.f32 1.0, %v13804_v6  ;;  %v4499_v58 = vmul.f32 %v4467_v32, %v4371_v38  ;;  %v4372_v48 = vmul.f32 0.5, %v16403_v62  ;;  %v4466_v19 = vadd.f32 1.0, %v13802_v53 }
 0xf06   : > { %v13808_v57 = vpop.eup %13807  ;;  %v4471_v21 = vadd.f32 1.0, %v13806_v20  ;;  %v4516_v11 = vpack.c.bf16 %v4492_v51, %v4488_v63  ;;  %v4518_v13 = vpack.c.bf16 %v4494_v56, %v4490_v41  ;;  %v4374_v42 = vmul.f32 0.5, %v16406_v8 }
 0xf07   : > { %v13810_v31 = vpop.eup %13809  ;;  %v4501_v40 = vmul.f32 %v4469_v37, %v4373_v3  ;;  %v4468_v39 = vadd.f32 1.0, %v13808_v57  ;;  %v4368_v44 = vmul.f32 0.5, %v16369_v2  ;;  %v4370_v55 = vmul.f32 0.5, %v16384_v4 }
 0xf08   : > { %v4503_v26 = vmul.f32 %v4471_v21, %v4375_v9  ;;  %v13812_v47 = vpop.eup %13811  ;;  %v4470_v36 = vadd.f32 1.0, %v13810_v31  ;;  %v4377_v62 = vmul.f32 0.5, %v16447_v59  ;;  %v4379_v7 = vmul.f32 0.5, %v16450_v17 }
 0xf09   : > { %v4521_v45 = vpack.c.bf16 %v4501_v40, %v4497_v28  ;;  %v13814_v12 = vpop.eup %13813  ;;  %4955 = vmatmul.mubr.bf16.gmra.mxu0 %v4516_v11  ;;  %v4500_v30 = vmul.f32 %v4468_v39, %v4372_v48  ;;  %v4496_v61 = vmul.f32 %v4464_v34, %v4368_v44  ;;  %v4498_v33 = vmul.f32 %v4466_v19, %v4370_v55 }
 0xf0a   : > { %v4523_v14 = vpack.c.bf16 %v4503_v26, %v4499_v58  ;;  %v13816_v18 = vpop.eup %13815  ;;  %5028 = vmatmul.mubr.bf16.gmra.mxu1 %v4518_v13  ;;  %v4502_v22 = vmul.f32 %v4470_v36, %v4374_v42  ;;  %v4381_v2 = vmul.f32 0.5, %v16467_v49  ;;  %v4380_v4 = vmul.f32 0.5, %v16454_v0 }
 0xf0b   : > { %v13818_v27 = vpop.eup %13817  ;;  %4964 = vmatprep.mubr.bf16.mxu0 %v4521_v45  ;;  %v4473_v53 = vadd.f32 1.0, %v13816_v18  ;;  %v4520_v8 = vpack.c.bf16 %v4500_v30, %v4496_v61  ;;  %v4382_v57 = vmul.f32 0.5, %v16457_v50  ;;  %v4383_v51 = vmul.f32 0.5, %v16470_v54 }
 0xf0c   : > { %5037 = vmatprep.mubr.bf16.mxu1 %v4523_v14  ;;  %v13820_v29 = vpop.eup %13819  ;;  %v4475_v1 = vadd.f32 1.0, %v13818_v27  ;;  %v4522_v20 = vpack.c.bf16 %v4502_v22, %v4498_v33  ;;  %v4472_v56 = vadd.f32 1.0, %v13812_v47  ;;  %v4474_v9 = vadd.f32 1.0, %v13814_v12 }
 0xf0d   : > { %v13822_v16 = vpop.eup %13821  ;;  %v4476_v38 = vadd.f32 1.0, %v13820_v29  ;;  %v4505_v21 = vmul.f32 %v4473_v53, %v4377_v62  ;;  %v4376_v17 = vmul.f32 0.5, %v16432_v15  ;;  %v4378_v40 = vmul.f32 0.5, %v16436_v5  ;;  %v5074_v15 = vld [vmem:[%s18919_s13] sm:$0x3] }
 0xf0e   : > { %v13824_v6 = vpop.eup %13823  ;;  %v4478_v3 = vadd.f32 1.0, %v13822_v16  ;;  %v4507_v49 = vmul.f32 %v4475_v1, %v4379_v7  ;;  %v16501_v14 = vrot.slane %v5074_v15, %v14818_v46  ;;  %v16504_v34 = vrot.slane %v5074_v15, %v14815_v43 }
 0xf0f   : > { %v13826_v32 = vpop.eup %13825  ;;  %v4477_v37 = vadd.f32 1.0, %v13824_v6  ;;  %v4508_v63 = vmul.f32 %v4476_v38, %v4380_v4  ;;  %v4504_v50 = vmul.f32 %v4472_v56, %v4376_v17  ;;  %v4506_v26 = vmul.f32 %v4474_v9, %v4378_v40  ;;  %v19070_v56 = vld [vmem:[#allocation17_spill] sm:$0xff]  ;;  %v19073_v40 = vld [vmem:[#allocation18_spill] sm:$0xff] }
 0xf10   : > { %v4479_v59 = vadd.f32 1.0, %v13826_v32  ;;  %v4510_v41 = vmul.f32 %v4478_v3, %v4382_v57 }
 0xf11   : > { %v4509_v31 = vmul.f32 %v4477_v37, %v4381_v2  ;;  %4965 = vmatmul.mubr.bf16.gmra.mxu0 %v4520_v8  ;;  %v4524_v54 = vpack.c.bf16 %v4508_v63, %v4504_v50 }
 0xf12   : > { %5038 = vmatmul.mubr.bf16.gmra.mxu1 %v4522_v20  ;;  %v4511_v28 = vmul.f32 %v4479_v59, %v4383_v51  ;;  %v4526_v39 = vpack.c.bf16 %v4510_v41, %v4506_v26 }
 0xf13   : > { %v4525_v0 = vpack.c.bf16 %v4509_v31, %v4505_v21 }
 0xf14   : > { %v4527_v58 = vpack.c.bf16 %v4511_v28, %v4507_v49 }
 0xf15   : > { %4974 = vmatprep.mubr.bf16.mxu0 %v4525_v0 }
 0xf16   : > { %5047 = vmatprep.mubr.bf16.mxu1 %v4527_v58  ;;  %v19074_v58 = vld [vmem:[#allocation19_spill] sm:$0xff] }
 0xf19   : > { %4975 = vmatmul.mubr.bf16.gmra.mxu0 %v4524_v54 }
 0xf1a   : > { %5048 = vmatmul.mubr.bf16.gmra.mxu1 %v4526_v39 }
 0xfc1   : > { %v4946_v45 = vpop.f32.mrf.mxu0 }
 0xfc2   : > { %v5019_v47 = vpop.f32.mrf.mxu1 }
 0xfc3   : > { %v5020_v11 = vadd.f32 %v5019_v47, %v4946_v45  ;;  %v4948_v5 = vpop.f32.mrf.mxu0 }
 0xfc4   : > { %v5021_v36 = vpop.f32.mrf.mxu1 }
 0xfc5   : > { %v5058_v13 = vadd.f32 %v5020_v11, %v15692_v24  ;;  %v5022_v12 = vadd.f32 %v5021_v36, %v4948_v5  ;;  %v4950_v48 = vpop.f32.mrf.mxu0  ;;  %v19077_v11 = vld [vmem:[#allocation20_spill] sm:$0xff] }
 0xfc6   : > { %v5023_v18 = vpop.f32.mrf.mxu1 }
 0xfc7   : > { %v5059_v19 = vadd.f32 %v5022_v12, %v15695_v35  ;;  %v5024_v42 = vadd.f32 %v5023_v18, %v4950_v48  ;;  %v4952_v27 = vpop.f32.mrf.mxu0  ;;  %v16508_v30 = vadd.f32 %v16501_v14, %v5058_v13  ;;  %v19078_v48 = vld [vmem:[#allocation21_spill] sm:$0xff] }
 0xfc8   : > { %v5025_v44 = vpop.f32.mrf.mxu1 }
 0xfc9   : > { %v16511_v29 = vadd.f32 %v16504_v34, %v5059_v19  ;;  %v5060_v24 = vadd.f32 %v5024_v42, %v15705_v52  ;;  %v5026_v55 = vadd.f32 %v5025_v44, %v4952_v27  ;;  %v4956_v22 = vpop.f32.mrf.mxu0 }
 0xfca   : > { %v5029_v16 = vpop.f32.mrf.mxu1 }
 0xfcb   : > { %v5061_v61 = vadd.f32 %v5026_v55, %v15708_v25  ;;  %v5030_v33 = vadd.f32 %v5029_v16, %v4956_v22  ;;  %v5106_v35 = vadd.f32 %v16511_v29, %v16508_v30  ;;  %v4958_v62 = vpop.f32.mrf.mxu0  ;;  %v16518_v6 = vadd.f32 %v16501_v14, %v5060_v24  ;;  %v19081_v22 = vld [vmem:[#allocation22_spill] sm:$0xff] }
 0xfcc   : > { %v5031_v53 = vpop.f32.mrf.mxu1 }
 0xfcd   : > { %19066 = vst [vmem:[#allocation28_spill] sm:$0xff] %v16518_v6  ;;  %v16521_v8 = vadd.f32 %v16504_v34, %v5061_v61  ;;  %v5062_v7 = vadd.f32 %v5030_v33, %v15718_v60  ;;  %v5032_v52 = vadd.f32 %v5031_v53, %v4958_v62  ;;  %5107 = vadd.xlane.f32.xlu0 %v5106_v35  ;;  %v4960_v1 = vpop.f32.mrf.mxu0  ;;  %v19082_v62 = vld [vmem:[#allocation23_spill] sm:$0xff] }
 0xfce   : > { %v5033_v2 = vpop.f32.mrf.mxu1 }
 0xfcf   : > { %19067 = vst [vmem:[#allocation29_spill] sm:$0xff] %v16521_v8  ;;  %v5063_v25 = vadd.f32 %v5032_v52, %v15721_v23  ;;  %v5034_v32 = vadd.f32 %v5033_v2, %v4960_v1  ;;  %v5109_v20 = vadd.f32 %v16521_v8, %v16518_v6  ;;  %v4962_v38 = vpop.f32.mrf.mxu0  ;;  %v16528_v37 = vadd.f32 %v16501_v14, %v5062_v7 }
 0xfd0   : > { %v5035_v3 = vpop.f32.mrf.mxu1 }
 0xfd1   : > { %19068 = vst [vmem:[#allocation30_spill] sm:$0xff] %v16528_v37  ;;  %v16531_v4 = vadd.f32 %v16504_v34, %v5063_v25  ;;  %v5064_v60 = vadd.f32 %v5034_v32, %v15731_v10  ;;  %v5036_v57 = vadd.f32 %v5035_v3, %v4962_v38  ;;  %5110 = vadd.xlane.f32.xlu1 %v5109_v20  ;;  %v4966_v51 = vpop.f32.mrf.mxu0  ;;  %v19085_v20 = vld [vmem:[#allocation24_spill] sm:$0xff] }
 0xfd2   : > { %v5039_v59 = vpop.f32.mrf.mxu1 }
 0xfd3   : > { %19069 = vst [vmem:[#allocation33_spill] sm:$0xff] %v16531_v4  ;;  %v5065_v23 = vadd.f32 %v5036_v57, %v19070_v56  ;;  %v5040_v9 = vadd.f32 %v5039_v59, %v4966_v51  ;;  %v5112_v21 = vadd.f32 %v16531_v4, %v16528_v37  ;;  %v4968_v31 = vpop.f32.mrf.mxu0  ;;  %v16538_v49 = vadd.f32 %v16501_v14, %v5064_v60  ;;  %v19086_v60 = vld [vmem:[#allocation25_spill] sm:$0xff] }
 0xfd4   : > { %v5041_v17 = vpop.f32.mrf.mxu1 }
 0xfd5   : > { %19071 = vst [vmem:[#allocation17_spill] sm:$0xff] %v16538_v49  ;;  %v16541_v28 = vadd.f32 %v16504_v34, %v5065_v23  ;;  %v5066_v10 = vadd.f32 %v5040_v9, %v19073_v40  ;;  %v5042_v63 = vadd.f32 %v5041_v17, %v4968_v31  ;;  %5113 = vadd.xlane.f32.xlu0 %v5112_v21  ;;  %v4970_v41 = vpop.f32.mrf.mxu0  ;;  %v13155_v9 = vld [vmem:[%s19034_s5 + $0x450] ss:$24 sps:$4 sm:$0xff]   ;;  %v13157_v21 = vld [vmem:[%s19034_s5 + $0x454] ss:$24 sps:$4 sm:$0xff]  }
 0xfd6   : > { %v5043_v0 = vpop.f32.mrf.mxu1  ;;  %v13163_v31 = vld [vmem:[%s19034_s5 + $0x424] ss:$24 sps:$4 sm:$0xff]   ;;  %5873 = vmatprep.subr.bf16.mxu0 %v13157_v21  ;;  %v13161_v40 = vld [vmem:[%s19034_s5 + $0x420] ss:$24 sps:$4 sm:$0xff]  }
 0xfd7   : > { %19072 = vst [vmem:[#allocation34_spill] sm:$0xff] %v16541_v28  ;;  %v5067_v50 = vadd.f32 %v5042_v63, %v19074_v58  ;;  %v5044_v26 = vadd.f32 %v5043_v0, %v4970_v41  ;;  %v5115_v54 = vadd.f32 %v16541_v28, %v16538_v49  ;;  %v4972_v39 = vpop.f32.mrf.mxu0  ;;  %v16548_v47 = vadd.f32 %v16501_v14, %v5066_v10  ;;  %v13166_v17 = vld [vmem:[%s19034_s5 + $0x42c] ss:$24 sps:$4 sm:$0xff]   ;;  %v13164_v10 = vld [vmem:[%s19034_s5 + $0x428] ss:$24 sps:$4 sm:$0xff]  }
 0xfd8   : > { %v5045_v45 = vpop.f32.mrf.mxu1  ;;  %5874 = vmatpush1.bf16.msra.mxu0 %v13155_v9  ;;  %v13169_v63 = vld [vmem:[%s19034_s5 + $0x3f4] ss:$24 sps:$4 sm:$0xff]   ;;  %v13167_v0 = vld [vmem:[%s19034_s5 + $0x3f0] ss:$24 sps:$4 sm:$0xff]  }
 0xfd9   : > { %19075 = vst [vmem:[#allocation18_spill] sm:$0xff] %v16548_v47  ;;  %v16551_v15 = vadd.f32 %v16504_v34, %v5067_v50  ;;  %v5068_v5 = vadd.f32 %v5044_v26, %v19077_v11  ;;  %v5046_v36 = vadd.f32 %v5045_v45, %v4972_v39  ;;  %5116 = vadd.xlane.f32.xlu1 %v5115_v54  ;;  %v4976_v13 = vpop.f32.mrf.mxu0  ;;  %v13172_v41 = vld [vmem:[%s19034_s5 + $0x3fc] ss:$24 sps:$4 sm:$0xff]   ;;  %v13170_v58 = vld [vmem:[%s19034_s5 + $0x3f8] ss:$24 sps:$4 sm:$0xff]  }
 0xfda   : > { %v5049_v12 = vpop.f32.mrf.mxu1  ;;  %5875 = vmatprep.subr.bf16.mxu0 %v13163_v31  ;;  %v13175_v50 = vld [vmem:[%s19034_s5 + $0x3c4] ss:$24 sps:$4 sm:$0xff]   ;;  %v13173_v54 = vld [vmem:[%s19034_s5 + $0x3c0] ss:$24 sps:$4 sm:$0xff]   ;;  %v13181_v45 = vld [vmem:[%s19034_s5 + $0x394] ss:$24 sps:$4 sm:$0xff]  }
 0xfdb   : > { %19076 = vst [vmem:[#allocation19_spill] sm:$0xff] %v16551_v15  ;;  %v5069_v18 = vadd.f32 %v5046_v36, %v19078_v48  ;;  %v5050_v19 = vadd.f32 %v5049_v12, %v4976_v13  ;;  %v5118_v42 = vadd.f32 %v16551_v15, %v16548_v47  ;;  %v4978_v27 = vpop.f32.mrf.mxu0  ;;  %v16558_v24 = vadd.f32 %v16501_v14, %v5068_v5  ;;  %v13178_v26 = vld [vmem:[%s19034_s5 + $0x3cc] ss:$24 sps:$4 sm:$0xff]   ;;  %v13176_v39 = vld [vmem:[%s19034_s5 + $0x3c8] ss:$24 sps:$4 sm:$0xff]  }
 0xfdc   : > { %v5051_v44 = vpop.f32.mrf.mxu1  ;;  %5876 = vmatpush1.bf16.msra.mxu0 %v13161_v40  ;;  %v13184_v11 = vld [vmem:[%s19034_s5 + $0x39c] ss:$24 sps:$4 sm:$0xff]   ;;  %v13179_v5 = vld [vmem:[%s19034_s5 + $0x390] ss:$24 sps:$4 sm:$0xff]   ;;  %v13190_v12 = vld [vmem:[%s19034_s5 + $0x36c] ss:$24 sps:$4 sm:$0xff]  }
 0xfdd   : > { %19079 = vst [vmem:[#allocation20_spill] sm:$0xff] %v16558_v24  ;;  %v16561_v55 = vadd.f32 %v16504_v34, %v5069_v18  ;;  %v5070_v16 = vadd.f32 %v5050_v19, %v19081_v22  ;;  %v5052_v61 = vadd.f32 %v5051_v44, %v4978_v27  ;;  %5119 = vadd.xlane.f32.xlu0 %v5118_v42  ;;  %v4980_v33 = vpop.f32.mrf.mxu0  ;;  %v13182_v36 = vld [vmem:[%s19034_s5 + $0x398] ss:$24 sps:$4 sm:$0xff]   ;;  %v13187_v13 = vld [vmem:[%s19034_s5 + $0x364] ss:$24 sps:$4 sm:$0xff]  }
 0xfde   : > { %v5053_v35 = vpop.f32.mrf.mxu1  ;;  %5877 = vmatprep.subr.bf16.mxu0 %v13169_v63  ;;  %v13185_v48 = vld [vmem:[%s19034_s5 + $0x360] ss:$24 sps:$4 sm:$0xff]   ;;  %v13193_v19 = vld [vmem:[%s19034_s5 + $0x334] ss:$24 sps:$4 sm:$0xff]   ;;  %v13191_v27 = vld [vmem:[%s19034_s5 + $0x330] ss:$24 sps:$4 sm:$0xff]  }
 0xfdf   : > { %19080 = vst [vmem:[#allocation21_spill] sm:$0xff] %v16561_v55  ;;  %v5071_v53 = vadd.f32 %v5052_v61, %v19082_v62  ;;  %v5054_v7 = vadd.f32 %v5053_v35, %v4980_v33  ;;  %v5121_v52 = vadd.f32 %v16561_v55, %v16558_v24  ;;  %v4982_v1 = vpop.f32.mrf.mxu0  ;;  %v16568_v25 = vadd.f32 %v16501_v14, %v5070_v16  ;;  %v13188_v18 = vld [vmem:[%s19034_s5 + $0x368] ss:$24 sps:$4 sm:$0xff]   ;;  %v13196_v42 = vld [vmem:[%s19034_s5 + $0x33c] ss:$24 sps:$4 sm:$0xff]  }
 0xfe0   : > { %v5055_v2 = vpop.f32.mrf.mxu1  ;;  %5878 = vmatpush1.bf16.msra.mxu0 %v13167_v0  ;;  %v13194_v44 = vld [vmem:[%s19034_s5 + $0x338] ss:$24 sps:$4 sm:$0xff]   ;;  %v13199_v22 = vld [vmem:[%s19034_s5 + $0x304] ss:$24 sps:$4 sm:$0xff]   ;;  %v13200_v33 = vld [vmem:[%s19034_s5 + $0x308] ss:$24 sps:$4 sm:$0xff]  }
 0xfe1   : > { %19083 = vst [vmem:[#allocation22_spill] sm:$0xff] %v16568_v25  ;;  %v16571_v32 = vadd.f32 %v16504_v34, %v5071_v53  ;;  %v5072_v38 = vadd.f32 %v5054_v7, %v19085_v20  ;;  %v5056_v3 = vadd.f32 %v5055_v2, %v4982_v1  ;;  %5122 = vadd.xlane.f32.xlu1 %v5121_v52  ;;  %v13202_v16 = vld [vmem:[%s19034_s5 + $0x30c] ss:$24 sps:$4 sm:$0xff]   ;;  %v13197_v61 = vld [vmem:[%s19034_s5 + $0x300] ss:$24 sps:$4 sm:$0xff]  }
 0xfe2   : > { %5879 = vmatprep.subr.bf16.mxu0 %v13175_v50  ;;  %v13205_v35 = vld [vmem:[%s19034_s5 + $0x5d4] ss:$24 sps:$4 sm:$0xff]   ;;  %v13203_v53 = vld [vmem:[%s19034_s5 + $0x5d0] ss:$24 sps:$4 sm:$0xff]  }
 0xfe3   : > { %19084 = vst [vmem:[#allocation23_spill] sm:$0xff] %v16571_v32  ;;  %v5073_v57 = vadd.f32 %v5056_v3, %v19086_v60  ;;  %v5124_v51 = vadd.f32 %v16571_v32, %v16568_v25  ;;  %v16578_v59 = vadd.f32 %v16501_v14, %v5072_v38  ;;  %v13158_v14 = vld [vmem:[%s19034_s5 + $0x458] ss:$24 sps:$4 sm:$0xff]   ;;  %v13208_v62 = vld [vmem:[%s19034_s5 + $0x5dc] ss:$24 sps:$4 sm:$0xff]  }
 0xfe4   : > { %5880 = vmatpush1.bf16.msra.mxu0 %v13173_v54  ;;  %v13206_v7 = vld [vmem:[%s19034_s5 + $0x5d8] ss:$24 sps:$4 sm:$0xff]  }
 0xfe5   : > { %19087 = vst [vmem:[#allocation24_spill] sm:$0xff] %v16578_v59  ;;  %v16581_v56 = vadd.f32 %v16504_v34, %v5073_v57  ;;  %5125 = vadd.xlane.f32.xlu0 %v5124_v51  ;;  %v13160_v34 = vld [vmem:[%s19034_s5 + $0x45c] ss:$24 sps:$4 sm:$0xff]   ;;  %5881 = vmatprep.subr.bf16.mxu0 %v13181_v45 }
 0xfe6   : > { %5946 = vmatprep.subr.bf16.mxu1 %v13160_v34 }
 0xfe7   : > { %19088 = vst [vmem:[#allocation25_spill] sm:$0xff] %v16581_v56  ;;  %v5127_v23 = vadd.f32 %v16581_v56, %v16578_v59  ;;  %5947 = vmatpush1.bf16.msra.mxu1 %v13158_v14 }
 0xfe8   : > { %5948 = vmatprep.subr.bf16.mxu1 %v13166_v17  ;;  %5882 = vmatpush1.bf16.msra.mxu0 %v13179_v5 }
 0xfe9   : > { %5128 = vadd.xlane.f32.xlu1 %v5127_v23  ;;  %5883 = vmatprep.subr.bf16.mxu0 %v13187_v13 }
 0xfeb   : > { %5949 = vmatpush1.bf16.msra.mxu1 %v13164_v10 }
 0xfec   : > { %5950 = vmatprep.subr.bf16.mxu1 %v13172_v41  ;;  %5884 = vmatpush1.bf16.msra.mxu0 %v13185_v48  ;;  %v13211_v48 = vld [vmem:[%s19034_s5 + $0x5a4] ss:$24 sps:$4 sm:$0xff]  }
 0xfed   : > { %5885 = vmatprep.subr.bf16.mxu0 %v13193_v19  ;;  %v13209_v19 = vld [vmem:[%s19034_s5 + $0x5a0] ss:$24 sps:$4 sm:$0xff]  }
 0xfef   : > { %5951 = vmatpush1.bf16.msra.mxu1 %v13170_v58 }
 0xff0   : > { %5952 = vmatprep.subr.bf16.mxu1 %v13178_v26  ;;  %5886 = vmatpush1.bf16.msra.mxu0 %v13191_v27 }
 0xff1   : > { %5887 = vmatprep.subr.bf16.mxu0 %v13199_v22 }
 0xff3   : > { %5953 = vmatpush1.bf16.msra.mxu1 %v13176_v39 }
 0xff4   : > { %5954 = vmatprep.subr.bf16.mxu1 %v13184_v11  ;;  %5888 = vmatpush1.bf16.msra.mxu0 %v13197_v61 }
 0xff5   : > { %5889 = vmatprep.subr.bf16.mxu0 %v13205_v35 }
 0xff7   : > { %5955 = vmatpush1.bf16.msra.mxu1 %v13182_v36 }
 0xff8   : > { %5956 = vmatprep.subr.bf16.mxu1 %v13190_v12  ;;  %5890 = vmatpush2.bf16.msra.mxu0 %v13203_v53 }
 0xff9   : > { %5891 = vmatprep.subr.bf16.mxu0 %v13211_v48 }
 0xffb   : > { %5957 = vmatpush1.bf16.msra.mxu1 %v13188_v18 }
 0xffc   : > { %5958 = vmatprep.subr.bf16.mxu1 %v13196_v42  ;;  %v13214_v42 = vld [vmem:[%s19034_s5 + $0x5ac] ss:$24 sps:$4 sm:$0xff]   ;;  %5892 = vmatpush2.bf16.msra.mxu0 %v13209_v19  ;;  %v13230_v19 = vld [vmem:[%s19034_s5 + $0x518] ss:$24 sps:$4 sm:$0xff]  }
 0xfff   : > { %5959 = vmatpush1.bf16.msra.mxu1 %v13194_v44 }
0x1000   : > { %5960 = vmatprep.subr.bf16.mxu1 %v13202_v16  ;;  %v13212_v16 = vld [vmem:[%s19034_s5 + $0x5a8] ss:$24 sps:$4 sm:$0xff]  }
0x1003   : > { %5961 = vmatpush1.bf16.msra.mxu1 %v13200_v33 }
0x1004   : > { %5962 = vmatprep.subr.bf16.mxu1 %v13208_v62  ;;  %v13217_v62 = vld [vmem:[%s19034_s5 + $0x574] ss:$24 sps:$4 sm:$0xff]  }
0x1005   : > { %5893 = vmatprep.subr.bf16.mxu0 %v13217_v62  ;;  %v13239_v62 = vld [vmem:[%s19034_s5 + $0x4b0] ss:$24 sps:$4 sm:$0xff]  }
0x1007   : > { %5963 = vmatpush2.bf16.msra.mxu1 %v13206_v7  ;;  %v13215_v7 = vld [vmem:[%s19034_s5 + $0x570] ss:$24 sps:$4 sm:$0xff]  }
0x1008   : > { %5964 = vmatprep.subr.bf16.mxu1 %v13214_v42  ;;  %5894 = vmatpush2.bf16.msra.mxu0 %v13215_v7  ;;  %v13242_v7 = vld [vmem:[%s19034_s5 + $0x4b8] ss:$24 sps:$4 sm:$0xff]  }
0x100b   : > { %5965 = vmatpush2.bf16.msra.mxu1 %v13212_v16  ;;  %v13236_v16 = vld [vmem:[%s19034_s5 + $0x4e8] ss:$24 sps:$4 sm:$0xff]  }
0x1056   : > { %v5108_v52 = vpop.xlane.xlu0 %5107 }
0x1057   : > { %v5130_v1 = vmul.f32 0.00390625, %v5108_v52  ;;  %v13220_v52 = vld [vmem:[%s19034_s5 + $0x57c] ss:$24 sps:$4 sm:$0xff]  }
0x1058   : > { %5966 = vmatprep.subr.bf16.mxu1 %v13220_v52  ;;  %v13247_v52 = vld [vmem:[%s19034_s5 + $0x484] ss:$24 sps:$4 sm:$0xff]  }
0x1059   : > { %v16694_v2 = vsub.f32 %v16508_v30, %v5130_v1  ;;  %v16697_v20 = vsub.f32 %v16511_v29, %v5130_v1 }
0x105a   : > { %v5111_v38 = vpop.xlane.xlu1 %5110 }
0x105b   : > { %v5154_v3 = vmul.f32 %v16694_v2, %v16694_v2  ;;  %v5155_v60 = vmul.f32 %v16697_v20, %v16697_v20  ;;  %v5131_v57 = vmul.f32 0.00390625, %v5111_v38 }
0x105d   : > { %v16704_v51 = vsub.f32 %v16518_v6, %v5131_v57  ;;  %v16707_v23 = vsub.f32 %v16521_v8, %v5131_v57  ;;  %v5170_v9 = vadd.f32 %v5155_v60, %v5154_v3  ;;  %v13218_v60 = vld [vmem:[%s19034_s5 + $0x578] ss:$24 sps:$4 sm:$0xff]  }
0x105e   : > { %v5114_v21 = vpop.xlane.xlu0 %5113  ;;  %5967 = vmatpush2.bf16.msra.mxu1 %v13218_v60  ;;  %v13253_v60 = vld [vmem:[%s19034_s5 + $0x464] ss:$24 sps:$4 sm:$0xff]  }
0x105f   : > { %v5156_v14 = vmul.f32 %v16704_v51, %v16704_v51  ;;  %v5157_v34 = vmul.f32 %v16707_v23, %v16707_v23  ;;  %v5132_v31 = vmul.f32 0.00390625, %v5114_v21  ;;  %5171 = vadd.xlane.f32.xlu0 %v5170_v9 }
0x1061   : > { %v16714_v17 = vsub.f32 %v16528_v37, %v5132_v31  ;;  %v16717_v40 = vsub.f32 %v16531_v4, %v5132_v31  ;;  %v5173_v10 = vadd.f32 %v5157_v34, %v5156_v14  ;;  %v13223_v14 = vld [vmem:[%s19034_s5 + $0x544] ss:$24 sps:$4 sm:$0xff]   ;;  %v13221_v31 = vld [vmem:[%s19034_s5 + $0x540] ss:$24 sps:$4 sm:$0xff]  }
0x1062   : > { %v5117_v63 = vpop.xlane.xlu1 %5116  ;;  %5895 = vmatprep.subr.bf16.mxu0 %v13223_v14 }
0x1063   : > { %v5158_v41 = vmul.f32 %v16714_v17, %v16714_v17  ;;  %v5159_v0 = vmul.f32 %v16717_v40, %v16717_v40  ;;  %v5133_v58 = vmul.f32 0.00390625, %v5117_v63  ;;  %5174 = vadd.xlane.f32.xlu1 %v5173_v10  ;;  %v13226_v10 = vld [vmem:[%s19034_s5 + $0x54c] ss:$24 sps:$4 sm:$0xff]   ;;  %5896 = vmatpush2.bf16.msra.mxu0 %v13221_v31 }
0x1064   : > { %5968 = vmatprep.subr.bf16.mxu1 %v13226_v10 }
0x1065   : > { %v16724_v50 = vsub.f32 %v16538_v49, %v5133_v58  ;;  %v16727_v26 = vsub.f32 %v16541_v28, %v5133_v58  ;;  %v5176_v54 = vadd.f32 %v5159_v0, %v5158_v41  ;;  %v13224_v58 = vld [vmem:[%s19034_s5 + $0x548] ss:$24 sps:$4 sm:$0xff]  }
0x1066   : > { %v5120_v39 = vpop.xlane.xlu0 %5119  ;;  %5969 = vmatpush2.bf16.msra.mxu1 %v13224_v58 }
0x1067   : > { %v5160_v45 = vmul.f32 %v16724_v50, %v16724_v50  ;;  %v5161_v11 = vmul.f32 %v16727_v26, %v16727_v26  ;;  %v5134_v5 = vmul.f32 0.00390625, %v5120_v39  ;;  %5177 = vadd.xlane.f32.xlu0 %v5176_v54 }
0x1069   : > { %v16734_v36 = vsub.f32 %v16548_v47, %v5134_v5  ;;  %v16737_v13 = vsub.f32 %v16551_v15, %v5134_v5  ;;  %v5179_v12 = vadd.f32 %v5161_v11, %v5160_v45  ;;  %v13229_v11 = vld [vmem:[%s19034_s5 + $0x514] ss:$24 sps:$4 sm:$0xff]   ;;  %v13227_v5 = vld [vmem:[%s19034_s5 + $0x510] ss:$24 sps:$4 sm:$0xff]  }
0x106a   : > { %v5123_v18 = vpop.xlane.xlu1 %5122  ;;  %5897 = vmatprep.subr.bf16.mxu0 %v13229_v11 }
0x106b   : > { %v5162_v27 = vmul.f32 %v16734_v36, %v16734_v36  ;;  %v5163_v44 = vmul.f32 %v16737_v13, %v16737_v13  ;;  %v5135_v22 = vmul.f32 0.00390625, %v5123_v18  ;;  %5180 = vadd.xlane.f32.xlu1 %v5179_v12  ;;  %v13232_v12 = vld [vmem:[%s19034_s5 + $0x51c] ss:$24 sps:$4 sm:$0xff]   ;;  %5898 = vmatpush2.bf16.msra.mxu0 %v13227_v5  ;;  %v11445_v5 = vld [vmem:[%s19036_s20 + $0x2] sm:$0x3] }
0x106c   : > { %5970 = vmatprep.subr.bf16.mxu1 %v13232_v12 }
0x106d   : > { %v16756_v61 = vsub.f32 %v16558_v24, %v5135_v22  ;;  %v16759_v33 = vsub.f32 %v16561_v55, %v5135_v22  ;;  %v5182_v35 = vadd.f32 %v5163_v44, %v5162_v27  ;;  %5971 = vmatpush2.bf16.msra.mxu1 %v13230_v19  ;;  %v13235_v27 = vld [vmem:[%s19034_s5 + $0x4e4] ss:$24 sps:$4 sm:$0xff]   ;;  %v13233_v44 = vld [vmem:[%s19034_s5 + $0x4e0] ss:$24 sps:$4 sm:$0xff]  }
0x106e   : > { %v5126_v53 = vpop.xlane.xlu0 %5125  ;;  %v13238_v22 = vld [vmem:[%s19034_s5 + $0x4ec] ss:$24 sps:$4 sm:$0xff]   ;;  %5899 = vmatprep.subr.bf16.mxu0 %v13235_v27  ;;  %v16867_v27 = vrot.slane %v11445_v5, %v14815_v43 }
0x106f   : > { %v5164_v1 = vmul.f32 %v16756_v61, %v16756_v61  ;;  %v5165_v38 = vmul.f32 %v16759_v33, %v16759_v33  ;;  %v5136_v3 = vmul.f32 0.00390625, %v5126_v53  ;;  %5183 = vadd.xlane.f32.xlu0 %v5182_v35  ;;  %5900 = vmatpush2.bf16.msra.mxu0 %v13233_v44  ;;  %v13241_v35 = vld [vmem:[%s19034_s5 + $0x4b4] ss:$24 sps:$4 sm:$0xff]  }
0x1070   : > { %5972 = vmatprep.subr.bf16.mxu1 %v13238_v22  ;;  %v13244_v53 = vld [vmem:[%s19034_s5 + $0x4bc] ss:$24 sps:$4 sm:$0xff]   ;;  %5901 = vmatprep.subr.bf16.mxu0 %v13241_v35 }
0x1071   : > { %v16778_v57 = vsub.f32 %v16568_v25, %v5136_v3  ;;  %v16781_v9 = vsub.f32 %v16571_v32, %v5136_v3  ;;  %v5185_v21 = vadd.f32 %v5165_v38, %v5164_v1  ;;  %5973 = vmatpush2.bf16.msra.mxu1 %v13236_v16  ;;  %v13245_v1 = vld [vmem:[%s19034_s5 + $0x480] ss:$24 sps:$4 sm:$0xff]   ;;  %v13250_v38 = vld [vmem:[%s19034_s5 + $0x48c] ss:$24 sps:$4 sm:$0xff]  }
0x1072   : > { %v5129_v34 = vpop.xlane.xlu1 %5128  ;;  %5974 = vmatprep.subr.bf16.mxu1 %v13244_v53  ;;  %v13248_v3 = vld [vmem:[%s19034_s5 + $0x488] ss:$24 sps:$4 sm:$0xff]  }
0x1073   : > { %v5166_v63 = vmul.f32 %v16778_v57, %v16778_v57  ;;  %v5167_v41 = vmul.f32 %v16781_v9, %v16781_v9  ;;  %v5137_v0 = vmul.f32 0.00390625, %v5129_v34  ;;  %5186 = vadd.xlane.f32.xlu1 %v5185_v21  ;;  %5902 = vmatpush2.bf16.msra.mxu0 %v13239_v62  ;;  %v11446_v16 = vld [vmem:[%s19037_s6 + $0x2] sm:$0x3] }
0x1074   : > { %5903 = vmatprep.subr.bf16.mxu0 %v13247_v52 }
0x1075   : > { %v16800_v54 = vsub.f32 %v16578_v59, %v5137_v0  ;;  %v16803_v39 = vsub.f32 %v16581_v56, %v5137_v0  ;;  %v5188_v45 = vadd.f32 %v5167_v41, %v5166_v63  ;;  %5975 = vmatpush2.bf16.msra.mxu1 %v13242_v7 }
0x1076   : > { %5976 = vmatprep.subr.bf16.mxu1 %v13250_v38  ;;  %v16877_v38 = vrot.slane %v11446_v16, %v14818_v46 }
0x1077   : > { %v5168_v48 = vmul.f32 %v16800_v54, %v16800_v54  ;;  %v5169_v18 = vmul.f32 %v16803_v39, %v16803_v39  ;;  %5189 = vadd.xlane.f32.xlu0 %v5188_v45  ;;  %5904 = vmatpush2.bf16.msra.mxu0 %v13245_v1 }
0x1078   : > { %6019 = vmatprep.subr.bf16.mxu0 %v13253_v60 }
0x1079   : > { %v5191_v42 = vadd.f32 %v5169_v18, %v5168_v48  ;;  %5977 = vmatpush2.bf16.msra.mxu1 %v13248_v3 }
0x107b   : > { %5192 = vadd.xlane.f32.xlu1 %v5191_v42  ;;  %v16864_v42 = vrot.slane %v11445_v5, %v14818_v46 }
0x10e8   : > { %v5172_v21 = vpop.xlane.xlu0 %5171 }
0x10e9   : > { %v5194_v14 = vmul.f32 0.00390625, %v5172_v21 }
0x10eb   : > { %v5202_v34 = vadd.f32 1e-05, %v5194_v14 }
0x10ec   : > { %v5175_v31 = vpop.xlane.xlu1 %5174 }
0x10ed   : > { %13827 = vrsqrt.f32 %v5202_v34  ;;  %v5195_v10 = vmul.f32 0.00390625, %v5175_v31 }
0x10ef   : > { %v5203_v63 = vadd.f32 1e-05, %v5195_v10 }
0x10f0   : > { %v5178_v41 = vpop.xlane.xlu0 %5177 }
0x10f1   : > { %13829 = vrsqrt.f32 %v5203_v63  ;;  %v5196_v0 = vmul.f32 0.00390625, %v5178_v41 }
0x10f3   : > { %v5204_v58 = vadd.f32 1e-05, %v5196_v0 }
0x10f4   : > { %v5181_v45 = vpop.xlane.xlu1 %5180 }
0x10f5   : > { %13831 = vrsqrt.f32 %v5204_v58  ;;  %v5197_v11 = vmul.f32 0.00390625, %v5181_v45 }
0x10f7   : > { %v5205_v12 = vadd.f32 1e-05, %v5197_v11 }
0x10f8   : > { %v5184_v48 = vpop.xlane.xlu0 %5183 }
0x10f9   : > { %13833 = vrsqrt.f32 %v5205_v12  ;;  %v5198_v18 = vmul.f32 0.00390625, %v5184_v48  ;;  %v13251_v48 = vld [vmem:[%s19034_s5 + $0x460] ss:$24 sps:$4 sm:$0xff]  }
0x10fa   : > { %v13828_v19 = vpop.eup %13827 }
0x10fb   : > { %v5218_v44 = vmul.f32 %v13828_v19, %v16694_v2  ;;  %v5206_v22 = vadd.f32 1e-05, %v5198_v18  ;;  %v5219_v35 = vmul.f32 %v13828_v19, %v16697_v20  ;;  %v16880_v2 = vrot.slane %v11446_v16, %v14815_v43 }
0x10fc   : > { %v5187_v62 = vpop.xlane.xlu1 %5186 }
0x10fd   : > { %13835 = vrsqrt.f32 %v5206_v22  ;;  %v5199_v53 = vmul.f32 0.00390625, %v5187_v62  ;;  %v5245_v52 = vmul.f32 %v16864_v42, %v5218_v44  ;;  %v5246_v1 = vmul.f32 %v16867_v27, %v5219_v35  ;;  %v13256_v44 = vld [vmem:[%s19034_s5 + $0x434] ss:$24 sps:$4 sm:$0xff]   ;;  %v13254_v62 = vld [vmem:[%s19034_s5 + $0x430] ss:$24 sps:$4 sm:$0xff]  }
0x10fe   : > { %v13830_v7 = vpop.eup %13829 }
0x10ff   : > { %v5220_v3 = vmul.f32 %v13830_v7, %v16704_v51  ;;  %v5207_v60 = vadd.f32 1e-05, %v5199_v53  ;;  %v5221_v21 = vmul.f32 %v13830_v7, %v16707_v23  ;;  %v5273_v63 = vadd.f32 %v16880_v2, %v5246_v1 }
0x1100   : > { %v5190_v20 = vpop.xlane.xlu0 %5189  ;;  %v5272_v41 = vadd.f32 %v16877_v38, %v5245_v52 }
0x1101   : > { %v5247_v14 = vmul.f32 %v16864_v42, %v5220_v3  ;;  %13837 = vrsqrt.f32 %v5207_v60  ;;  %v5200_v34 = vmul.f32 0.00390625, %v5190_v20  ;;  %v5248_v31 = vmul.f32 %v16867_v27, %v5221_v21 }
0x1102   : > { %v13832_v10 = vpop.eup %13831 }
0x1103   : > { %v5208_v0 = vadd.f32 1e-05, %v5200_v34  ;;  %v5275_v58 = vadd.f32 %v16880_v2, %v5248_v31  ;;  %v5274_v51 = vadd.f32 %v16877_v38, %v5247_v14  ;;  %v5223_v45 = vmul.f32 %v13832_v10, %v16717_v40  ;;  %v13257_v34 = vld [vmem:[%s19034_s5 + $0x400] ss:$24 sps:$4 sm:$0xff]  }
0x1104   : > { %v5193_v23 = vpop.xlane.xlu1 %5192  ;;  %v5222_v11 = vmul.f32 %v13832_v10, %v16714_v17 }
0x1105   : > { %13839 = vrsqrt.f32 %v5208_v0  ;;  %v5201_v5 = vmul.f32 0.00390625, %v5193_v23  ;;  %v16892_v12 = vpack.c.bf16 %v5275_v58, %v5273_v63  ;;  %v16897_v18 = vpack.c.bf16 %v5274_v51, %v5272_v41  ;;  %v13262_v63 = vld [vmem:[%s19034_s5 + $0x3d4] ss:$24 sps:$4 sm:$0xff]   ;;  %v13260_v58 = vld [vmem:[%s19034_s5 + $0x3d0] ss:$24 sps:$4 sm:$0xff]  }
0x1106   : > { %v13834_v19 = vpop.eup %13833  ;;  %v5250_v40 = vmul.f32 %v16867_v27, %v5223_v45  ;;  %v5249_v22 = vmul.f32 %v16864_v42, %v5222_v11 }
0x1107   : > { %v5209_v17 = vadd.f32 1e-05, %v5201_v5  ;;  %5905 = vmatprep.mubr.bf16.mxu0 %v16892_v12  ;;  %5978 = vmatprep.mubr.bf16.mxu1 %v16892_v12  ;;  %v5225_v16 = vmul.f32 %v13834_v19, %v16727_v26  ;;  %v5224_v35 = vmul.f32 %v13834_v19, %v16724_v50  ;;  %v13259_v50 = vld [vmem:[%s19034_s5 + $0x404] ss:$24 sps:$4 sm:$0xff]  }
0x1108   : > { %5906 = vmatmul.mubr.bf16.vlgmr.msra.gmra.mxu0 %v16897_v18  ;;  %5979 = vmatmul.mubr.bf16.vlgmr.msra.gmra.mxu1 %v16897_v18  ;;  %v5277_v26 = vadd.f32 %v16880_v2, %v5250_v40  ;;  %v5276_v1 = vadd.f32 %v16877_v38, %v5249_v22  ;;  %v13263_v22 = vld [vmem:[%s19034_s5 + $0x3a0] ss:$24 sps:$4 sm:$0xff]  }
0x1109   : > { %13841 = vrsqrt.f32 %v5209_v17  ;;  %6020 = vmatpush1.bf16.msra.mxu0 %v13251_v48  ;;  %v5252_v53 = vmul.f32 %v16867_v27, %v5225_v16  ;;  %v5251_v7 = vmul.f32 %v16864_v42, %v5224_v35  ;;  %v13268_v35 = vld [vmem:[%s19034_s5 + $0x374] ss:$24 sps:$4 sm:$0xff]  }
0x110a   : > { %v13836_v52 = vpop.eup %13835  ;;  %6021 = vmatprep.subr.bf16.mxu0 %v13256_v44 }
0x110b   : > { %v5279_v3 = vadd.f32 %v16880_v2, %v5252_v53  ;;  %v5278_v60 = vadd.f32 %v16877_v38, %v5251_v7  ;;  %v5227_v21 = vmul.f32 %v13836_v52, %v16737_v13  ;;  %v5226_v20 = vmul.f32 %v13836_v52, %v16734_v36  ;;  %v13266_v7 = vld [vmem:[%s19034_s5 + $0x370] ss:$24 sps:$4 sm:$0xff]  }
0x110d   : > { %6022 = vmatpush1.bf16.msra.mxu0 %v13254_v62  ;;  %v16924_v14 = vpack.c.bf16 %v5279_v3, %v5277_v26  ;;  %v16929_v31 = vpack.c.bf16 %v5278_v60, %v5276_v1  ;;  %v5254_v41 = vmul.f32 %v16867_v27, %v5227_v21  ;;  %v5253_v13 = vmul.f32 %v16864_v42, %v5226_v20  ;;  %v13274_v21 = vld [vmem:[%s19034_s5 + $0x314] ss:$24 sps:$4 sm:$0xff]   ;;  %v13275_v20 = vld [vmem:[%s19034_s5 + $0x5e0] ss:$24 sps:$4 sm:$0xff]  }
0x110e   : > { %v13838_v10 = vpop.eup %13837  ;;  %6023 = vmatprep.subr.bf16.mxu0 %v13259_v50 }
0x110f   : > { %5915 = vmatprep.mubr.bf16.mxu0 %v16924_v14  ;;  %5988 = vmatprep.mubr.bf16.mxu1 %v16924_v14  ;;  %v5229_v36 = vmul.f32 %v13838_v10, %v16759_v33  ;;  %v5228_v0 = vmul.f32 %v13838_v10, %v16756_v61  ;;  %v5281_v11 = vadd.f32 %v16880_v2, %v5254_v41  ;;  %v13265_v61 = vld [vmem:[%s19034_s5 + $0x3a4] ss:$24 sps:$4 sm:$0xff]   ;;  %v13286_v41 = vld [vmem:[%s19034_s5 + $0x554] ss:$24 sps:$4 sm:$0xff]  }
0x1110   : > { %5916 = vmatmul.mubr.bf16.gmra.mxu0 %v16929_v31  ;;  %5989 = vmatmul.mubr.bf16.gmra.mxu1 %v16929_v31  ;;  %v5280_v33 = vadd.f32 %v16877_v38, %v5253_v13  ;;  %v13283_v10 = vld [vmem:[%s19034_s5 + $0x584] ss:$24 sps:$4 sm:$0xff]   ;;  %v13284_v13 = vld [vmem:[%s19034_s5 + $0x550] ss:$24 sps:$4 sm:$0xff]  }
0x1111   : > { %6024 = vmatpush1.bf16.msra.mxu0 %v13257_v34  ;;  %v5256_v51 = vmul.f32 %v16867_v27, %v5229_v36  ;;  %v5255_v45 = vmul.f32 %v16864_v42, %v5228_v0  ;;  %v13280_v34 = vld [vmem:[%s19034_s5 + $0x5b4] ss:$24 sps:$4 sm:$0xff]   ;;  %v13289_v36 = vld [vmem:[%s19034_s5 + $0x524] ss:$24 sps:$4 sm:$0xff]   ;;  %v13287_v0 = vld [vmem:[%s19034_s5 + $0x520] ss:$24 sps:$4 sm:$0xff]  }
0x1112   : > { %v13840_v23 = vpop.eup %13839  ;;  %6025 = vmatprep.subr.bf16.mxu0 %v13262_v63  ;;  %v13281_v63 = vld [vmem:[%s19034_s5 + $0x580] ss:$24 sps:$4 sm:$0xff]  }
0x1113   : > { %v5283_v5 = vadd.f32 %v16880_v2, %v5256_v51  ;;  %v5282_v48 = vadd.f32 %v16877_v38, %v5255_v45  ;;  %v5231_v19 = vmul.f32 %v13840_v23, %v16781_v9  ;;  %v5230_v44 = vmul.f32 %v13840_v23, %v16778_v57  ;;  %v13290_v51 = vld [vmem:[%s19034_s5 + $0x4f0] ss:$24 sps:$4 sm:$0xff]   ;;  %v13295_v45 = vld [vmem:[%s19034_s5 + $0x4c4] ss:$24 sps:$4 sm:$0xff]   ;;  %v13293_v23 = vld [vmem:[%s19034_s5 + $0x4c0] ss:$24 sps:$4 sm:$0xff]  }
0x1115   : > { %6026 = vmatpush1.bf16.msra.mxu0 %v13260_v58  ;;  %v16956_v40 = vpack.c.bf16 %v5283_v5, %v5281_v11  ;;  %v16961_v17 = vpack.c.bf16 %v5282_v48, %v5280_v33  ;;  %v5258_v62 = vmul.f32 %v16867_v27, %v5231_v19  ;;  %v5257_v53 = vmul.f32 %v16864_v42, %v5230_v44  ;;  %v13292_v58 = vld [vmem:[%s19034_s5 + $0x4f4] ss:$24 sps:$4 sm:$0xff]  }
0x1116   : > { %v13842_v16 = vpop.eup %13841  ;;  %6027 = vmatprep.subr.bf16.mxu0 %v13265_v61  ;;  %v13298_v11 = vld [vmem:[%s19034_s5 + $0x494] ss:$24 sps:$4 sm:$0xff]   ;;  %v13296_v61 = vld [vmem:[%s19034_s5 + $0x490] ss:$24 sps:$4 sm:$0xff]  }
0x1117   : > { %5925 = vmatprep.mubr.bf16.mxu0 %v16956_v40  ;;  %5998 = vmatprep.mubr.bf16.mxu1 %v16956_v40  ;;  %v5233_v57 = vmul.f32 %v13842_v16, %v16803_v39  ;;  %v5232_v9 = vmul.f32 %v13842_v16, %v16800_v54  ;;  %v13271_v54 = vld [vmem:[%s19034_s5 + $0x344] ss:$24 sps:$4 sm:$0xff]   ;;  %v5285_v39 = vadd.f32 %v16880_v2, %v5258_v62 }
0x1118   : > { %5926 = vmatmul.mubr.bf16.gmra.mxu0 %v16961_v17  ;;  %5999 = vmatmul.mubr.bf16.gmra.mxu1 %v16961_v17  ;;  %v5284_v1 = vadd.f32 %v16877_v38, %v5257_v53 }
0x1119   : > { %6028 = vmatpush1.bf16.msra.mxu0 %v13263_v22  ;;  %v5260_v52 = vmul.f32 %v16867_v27, %v5233_v57  ;;  %v5259_v26 = vmul.f32 %v16864_v42, %v5232_v9  ;;  %v13269_v27 = vld [vmem:[%s19034_s5 + $0x340] ss:$24 sps:$4 sm:$0xff]  }
0x111a   : > { %6029 = vmatprep.subr.bf16.mxu0 %v13268_v35 }
0x111b   : > { %v5287_v50 = vadd.f32 %v16880_v2, %v5260_v52  ;;  %v5286_v3 = vadd.f32 %v16877_v38, %v5259_v26  ;;  %v13272_v38 = vld [vmem:[%s19034_s5 + $0x310] ss:$24 sps:$4 sm:$0xff]   ;;  %v13277_v2 = vld [vmem:[%s19034_s5 + $0x5e4] ss:$24 sps:$4 sm:$0xff]  }
0x111d   : > { %6030 = vmatpush1.bf16.msra.mxu0 %v13266_v7  ;;  %v5295_v60 = vpack.c.bf16 %v5287_v50, %v5285_v39  ;;  %v5294_v42 = vpack.c.bf16 %v5286_v3, %v5284_v1 }
0x111e   : > { %6031 = vmatprep.subr.bf16.mxu0 %v13271_v54 }
0x111f   : > { %5935 = vmatprep.mubr.bf16.mxu0 %v5295_v60  ;;  %6008 = vmatprep.mubr.bf16.mxu1 %v5295_v60 }
0x1120   : > { %5936 = vmatmul.mubr.bf16.gmra.mxu0 %v5294_v42  ;;  %6009 = vmatmul.mubr.bf16.gmra.mxu1 %v5294_v42 }
0x1121   : > { %6032 = vmatpush1.bf16.msra.mxu0 %v13269_v27  ;;  %6051 = vmatprep.mubr.bf16.mxu0 %v16892_v12  ;;  %v13278_v12 = vld [vmem:[%s19034_s5 + $0x5b0] ss:$24 sps:$4 sm:$0xff]   ;;  %s14188_s5 = smov [#allocation7]  }
0x1122   : > { %6033 = vmatprep.subr.bf16.mxu0 %v13274_v21  ;;  %s14113_s6 = sshll.u32 %s14188_s5, 4  ;;  %s14114_s6 = int_to_ptr.vmem [resolvable:$false] %s14113_s6 }
0x1123   : > { %s14115_s2 = scalar_lea.vmem %s14114_s6, 32  ;;  %p14116_p11 = scmp.lt.s32.totalorder %s11039_s23, %s14114_s6 }
0x1124   : > { %p14117_p0 = scmp.lt.s32.totalorder %s14115_s2, %s14109_s27 }
0x1125   : > { %6034 = vmatpush1.bf16.msra.mxu0 %v13272_v38 }
0x1126   : > { %6035 = vmatprep.subr.bf16.mxu0 %v13277_v2  ;;  %p14118_p1 = por %p14117_p0, %p14116_p11 }
0x1128   : > { %p14119_p3 = pnand %p14118_p1, %p14112_p8 }
0x1129   : > { %6036 = vmatpush2.bf16.msra.mxu0 %v13275_v20 }
0x112a   : > { %6037 = vmatprep.subr.bf16.mxu0 %v13280_v34 }
0x112d   : > { %6038 = vmatpush2.bf16.msra.mxu0 %v13278_v12 }
0x112e   : > { %6039 = vmatprep.subr.bf16.mxu0 %v13283_v10 }
0x1131   : > { %6040 = vmatpush2.bf16.msra.mxu0 %v13281_v63 }
0x1132   : > { %6041 = vmatprep.subr.bf16.mxu0 %v13286_v41 }
0x1135   : > { %6042 = vmatpush2.bf16.msra.mxu0 %v13284_v13 }
0x1136   : > { %6043 = vmatprep.subr.bf16.mxu0 %v13289_v36 }
0x1139   : > { %6044 = vmatpush2.bf16.msra.mxu0 %v13287_v0 }
0x113a   : > { %6045 = vmatprep.subr.bf16.mxu0 %v13292_v58 }
0x113d   : > { %6046 = vmatpush2.bf16.msra.mxu0 %v13290_v51 }
0x113e   : > { %6047 = vmatprep.subr.bf16.mxu0 %v13295_v45 }
0x1141   : > { %6048 = vmatpush2.bf16.msra.mxu0 %v13293_v23 }
0x1142   : > { %6049 = vmatprep.subr.bf16.mxu0 %v13298_v11 }
0x1145   : > { %6050 = vmatpush2.bf16.msra.mxu0 %v13296_v61 }
0x1148   : > { %6052 = vmatmul.mubr.bf16.vlgmr.msra.gmra.mxu0 %v16897_v18 }
0x1149   : > { %6061 = vmatprep.mubr.bf16.mxu0 %v16924_v14 }
0x1150   : > { %6062 = vmatmul.mubr.bf16.gmra.mxu0 %v16929_v31 }
0x1151   : > { %6071 = vmatprep.mubr.bf16.mxu0 %v16956_v40 }
0x1158   : > { %6072 = vmatmul.mubr.bf16.gmra.mxu0 %v16961_v17 }
0x1159   : > { %6081 = vmatprep.mubr.bf16.mxu0 %v5295_v60 }
0x1160   : > { %6082 = vmatmul.mubr.bf16.gmra.mxu0 %v5294_v42 }
0x11c8   : > { %v5907_v33 = vpop.f32.mrf.mxu0  ;;  %v5980_v5 = vpop.f32.mrf.mxu1 }
0x11ca   : > { %v17049_v48 = vpop.f32.mrf.mxu0  ;;  %v17051_v19 = vpop.f32.mrf.mxu1 }
0x11cc   : > { %v5911_v44 = vpop.f32.mrf.mxu0  ;;  %v5984_v22 = vpop.f32.mrf.mxu1 }
0x11cd   : > { %v17053_v16 = vpack.c.bf16 %v5911_v44, %v5907_v33  ;;  %v17095_v12 = vpack.c.bf16 %v5984_v22, %v5980_v5 }
0x11ce   : > { %v17055_v18 = vpop.f32.mrf.mxu1  ;;  %v17061_v17 = vpop.f32.mrf.mxu0 }
0x11cf   : > { %12528 = vmatprep.mubr.msk.bf16.mxu1 %vm1891_vm0, %v17053_v16  ;;  %v6150_v13 = vsel %vm1891_vm0, %v17095_v12, 0 }
0x11d0   : > { %v5990_v14 = vpop.f32.mrf.mxu1  ;;  %v5917_v57 = vpop.f32.mrf.mxu0 }
0x11d2   : > { %v17059_v31 = vpop.f32.mrf.mxu1  ;;  %v17067_v7 = vpop.f32.mrf.mxu0 }
0x11d4   : > { %v5994_v40 = vpop.f32.mrf.mxu1  ;;  %v5921_v54 = vpop.f32.mrf.mxu0 }
0x11d5   : > { %v17087_v38 = vpack.c.bf16 %v5994_v40, %v5990_v14  ;;  %v17105_v0 = vpack.c.bf16 %v5921_v54, %v5917_v57 }
0x11d6   : > { %v17063_v35 = vpop.f32.mrf.mxu1  ;;  %v17075_v3 = vpop.f32.mrf.mxu0 }
0x11d7   : > { %v6153_v10 = vsel %vm1891_vm0, %v17087_v38, 0 }
0x11d8   : > { %v6000_v62 = vpop.f32.mrf.mxu1  ;;  %v5927_v42 = vpop.f32.mrf.mxu0 }
0x11da   : > { %v17065_v9 = vpop.f32.mrf.mxu1  ;;  %v17085_v21 = vpop.f32.mrf.mxu0 }
0x11dc   : > { %v6004_v53 = vpop.f32.mrf.mxu1  ;;  %v5931_v20 = vpop.f32.mrf.mxu0 }
0x11dd   : > { %v17077_v60 = vpack.c.bf16 %v6004_v53, %v6000_v62  ;;  %v17107_v58 = vpack.c.bf16 %v5931_v20, %v5927_v42 }
0x11de   : > { %v17069_v52 = vpop.f32.mrf.mxu1  ;;  %v17093_v34 = vpop.f32.mrf.mxu0 }
0x11df   : > { %v6156_v2 = vsel %vm1891_vm0, %v17077_v60, 0 }
0x11e0   : > { %v6010_v26 = vpop.f32.mrf.mxu1  ;;  %v5937_v63 = vpop.f32.mrf.mxu0 }
0x11e2   : > { %v17071_v39 = vpop.f32.mrf.mxu1  ;;  %v17101_v41 = vpop.f32.mrf.mxu0 }
0x11e4   : > { %v6014_v50 = vpop.f32.mrf.mxu1  ;;  %v5941_v36 = vpop.f32.mrf.mxu0 }
0x11e5   : > { %v17073_v1 = vpack.c.bf16 %v6014_v50, %v6010_v26  ;;  %v17117_v61 = vpack.c.bf16 %v5941_v36, %v5937_v63 }
0x11e6   : > { %v17109_v51 = vpop.f32.mrf.mxu0  ;;  %v17147_v63 = vpop.f32.mrf.mxu1 }
0x11e7   : > { %12664 = vmatprep.subr.msk.bf16.mxu1 %vm1891_vm0, %v17073_v1  ;;  %v6159_v27 = vsel %vm1891_vm0, %v17073_v1, 0 }
0x11e8   : > { %12521 = vmatpush3.bf16.xpose.msra.mxu1 %v6159_v27 }
0x11e9   : > { %12665 = vmatprep.subr.msk.bf16.mxu1 %vm1891_vm0, %v17077_v60 }
0x11f0   : > { %12523 = vmatpush3.bf16.xpose.msra.mxu1 %v6156_v2 }
0x11f1   : > { %12666 = vmatprep.subr.msk.bf16.mxu1 %vm1891_vm0, %v17087_v38 }
0x11f8   : > { %12525 = vmatpush3.bf16.xpose.msra.mxu1 %v6153_v10 }
0x11f9   : > { %12667 = vmatprep.subr.msk.bf16.mxu1 %vm1891_vm0, %v17095_v12 }
0x1200   : > { %12527 = vmatpush3.bf16.xpose.msra.mxu1 %v6150_v13 }
0x1207   : > { %12529 = vmatmul.mubr.msk.bf16.vlgmr.msra.gmra.mxu1 %vm1891_vm0, %v17105_v0 }
0x1208   : > { %v6053_v45 = vpop.f32.mrf.mxu0  ;;  %12532 = vmatprep.mubr.msk.bf16.mxu1 %vm1891_vm0, %v17107_v58 }
0x120a   : > { %v17115_v23 = vpop.f32.mrf.mxu0 }
0x120c   : > { %v6057_v11 = vpop.f32.mrf.mxu0 }
0x120d   : > { %v17142_v10 = vpack.c.bf16 %v6057_v11, %v6053_v45 }
0x120e   : > { %v17119_v33 = vpop.f32.mrf.mxu0 }
0x120f   : > { %12533 = vmatmul.mubr.msk.bf16.gmra.mxu1 %vm1891_vm0, %v17117_v61 }
0x1210   : > { %v6063_v5 = vpop.f32.mrf.mxu0 }
0x1212   : > { %v17123_v44 = vpop.f32.mrf.mxu0 }
0x1214   : > { %v6067_v22 = vpop.f32.mrf.mxu0 }
0x1215   : > { %v17138_v20 = vpack.c.bf16 %v6067_v22, %v6063_v5 }
0x1216   : > { %v17125_v14 = vpop.f32.mrf.mxu0 }
0x1218   : > { %v6073_v40 = vpop.f32.mrf.mxu0 }
0x121a   : > { %v6075_v62 = vpop.f32.mrf.mxu0 }
0x121c   : > { %v6077_v57 = vpop.f32.mrf.mxu0 }
0x121d   : > { %v17133_v2 = vpack.c.bf16 %v6077_v57, %v6073_v40  ;;  %v19089_v40 = vld [vmem:[#allocation32_spill] sm:$0xff] }
0x121e   : > { %v6079_v53 = vpop.f32.mrf.mxu0 }
0x121f   : > { %v17127_v26 = vpack.c.bf16 %v6079_v53, %v6075_v62 }
0x1220   : > { %v6083_v54 = vpop.f32.mrf.mxu0 }
0x1222   : > { %v17129_v50 = vpop.f32.mrf.mxu0 }
0x1224   : > { %v6087_v27 = vpop.f32.mrf.mxu0 }
0x1225   : > { %v17131_v42 = vpack.c.bf16 %v6087_v27, %v6083_v54 }
0x1227   : > { %12536 = vmatprep.subr.bf16.mxu1 %v17131_v42 }
0x1228   : > { %12537 = vmatpush3.bf16.msra.mxu1 %v17131_v42 }
0x1229   : > { %12538 = vmatprep.subr.bf16.mxu1 %v17133_v2 }
0x122c   : > { %12539 = vmatpush3.bf16.msra.mxu1 %v17133_v2 }
0x122d   : > { %12540 = vmatprep.subr.bf16.mxu1 %v17138_v20 }
0x1230   : > { %12541 = vmatpush3.bf16.msra.mxu1 %v17138_v20 }
0x1231   : > { %12542 = vmatprep.subr.bf16.mxu1 %v17142_v10 }
0x1234   : > { %12543 = vmatpush3.bf16.msra.mxu1 %v17142_v10 }
0x12c7   : > { %v12530_v13 = vpop.f32.mrf.mxu1 }
0x12c8   : > { %v6204_v22 = vadd.f32 %v12530_v13, %v19089_v40 }
0x12c9   : > { %v6195_v36 = vpop.f32.mrf.mxu1 }
0x12ca   : > { %v6196_v62 = vadd.f32 %v6195_v36, %v19089_v40  ;;  %v6232_v56 = vsel %vm1891_vm0, %v6204_v22, -inf }
0x12cb   : > { %v12531_v5 = vpop.f32.mrf.mxu1 }
0x12cc   : > { %v6226_v57 = vsel %vm1891_vm0, %v6196_v62, -inf  ;;  %v6207_v54 = vadd.f32 %v12531_v5, %v19089_v40 }
0x12cd   : > { %v6198_v53 = vpop.f32.mrf.mxu1  ;;  %6227 = vmax.xlane.f32.xlu0 %v6226_v57 }
0x12ce   : > { %v6199_v45 = vadd.f32 %v6198_v53, %v19089_v40  ;;  %v6235_v25 = vsel %vm1891_vm0, %v6207_v54, -inf }
0x12cf   : > { %v12534_v11 = vpop.f32.mrf.mxu1 }
0x12d0   : > { %v6229_v27 = vsel %vm1891_vm0, %v6199_v45, -inf  ;;  %v6220_v13 = vadd.f32 %v12534_v11, %v19089_v40 }
0x12d1   : > { %6230 = vmax.xlane.f32.xlu1 %v6229_v27  ;;  %6233 = vmax.xlane.f32.xlu0 %v6232_v56  ;;  %v6211_v59 = vpop.f32.mrf.mxu1 }
0x12d2   : > { %v6212_v36 = vadd.f32 %v6211_v59, %v19089_v40  ;;  %v6244_v56 = vsel %vm1891_vm0, %v6220_v13, -inf }
0x12d3   : > { %v12535_v32 = vpop.f32.mrf.mxu1 }
0x12d4   : > { %v6238_v57 = vsel %vm1891_vm0, %v6212_v36, -inf  ;;  %v6223_v55 = vadd.f32 %v12535_v32, %v19089_v40 }
0x12d5   : > { %6236 = vmax.xlane.f32.xlu1 %v6235_v25  ;;  %v6214_v53 = vpop.f32.mrf.mxu1  ;;  %6239 = vmax.xlane.f32.xlu0 %v6238_v57 }
0x12d6   : > { %v6215_v5 = vadd.f32 %v6214_v53, %v19089_v40  ;;  %v6247_v59 = vsel %vm1891_vm0, %v6223_v55, -inf }
0x12d8   : > { %v6241_v27 = vsel %vm1891_vm0, %v6215_v5, -inf }
0x12d9   : > { %6242 = vmax.xlane.f32.xlu1 %v6241_v27  ;;  %6245 = vmax.xlane.f32.xlu0 %v6244_v56 }
0x12dd   : > { %6248 = vmax.xlane.f32.xlu1 %v6247_v59 }
0x1356   : > { %v6228_v11 = vpop.xlane.xlu0 %6227 }
0x1357   : > { %v6250_v24 = vsub.f32 %v6196_v62, %v6228_v11 }
0x1359   : > { %v6258_v28 = vmul.f32 1.442695, %v6250_v24 }
0x135a   : > { %v6231_v15 = vpop.xlane.xlu1 %6230  ;;  %v6234_v47 = vpop.xlane.xlu0 %6233 }
0x135b   : > { %v6252_v25 = vsub.f32 %v6204_v22, %v6234_v47  ;;  %v6251_v49 = vsub.f32 %v6199_v45, %v6231_v15 }
0x135d   : > { %v6262_v57 = vmul.f32 1.442695, %v6252_v25  ;;  %v6260_v4 = vmul.f32 1.442695, %v6251_v49 }
0x135e   : > { %v6237_v53 = vpop.xlane.xlu1 %6236  ;;  %v6240_v37 = vpop.xlane.xlu0 %6239 }
0x135f   : > { %v6253_v32 = vsub.f32 %v6207_v54, %v6237_v53  ;;  %13843 = vpow2.f32 %v6262_v57  ;;  %v6254_v27 = vsub.f32 %v6212_v36, %v6240_v37 }
0x1360   : > { %13845 = vpow2.f32 %v6258_v28 }
0x1361   : > { %v6264_v8 = vmul.f32 1.442695, %v6253_v32  ;;  %v6266_v62 = vmul.f32 1.442695, %v6254_v27 }
0x1362   : > { %v6246_v56 = vpop.xlane.xlu0 %6245  ;;  %v6243_v36 = vpop.xlane.xlu1 %6242 }
0x1363   : > { %13847 = vpow2.f32 %v6264_v8  ;;  %v6256_v6 = vsub.f32 %v6220_v13, %v6246_v56  ;;  %v6255_v25 = vsub.f32 %v6215_v5, %v6243_v36 }
0x1364   : > { %13849 = vpow2.f32 %v6260_v4 }
0x1365   : > { %v6270_v59 = vmul.f32 1.442695, %v6256_v6  ;;  %v6268_v53 = vmul.f32 1.442695, %v6255_v25 }
0x1366   : > { %v6249_v13 = vpop.xlane.xlu1 %6248 }
0x1367   : > { %13851 = vpow2.f32 %v6270_v59  ;;  %v6257_v11 = vsub.f32 %v6223_v55, %v6249_v13 }
0x1368   : > { %13853 = vpow2.f32 %v6266_v62 }
0x1369   : > { %v6272_v57 = vmul.f32 1.442695, %v6257_v11 }
0x136b   : > { %13855 = vpow2.f32 %v6272_v57 }
0x136c   : > { %v13844_v47 = vpop.eup %13843  ;;  %13857 = vpow2.f32 %v6268_v53 }
0x136d   : > { %v6280_v15 = vsel %vm1891_vm0, %v13844_v47, 0.0  ;;  %v13846_v24 = vpop.eup %13845 }
0x136e   : > { %6281 = vadd.xlane.f32.xlu0 %v6280_v15  ;;  %v6274_v37 = vsel %vm1891_vm0, %v13846_v24, 0.0 }
0x1370   : > { %v13848_v22 = vpop.eup %13847 }
0x1371   : > { %v6283_v45 = vsel %vm1891_vm0, %v13848_v22, 0.0  ;;  %v13850_v49 = vpop.eup %13849 }
0x1372   : > { %6284 = vadd.xlane.f32.xlu1 %v6283_v45  ;;  %6275 = vadd.xlane.f32.xlu0 %v6274_v37  ;;  %v6277_v6 = vsel %vm1891_vm0, %v13850_v49, 0.0 }
0x1374   : > { %v17168_v8 = vpop.eup %13851 }
0x1375   : > { %v6292_v4 = vsel %vm1891_vm0, %v17168_v8, 0.0  ;;  %v17173_v28 = vpop.eup %13853 }
0x1376   : > { %6278 = vadd.xlane.f32.xlu1 %v6277_v6  ;;  %6293 = vadd.xlane.f32.xlu0 %v6292_v4  ;;  %v6286_v54 = vsel %vm1891_vm0, %v17173_v28, 0.0 }
0x137a   : > { %6287 = vadd.xlane.f32.xlu0 %v6286_v54 }
0x1387   : > { %6419 = vrot.lane.b32.xlu1 %v17077_v60, %s19090_s21  ;;  %v13856_v60 = vpop.eup %13855 }
0x1388   : > { %v13858_v32 = vpop.eup %13857 }
0x138b   : > { %6417 = vrot.lane.b32.xlu1 %v17087_v38, %s19090_s21  ;;  %v6295_v38 = vsel %vm1891_vm0, %v13856_v60, 0.0 }
0x1390   : > { %6421 = vrot.lane.b32.xlu0 %v17073_v1, %s19090_s21  ;;  %v6289_v1 = vsel %vm1891_vm0, %v13858_v32, 0.0 }
0x1394   : > { %6403 = vrot.lane.b32.xlu0 %v17053_v16, %s19090_s21 }
0x1398   : > { %6407 = vrot.lane.b32.xlu0 %v17107_v58, %s19090_s21 }
0x13af   : > { %6296 = vadd.xlane.f32.xlu1 %v6295_v38 }
0x13b3   : > { %6290 = vadd.xlane.f32.xlu1 %v6289_v1 }
0x13c4   : > { %6415 = vrot.lane.b32.xlu1 %v17095_v12, %s19090_s21 }
0x13c8   : > { %6405 = vrot.lane.b32.xlu1 %v17105_v0, %s19090_s21 }
0x13cc   : > { %6409 = vrot.lane.b32.xlu1 %v17117_v61, %s19090_s21 }
0x13f7   : > { %v6282_v55 = vpop.xlane.xlu0 %6281 }
0x13fb   : > { %v6285_v16 = vpop.xlane.xlu1 %6284  ;;  %v6276_v58 = vpop.xlane.xlu0 %6275 }
0x13fc   : > { %13859 = vrcp.f32 %v6285_v16 }
0x13fd   : > { %13861 = vrcp.f32 %v6276_v58 }
0x13fe   : > { %13863 = vrcp.f32 %v6282_v55 }
0x13ff   : > { %v6279_v5 = vpop.xlane.xlu1 %6278  ;;  %v6294_v27 = vpop.xlane.xlu0 %6293 }
0x1400   : > { %13865 = vrcp.f32 %v6279_v5 }
0x1403   : > { %v6288_v56 = vpop.xlane.xlu0 %6287  ;;  %v6420_v13 = vpop.permute.xlu1 %6419 }
0x1404   : > { %v6442_v11 = vsel %vm1891_vm0, %v6420_v13, 0 }
0x1407   : > { %v6422_v59 = vpop.permute.xlu0 %6421  ;;  %v6418_v25 = vpop.permute.xlu1 %6417 }
0x1408   : > { %12668 = vmatprep.subr.msk.bf16.mxu1 %vm1891_vm0, %v6422_v59  ;;  %v6445_v36 = vsel %vm1891_vm0, %v6422_v59, 0 }
0x1409   : > { %v13860_v12 = vpop.eup %13859 }
0x140a   : > { %v13862_v62 = vpop.eup %13861  ;;  %v6309_v45 = vmul.f32 %v13860_v12, %v13848_v22 }
0x140b   : > { %v13864_v15 = vpop.eup %13863  ;;  %v6306_v37 = vmul.f32 %v13862_v62, %v13846_v24  ;;  %v6404_v62 = vpop.permute.xlu0 %6403 }
0x140c   : > { %v6308_v6 = vmul.f32 %v13864_v15, %v13844_v47  ;;  %v6439_v47 = vsel %vm1891_vm0, %v6418_v25, 0  ;;  %v13299_v15 = vld [vmem:[#allocation2 + $0x170] ss:$8 sps:$4 sm:$0xff]  }
0x140d   : > { %v13866_v0 = vpop.eup %13865 }
0x140e   : > { %v6307_v61 = vmul.f32 %v13866_v0, %v13850_v49  ;;  %v6315_v54 = vpack.c.bf16 %v6309_v45, %v6308_v6  ;;  %v13301_v49 = vld [vmem:[#allocation2 + $0x174] ss:$8 sps:$4 sm:$0xff]   ;;  %v13304_v0 = vld [vmem:[#allocation2 + $0x164] ss:$8 sps:$4 sm:$0xff]   ;;  %v13308_v6 = vld [vmem:[#allocation2 + $0x140] ss:$8 sps:$4 sm:$0xff]  }
0x1410   : > { %v6314_v4 = vpack.c.bf16 %v6307_v61, %v6306_v37  ;;  %v6408_v37 = vpop.permute.xlu0 %6407 }
0x1412   : > { %12544 = vmatprep.mubr.msk.bf16.mxu1 %vm1891_vm0, %v6314_v4  ;;  %v19091_v4 = vmov 0  }
0x1413   : > { %12545 = vmatmul.mubr.msk.bf16.vlgmr.msra.gmra.mxu1 %vm1891_vm0, %v6315_v54  ;;  %v17216_v54 = vpack.c.bf16 %v17147_v63, %v17071_v39 }
0x1414   : > { %12553 = vmatpush3.bf16.xpose.msra.mxu1 %v6445_v36 }
0x1415   : > { %12669 = vmatprep.subr.msk.bf16.mxu1 %vm1891_vm0, %v6420_v13 }
0x141c   : > { %12555 = vmatpush3.bf16.xpose.msra.mxu1 %v6442_v11 }
0x141d   : > { %12670 = vmatprep.subr.msk.bf16.mxu1 %vm1891_vm0, %v6418_v25 }
0x1424   : > { %12557 = vmatpush3.bf16.xpose.msra.mxu1 %v6439_v47 }
0x1438   : > { %v6297_v24 = vpop.xlane.xlu1 %6296 }
0x1439   : > { %13867 = vrcp.f32 %v6297_v24 }
0x143a   : > { %13869 = vrcp.f32 %v6288_v56 }
0x143b   : > { %13871 = vrcp.f32 %v6294_v27 }
0x143c   : > { %v6291_v22 = vpop.xlane.xlu1 %6290 }
0x143d   : > { %13873 = vrcp.f32 %v6291_v22 }
0x1440   : > { %v6416_v57 = vpop.permute.xlu1 %6415 }
0x1441   : > { %v6436_v53 = vsel %vm1891_vm0, %v6416_v57, 0  ;;  %12671 = vmatprep.subr.msk.bf16.mxu1 %vm1891_vm0, %v6416_v57 }
0x1442   : > { %12559 = vmatpush3.bf16.xpose.msra.mxu1 %v6436_v53 }
0x1443   : > { %6761 = vmatprep.subr.bf16.mxu1 %v13301_v49 }
0x1444   : > { %v6406_v45 = vpop.permute.xlu1 %6405 }
0x1446   : > { %v13868_v38 = vpop.eup %13867 }
0x1447   : > { %v13870_v1 = vpop.eup %13869  ;;  %v6313_v58 = vmul.f32 %v13868_v38, %v13856_v60  ;;  %v13305_v60 = vld [vmem:[#allocation2 + $0x150] ss:$8 sps:$4 sm:$0xff]  }
0x1448   : > { %v13872_v55 = vpop.eup %13871  ;;  %v6310_v5 = vmul.f32 %v13870_v1, %v17173_v28  ;;  %v13302_v28 = vld [vmem:[#allocation2 + $0x160] ss:$8 sps:$4 sm:$0xff]   ;;  %v6410_v61 = vpop.permute.xlu1 %6409 }
0x1449   : > { %v6312_v27 = vmul.f32 %v13872_v55, %v17168_v8  ;;  %v13307_v8 = vld [vmem:[#allocation2 + $0x154] ss:$8 sps:$4 sm:$0xff]  }
0x144a   : > { %v13874_v16 = vpop.eup %13873 }
0x144b   : > { %v6311_v59 = vmul.f32 %v13874_v16, %v13858_v32  ;;  %v6317_v12 = vpack.c.bf16 %v6313_v58, %v6312_v27  ;;  %v13310_v32 = vld [vmem:[#allocation2 + $0x144] ss:$8 sps:$4 sm:$0xff]  }
0x144d   : > { %v6316_v56 = vpack.c.bf16 %v6311_v59, %v6310_v5 }
0x144f   : > { %12548 = vmatprep.mubr.msk.bf16.mxu1 %vm1891_vm0, %v6316_v56 }
0x1450   : > { %12549 = vmatmul.mubr.msk.bf16.gmra.mxu1 %vm1891_vm0, %v6317_v12 }
0x1451   : > { %12560 = vmatprep.mubr.msk.bf16.mxu1 %vm1891_vm0, %v6404_v62 }
0x1458   : > { %12561 = vmatmul.mubr.msk.bf16.vlgmr.msra.gmra.mxu1 %vm1891_vm0, %v6406_v45 }
0x1459   : > { %6762 = vmatpush1.bf16.msra.mxu1 %v13299_v15  ;;  %12564 = vmatprep.mubr.msk.bf16.mxu1 %vm1891_vm0, %v6408_v37 }
0x145a   : > { %6763 = vmatprep.subr.bf16.mxu1 %v13304_v0 }
0x145d   : > { %6764 = vmatpush1.bf16.msra.mxu1 %v13302_v28 }
0x145e   : > { %6765 = vmatprep.subr.bf16.mxu1 %v13307_v8 }
0x1460   : > { %12565 = vmatmul.mubr.msk.bf16.gmra.mxu1 %vm1891_vm0, %v6410_v61 }
0x1461   : > { %6766 = vmatpush1.bf16.msra.mxu1 %v13305_v60  ;;  %6785 = vmatprep.mubr.bf16.mxu1 %v19091_v4 }
0x1462   : > { %6767 = vmatprep.subr.bf16.mxu1 %v13310_v32 }
0x1465   : > { %6768 = vmatpush1.bf16.msra.mxu1 %v13308_v6 }
0x1466   : > { %12672 = vmatprep.subr.msk.bf16.mxu1 %vm1891_vm0, %v17216_v54 }
0x14d3   : > { %v17220_v36 = vpop.f32.mrf.mxu1 }
0x14d5   : > { %v17222_v13 = vpop.f32.mrf.mxu1 }
0x14d7   : > { %v17224_v11 = vpop.f32.mrf.mxu1 }
0x14d9   : > { %v17228_v47 = vpop.f32.mrf.mxu1 }
0x1510   : > { %v17232_v39 = vpop.f32.mrf.mxu1 }
0x1512   : > { %v17234_v63 = vpop.f32.mrf.mxu1 }
0x1514   : > { %v17236_v22 = vpop.f32.mrf.mxu1 }
0x1516   : > { %v17240_v57 = vpop.f32.mrf.mxu1 }
0x1518   : > { %v12562_v38 = vpop.f32.mrf.mxu1 }
0x1519   : > { %v6490_v58 = vadd.f32 %v12562_v38, %v19089_v40 }
0x151a   : > { %v6481_v1 = vpop.f32.mrf.mxu1 }
0x151b   : > { %v6482_v55 = vadd.f32 %v6481_v1, %v19089_v40  ;;  %v6518_v15 = vsel %vm1891_vm0, %v6490_v58, -inf }
0x151c   : > { %v12563_v16 = vpop.f32.mrf.mxu1 }
0x151d   : > { %v6512_v5 = vsel %vm1891_vm0, %v6482_v55, -inf  ;;  %v6493_v12 = vadd.f32 %v12563_v16, %v19089_v40 }
0x151e   : > { %v6484_v59 = vpop.f32.mrf.mxu1  ;;  %6513 = vmax.xlane.f32.xlu0 %v6512_v5 }
0x151f   : > { %v6485_v27 = vadd.f32 %v6484_v59, %v19089_v40  ;;  %v6521_v28 = vsel %vm1891_vm0, %v6493_v12, -inf }
0x1520   : > { %v12566_v56 = vpop.f32.mrf.mxu1 }
0x1521   : > { %v6515_v62 = vsel %vm1891_vm0, %v6485_v27, -inf  ;;  %v6506_v32 = vadd.f32 %v12566_v56, %v19089_v40 }
0x1522   : > { %v6497_v0 = vpop.f32.mrf.mxu1  ;;  %6516 = vmax.xlane.f32.xlu1 %v6515_v62  ;;  %6519 = vmax.xlane.f32.xlu0 %v6518_v15 }
0x1523   : > { %v6498_v37 = vadd.f32 %v6497_v0, %v19089_v40  ;;  %v6530_v16 = vsel %vm1891_vm0, %v6506_v32, -inf }
0x1524   : > { %v12567_v45 = vpop.f32.mrf.mxu1 }
0x1525   : > { %v6509_v61 = vadd.f32 %v12567_v45, %v19089_v40  ;;  %v6524_v38 = vsel %vm1891_vm0, %v6498_v37, -inf }
0x1526   : > { %v6500_v8 = vpop.f32.mrf.mxu1  ;;  %6522 = vmax.xlane.f32.xlu0 %v6521_v28 }
0x1527   : > { %v6501_v60 = vadd.f32 %v6500_v8, %v19089_v40  ;;  %v6533_v1 = vsel %vm1891_vm0, %v6509_v61, -inf }
0x1529   : > { %v6527_v6 = vsel %vm1891_vm0, %v6501_v60, -inf }
0x152a   : > { %6528 = vmax.xlane.f32.xlu1 %v6527_v6  ;;  %6525 = vmax.xlane.f32.xlu0 %v6524_v38 }
0x152e   : > { %6534 = vmax.xlane.f32.xlu1 %v6533_v1  ;;  %6531 = vmax.xlane.f32.xlu0 %v6530_v16 }
0x1544   : > { %6614 = vrot.lane.b32.xlu0 %v17131_v42, %s19090_s21 }
0x15a7   : > { %v6514_v5 = vpop.xlane.xlu0 %6513 }
0x15a8   : > { %v6536_v59 = vsub.f32 %v6482_v55, %v6514_v5 }
0x15aa   : > { %v6544_v28 = vmul.f32 1.442695, %v6536_v59 }
0x15ab   : > { %v6517_v56 = vpop.xlane.xlu1 %6516  ;;  %v6520_v62 = vpop.xlane.xlu0 %6519 }
0x15ac   : > { %v6538_v15 = vsub.f32 %v6490_v58, %v6520_v62  ;;  %v6537_v0 = vsub.f32 %v6485_v27, %v6517_v56 }
0x15ae   : > { %v6548_v45 = vmul.f32 1.442695, %v6538_v15  ;;  %v6546_v38 = vmul.f32 1.442695, %v6537_v0 }
0x15af   : > { %v6523_v8 = vpop.xlane.xlu0 %6522 }
0x15b0   : > { %v6539_v6 = vsub.f32 %v6493_v12, %v6523_v8  ;;  %13875 = vpow2.f32 %v6548_v45 }
0x15b1   : > { %13877 = vpow2.f32 %v6544_v28 }
0x15b2   : > { %v6550_v49 = vmul.f32 1.442695, %v6539_v6 }
0x15b3   : > { %v6529_v53 = vpop.xlane.xlu1 %6528  ;;  %v6526_v1 = vpop.xlane.xlu0 %6525 }
0x15b4   : > { %13879 = vpow2.f32 %v6550_v49  ;;  %v6540_v16 = vsub.f32 %v6498_v37, %v6526_v1  ;;  %v6541_v59 = vsub.f32 %v6501_v60, %v6529_v53 }
0x15b5   : > { %13881 = vpow2.f32 %v6546_v38 }
0x15b6   : > { %v6552_v24 = vmul.f32 1.442695, %v6540_v16  ;;  %v6554_v0 = vmul.f32 1.442695, %v6541_v59 }
0x15b7   : > { %v6532_v42 = vpop.xlane.xlu0 %6531  ;;  %v6535_v25 = vpop.xlane.xlu1 %6534 }
0x15b8   : > { %v6542_v55 = vsub.f32 %v6506_v32, %v6532_v42  ;;  %v6543_v58 = vsub.f32 %v6509_v61, %v6535_v25 }
0x15ba   : > { %v6556_v5 = vmul.f32 1.442695, %v6542_v55  ;;  %v6558_v56 = vmul.f32 1.442695, %v6543_v58 }
0x15bb   : > { %v6615_v27 = vpop.permute.xlu0 %6614 }
0x15bc   : > { %12568 = vmatprep.subr.bf16.mxu0 %v6615_v27  ;;  %13883 = vpow2.f32 %v6556_v5 }
0x15bd   : > { %12569 = vmatpush3.bf16.msra.mxu0 %v6615_v27  ;;  %v17262_v12 = vpop.eup %13875  ;;  %13885 = vpow2.f32 %v6552_v24 }
0x15be   : > { %v6566_v49 = vsel %vm1891_vm0, %v17262_v12, 0.0  ;;  %v13878_v62 = vpop.eup %13877  ;;  %13887 = vpow2.f32 %v6558_v56 }
0x15bf   : > { %6567 = vadd.xlane.f32.xlu0 %v6566_v49  ;;  %v6560_v25 = vsel %vm1891_vm0, %v13878_v62, 0.0  ;;  %13889 = vpow2.f32 %v6554_v0 }
0x15c1   : > { %v13880_v37 = vpop.eup %13879 }
0x15c2   : > { %v6569_v32 = vsel %vm1891_vm0, %v13880_v37, 0.0  ;;  %v13882_v15 = vpop.eup %13881 }
0x15c3   : > { %6570 = vadd.xlane.f32.xlu1 %v6569_v32  ;;  %6561 = vadd.xlane.f32.xlu0 %v6560_v25  ;;  %v6563_v61 = vsel %vm1891_vm0, %v13882_v15, 0.0 }
0x15c7   : > { %6564 = vadd.xlane.f32.xlu1 %v6563_v61 }
0x15c9   : > { %v17269_v24 = vpop.eup %13883 }
0x15ca   : > { %v6578_v53 = vsel %vm1891_vm0, %v17269_v24, 0.0  ;;  %v13886_v60 = vpop.eup %13885 }
0x15cb   : > { %6579 = vadd.xlane.f32.xlu1 %v6578_v53  ;;  %v6572_v45 = vsel %vm1891_vm0, %v13886_v60, 0.0  ;;  %v13888_v28 = vpop.eup %13887 }
0x15cc   : > { %v6581_v8 = vsel %vm1891_vm0, %v13888_v28, 0.0  ;;  %v13890_v6 = vpop.eup %13889 }
0x15cd   : > { %v6575_v38 = vsel %vm1891_vm0, %v13890_v6, 0.0 }
0x15cf   : > { %6573 = vadd.xlane.f32.xlu1 %v6572_v45 }
0x15d3   : > { %6582 = vadd.xlane.f32.xlu1 %v6581_v8 }
0x15d7   : > { %6576 = vadd.xlane.f32.xlu1 %v6575_v38 }
0x15d9   : > { %6610 = vrot.lane.b32.xlu0 %v17138_v20, %s19090_s21 }
0x15dd   : > { %6608 = vrot.lane.b32.xlu0 %v17142_v10, %s19090_s21 }
0x15e8   : > { %6612 = vrot.lane.b32.xlu1 %v17133_v2, %s19090_s21 }
0x1648   : > { %v6568_v1 = vpop.xlane.xlu0 %6567 }
0x164c   : > { %v6571_v16 = vpop.xlane.xlu1 %6570  ;;  %v6562_v42 = vpop.xlane.xlu0 %6561 }
0x164d   : > { %13891 = vrcp.f32 %v6562_v42 }
0x1650   : > { %v6565_v55 = vpop.xlane.xlu1 %6564  ;;  %v6611_v2 = vpop.permute.xlu0 %6610 }
0x1651   : > { %13893 = vrcp.f32 %v6565_v55 }
0x1652   : > { %13895 = vrcp.f32 %v6571_v16 }
0x1653   : > { %13897 = vrcp.f32 %v6568_v1  ;;  %v13311_v1 = vld [vmem:[#allocation2 + $0x130] ss:$8 sps:$4 sm:$0xff]  }
0x1654   : > { %v6580_v5 = vpop.xlane.xlu1 %6579  ;;  %v6609_v53 = vpop.permute.xlu0 %6608 }
0x1658   : > { %v6574_v58 = vpop.xlane.xlu1 %6573 }
0x1659   : > { %13899 = vrcp.f32 %v6574_v58 }
0x165a   : > { %v13892_v27 = vpop.eup %13891 }
0x165b   : > { %v6592_v20 = vmul.f32 %v13892_v27, %v13878_v62  ;;  %v13313_v62 = vld [vmem:[#allocation2 + $0x134] ss:$8 sps:$4 sm:$0xff]  }
0x165c   : > { %v6583_v59 = vpop.xlane.xlu1 %6582 }
0x165e   : > { %v13894_v56 = vpop.eup %13893 }
0x165f   : > { %v6593_v49 = vmul.f32 %v13894_v56, %v13882_v15  ;;  %v13896_v25 = vpop.eup %13895 }
0x1660   : > { %v6577_v10 = vpop.xlane.xlu1 %6576  ;;  %v13898_v61 = vpop.eup %13897  ;;  %v6595_v45 = vmul.f32 %v13896_v25, %v13880_v37  ;;  %v13314_v37 = vld [vmem:[#allocation2 + $0x120] ss:$8 sps:$4 sm:$0xff]   ;;  %v17329_v25 = vpack.c.bf16 %v17069_v52, %v17065_v9 }
0x1661   : > { %v6600_v32 = vpack.c.bf16 %v6593_v49, %v6592_v20  ;;  %13901 = vrcp.f32 %v6577_v10  ;;  %v6594_v8 = vmul.f32 %v13898_v61, %v17262_v12  ;;  %v13319_v12 = vld [vmem:[#allocation2 + $0x114] ss:$8 sps:$4 sm:$0xff]   ;;  %v13317_v49 = vld [vmem:[#allocation2 + $0x110] ss:$8 sps:$4 sm:$0xff]   ;;  %v17339_v61 = vpack.c.bf16 %v17063_v35, %v17059_v31 }
0x1662   : > { %13903 = vrcp.f32 %v6583_v59  ;;  %v6982_v9 = vsel %vm1891_vm0, %v17329_v25, 0 }
0x1663   : > { %12576 = vmatprep.mubr.msk.bf16.mxu0 %vm1891_vm0, %v6600_v32  ;;  %13905 = vrcp.f32 %v6580_v5  ;;  %v6601_v16 = vpack.c.bf16 %v6595_v45, %v6594_v8  ;;  %v13316_v5 = vld [vmem:[#allocation2 + $0x124] ss:$8 sps:$4 sm:$0xff]   ;;  %v13320_v32 = vld [vmem:[#allocation2 + $0x100] ss:$8 sps:$4 sm:$0xff]   ;;  %v17349_v45 = vpack.c.bf16 %v17055_v18, %v17051_v19  ;;  %v6979_v31 = vsel %vm1891_vm0, %v17339_v61, 0 }
0x1664   : > { %v6613_v0 = vpop.permute.xlu1 %6612  ;;  %v17368_v18 = vpack.c.bf16 %v17075_v3, %v17067_v7 }
0x1665   : > { %12570 = vmatprep.subr.bf16.mxu0 %v6613_v0  ;;  %v6976_v19 = vsel %vm1891_vm0, %v17349_v45, 0 }
0x1666   : > { %12571 = vmatpush3.bf16.msra.mxu0 %v6613_v0  ;;  %v13900_v15 = vpop.eup %13899 }
0x1667   : > { %12572 = vmatprep.subr.bf16.mxu0 %v6611_v2  ;;  %v6596_v42 = vmul.f32 %v13900_v15, %v13886_v60  ;;  %v13322_v60 = vld [vmem:[#allocation2 + $0x104] ss:$8 sps:$4 sm:$0xff]   ;;  %v17372_v15 = vpack.c.bf16 %v17093_v34, %v17085_v21 }
0x166a   : > { %12573 = vmatpush3.bf16.msra.mxu0 %v6611_v2 }
0x166b   : > { %12574 = vmatprep.subr.bf16.mxu0 %v6609_v53 }
0x166e   : > { %v13902_v38 = vpop.eup %13901  ;;  %12575 = vmatpush3.bf16.msra.mxu0 %v6609_v53 }
0x166f   : > { %6886 = vmatprep.subr.bf16.mxu0 %v13313_v62  ;;  %v6597_v55 = vmul.f32 %v13902_v38, %v13890_v6  ;;  %v13904_v58 = vpop.eup %13903  ;;  %v6089_v6 = vpop.f32.mrf.mxu0  ;;  %v17359_v62 = vpack.c.bf16 %v17061_v17, %v17049_v48  ;;  %v17380_v48 = vpack.c.bf16 %v17109_v51, %v17101_v41 }
0x1670   : > { %v13906_v59 = vpop.eup %13905  ;;  %v6599_v56 = vmul.f32 %v13904_v58, %v13888_v28  ;;  %v17290_v2 = vpack.c.bf16 %v6089_v6, %v17129_v50  ;;  %v17302_v28 = vpack.c.bf16 %v17125_v14, %v17123_v44  ;;  %v17308_v50 = vpack.c.bf16 %v17119_v33, %v17115_v23 }
0x1671   : > { %12577 = vmatmul.mubr.msk.bf16.vlgmr.msra.gmra.mxu0 %vm1891_vm0, %v6601_v16  ;;  %v6602_v27 = vpack.c.bf16 %v6597_v55, %v6596_v42  ;;  %v6598_v20 = vmul.f32 %v13906_v59, %v17269_v24  ;;  %v19092_v24 = vpack.c.bf16 %v17228_v47, %v17222_v13  ;;  %v19093_v13 = vpack.c.bf16 %v17224_v11, %v17220_v36 }
0x1672   : > { %6887 = vmatpush1.bf16.msra.mxu0 %v13311_v1  ;;  %v19094_v44 = vpack.c.bf16 %v17240_v57, %v17234_v63  ;;  %v19095_v23 = vpack.c.bf16 %v17236_v22, %v17232_v39  ;;  %v6985_v63 = vsel %vm1891_vm0, %v17216_v54, 0 }
0x1673   : > { %12580 = vmatprep.mubr.msk.bf16.mxu0 %vm1891_vm0, %v6602_v27  ;;  %6888 = vmatprep.subr.bf16.mxu0 %v13316_v5  ;;  %v6603_v10 = vpack.c.bf16 %v6599_v56, %v6598_v20 }
0x1676   : > { %6889 = vmatpush1.bf16.msra.mxu0 %v13314_v37 }
0x1677   : > { %6890 = vmatprep.subr.bf16.mxu0 %v13319_v12 }
0x1679   : > { %12581 = vmatmul.mubr.msk.bf16.gmra.mxu0 %vm1891_vm0, %v6603_v10 }
0x167a   : > { %6891 = vmatpush1.bf16.msra.mxu0 %v13317_v49  ;;  %6910 = vmatprep.mubr.bf16.mxu0 %v19091_v4 }
0x167b   : > { %6892 = vmatprep.subr.bf16.mxu0 %v13322_v60 }
0x167e   : > { %6893 = vmatpush1.bf16.msra.mxu0 %v13320_v32 }
0x167f   : > { %12600 = vmatprep.subr.bf16.mxu0 %v17290_v2 }
0x1681   : > { %11675 = vmatmul.mubr.msk.bf16.vlgmr.msra.gmra.mxu0 %vm1891_vm0, %v19092_v24 }
0x1682   : > { %12601 = vmatpush3.bf16.msra.mxu0 %v17290_v2  ;;  %6920 = vmatprep.mubr.bf16.mxu0 %v19091_v4 }
0x1683   : > { %12602 = vmatprep.subr.bf16.mxu0 %v17127_v26 }
0x1686   : > { %12603 = vmatpush3.bf16.msra.mxu0 %v17127_v26 }
0x1687   : > { %12604 = vmatprep.subr.bf16.mxu0 %v17302_v28 }
0x1689   : > { %11676 = vmatmul.mubr.msk.bf16.gmra.mxu0 %vm1891_vm0, %v19093_v13 }
0x168a   : > { %12605 = vmatpush3.bf16.msra.mxu0 %v17302_v28  ;;  %6930 = vmatprep.mubr.bf16.mxu0 %v19091_v4 }
0x168b   : > { %12606 = vmatprep.subr.bf16.mxu0 %v17308_v50 }
0x168e   : > { %12607 = vmatpush3.bf16.msra.mxu0 %v17308_v50 }
0x1691   : > { %11677 = vmatmul.mubr.msk.bf16.gmra.mxu0 %vm1891_vm0, %v19094_v44 }
0x1692   : > { %6940 = vmatprep.mubr.bf16.mxu0 %v19091_v4 }
0x1699   : > { %11678 = vmatmul.mubr.msk.bf16.gmra.mxu0 %vm1891_vm0, %v19095_v23 }
0x1731   : > { %v12578_v33 = vpop.f32.mrf.mxu0 }
0x1733   : > { %v6666_v14 = vpop.f32.mrf.mxu0 }
0x1735   : > { %v12579_v36 = vpop.f32.mrf.mxu0 }
0x1736   : > { %v6698_v22 = vpack.c.bf16 %v12579_v36, %v12578_v33 }
0x1737   : > { %v6669_v11 = vpop.f32.mrf.mxu0 }
0x1738   : > { %v6697_v47 = vpack.c.bf16 %v6669_v11, %v6666_v14 }
0x1739   : > { %v12582_v0 = vpop.f32.mrf.mxu0 }
0x173a   : > { %11663 = vmatmul.mubr.msk.bf16.vlgmr.msra.gmra.mxu1 %vm1891_vm0, %v6697_v47 }
0x173b   : > { %12585 = vmatpush3.bf16.xpose.msra.mxu1 %v6985_v63  ;;  %6795 = vmatprep.mubr.bf16.mxu1 %v19091_v4  ;;  %v6682_v39 = vpop.f32.mrf.mxu0 }
0x173c   : > { %12673 = vmatprep.subr.msk.bf16.mxu1 %vm1891_vm0, %v17329_v25 }
0x173d   : > { %v12583_v57 = vpop.f32.mrf.mxu0 }
0x173e   : > { %v6700_v35 = vpack.c.bf16 %v12583_v57, %v12582_v0 }
0x173f   : > { %v6685_v52 = vpop.f32.mrf.mxu0 }
0x1740   : > { %v6699_v53 = vpack.c.bf16 %v6685_v52, %v6682_v39 }
0x1742   : > { %11664 = vmatmul.mubr.msk.bf16.gmra.mxu1 %vm1891_vm0, %v6698_v22 }
0x1743   : > { %12587 = vmatpush3.bf16.xpose.msra.mxu1 %v6982_v9  ;;  %6805 = vmatprep.mubr.bf16.mxu1 %v19091_v4 }
0x1744   : > { %12674 = vmatprep.subr.msk.bf16.mxu1 %vm1891_vm0, %v17339_v61 }
0x174a   : > { %11665 = vmatmul.mubr.msk.bf16.gmra.mxu1 %vm1891_vm0, %v6699_v53 }
0x174b   : > { %12589 = vmatpush3.bf16.xpose.msra.mxu1 %v6979_v31  ;;  %6815 = vmatprep.mubr.bf16.mxu1 %v19091_v4 }
0x174c   : > { %12675 = vmatprep.subr.msk.bf16.mxu1 %vm1891_vm0, %v17349_v45 }
0x1752   : > { %11666 = vmatmul.mubr.msk.bf16.gmra.mxu1 %vm1891_vm0, %v6700_v35 }
0x1753   : > { %12591 = vmatpush3.bf16.xpose.msra.mxu1 %v6976_v19  ;;  %12592 = vmatprep.mubr.msk.bf16.mxu1 %vm1891_vm0, %v17359_v62 }
0x175a   : > { %12593 = vmatmul.mubr.msk.bf16.vlgmr.msra.gmra.mxu1 %vm1891_vm0, %v17368_v18 }
0x175b   : > { %12596 = vmatprep.mubr.msk.bf16.mxu1 %vm1891_vm0, %v17372_v15 }
0x1762   : > { %12597 = vmatmul.mubr.msk.bf16.gmra.mxu1 %vm1891_vm0, %v17380_v48 }
0x1763   : > { %7309 = vmatprep.mubr.bf16.mxu1 %v19091_v4 }
0x17fa   : > { %v17385_v17 = vpop.f32.mrf.mxu1 }
0x17fc   : > { %v17387_v7 = vpop.f32.mrf.mxu1 }
0x17fe   : > { %v17389_v3 = vpop.f32.mrf.mxu1 }
0x1800   : > { %v17391_v21 = vpop.f32.mrf.mxu1 }
0x1802   : > { %v17393_v34 = vpop.f32.mrf.mxu1 }
0x1804   : > { %v17395_v8 = vpop.f32.mrf.mxu1 }
0x1806   : > { %v17397_v38 = vpop.f32.mrf.mxu1 }
0x1808   : > { %v17399_v41 = vpop.f32.mrf.mxu1 }
0x180a   : > { %v17401_v51 = vpop.f32.mrf.mxu1 }
0x180c   : > { %v17403_v1 = vpop.f32.mrf.mxu1 }
0x180e   : > { %v17405_v16 = vpop.f32.mrf.mxu1 }
0x1810   : > { %v17407_v42 = vpop.f32.mrf.mxu1 }
0x1812   : > { %v17409_v55 = vpop.f32.mrf.mxu1 }
0x1814   : > { %v17411_v5 = vpop.f32.mrf.mxu1 }
0x1816   : > { %v17413_v58 = vpop.f32.mrf.mxu1 }
0x1818   : > { %v17415_v27 = vpop.f32.mrf.mxu1 }
0x181a   : > { %v12594_v59 = vpop.f32.mrf.mxu1 }
0x181b   : > { %v7030_v20 = vadd.f32 %v12594_v59, %v19089_v40 }
0x181c   : > { %v7021_v37 = vpop.f32.mrf.mxu1 }
0x181d   : > { %v7022_v56 = vadd.f32 %v7021_v37, %v19089_v40  ;;  %v7058_v13 = vsel %vm1891_vm0, %v7030_v20, -inf }
0x181e   : > { %v12595_v12 = vpop.f32.mrf.mxu1 }
0x181f   : > { %v7052_v49 = vsel %vm1891_vm0, %v7022_v56, -inf  ;;  %v7033_v32 = vadd.f32 %v12595_v12, %v19089_v40 }
0x1820   : > { %v7024_v10 = vpop.f32.mrf.mxu1  ;;  %7053 = vmax.xlane.f32.xlu0 %v7052_v49 }
0x1821   : > { %v7025_v60 = vadd.f32 %v7024_v10, %v19089_v40  ;;  %v7061_v14 = vsel %vm1891_vm0, %v7033_v32, -inf }
0x1822   : > { %v12598_v6 = vpop.f32.mrf.mxu1 }
0x1823   : > { %v7055_v24 = vsel %vm1891_vm0, %v7025_v60, -inf  ;;  %v7046_v47 = vadd.f32 %v12598_v6, %v19089_v40 }
0x1824   : > { %v7037_v44 = vpop.f32.mrf.mxu1  ;;  %7056 = vmax.xlane.f32.xlu1 %v7055_v24  ;;  %7059 = vmax.xlane.f32.xlu0 %v7058_v13 }
0x1825   : > { %v7038_v33 = vadd.f32 %v7037_v44, %v19089_v40  ;;  %v7070_v57 = vsel %vm1891_vm0, %v7046_v47, -inf }
0x1826   : > { %v12599_v23 = vpop.f32.mrf.mxu1 }
0x1827   : > { %v7049_v0 = vadd.f32 %v12599_v23, %v19089_v40  ;;  %v7064_v39 = vsel %vm1891_vm0, %v7038_v33, -inf }
0x1828   : > { %v7040_v36 = vpop.f32.mrf.mxu1  ;;  %7062 = vmax.xlane.f32.xlu0 %v7061_v14 }
0x1829   : > { %v17427_v11 = vadd.f32 %v7040_v36, %v19089_v40  ;;  %v7073_v22 = vsel %vm1891_vm0, %v7049_v0, -inf }
0x182b   : > { %v7067_v63 = vsel %vm1891_vm0, %v17427_v11, -inf }
0x182c   : > { %7068 = vmax.xlane.f32.xlu1 %v7067_v63  ;;  %7065 = vmax.xlane.f32.xlu0 %v7064_v39 }
0x1830   : > { %7074 = vmax.xlane.f32.xlu1 %v7073_v22  ;;  %7071 = vmax.xlane.f32.xlu0 %v7070_v57 }
0x18a9   : > { %v7054_v9 = vpop.xlane.xlu0 %7053 }
0x18aa   : > { %v7076_v52 = vsub.f32 %v7022_v56, %v7054_v9 }
0x18ac   : > { %v7084_v37 = vmul.f32 1.442695, %v7076_v52 }
0x18ad   : > { %v7057_v53 = vpop.xlane.xlu1 %7056  ;;  %v7060_v31 = vpop.xlane.xlu0 %7059 }
0x18ae   : > { %v7078_v35 = vsub.f32 %v7030_v20, %v7060_v31  ;;  %v7077_v19 = vsub.f32 %v7025_v60, %v7057_v53 }
0x18b0   : > { %v7088_v59 = vmul.f32 1.442695, %v7078_v35  ;;  %v7086_v10 = vmul.f32 1.442695, %v7077_v19 }
0x18b1   : > { %v7063_v12 = vpop.xlane.xlu0 %7062 }
0x18b2   : > { %v7079_v49 = vsub.f32 %v7033_v32, %v7063_v12  ;;  %13907 = vpow2.f32 %v7088_v59 }
0x18b3   : > { %13909 = vpow2.f32 %v7084_v37 }
0x18b4   : > { %v7090_v6 = vmul.f32 1.442695, %v7079_v49 }
0x18b5   : > { %v7066_v24 = vpop.xlane.xlu0 %7065  ;;  %v7069_v53 = vpop.xlane.xlu1 %7068 }
0x18b6   : > { %13911 = vpow2.f32 %v7090_v6  ;;  %v7080_v13 = vsub.f32 %v7038_v33, %v7066_v24  ;;  %v7081_v19 = vsub.f32 %v17427_v11, %v7069_v53  ;;  %v13328_v11 = vld [vmem:[#allocation2 + $0x1a4] ss:$8 sps:$4 sm:$0xff]  }
0x18b7   : > { %13913 = vpow2.f32 %v7086_v10 }
0x18b8   : > { %v7092_v56 = vmul.f32 1.442695, %v7080_v13  ;;  %v7094_v37 = vmul.f32 1.442695, %v7081_v19 }
0x18b9   : > { %v7072_v44 = vpop.xlane.xlu0 %7071  ;;  %v7075_v31 = vpop.xlane.xlu1 %7074 }
0x18ba   : > { %v7082_v23 = vsub.f32 %v7046_v47, %v7072_v44  ;;  %v7083_v35 = vsub.f32 %v7049_v0, %v7075_v31  ;;  %v13326_v0 = vld [vmem:[#allocation2 + $0x1a0] ss:$8 sps:$4 sm:$0xff]  }
0x18bc   : > { %v7096_v14 = vmul.f32 1.442695, %v7082_v23  ;;  %v7098_v59 = vmul.f32 1.442695, %v7083_v35 }
0x18be   : > { %13915 = vpow2.f32 %v7096_v14 }
0x18bf   : > { %v17436_v36 = vpop.eup %13907  ;;  %13917 = vpow2.f32 %v7092_v56 }
0x18c0   : > { %v7106_v20 = vsel %vm1891_vm0, %v17436_v36, 0.0  ;;  %v17440_v60 = vpop.eup %13909  ;;  %13919 = vpow2.f32 %v7098_v59 }
0x18c1   : > { %7107 = vadd.xlane.f32.xlu0 %v7106_v20  ;;  %v7100_v33 = vsel %vm1891_vm0, %v17440_v60, 0.0  ;;  %13921 = vpow2.f32 %v7094_v37 }
0x18c3   : > { %v13912_v32 = vpop.eup %13911 }
0x18c4   : > { %v7109_v63 = vsel %vm1891_vm0, %v13912_v32, 0.0  ;;  %v13914_v39 = vpop.eup %13913 }
0x18c5   : > { %7110 = vadd.xlane.f32.xlu1 %v7109_v63  ;;  %7101 = vadd.xlane.f32.xlu0 %v7100_v33  ;;  %v7103_v47 = vsel %vm1891_vm0, %v13914_v39, 0.0 }
0x18c9   : > { %7104 = vadd.xlane.f32.xlu1 %v7103_v47 }
0x18cb   : > { %v17446_v22 = vpop.eup %13915 }
0x18cc   : > { %v7118_v57 = vsel %vm1891_vm0, %v17446_v22, 0.0  ;;  %v17450_v9 = vpop.eup %13917 }
0x18cd   : > { %7119 = vadd.xlane.f32.xlu0 %v7118_v57  ;;  %v7112_v52 = vsel %vm1891_vm0, %v17450_v9, 0.0 }
0x18d1   : > { %7113 = vadd.xlane.f32.xlu0 %v7112_v52 }
0x18da   : > { %7386 = vrot.lane.b32.xlu1 %v17329_v25, %s19090_s21  ;;  %v17465_v25 = vpop.eup %13919 }
0x18db   : > { %v17469_v12 = vpop.eup %13921 }
0x18de   : > { %7384 = vrot.lane.b32.xlu1 %v17339_v61, %s19090_s21  ;;  %v7121_v61 = vsel %vm1891_vm0, %v17465_v25, 0.0 }
0x18e7   : > { %7388 = vrot.lane.b32.xlu0 %v17216_v54, %s19090_s21  ;;  %v7115_v54 = vsel %vm1891_vm0, %v17469_v12, 0.0 }
0x18eb   : > { %7370 = vrot.lane.b32.xlu0 %v17359_v62, %s19090_s21  ;;  %v13323_v62 = vld [vmem:[#allocation2 + $0x1b0] ss:$8 sps:$4 sm:$0xff]  }
0x18ef   : > { %7374 = vrot.lane.b32.xlu0 %v17372_v15, %s19090_s21  ;;  %v13325_v15 = vld [vmem:[#allocation2 + $0x1b4] ss:$8 sps:$4 sm:$0xff]  }
0x18f0   : > { %7285 = vmatprep.subr.bf16.mxu1 %v13325_v15 }
0x18f1   : > { %7286 = vmatpush1.bf16.msra.mxu1 %v13323_v62 }
0x18f2   : > { %7287 = vmatprep.subr.bf16.mxu1 %v13328_v11 }
0x18f5   : > { %7288 = vmatpush1.bf16.msra.mxu1 %v13326_v0 }
0x1902   : > { %7122 = vadd.xlane.f32.xlu1 %v7121_v61 }
0x1906   : > { %7116 = vadd.xlane.f32.xlu1 %v7115_v54 }
0x1917   : > { %7382 = vrot.lane.b32.xlu1 %v17349_v45, %s19090_s21 }
0x191b   : > { %7372 = vrot.lane.b32.xlu1 %v17368_v18, %s19090_s21 }
0x191f   : > { %7376 = vrot.lane.b32.xlu1 %v17380_v48, %s19090_s21 }
0x194a   : > { %v7108_v49 = vpop.xlane.xlu0 %7107 }
0x194e   : > { %v7111_v10 = vpop.xlane.xlu1 %7110  ;;  %v7102_v6 = vpop.xlane.xlu0 %7101 }
0x194f   : > { %13923 = vrcp.f32 %v7111_v10 }
0x1950   : > { %13925 = vrcp.f32 %v7102_v6 }
0x1951   : > { %13927 = vrcp.f32 %v7108_v49 }
0x1952   : > { %v7105_v45 = vpop.xlane.xlu1 %7104 }
0x1953   : > { %13929 = vrcp.f32 %v7105_v45  ;;  %v13329_v45 = vld [vmem:[#allocation2 + $0x190] ss:$8 sps:$4 sm:$0xff]  }
0x1956   : > { %v7120_v18 = vpop.xlane.xlu0 %7119  ;;  %v7387_v53 = vpop.permute.xlu1 %7386 }
0x195a   : > { %v7114_v24 = vpop.xlane.xlu0 %7113  ;;  %v7385_v31 = vpop.permute.xlu1 %7384 }
0x195c   : > { %v13924_v13 = vpop.eup %13923 }
0x195d   : > { %v13926_v48 = vpop.eup %13925  ;;  %v7135_v56 = vmul.f32 %v13924_v13, %v13912_v32  ;;  %v7409_v32 = vsel %vm1891_vm0, %v7387_v53, 0  ;;  %v6912_v13 = vpop.f32.mrf.mxu0 }
0x195e   : > { %v13928_v44 = vpop.eup %13927  ;;  %v7389_v23 = vpop.permute.xlu0 %7388  ;;  %v7132_v20 = vmul.f32 %v13926_v48, %v17440_v60 }
0x195f   : > { %12676 = vmatprep.subr.msk.bf16.mxu0 %vm1891_vm0, %v7389_v23  ;;  %v7134_v33 = vmul.f32 %v13928_v44, %v17436_v36  ;;  %v7412_v52 = vsel %vm1891_vm0, %v7389_v23, 0  ;;  %v7406_v36 = vsel %vm1891_vm0, %v7385_v31, 0  ;;  %v6914_v48 = vpop.f32.mrf.mxu0 }
0x1960   : > { %v13930_v14 = vpop.eup %13929 }
0x1961   : > { %v7133_v63 = vmul.f32 %v13930_v14, %v13914_v39  ;;  %v7141_v57 = vpack.c.bf16 %v7135_v56, %v7134_v33  ;;  %v6916_v44 = vpop.f32.mrf.mxu0 }
0x1962   : > { %v7371_v6 = vpop.permute.xlu0 %7370 }
0x1963   : > { %v7140_v47 = vpack.c.bf16 %v7133_v63, %v7132_v20  ;;  %v6918_v23 = vpop.f32.mrf.mxu0 }
0x1965   : > { %12608 = vmatprep.mubr.msk.bf16.mxu0 %vm1891_vm0, %v7140_v47  ;;  %v6922_v14 = vpop.f32.mrf.mxu0 }
0x1966   : > { %12609 = vmatmul.mubr.msk.bf16.vlgmr.msra.gmra.mxu0 %vm1891_vm0, %v7141_v57 }
0x1967   : > { %12617 = vmatpush3.bf16.xpose.msra.mxu0 %v7412_v52  ;;  %v6924_v56 = vpop.f32.mrf.mxu0 }
0x1968   : > { %12677 = vmatprep.subr.msk.bf16.mxu0 %vm1891_vm0, %v7387_v53 }
0x1969   : > { %v17502_v20 = vpop.f32.mrf.mxu0 }
0x196b   : > { %v17504_v63 = vpop.f32.mrf.mxu0 }
0x196d   : > { %v17506_v33 = vpop.f32.mrf.mxu0 }
0x196f   : > { %12619 = vmatpush3.bf16.xpose.msra.mxu0 %v7409_v32  ;;  %v17508_v47 = vpop.f32.mrf.mxu0 }
0x1970   : > { %12678 = vmatprep.subr.msk.bf16.mxu0 %vm1891_vm0, %v7385_v31 }
0x1971   : > { %v17510_v57 = vpop.f32.mrf.mxu0 }
0x1973   : > { %v17512_v52 = vpop.f32.mrf.mxu0 }
0x1975   : > { %v17514_v53 = vpop.f32.mrf.mxu0 }
0x1977   : > { %12621 = vmatpush3.bf16.xpose.msra.mxu0 %v7406_v36  ;;  %v17516_v32 = vpop.f32.mrf.mxu0 }
0x1979   : > { %v17518_v31 = vpop.f32.mrf.mxu0 }
0x197b   : > { %v17520_v36 = vpop.f32.mrf.mxu0 }
0x198b   : > { %v7123_v60 = vpop.xlane.xlu1 %7122 }
0x198c   : > { %13931 = vrcp.f32 %v7123_v60 }
0x198d   : > { %13933 = vrcp.f32 %v7114_v24  ;;  %v13334_v24 = vld [vmem:[#allocation2 + $0x184] ss:$8 sps:$4 sm:$0xff]  }
0x198e   : > { %13935 = vrcp.f32 %v7120_v18  ;;  %v13331_v18 = vld [vmem:[#allocation2 + $0x194] ss:$8 sps:$4 sm:$0xff]  }
0x198f   : > { %v7117_v39 = vpop.xlane.xlu1 %7116  ;;  %7289 = vmatprep.subr.bf16.mxu1 %v13331_v18 }
0x1990   : > { %13937 = vrcp.f32 %v7117_v39  ;;  %7290 = vmatpush1.bf16.msra.mxu1 %v13329_v45 }
0x1991   : > { %7291 = vmatprep.subr.bf16.mxu1 %v13334_v24 }
0x1993   : > { %v7383_v35 = vpop.permute.xlu1 %7382 }
0x1994   : > { %v7403_v19 = vsel %vm1891_vm0, %v7383_v35, 0  ;;  %12679 = vmatprep.subr.msk.bf16.mxu0 %vm1891_vm0, %v7383_v35 }
0x1995   : > { %12623 = vmatpush3.bf16.xpose.msra.mxu0 %v7403_v19 }
0x1999   : > { %v13932_v59 = vpop.eup %13931 }
0x199a   : > { %v13934_v37 = vpop.eup %13933  ;;  %v7139_v62 = vmul.f32 %v13932_v59, %v17465_v25  ;;  %v7373_v25 = vpop.permute.xlu1 %7372 }
0x199b   : > { %v13936_v61 = vpop.eup %13935  ;;  %v7136_v15 = vmul.f32 %v13934_v37, %v17450_v9  ;;  %v7375_v9 = vpop.permute.xlu0 %7374 }
0x199c   : > { %v7138_v0 = vmul.f32 %v13936_v61, %v17446_v22 }
0x199d   : > { %v13938_v54 = vpop.eup %13937 }
0x199e   : > { %v7137_v11 = vmul.f32 %v13938_v54, %v17469_v12  ;;  %v7143_v10 = vpack.c.bf16 %v7139_v62, %v7138_v0  ;;  %v13332_v12 = vld [vmem:[#allocation2 + $0x180] ss:$8 sps:$4 sm:$0xff]   ;;  %v7377_v22 = vpop.permute.xlu1 %7376 }
0x199f   : > { %7292 = vmatpush1.bf16.msra.mxu1 %v13332_v12 }
0x19a0   : > { %v7142_v49 = vpack.c.bf16 %v7137_v11, %v7136_v15 }
0x19a2   : > { %12612 = vmatprep.mubr.msk.bf16.mxu0 %vm1891_vm0, %v7142_v49 }
0x19a3   : > { %12613 = vmatmul.mubr.msk.bf16.gmra.mxu0 %vm1891_vm0, %v7143_v10 }
0x19a4   : > { %12624 = vmatprep.mubr.msk.bf16.mxu0 %vm1891_vm0, %v7371_v6 }
0x19ab   : > { %12625 = vmatmul.mubr.msk.bf16.vlgmr.msra.gmra.mxu0 %vm1891_vm0, %v7373_v25 }
0x19ac   : > { %12628 = vmatprep.mubr.msk.bf16.mxu0 %vm1891_vm0, %v7375_v9 }
0x19b3   : > { %12629 = vmatmul.mubr.msk.bf16.gmra.mxu0 %vm1891_vm0, %v7377_v22 }
0x19b4   : > { %7752 = vmatprep.mubr.bf16.mxu0 %v19091_v4 }
0x1a26   : > { %v12610_v60 = vpop.f32.mrf.mxu0 }
0x1a28   : > { %v7190_v39 = vpop.f32.mrf.mxu0 }
0x1a2a   : > { %v12611_v35 = vpop.f32.mrf.mxu0 }
0x1a2b   : > { %v7222_v37 = vpack.c.bf16 %v12611_v35, %v12610_v60  ;;  %v6913_v35 = vadd.f32 %v6912_v13, %v17385_v17 }
0x1a2c   : > { %v7193_v19 = vpop.f32.mrf.mxu0 }
0x1a2d   : > { %v7221_v59 = vpack.c.bf16 %v7193_v19, %v7190_v39 }
0x1a2f   : > { %11695 = vmatmul.mubr.msk.bf16.vlgmr.msra.gmra.mxu1 %vm1891_vm0, %v7221_v59  ;;  %v6915_v59 = vadd.f32 %v6914_v48, %v17387_v7  ;;  %v6925_v7 = vadd.f32 %v6924_v56, %v17395_v8 }
0x1a30   : > { %7319 = vmatprep.mubr.bf16.mxu1 %v19091_v4 }
0x1a37   : > { %11696 = vmatmul.mubr.msk.bf16.gmra.mxu1 %vm1891_vm0, %v7222_v37 }
0x1a38   : > { %7329 = vmatprep.mubr.bf16.mxu1 %v19091_v4 }
0x1a63   : > { %v12614_v61 = vpop.f32.mrf.mxu0 }
0x1a65   : > { %v7206_v54 = vpop.f32.mrf.mxu0 }
0x1a67   : > { %v12615_v62 = vpop.f32.mrf.mxu0 }
0x1a68   : > { %v7224_v24 = vpack.c.bf16 %v12615_v62, %v12614_v61 }
0x1a69   : > { %v7209_v15 = vpop.f32.mrf.mxu0 }
0x1a6a   : > { %v7223_v11 = vpack.c.bf16 %v7209_v15, %v7206_v54  ;;  %v6917_v54 = vadd.f32 %v6916_v44, %v17389_v3  ;;  %v6927_v3 = vadd.f32 %v17502_v20, %v17397_v38 }
0x1a6b   : > { %v12626_v0 = vpop.f32.mrf.mxu0 }
0x1a6c   : > { %11697 = vmatmul.mubr.msk.bf16.gmra.mxu1 %vm1891_vm0, %v7223_v11  ;;  %v7457_v45 = vadd.f32 %v12626_v0, %v19089_v40  ;;  %v6919_v11 = vadd.f32 %v6918_v23, %v17391_v21  ;;  %v6929_v23 = vadd.f32 %v17504_v63, %v17399_v41 }
0x1a6d   : > { %v7448_v49 = vpop.f32.mrf.mxu0  ;;  %7339 = vmatprep.mubr.bf16.mxu1 %v19091_v4 }
0x1a6e   : > { %v7449_v10 = vadd.f32 %v7448_v49, %v19089_v40  ;;  %v7485_v60 = vsel %vm1891_vm0, %v7457_v45, -inf }
0x1a6f   : > { %v12627_v6 = vpop.f32.mrf.mxu0 }
0x1a70   : > { %v7479_v18 = vsel %vm1891_vm0, %v7449_v10, -inf  ;;  %v7460_v12 = vadd.f32 %v12627_v6, %v19089_v40 }
0x1a71   : > { %v7451_v25 = vpop.f32.mrf.mxu0  ;;  %7480 = vmax.xlane.f32.xlu0 %v7479_v18 }
0x1a72   : > { %v7452_v9 = vadd.f32 %v7451_v25, %v19089_v40  ;;  %v7488_v39 = vsel %vm1891_vm0, %v7460_v12, -inf }
0x1a74   : > { %11698 = vmatmul.mubr.msk.bf16.gmra.mxu1 %vm1891_vm0, %v7224_v24  ;;  %v7482_v22 = vsel %vm1891_vm0, %v7452_v9, -inf }
0x1a75   : > { %7483 = vmax.xlane.f32.xlu1 %v7482_v22  ;;  %7486 = vmax.xlane.f32.xlu0 %v7485_v60 }
0x1a79   : > { %7489 = vmax.xlane.f32.xlu0 %v7488_v39 }
0x1a86   : > { %7579 = vrot.lane.b32.xlu1 %v17127_v26, %s19090_s21 }
0x1a8a   : > { %7577 = vrot.lane.b32.xlu1 %v17302_v28, %s19090_s21  ;;  %v6923_v28 = vadd.f32 %v6922_v14, %v17393_v34 }
0x1aef   : > { %v7311_v19 = vpop.f32.mrf.mxu1 }
0x1af0   : > { %v17543_v37 = vadd.f32 %v7311_v19, %v6913_v35 }
0x1af1   : > { %v7313_v61 = vpop.f32.mrf.mxu1 }
0x1af2   : > { %v17546_v62 = vadd.f32 %v7313_v61, %v6915_v59 }
0x1af3   : > { %v7315_v15 = vpop.f32.mrf.mxu1 }
0x1af4   : > { %v17549_v0 = vadd.f32 %v7315_v15, %v6917_v54  ;;  %v6933_v54 = vadd.f32 %v17506_v33, %v17401_v51  ;;  %v6939_v51 = vadd.f32 %v17512_v52, %v17407_v42 }
0x1af5   : > { %v7317_v26 = vpop.f32.mrf.mxu1 }
0x1af6   : > { %v17552_v49 = vadd.f32 %v7317_v26, %v6919_v11  ;;  %v6935_v11 = vadd.f32 %v17508_v47, %v17403_v1  ;;  %v6943_v1 = vadd.f32 %v17514_v53, %v17409_v55 }
0x1af7   : > { %v7321_v17 = vpop.f32.mrf.mxu1 }
0x1af8   : > { %v17555_v13 = vadd.f32 %v7321_v17, %v6923_v28  ;;  %v6937_v17 = vadd.f32 %v17510_v57, %v17405_v16  ;;  %v6947_v57 = vadd.f32 %v17518_v31, %v17413_v58 }
0x1af9   : > { %v7323_v48 = vpop.f32.mrf.mxu1 }
0x1afa   : > { %v17559_v44 = vadd.f32 %v7323_v48, %v6925_v7  ;;  %v7481_v6 = vpop.xlane.xlu0 %7480 }
0x1afb   : > { %v7325_v21 = vpop.f32.mrf.mxu1  ;;  %v7503_v14 = vsub.f32 %v7449_v10, %v7481_v6 }
0x1afc   : > { %v17563_v18 = vadd.f32 %v7325_v21, %v6927_v3 }
0x1afd   : > { %v7327_v34 = vpop.f32.mrf.mxu1  ;;  %v7511_v39 = vmul.f32 1.442695, %v7503_v14 }
0x1afe   : > { %v17565_v25 = vadd.f32 %v7327_v34, %v6929_v23  ;;  %v7484_v8 = vpop.xlane.xlu1 %7483  ;;  %v7487_v56 = vpop.xlane.xlu0 %7486 }
0x1aff   : > { %v7505_v24 = vsub.f32 %v7457_v45, %v7487_v56  ;;  %v7504_v22 = vsub.f32 %v7452_v9, %v7484_v8  ;;  %v12630_v23 = vpop.f32.mrf.mxu0 }
0x1b01   : > { %v7515_v60 = vmul.f32 1.442695, %v7505_v24  ;;  %v7513_v35 = vmul.f32 1.442695, %v7504_v22  ;;  %v7464_v34 = vpop.f32.mrf.mxu0  ;;  %v13335_v22 = vld [vmem:[#allocation2 + $0x1f0] ss:$8 sps:$4 sm:$0xff]  }
0x1b02   : > { %v7490_v38 = vpop.xlane.xlu0 %7489  ;;  %v7465_v53 = vadd.f32 %v7464_v34, %v19089_v40 }
0x1b03   : > { %v7506_v20 = vsub.f32 %v7460_v12, %v7490_v38  ;;  %13939 = vpow2.f32 %v7515_v60  ;;  %v12631_v55 = vpop.f32.mrf.mxu0  ;;  %v13337_v60 = vld [vmem:[#allocation2 + $0x1f4] ss:$8 sps:$4 sm:$0xff]  }
0x1b04   : > { %13941 = vpow2.f32 %v7511_v39  ;;  %v7476_v31 = vadd.f32 %v12631_v55, %v19089_v40  ;;  %7728 = vmatprep.subr.bf16.mxu0 %v13337_v60  ;;  %v7580_v39 = vpop.permute.xlu1 %7579  ;;  %v13343_v60 = vld [vmem:[#allocation2 + $0x1d4] ss:$8 sps:$4 sm:$0xff]  }
0x1b05   : > { %v7517_v19 = vmul.f32 1.442695, %v7506_v20  ;;  %v7467_v14 = vpop.f32.mrf.mxu0  ;;  %7729 = vmatpush1.bf16.msra.mxu0 %v13335_v22  ;;  %v13341_v22 = vld [vmem:[#allocation2 + $0x1d0] ss:$8 sps:$4 sm:$0xff]  }
0x1b06   : > { %v7468_v8 = vadd.f32 %v7467_v14, %v19089_v40  ;;  %v7500_v24 = vsel %vm1891_vm0, %v7476_v31, -inf }
0x1b07   : > { %13943 = vpow2.f32 %v7517_v19 }
0x1b08   : > { %13945 = vpow2.f32 %v7513_v35  ;;  %v7494_v58 = vsel %vm1891_vm0, %v7468_v8, -inf  ;;  %v7578_v38 = vpop.permute.xlu1 %7577 }
0x1b10   : > { %v17567_v41 = vpop.eup %13939 }
0x1b11   : > { %v7533_v63 = vsel %vm1891_vm0, %v17567_v41, 0.0  ;;  %v17571_v10 = vpop.eup %13941 }
0x1b12   : > { %7534 = vadd.xlane.f32.xlu0 %v7533_v63  ;;  %v7527_v59 = vsel %vm1891_vm0, %v17571_v10, 0.0 }
0x1b14   : > { %v17573_v45 = vpop.eup %13943 }
0x1b15   : > { %v7536_v9 = vsel %vm1891_vm0, %v17573_v45, 0.0  ;;  %v17577_v12 = vpop.eup %13945 }
0x1b16   : > { %7537 = vadd.xlane.f32.xlu1 %v7536_v9  ;;  %7528 = vadd.xlane.f32.xlu0 %v7527_v59  ;;  %v7530_v61 = vsel %vm1891_vm0, %v17577_v12, 0.0 }
0x1b1a   : > { %7531 = vadd.xlane.f32.xlu1 %v7530_v61 }
0x1b2b   : > { %7575 = vrot.lane.b32.xlu1 %v17308_v50, %s19090_s21 }
0x1b2c   : > { %v7331_v15 = vpop.f32.mrf.mxu1  ;;  %7581 = vrot.lane.b32.xlu0 %v17290_v2, %s19090_s21  ;;  %v6945_v2 = vadd.f32 %v17516_v32, %v17411_v5  ;;  %v7473_v5 = vadd.f32 %v12630_v23, %v19089_v40  ;;  %v7491_v32 = vsel %vm1891_vm0, %v7465_v53, -inf  ;;  %s11036_s21 = scalar_lea.hbm %s19113_s24, %s12172_s26 }
0x1b2d   : > { %v17589_v26 = vadd.f32 %v7331_v15, %v6933_v54 }
0x1b2e   : > { %v7333_v28 = vpop.f32.mrf.mxu1  ;;  %v7497_v56 = vsel %vm1891_vm0, %v7473_v5, -inf }
0x1b2f   : > { %v17595_v7 = vadd.f32 %v7333_v28, %v6935_v11 }
0x1b30   : > { %v7335_v48 = vpop.f32.mrf.mxu1 }
0x1b31   : > { %v17599_v50 = vadd.f32 %v7335_v48, %v6937_v17 }
0x1b32   : > { %v7337_v33 = vpop.f32.mrf.mxu1 }
0x1b33   : > { %v17603_v47 = vadd.f32 %v7337_v33, %v6939_v51 }
0x1b34   : > { %v7341_v3 = vpop.f32.mrf.mxu1 }
0x1b35   : > { %v17607_v6 = vadd.f32 %v7341_v3, %v6943_v1 }
0x1b36   : > { %v7343_v16 = vpop.f32.mrf.mxu1 }
0x1b37   : > { %v17611_v21 = vadd.f32 %v7343_v16, %v6945_v2 }
0x1b38   : > { %v7345_v42 = vpop.f32.mrf.mxu1 }
0x1b39   : > { %v17613_v52 = vadd.f32 %v7345_v42, %v6947_v57 }
0x1b4b   : > { %7492 = vmax.xlane.f32.xlu0 %v7491_v32 }
0x1b4f   : > { %7495 = vmax.xlane.f32.xlu1 %v7494_v58  ;;  %7498 = vmax.xlane.f32.xlu0 %v7497_v56 }
0x1b53   : > { %7501 = vmax.xlane.f32.xlu0 %v7500_v24  ;;  %v13338_v24 = vld [vmem:[#allocation2 + $0x1e0] ss:$8 sps:$4 sm:$0xff]  }
0x1b9b   : > { %v7535_v20 = vpop.xlane.xlu0 %7534 }
0x1b9f   : > { %v7538_v35 = vpop.xlane.xlu1 %7537  ;;  %v7529_v19 = vpop.xlane.xlu0 %7528 }
0x1ba0   : > { %13947 = vrcp.f32 %v7538_v35  ;;  %v17633_v35 = vpop.f32.mrf.mxu1 }
0x1ba1   : > { %13949 = vrcp.f32 %v7529_v19 }
0x1ba2   : > { %13951 = vrcp.f32 %v7535_v20 }
0x1ba3   : > { %v7532_v40 = vpop.xlane.xlu1 %7531  ;;  %v7582_v63 = vpop.permute.xlu0 %7581 }
0x1ba4   : > { %13953 = vrcp.f32 %v7532_v40  ;;  %12632 = vmatprep.subr.bf16.mxu1 %v7582_v63 }
0x1ba5   : > { %12633 = vmatpush3.bf16.msra.mxu1 %v7582_v63 }
0x1ba6   : > { %12634 = vmatprep.subr.bf16.mxu1 %v7580_v39 }
0x1ba7   : > { %v7576_v59 = vpop.permute.xlu1 %7575 }
0x1ba9   : > { %12635 = vmatpush3.bf16.msra.mxu1 %v7580_v39  ;;  %v13346_v39 = vld [vmem:[#allocation2 + $0x1c4] ss:$8 sps:$4 sm:$0xff]  }
0x1baa   : > { %12636 = vmatprep.subr.bf16.mxu1 %v7578_v38 }
0x1bad   : > { %v13948_v9 = vpop.eup %13947  ;;  %12637 = vmatpush3.bf16.msra.mxu1 %v7578_v38  ;;  %v13344_v38 = vld [vmem:[#allocation2 + $0x1c0] ss:$8 sps:$4 sm:$0xff]  }
0x1bae   : > { %v13950_v61 = vpop.eup %13949  ;;  %12638 = vmatprep.subr.bf16.mxu1 %v7576_v59  ;;  %v7562_v11 = vmul.f32 %v13948_v9, %v17573_v45 }
0x1baf   : > { %v13952_v54 = vpop.eup %13951  ;;  %v7559_v28 = vmul.f32 %v13950_v61, %v17571_v10 }
0x1bb0   : > { %v7561_v48 = vmul.f32 %v13952_v54, %v17567_v41 }
0x1bb1   : > { %v13954_v15 = vpop.eup %13953  ;;  %12639 = vmatpush3.bf16.msra.mxu1 %v7576_v59 }
0x1bb2   : > { %v7560_v17 = vmul.f32 %v13954_v15, %v17577_v12  ;;  %v7568_v33 = vpack.c.bf16 %v7562_v11, %v7561_v48 }
0x1bb4   : > { %v7567_v51 = vpack.c.bf16 %v7560_v17, %v7559_v28 }
0x1bb6   : > { %12640 = vmatprep.mubr.msk.bf16.mxu1 %vm1891_vm0, %v7567_v51 }
0x1bb7   : > { %12641 = vmatmul.mubr.msk.bf16.vlgmr.msra.gmra.mxu1 %vm1891_vm0, %v7568_v33 }
0x1bd4   : > { %v7493_v1 = vpop.xlane.xlu0 %7492 }
0x1bd5   : > { %v7507_v3 = vsub.f32 %v7465_v53, %v7493_v1 }
0x1bd7   : > { %v7519_v2 = vmul.f32 1.442695, %v7507_v3 }
0x1bd8   : > { %v7496_v16 = vpop.xlane.xlu1 %7495  ;;  %v7499_v42 = vpop.xlane.xlu0 %7498 }
0x1bd9   : > { %v7508_v57 = vsub.f32 %v7468_v8, %v7496_v16  ;;  %13955 = vpow2.f32 %v7519_v2  ;;  %v7509_v45 = vsub.f32 %v7473_v5, %v7499_v42 }
0x1bdb   : > { %v7521_v23 = vmul.f32 1.442695, %v7508_v57  ;;  %v7523_v10 = vmul.f32 1.442695, %v7509_v45  ;;  %v11719_v45 = vld [vmem:[%s18913_s7 + $0x2] sm:$0x3] }
0x1bdc   : > { %v7502_v12 = vpop.xlane.xlu0 %7501 }
0x1bdd   : > { %13957 = vpow2.f32 %v7521_v23  ;;  %v7510_v41 = vsub.f32 %v7476_v31, %v7502_v12  ;;  %v13340_v31 = vld [vmem:[#allocation2 + $0x1e4] ss:$8 sps:$4 sm:$0xff]  }
0x1bde   : > { %13959 = vpow2.f32 %v7523_v10  ;;  %7730 = vmatprep.subr.bf16.mxu0 %v13340_v31 }
0x1bdf   : > { %v7525_v34 = vmul.f32 1.442695, %v7510_v41  ;;  %7731 = vmatpush1.bf16.msra.mxu0 %v13338_v24  ;;  %v17647_v41 = vrot.slane %v11719_v45, %v14818_v46 }
0x1be0   : > { %7732 = vmatprep.subr.bf16.mxu0 %v13343_v60 }
0x1be1   : > { %13961 = vpow2.f32 %v7525_v34 }
0x1be3   : > { %7733 = vmatpush1.bf16.msra.mxu0 %v13341_v22 }
0x1be4   : > { %7734 = vmatprep.subr.bf16.mxu0 %v13346_v39 }
0x1be6   : > { %v13956_v55 = vpop.eup %13955 }
0x1be7   : > { %v7539_v14 = vsel %vm1891_vm0, %v13956_v55, 0.0  ;;  %7735 = vmatpush1.bf16.msra.mxu0 %v13344_v38 }
0x1be8   : > { %7540 = vadd.xlane.f32.xlu0 %v7539_v14 }
0x1bea   : > { %v13958_v32 = vpop.eup %13957 }
0x1beb   : > { %v13960_v53 = vpop.eup %13959  ;;  %v7542_v58 = vsel %vm1891_vm0, %v13958_v32, 0.0 }
0x1bec   : > { %7543 = vadd.xlane.f32.xlu1 %v7542_v58  ;;  %v7545_v8 = vsel %vm1891_vm0, %v13960_v53, 0.0 }
0x1bed   : > { %7546 = vadd.xlane.f32.xlu0 %v7545_v8 }
0x1bee   : > { %v13962_v5 = vpop.eup %13961 }
0x1bef   : > { %v7548_v56 = vsel %vm1891_vm0, %v13962_v5, 0.0 }
0x1bf0   : > { %7549 = vadd.xlane.f32.xlu1 %v7548_v56 }
0x1c71   : > { %v7541_v20 = vpop.xlane.xlu0 %7540 }
0x1c72   : > { %13963 = vrcp.f32 %v7541_v20 }
0x1c75   : > { %v7544_v19 = vpop.xlane.xlu1 %7543 }
0x1c76   : > { %13965 = vrcp.f32 %v7544_v19  ;;  %v7547_v40 = vpop.xlane.xlu0 %7546 }
0x1c77   : > { %v12642_v63 = vpop.f32.mrf.mxu1  ;;  %13967 = vrcp.f32 %v7547_v40  ;;  %v13347_v40 = vld [vmem:[%s18916_s10 + $0x2e0] ss:$16 sps:$4 sm:$0xff]  }
0x1c79   : > { %v7633_v9 = vpop.f32.mrf.mxu1  ;;  %v7550_v59 = vpop.xlane.xlu1 %7549 }
0x1c7a   : > { %13969 = vrcp.f32 %v7550_v59  ;;  %v13352_v59 = vld [vmem:[%s18916_s10 + $0x2ec] ss:$16 sps:$4 sm:$0xff]  }
0x1c7b   : > { %v12643_v61 = vpop.f32.mrf.mxu1  ;;  %8529 = vmatprep.subr.bf16.mxu0 %v13352_v59 }
0x1c7c   : > { %v7665_v33 = vpack.c.bf16 %v12643_v61, %v12642_v63  ;;  %v13349_v63 = vld [vmem:[%s18916_s10 + $0x2e4] ss:$16 sps:$4 sm:$0xff]   ;;  %v13358_v61 = vld [vmem:[%s18916_s10 + $0x2cc] ss:$16 sps:$4 sm:$0xff]  }
0x1c7d   : > { %v7636_v54 = vpop.f32.mrf.mxu1  ;;  %8456 = vmatprep.subr.bf16.mxu1 %v13349_v63 }
0x1c7e   : > { %v7664_v15 = vpack.c.bf16 %v7636_v54, %v7633_v9  ;;  %v13350_v9 = vld [vmem:[%s18916_s10 + $0x2e8] ss:$16 sps:$4 sm:$0xff]   ;;  %8457 = vmatpush1.bf16.msra.mxu1 %v13347_v40  ;;  %v13353_v54 = vld [vmem:[%s18916_s10 + $0x2c0] ss:$16 sps:$4 sm:$0xff]  }
0x1c7f   : > { %v13964_v11 = vpop.eup %13963 }
0x1c80   : > { %11715 = vmatmul.mubr.msk.bf16.vlgmr.msra.gmra.mxu0 %vm1891_vm0, %v7664_v15  ;;  %v7563_v17 = vmul.f32 %v13964_v11, %v13956_v55  ;;  %v17651_v55 = vrot.slane %v11719_v45, %v14815_v43  ;;  %v13356_v15 = vld [vmem:[%s18916_s10 + $0x2c8] ss:$16 sps:$4 sm:$0xff]   ;;  %v13361_v11 = vld [vmem:[%s18916_s10 + $0x2a4] ss:$16 sps:$4 sm:$0xff]  }
0x1c81   : > { %7762 = vmatprep.mubr.bf16.mxu0 %v19091_v4  ;;  %8530 = vmatpush1.bf16.msra.mxu0 %v13350_v9  ;;  %v13379_v45 = vld [vmem:[%s18916_s10 + $0x244] ss:$16 sps:$4 sm:$0xff]  }
0x1c82   : > { %8531 = vmatprep.subr.bf16.mxu0 %v13358_v61  ;;  %v19098_v9 = vld [vmem:[#allocation33_spill] sm:$0xff] }
0x1c83   : > { %v13966_v28 = vpop.eup %13965 }
0x1c84   : > { %v7564_v48 = vmul.f32 %v13966_v28, %v13958_v32  ;;  %v13968_v51 = vpop.eup %13967  ;;  %v13364_v28 = vld [vmem:[%s18916_s10 + $0x2ac] ss:$16 sps:$4 sm:$0xff]  }
0x1c85   : > { %v7565_v2 = vmul.f32 %v13968_v51, %v13960_v53  ;;  %8532 = vmatpush1.bf16.msra.mxu0 %v13356_v15  ;;  %v13367_v51 = vld [vmem:[%s18916_s10 + $0x284] ss:$16 sps:$4 sm:$0xff]   ;;  %v19099_v15 = vld [vmem:[#allocation30_spill] sm:$0xff] }
0x1c86   : > { %v7569_v1 = vpack.c.bf16 %v7564_v48, %v7563_v17  ;;  %v13359_v17 = vld [vmem:[%s18916_s10 + $0x2a0] ss:$16 sps:$4 sm:$0xff]   ;;  %v13362_v48 = vld [vmem:[%s18916_s10 + $0x2a8] ss:$16 sps:$4 sm:$0xff]   ;;  %8533 = vmatprep.subr.bf16.mxu0 %v13364_v28 }
0x1c87   : > { %v13970_v3 = vpop.eup %13969 }
0x1c88   : > { %12644 = vmatprep.mubr.msk.bf16.mxu1 %vm1891_vm0, %v7569_v1  ;;  %11716 = vmatmul.mubr.msk.bf16.gmra.mxu0 %vm1891_vm0, %v7665_v33  ;;  %v7566_v16 = vmul.f32 %v13970_v3, %v13962_v5  ;;  %v13370_v33 = vld [vmem:[%s18916_s10 + $0x28c] ss:$16 sps:$4 sm:$0xff]   ;;  %v13365_v1 = vld [vmem:[%s18916_s10 + $0x280] ss:$16 sps:$4 sm:$0xff]   ;;  %v13368_v3 = vld [vmem:[%s18916_s10 + $0x288] ss:$16 sps:$4 sm:$0xff]  }
0x1c89   : > { %7772 = vmatprep.mubr.bf16.mxu0 %v19091_v4  ;;  %8534 = vmatpush1.bf16.msra.mxu0 %v13362_v48 }
0x1c8a   : > { %v7570_v57 = vpack.c.bf16 %v7566_v16, %v7565_v2  ;;  %v13373_v2 = vld [vmem:[%s18916_s10 + $0x264] ss:$16 sps:$4 sm:$0xff]   ;;  %8535 = vmatprep.subr.bf16.mxu0 %v13370_v33  ;;  %v13376_v16 = vld [vmem:[%s18916_s10 + $0x26c] ss:$16 sps:$4 sm:$0xff]  }
0x1c8c   : > { %12645 = vmatmul.mubr.msk.bf16.gmra.mxu1 %vm1891_vm0, %v7570_v57  ;;  %v13371_v57 = vld [vmem:[%s18916_s10 + $0x260] ss:$16 sps:$4 sm:$0xff]  }
0x1c8d   : > { %8536 = vmatpush1.bf16.msra.mxu0 %v13368_v3 }
0x1c8e   : > { %8537 = vmatprep.subr.bf16.mxu0 %v13376_v16  ;;  %v19101_v16 = vld [vmem:[#allocation17_spill] sm:$0xff] }
0x1d40   : > { %v7754_v42 = vpop.f32.mrf.mxu0 }
0x1d41   : > { %v7793_v23 = vadd.f32 %v7754_v42, %v17543_v37  ;;  %v13374_v42 = vld [vmem:[%s18916_s10 + $0x268] ss:$16 sps:$4 sm:$0xff]  }
0x1d42   : > { %v7756_v10 = vpop.f32.mrf.mxu0  ;;  %8538 = vmatpush1.bf16.msra.mxu0 %v13374_v42 }
0x1d43   : > { %v7809_v12 = vadd.f32 %v7793_v23, %v16508_v30  ;;  %v7794_v34 = vadd.f32 %v7756_v10, %v17546_v62  ;;  %v19096_v30 = vld [vmem:[#allocation28_spill] sm:$0xff]  ;;  %v19097_v62 = vld [vmem:[#allocation29_spill] sm:$0xff] }
0x1d44   : > { %v7758_v14 = vpop.f32.mrf.mxu0  ;;  %v13382_v23 = vld [vmem:[%s18916_s10 + $0x24c] ss:$16 sps:$4 sm:$0xff]   ;;  %v13377_v10 = vld [vmem:[%s18916_s10 + $0x240] ss:$16 sps:$4 sm:$0xff]  }
0x1d45   : > { %v7810_v32 = vadd.f32 %v7794_v34, %v16511_v29  ;;  %v7795_v53 = vadd.f32 %v7758_v14, %v17549_v0  ;;  %v17656_v8 = vadd.f32 %v17647_v41, %v7809_v12  ;;  %v13380_v12 = vld [vmem:[%s18916_s10 + $0x248] ss:$16 sps:$4 sm:$0xff]   ;;  %v13385_v34 = vld [vmem:[%s18916_s10 + $0x224] ss:$16 sps:$4 sm:$0xff]   ;;  %8539 = vmatprep.subr.bf16.mxu0 %v13382_v23  ;;  %v13388_v14 = vld [vmem:[%s18916_s10 + $0x22c] ss:$16 sps:$4 sm:$0xff]  }
0x1d46   : > { %v7760_v58 = vpop.f32.mrf.mxu0  ;;  %8540 = vmatpush1.bf16.msra.mxu0 %v13380_v12 }
0x1d47   : > { %v17659_v37 = vadd.f32 %v17651_v55, %v7810_v32  ;;  %v7811_v5 = vadd.f32 %v7795_v53, %v19096_v30  ;;  %v7796_v56 = vadd.f32 %v7760_v58, %v17552_v49  ;;  %v13383_v32 = vld [vmem:[%s18916_s10 + $0x220] ss:$16 sps:$4 sm:$0xff]   ;;  %v13386_v53 = vld [vmem:[%s18916_s10 + $0x228] ss:$16 sps:$4 sm:$0xff]   ;;  %v13391_v58 = vld [vmem:[%s18916_s10 + $0x204] ss:$16 sps:$4 sm:$0xff]   ;;  %8541 = vmatprep.subr.bf16.mxu0 %v13388_v14 }
0x1d48   : > { %v13394_v30 = vld [vmem:[%s18916_s10 + $0x20c] ss:$16 sps:$4 sm:$0xff]  }
0x1d49   : > { %v7812_v24 = vadd.f32 %v7796_v56, %v19097_v62  ;;  %v7858_v31 = vadd.f32 %v17659_v37, %v17656_v8  ;;  %v17667_v29 = vadd.f32 %v17647_v41, %v7811_v5  ;;  %v7764_v5 = vpop.f32.mrf.mxu0  ;;  %v13389_v56 = vld [vmem:[%s18916_s10 + $0x200] ss:$16 sps:$4 sm:$0xff]   ;;  %v13392_v62 = vld [vmem:[%s18916_s10 + $0x208] ss:$16 sps:$4 sm:$0xff]   ;;  %v13406_v14 = vld [vmem:[%s18916_s10 + $0x3cc] ss:$16 sps:$4 sm:$0xff]  }
0x1d4a   : > { %8542 = vmatpush1.bf16.msra.mxu0 %v13386_v53  ;;  %v13404_v53 = vld [vmem:[%s18916_s10 + $0x3c8] ss:$16 sps:$4 sm:$0xff]  }
0x1d4b   : > { %v17670_v0 = vadd.f32 %v17651_v55, %v7812_v24  ;;  %7859 = vadd.xlane.f32.xlu0 %v7858_v31  ;;  %v13397_v24 = vld [vmem:[%s18916_s10 + $0x3e4] ss:$16 sps:$4 sm:$0xff]   ;;  %8543 = vmatprep.subr.bf16.mxu0 %v13394_v30  ;;  %v13400_v31 = vld [vmem:[%s18916_s10 + $0x3ec] ss:$16 sps:$4 sm:$0xff]  }
0x1d4c   : > { %v12646_v22 = vpop.f32.mrf.mxu1  ;;  %v13412_v30 = vld [vmem:[%s18916_s10 + $0x3ac] ss:$16 sps:$4 sm:$0xff]  }
0x1d4d   : > { %v7861_v60 = vadd.f32 %v17670_v0, %v17667_v29 }
0x1d4e   : > { %v7649_v39 = vpop.f32.mrf.mxu1  ;;  %8544 = vmatpush1.bf16.msra.mxu0 %v13392_v62  ;;  %v13415_v62 = vld [vmem:[%s18916_s10 + $0x384] ss:$16 sps:$4 sm:$0xff]  }
0x1d4f   : > { %7862 = vadd.xlane.f32.xlu1 %v7861_v60  ;;  %v13395_v60 = vld [vmem:[%s18916_s10 + $0x3e0] ss:$16 sps:$4 sm:$0xff]   ;;  %8545 = vmatprep.subr.bf16.mxu0 %v13400_v31 }
0x1d50   : > { %v12647_v38 = vpop.f32.mrf.mxu1  ;;  %v13413_v31 = vld [vmem:[%s18916_s10 + $0x380] ss:$16 sps:$4 sm:$0xff]  }
0x1d51   : > { %v7667_v19 = vpack.c.bf16 %v12647_v38, %v12646_v22  ;;  %v7766_v22 = vpop.f32.mrf.mxu0 }
0x1d52   : > { %v7652_v49 = vpop.f32.mrf.mxu1 }
0x1d53   : > { %v7666_v20 = vpack.c.bf16 %v7652_v49, %v7649_v39  ;;  %v13398_v39 = vld [vmem:[%s18916_s10 + $0x3e8] ss:$16 sps:$4 sm:$0xff]   ;;  %v7768_v38 = vpop.f32.mrf.mxu0  ;;  %v7798_v49 = vadd.f32 %v7766_v22, %v17559_v44 }
0x1d54   : > { %8546 = vmatpush2.bf16.msra.mxu0 %v13398_v39  ;;  %v7799_v44 = vadd.f32 %v7768_v38, %v17563_v18  ;;  %v13416_v22 = vld [vmem:[%s18916_s10 + $0x388] ss:$16 sps:$4 sm:$0xff]   ;;  %v13424_v39 = vld [vmem:[%s18916_s10 + $0x36c] ss:$16 sps:$4 sm:$0xff]   ;;  %v13419_v38 = vld [vmem:[%s18916_s10 + $0x360] ss:$16 sps:$4 sm:$0xff]  }
0x1d55   : > { %11717 = vmatmul.mubr.msk.bf16.gmra.mxu0 %vm1891_vm0, %v7666_v20  ;;  %v7797_v20 = vadd.f32 %v7764_v5, %v17555_v13  ;;  %v7814_v59 = vadd.f32 %v7798_v49, %v19098_v9  ;;  %8547 = vmatprep.subr.bf16.mxu0 %v13406_v14  ;;  %v13407_v5 = vld [vmem:[%s18916_s10 + $0x3a0] ss:$16 sps:$4 sm:$0xff]   ;;  %v13422_v49 = vld [vmem:[%s18916_s10 + $0x368] ss:$16 sps:$4 sm:$0xff]   ;;  %v13433_v9 = vld [vmem:[%s18916_s10 + $0x324] ss:$16 sps:$4 sm:$0xff]  }
0x1d56   : > { %7782 = vmatprep.mubr.bf16.mxu0 %v19091_v4  ;;  %v13355_v4 = vld [vmem:[%s18916_s10 + $0x2c4] ss:$16 sps:$4 sm:$0xff]   ;;  %v19104_v14 = vld [vmem:[#allocation20_spill] sm:$0xff] }
0x1d57   : > { %8458 = vmatprep.subr.bf16.mxu1 %v13355_v4 }
0x1d58   : > { %8459 = vmatpush1.bf16.msra.mxu1 %v13353_v54  ;;  %8548 = vmatpush2.bf16.msra.mxu0 %v13404_v53 }
0x1d59   : > { %8460 = vmatprep.subr.bf16.mxu1 %v13361_v11  ;;  %v7813_v11 = vadd.f32 %v7797_v20, %v19099_v15  ;;  %8549 = vmatprep.subr.bf16.mxu0 %v13412_v30  ;;  %v13427_v20 = vld [vmem:[%s18916_s10 + $0x344] ss:$16 sps:$4 sm:$0xff]   ;;  %v13434_v15 = vld [vmem:[%s18916_s10 + $0x328] ss:$16 sps:$4 sm:$0xff]  }
0x1d5b   : > { %v17812_v18 = vadd.f32 %v17647_v41, %v7813_v11  ;;  %v13439_v11 = vld [vmem:[%s18916_s10 + $0x304] ss:$16 sps:$4 sm:$0xff]  }
0x1d5c   : > { %8461 = vmatpush1.bf16.msra.mxu1 %v13359_v17 }
0x1d5d   : > { %11718 = vmatmul.mubr.msk.bf16.gmra.mxu0 %vm1891_vm0, %v7667_v19  ;;  %8462 = vmatprep.subr.bf16.mxu1 %v13367_v51  ;;  %v7770_v19 = vpop.f32.mrf.mxu0  ;;  %v19100_v51 = vld [vmem:[#allocation34_spill] sm:$0xff] }
0x1d5e   : > { %v7800_v4 = vadd.f32 %v7770_v19, %v17565_v25  ;;  %v17802_v25 = vadd.f32 %v17651_v55, %v7814_v59  ;;  %v13430_v19 = vld [vmem:[%s18916_s10 + $0x34c] ss:$16 sps:$4 sm:$0xff]  }
0x1d5f   : > { %v13436_v59 = vld [vmem:[%s18916_s10 + $0x32c] ss:$16 sps:$4 sm:$0xff]  }
0x1d60   : > { %8463 = vmatpush1.bf16.msra.mxu1 %v13365_v1  ;;  %v7816_v33 = vadd.f32 %v7800_v4, %v19100_v51  ;;  %v13431_v4 = vld [vmem:[%s18916_s10 + $0x320] ss:$16 sps:$4 sm:$0xff]  }
0x1d61   : > { %8464 = vmatprep.subr.bf16.mxu1 %v13373_v2 }
0x1d62   : > { %v17820_v23 = vadd.f32 %v17651_v55, %v7816_v33  ;;  %v19102_v33 = vld [vmem:[#allocation18_spill] sm:$0xff] }
0x1d64   : > { %8465 = vmatpush1.bf16.msra.mxu1 %v13371_v57  ;;  %v7815_v57 = vadd.f32 %v7799_v44, %v19101_v16  ;;  %v13440_v44 = vld [vmem:[%s18916_s10 + $0x308] ss:$16 sps:$4 sm:$0xff]  }
0x1d65   : > { %8466 = vmatprep.subr.bf16.mxu1 %v13379_v45 }
0x1d68   : > { %8467 = vmatpush1.bf16.msra.mxu1 %v13377_v10  ;;  %v17825_v10 = vadd.f32 %v17647_v41, %v7815_v57 }
0x1d69   : > { %8468 = vmatprep.subr.bf16.mxu1 %v13385_v34  ;;  %v13403_v34 = vld [vmem:[%s18916_s10 + $0x3c4] ss:$16 sps:$4 sm:$0xff]  }
0x1d6a   : > { %v7867_v12 = vadd.f32 %v17820_v23, %v17825_v10 }
0x1d6c   : > { %8469 = vmatpush1.bf16.msra.mxu1 %v13383_v32  ;;  %v13401_v32 = vld [vmem:[%s18916_s10 + $0x3c0] ss:$16 sps:$4 sm:$0xff]  }
0x1d6d   : > { %8470 = vmatprep.subr.bf16.mxu1 %v13391_v58  ;;  %v13409_v58 = vld [vmem:[%s18916_s10 + $0x3a4] ss:$16 sps:$4 sm:$0xff]  }
0x1d70   : > { %8471 = vmatpush1.bf16.msra.mxu1 %v13389_v56  ;;  %v13410_v56 = vld [vmem:[%s18916_s10 + $0x3a8] ss:$16 sps:$4 sm:$0xff]  }
0x1d71   : > { %8472 = vmatprep.subr.bf16.mxu1 %v13397_v24  ;;  %8550 = vmatpush2.bf16.msra.mxu0 %v13410_v56  ;;  %v13418_v24 = vld [vmem:[%s18916_s10 + $0x38c] ss:$16 sps:$4 sm:$0xff]  }
0x1d72   : > { %8551 = vmatprep.subr.bf16.mxu0 %v13418_v24 }
0x1d74   : > { %8473 = vmatpush2.bf16.msra.mxu1 %v13395_v60  ;;  %v13421_v60 = vld [vmem:[%s18916_s10 + $0x364] ss:$16 sps:$4 sm:$0xff]  }
0x1d75   : > { %8474 = vmatprep.subr.bf16.mxu1 %v13403_v34  ;;  %8552 = vmatpush2.bf16.msra.mxu0 %v13416_v22 }
0x1d76   : > { %8553 = vmatprep.subr.bf16.mxu0 %v13424_v39  ;;  %v19107_v39 = vld [vmem:[#allocation23_spill] sm:$0xff] }
0x1d78   : > { %8475 = vmatpush2.bf16.msra.mxu1 %v13401_v32 }
0x1d79   : > { %8476 = vmatprep.subr.bf16.mxu1 %v13409_v58  ;;  %8554 = vmatpush2.bf16.msra.mxu0 %v13422_v49  ;;  %v19105_v58 = vld [vmem:[#allocation21_spill] sm:$0xff] }
0x1d7a   : > { %8555 = vmatprep.subr.bf16.mxu0 %v13430_v19 }
0x1d7c   : > { %8477 = vmatpush2.bf16.msra.mxu1 %v13407_v5 }
0x1d7d   : > { %8478 = vmatprep.subr.bf16.mxu1 %v13415_v62 }
0x1d80   : > { %8479 = vmatpush2.bf16.msra.mxu1 %v13413_v31  ;;  %v19106_v31 = vld [vmem:[#allocation22_spill] sm:$0xff] }
0x1d81   : > { %8480 = vmatprep.subr.bf16.mxu1 %v13421_v60 }
0x1d84   : > { %8481 = vmatpush2.bf16.msra.mxu1 %v13419_v38 }
0x1d85   : > { %8482 = vmatprep.subr.bf16.mxu1 %v13427_v20 }
0x1dd4   : > { %v7860_v40 = vpop.xlane.xlu0 %7859 }
0x1dd5   : > { %v7882_v63 = vmul.f32 0.00390625, %v7860_v40  ;;  %v13425_v40 = vld [vmem:[%s18916_s10 + $0x340] ss:$16 sps:$4 sm:$0xff]  }
0x1dd6   : > { %8483 = vmatpush2.bf16.msra.mxu1 %v13425_v40  ;;  %v19108_v40 = vld [vmem:[#allocation24_spill] sm:$0xff] }
0x1dd7   : > { %v17790_v61 = vsub.f32 %v17656_v8, %v7882_v63  ;;  %v17793_v54 = vsub.f32 %v17659_v37, %v7882_v63  ;;  %v13428_v63 = vld [vmem:[%s18916_s10 + $0x348] ss:$16 sps:$4 sm:$0xff]   ;;  %8484 = vmatprep.subr.bf16.mxu1 %v13433_v9 }
0x1dd8   : > { %v7863_v28 = vpop.xlane.xlu1 %7862  ;;  %8556 = vmatpush2.bf16.msra.mxu0 %v13428_v63  ;;  %v19109_v9 = vld [vmem:[#allocation25_spill] sm:$0xff] }
0x1dd9   : > { %v7906_v13 = vmul.f32 %v17790_v61, %v17790_v61  ;;  %v7907_v17 = vmul.f32 %v17793_v54, %v17793_v54  ;;  %v7883_v48 = vmul.f32 0.00390625, %v7863_v28  ;;  %8557 = vmatprep.subr.bf16.mxu0 %v13436_v59  ;;  %v13437_v28 = vld [vmem:[%s18916_s10 + $0x300] ss:$16 sps:$4 sm:$0xff]  }
0x1dda   : > { %8485 = vmatpush2.bf16.msra.mxu1 %v13431_v4 }
0x1ddb   : > { %v17806_v1 = vsub.f32 %v17667_v29, %v7883_v48  ;;  %v17809_v3 = vsub.f32 %v17670_v0, %v7883_v48  ;;  %v7922_v2 = vadd.f32 %v7907_v17, %v7906_v13  ;;  %v7864_v0 = vadd.f32 %v17802_v25, %v17812_v18  ;;  %v13442_v13 = vld [vmem:[%s18916_s10 + $0x30c] ss:$16 sps:$4 sm:$0xff]   ;;  %8486 = vmatprep.subr.bf16.mxu1 %v13439_v11 }
0x1ddc   : > { %8558 = vmatpush2.bf16.msra.mxu0 %v13434_v15 }
0x1ddd   : > { %v7908_v42 = vmul.f32 %v17806_v1, %v17806_v1  ;;  %v7909_v45 = vmul.f32 %v17809_v3, %v17809_v3  ;;  %7923 = vadd.xlane.f32.xlu0 %v7922_v2  ;;  %8559 = vmatprep.subr.bf16.mxu0 %v13442_v13 }
0x1dde   : > { %8487 = vmatpush2.bf16.msra.mxu1 %v13437_v28 }
0x1ddf   : > { %v7925_v29 = vadd.f32 %v7909_v45, %v7908_v42  ;;  %v19103_v42 = vld [vmem:[#allocation19_spill] sm:$0xff] }
0x1de0   : > { %8560 = vmatpush2.bf16.msra.mxu0 %v13440_v44 }
0x1de1   : > { %7926 = vadd.xlane.f32.xlu1 %v7925_v29  ;;  %7865 = vadd.xlane.f32.xlu0 %v7864_v0 }
0x1de5   : > { %7868 = vadd.xlane.f32.xlu1 %v7867_v12 }
0x1e15   : > { %v7774_v17 = vpop.f32.mrf.mxu0 }
0x1e16   : > { %v7801_v48 = vadd.f32 %v7774_v17, %v17589_v26 }
0x1e17   : > { %v7776_v51 = vpop.f32.mrf.mxu0 }
0x1e18   : > { %v7817_v2 = vadd.f32 %v7801_v48, %v19102_v33  ;;  %v7802_v16 = vadd.f32 %v7776_v51, %v17595_v7 }
0x1e19   : > { %v7778_v57 = vpop.f32.mrf.mxu0 }
0x1e1a   : > { %v7818_v45 = vadd.f32 %v7802_v16, %v19103_v42  ;;  %v7803_v29 = vadd.f32 %v7778_v57, %v17599_v50  ;;  %v17919_v12 = vadd.f32 %v17647_v41, %v7817_v2  ;;  %v6949_v50 = vadd.f32 %v17520_v36, %v17415_v27 }
0x1e1b   : > { %v7780_v0 = vpop.f32.mrf.mxu0 }
0x1e1c   : > { %v17922_v34 = vadd.f32 %v17651_v55, %v7818_v45  ;;  %v7819_v32 = vadd.f32 %v7803_v29, %v19104_v14  ;;  %v7804_v26 = vadd.f32 %v7780_v0, %v17603_v47 }
0x1e1d   : > { %v7784_v53 = vpop.f32.mrf.mxu0 }
0x1e1e   : > { %v7820_v30 = vadd.f32 %v7804_v26, %v19105_v58  ;;  %v7805_v7 = vadd.f32 %v7784_v53, %v17607_v6  ;;  %v7870_v5 = vadd.f32 %v17922_v34, %v17919_v12  ;;  %v17933_v62 = vadd.f32 %v17647_v41, %v7819_v32  ;;  %v11720_v32 = vld [vmem:[%s18914_s8 + $0x2] sm:$0x3] }
0x1e1f   : > { %v7786_v56 = vpop.f32.mrf.mxu0  ;;  %v7365_v6 = vadd.f32 %v17633_v35, %v6949_v50  ;;  %v11721_v53 = vld [vmem:[%s18915_s9 + $0x2] sm:$0x3] }
0x1e20   : > { %v17936_v24 = vadd.f32 %v17651_v55, %v7820_v30  ;;  %v7821_v47 = vadd.f32 %v7805_v7, %v19106_v31  ;;  %v7806_v22 = vadd.f32 %v7786_v56, %v17611_v21  ;;  %7871 = vadd.xlane.f32.xlu0 %v7870_v5  ;;  %v17995_v30 = vrot.slane %v11720_v32, %v14815_v43 }
0x1e21   : > { %v7788_v60 = vpop.f32.mrf.mxu0  ;;  %v17998_v5 = vrot.slane %v11721_v53, %v14818_v46  ;;  %v18001_v50 = vrot.slane %v11721_v53, %v14815_v43 }
0x1e22   : > { %v7822_v38 = vadd.f32 %v7806_v22, %v19107_v39  ;;  %v7807_v49 = vadd.f32 %v7788_v60, %v17613_v52  ;;  %v7873_v27 = vadd.f32 %v17936_v24, %v17933_v62  ;;  %v17946_v20 = vadd.f32 %v17647_v41, %v7821_v47 }
0x1e23   : > { %v7790_v36 = vpop.f32.mrf.mxu0 }
0x1e24   : > { %v17949_v19 = vadd.f32 %v17651_v55, %v7822_v38  ;;  %v7823_v21 = vadd.f32 %v7807_v49, %v19108_v40  ;;  %v7808_v63 = vadd.f32 %v7790_v36, %v7365_v6  ;;  %7874 = vadd.xlane.f32.xlu1 %v7873_v27  ;;  %v13446_v36 = vld [vmem:[%s18918_s12 + $0x370] ss:$8 sps:$4 sm:$0xff]   ;;  %v13448_v40 = vld [vmem:[%s18918_s12 + $0x374] ss:$8 sps:$4 sm:$0xff]  }
0x1e25   : > { %9222 = vmatprep.subr.bf16.mxu0 %v13448_v40  ;;  %v13482_v40 = vld [vmem:[%s18918_s12 + $0x310] ss:$8 sps:$4 sm:$0xff]  }
0x1e26   : > { %v7824_v35 = vadd.f32 %v7808_v63, %v19109_v9  ;;  %v7876_v59 = vadd.f32 %v17949_v19, %v17946_v20  ;;  %v17956_v52 = vadd.f32 %v17647_v41, %v7823_v21  ;;  %v13451_v21 = vld [vmem:[%s18918_s12 + $0x264] ss:$8 sps:$4 sm:$0xff]   ;;  %v13449_v9 = vld [vmem:[%s18918_s12 + $0x260] ss:$8 sps:$4 sm:$0xff]  }
0x1e27   : > { %v13454_v63 = vld [vmem:[%s18918_s12 + $0x364] ss:$8 sps:$4 sm:$0xff]  }
0x1e28   : > { %v17959_v4 = vadd.f32 %v17651_v55, %v7824_v35  ;;  %7877 = vadd.xlane.f32.xlu0 %v7876_v59  ;;  %v13452_v35 = vld [vmem:[%s18918_s12 + $0x360] ss:$8 sps:$4 sm:$0xff]   ;;  %v13457_v59 = vld [vmem:[%s18918_s12 + $0x254] ss:$8 sps:$4 sm:$0xff]  }
0x1e2a   : > { %v7879_v15 = vadd.f32 %v17959_v4, %v17956_v52 }
0x1e2c   : > { %7880 = vadd.xlane.f32.xlu1 %v7879_v15  ;;  %v13460_v15 = vld [vmem:[%s18918_s12 + $0x354] ss:$8 sps:$4 sm:$0xff]  }
0x1e66   : > { %v7924_v11 = vpop.xlane.xlu0 %7923 }
0x1e67   : > { %v7946_v28 = vmul.f32 0.00390625, %v7924_v11  ;;  %v13455_v11 = vld [vmem:[%s18918_s12 + $0x250] ss:$8 sps:$4 sm:$0xff]  }
0x1e69   : > { %v7954_v44 = vadd.f32 1e-05, %v7946_v28  ;;  %v13458_v28 = vld [vmem:[%s18918_s12 + $0x350] ss:$8 sps:$4 sm:$0xff]  }
0x1e6a   : > { %v7927_v13 = vpop.xlane.xlu1 %7926  ;;  %v7866_v17 = vpop.xlane.xlu0 %7865 }
0x1e6b   : > { %13971 = vrsqrt.f32 %v7954_v44  ;;  %v7947_v48 = vmul.f32 0.00390625, %v7927_v13  ;;  %v7884_v51 = vmul.f32 0.00390625, %v7866_v17  ;;  %v13463_v44 = vld [vmem:[%s18918_s12 + $0x244] ss:$8 sps:$4 sm:$0xff]   ;;  %v13461_v17 = vld [vmem:[%s18918_s12 + $0x240] ss:$8 sps:$4 sm:$0xff]  }
0x1e6c   : > { %v13466_v13 = vld [vmem:[%s18918_s12 + $0x344] ss:$8 sps:$4 sm:$0xff]  }
0x1e6d   : > { %v7955_v33 = vadd.f32 1e-05, %v7947_v48  ;;  %v17964_v41 = vsub.f32 %v17812_v18, %v7884_v51  ;;  %v17967_v55 = vsub.f32 %v17802_v25, %v7884_v51  ;;  %v13464_v48 = vld [vmem:[%s18918_s12 + $0x340] ss:$8 sps:$4 sm:$0xff]   ;;  %v13469_v51 = vld [vmem:[%s18918_s12 + $0x234] ss:$8 sps:$4 sm:$0xff]  }
0x1e6e   : > { %v7869_v2 = vpop.xlane.xlu1 %7868 }
0x1e6f   : > { %13973 = vrsqrt.f32 %v7955_v33  ;;  %v7910_v16 = vmul.f32 %v17964_v41, %v17964_v41  ;;  %v7911_v57 = vmul.f32 %v17967_v55, %v17967_v55  ;;  %v7885_v42 = vmul.f32 0.00390625, %v7869_v2  ;;  %v13472_v33 = vld [vmem:[%s18918_s12 + $0x334] ss:$8 sps:$4 sm:$0xff]  }
0x1e71   : > { %v17974_v45 = vsub.f32 %v17825_v10, %v7885_v42  ;;  %v17977_v29 = vsub.f32 %v17820_v23, %v7885_v42  ;;  %v7928_v18 = vadd.f32 %v7911_v57, %v7910_v16  ;;  %v17987_v10 = vrot.slane %v11720_v32, %v14818_v46  ;;  %v13467_v57 = vld [vmem:[%s18918_s12 + $0x230] ss:$8 sps:$4 sm:$0xff]  }
0x1e72   : > { %v13470_v42 = vld [vmem:[%s18918_s12 + $0x330] ss:$8 sps:$4 sm:$0xff]  }
0x1e73   : > { %v7912_v25 = vmul.f32 %v17974_v45, %v17974_v45  ;;  %v7913_v0 = vmul.f32 %v17977_v29, %v17977_v29  ;;  %7929 = vadd.xlane.f32.xlu0 %v7928_v18 }
0x1e75   : > { %v7931_v14 = vadd.f32 %v7913_v0, %v7912_v25 }
0x1e77   : > { %7932 = vadd.xlane.f32.xlu1 %v7931_v14 }
0x1e78   : > { %v13972_v26 = vpop.eup %13971 }
0x1e79   : > { %v7970_v23 = vmul.f32 %v13972_v26, %v17790_v61  ;;  %v7971_v58 = vmul.f32 %v13972_v26, %v17793_v54 }
0x1e7b   : > { %v7997_v56 = vmul.f32 %v17987_v10, %v7970_v23  ;;  %v7998_v47 = vmul.f32 %v17995_v30, %v7971_v58 }
0x1e7c   : > { %v13974_v7 = vpop.eup %13973 }
0x1e7d   : > { %v7972_v61 = vmul.f32 %v13974_v7, %v17806_v1  ;;  %v7973_v31 = vmul.f32 %v13974_v7, %v17809_v3  ;;  %v8025_v60 = vadd.f32 %v18001_v50, %v7998_v47  ;;  %v8024_v39 = vadd.f32 %v17998_v5, %v7997_v56  ;;  %v13443_v1 = vld [vmem:[%s18918_s12 + $0x270] ss:$8 sps:$4 sm:$0xff]   ;;  %v13445_v3 = vld [vmem:[%s18918_s12 + $0x274] ss:$8 sps:$4 sm:$0xff]  }
0x1e7e   : > { %9163 = vmatprep.subr.bf16.mxu1 %v13445_v3  ;;  %v13484_v3 = vld [vmem:[%s18918_s12 + $0x314] ss:$8 sps:$4 sm:$0xff]  }
0x1e7f   : > { %v7999_v54 = vmul.f32 %v17987_v10, %v7972_v61  ;;  %v8000_v22 = vmul.f32 %v17995_v30, %v7973_v31 }
0x1e81   : > { %v8027_v6 = vadd.f32 %v18001_v50, %v8000_v22  ;;  %v8026_v38 = vadd.f32 %v17998_v5, %v7999_v54 }
0x1e83   : > { %v8041_v49 = vpack.c.bf16 %v8027_v6, %v8025_v60  ;;  %v8040_v27 = vpack.c.bf16 %v8026_v38, %v8024_v39 }
0x1e85   : > { %8488 = vmatprep.mubr.bf16.mxu1 %v8041_v49  ;;  %8561 = vmatprep.mubr.bf16.mxu0 %v8041_v49  ;;  %v13475_v49 = vld [vmem:[%s18918_s12 + $0x224] ss:$8 sps:$4 sm:$0xff]  }
0x1e86   : > { %8489 = vmatmul.mubr.bf16.vlgmr.msra.gmra.mxu1 %v8040_v27  ;;  %8562 = vmatmul.mubr.bf16.vlgmr.msra.gmra.mxu0 %v8040_v27  ;;  %v13476_v27 = vld [vmem:[%s18918_s12 + $0x320] ss:$8 sps:$4 sm:$0xff]  }
0x1e87   : > { %9164 = vmatpush1.bf16.msra.mxu1 %v13443_v1  ;;  %9223 = vmatpush1.bf16.msra.mxu0 %v13446_v36  ;;  %v13481_v1 = vld [vmem:[%s18918_s12 + $0x214] ss:$8 sps:$4 sm:$0xff]   ;;  %v13479_v36 = vld [vmem:[%s18918_s12 + $0x210] ss:$8 sps:$4 sm:$0xff]  }
0x1e88   : > { %9165 = vmatprep.subr.bf16.mxu1 %v13451_v21  ;;  %9224 = vmatprep.subr.bf16.mxu0 %v13454_v63  ;;  %v13487_v21 = vld [vmem:[%s18918_s12 + $0x204] ss:$8 sps:$4 sm:$0xff]  }
0x1e89   : > { %v13490_v63 = vld [vmem:[%s18918_s12 + $0x304] ss:$8 sps:$4 sm:$0xff]  }
0x1e8b   : > { %9166 = vmatpush1.bf16.msra.mxu1 %v13449_v9  ;;  %9225 = vmatpush1.bf16.msra.mxu0 %v13452_v35  ;;  %v13485_v9 = vld [vmem:[%s18918_s12 + $0x200] ss:$8 sps:$4 sm:$0xff]  }
0x1e8c   : > { %9167 = vmatprep.subr.bf16.mxu1 %v13457_v59  ;;  %9226 = vmatprep.subr.bf16.mxu0 %v13460_v15  ;;  %v13488_v35 = vld [vmem:[%s18918_s12 + $0x300] ss:$8 sps:$4 sm:$0xff]   ;;  %v13493_v59 = vld [vmem:[%s18918_s12 + $0x2f4] ss:$8 sps:$4 sm:$0xff]  }
0x1e8d   : > { %v13496_v15 = vld [vmem:[%s18918_s12 + $0x3f4] ss:$8 sps:$4 sm:$0xff]  }
0x1e8f   : > { %9168 = vmatpush1.bf16.msra.mxu1 %v13455_v11  ;;  %9227 = vmatpush1.bf16.msra.mxu0 %v13458_v28  ;;  %v13491_v11 = vld [vmem:[%s18918_s12 + $0x2f0] ss:$8 sps:$4 sm:$0xff]  }
0x1e90   : > { %9169 = vmatprep.subr.bf16.mxu1 %v13463_v44  ;;  %9228 = vmatprep.subr.bf16.mxu0 %v13466_v13  ;;  %v13494_v28 = vld [vmem:[%s18918_s12 + $0x3f0] ss:$8 sps:$4 sm:$0xff]   ;;  %v13499_v44 = vld [vmem:[%s18918_s12 + $0x2e4] ss:$8 sps:$4 sm:$0xff]  }
0x1e91   : > { %v13502_v13 = vld [vmem:[%s18918_s12 + $0x3e4] ss:$8 sps:$4 sm:$0xff]  }
0x1e93   : > { %9170 = vmatpush1.bf16.msra.mxu1 %v13461_v17  ;;  %9229 = vmatpush1.bf16.msra.mxu0 %v13464_v48  ;;  %v13497_v17 = vld [vmem:[%s18918_s12 + $0x2e0] ss:$8 sps:$4 sm:$0xff]  }
0x1e94   : > { %9171 = vmatprep.subr.bf16.mxu1 %v13469_v51  ;;  %9230 = vmatprep.subr.bf16.mxu0 %v13472_v33  ;;  %v13500_v48 = vld [vmem:[%s18918_s12 + $0x3e0] ss:$8 sps:$4 sm:$0xff]   ;;  %v13505_v51 = vld [vmem:[%s18918_s12 + $0x2d4] ss:$8 sps:$4 sm:$0xff]  }
0x1e95   : > { %v13508_v33 = vld [vmem:[%s18918_s12 + $0x3d4] ss:$8 sps:$4 sm:$0xff]  }
0x1e97   : > { %9172 = vmatpush1.bf16.msra.mxu1 %v13467_v57  ;;  %9231 = vmatpush1.bf16.msra.mxu0 %v13470_v42  ;;  %v13511_v57 = vld [vmem:[%s18918_s12 + $0x2c4] ss:$8 sps:$4 sm:$0xff]  }
0x1e98   : > { %9173 = vmatprep.subr.bf16.mxu1 %v13475_v49  ;;  %v13514_v42 = vld [vmem:[%s18918_s12 + $0x3c4] ss:$8 sps:$4 sm:$0xff]  }
0x1ea9   : > { %v7872_v2 = vpop.xlane.xlu0 %7871 }
0x1eaa   : > { %v7886_v16 = vmul.f32 0.00390625, %v7872_v2  ;;  %v13503_v2 = vld [vmem:[%s18918_s12 + $0x2d0] ss:$8 sps:$4 sm:$0xff]  }
0x1eac   : > { %v18074_v18 = vsub.f32 %v17919_v12, %v7886_v16  ;;  %v18077_v25 = vsub.f32 %v17922_v34, %v7886_v16  ;;  %v13506_v16 = vld [vmem:[%s18918_s12 + $0x3d0] ss:$8 sps:$4 sm:$0xff]  }
0x1ead   : > { %v7875_v0 = vpop.xlane.xlu1 %7874 }
0x1eae   : > { %v7914_v14 = vmul.f32 %v18074_v18, %v18074_v18  ;;  %v7915_v32 = vmul.f32 %v18077_v25, %v18077_v25  ;;  %v7887_v26 = vmul.f32 0.00390625, %v7875_v0  ;;  %v13509_v0 = vld [vmem:[%s18918_s12 + $0x2c0] ss:$8 sps:$4 sm:$0xff]  }
0x1eb0   : > { %v18084_v23 = vsub.f32 %v17933_v62, %v7887_v26  ;;  %v18087_v12 = vsub.f32 %v17936_v24, %v7887_v26  ;;  %v7934_v53 = vadd.f32 %v7915_v32, %v7914_v14  ;;  %v13512_v14 = vld [vmem:[%s18918_s12 + $0x3c0] ss:$8 sps:$4 sm:$0xff]   ;;  %v13517_v32 = vld [vmem:[%s18918_s12 + $0x2b4] ss:$8 sps:$4 sm:$0xff]  }
0x1eb1   : > { %v7878_v34 = vpop.xlane.xlu0 %7877  ;;  %v13520_v26 = vld [vmem:[%s18918_s12 + $0x3b4] ss:$8 sps:$4 sm:$0xff]  }
0x1eb2   : > { %v7916_v58 = vmul.f32 %v18084_v23, %v18084_v23  ;;  %v7917_v7 = vmul.f32 %v18087_v12, %v18087_v12  ;;  %v7888_v56 = vmul.f32 0.00390625, %v7878_v34  ;;  %7935 = vadd.xlane.f32.xlu0 %v7934_v53  ;;  %v13515_v53 = vld [vmem:[%s18918_s12 + $0x2b0] ss:$8 sps:$4 sm:$0xff]  }
0x1eb3   : > { %v13518_v34 = vld [vmem:[%s18918_s12 + $0x3b0] ss:$8 sps:$4 sm:$0xff]  }
0x1eb4   : > { %v18094_v61 = vsub.f32 %v17946_v20, %v7888_v56  ;;  %v18097_v31 = vsub.f32 %v17949_v19, %v7888_v56  ;;  %v7937_v62 = vadd.f32 %v7917_v7, %v7916_v58  ;;  %v13523_v58 = vld [vmem:[%s18918_s12 + $0x2a4] ss:$8 sps:$4 sm:$0xff]   ;;  %v13521_v56 = vld [vmem:[%s18918_s12 + $0x2a0] ss:$8 sps:$4 sm:$0xff]  }
0x1eb5   : > { %v7881_v47 = vpop.xlane.xlu1 %7880  ;;  %v13526_v7 = vld [vmem:[%s18918_s12 + $0x3a4] ss:$8 sps:$4 sm:$0xff]  }
0x1eb6   : > { %v7918_v24 = vmul.f32 %v18094_v61, %v18094_v61  ;;  %v7919_v54 = vmul.f32 %v18097_v31, %v18097_v31  ;;  %v7889_v22 = vmul.f32 0.00390625, %v7881_v47  ;;  %7938 = vadd.xlane.f32.xlu1 %v7937_v62  ;;  %v13524_v62 = vld [vmem:[%s18918_s12 + $0x3a0] ss:$8 sps:$4 sm:$0xff]   ;;  %v13529_v47 = vld [vmem:[%s18918_s12 + $0x294] ss:$8 sps:$4 sm:$0xff]  }
0x1eb8   : > { %v18104_v60 = vsub.f32 %v17956_v52, %v7889_v22  ;;  %v18107_v6 = vsub.f32 %v17959_v4, %v7889_v22  ;;  %v7940_v20 = vadd.f32 %v7919_v54, %v7918_v24  ;;  %v13478_v52 = vld [vmem:[%s18918_s12 + $0x324] ss:$8 sps:$4 sm:$0xff]   ;;  %v13473_v4 = vld [vmem:[%s18918_s12 + $0x220] ss:$8 sps:$4 sm:$0xff]   ;;  %v13532_v24 = vld [vmem:[%s18918_s12 + $0x394] ss:$8 sps:$4 sm:$0xff]  }
0x1eb9   : > { %9232 = vmatprep.subr.bf16.mxu0 %v13478_v52  ;;  %9174 = vmatpush1.bf16.msra.mxu1 %v13473_v4  ;;  %v13527_v54 = vld [vmem:[%s18918_s12 + $0x290] ss:$8 sps:$4 sm:$0xff]  }
0x1eba   : > { %v7920_v19 = vmul.f32 %v18104_v60, %v18104_v60  ;;  %v7921_v39 = vmul.f32 %v18107_v6, %v18107_v6  ;;  %7941 = vadd.xlane.f32.xlu0 %v7940_v20  ;;  %9233 = vmatpush1.bf16.msra.mxu0 %v13476_v27  ;;  %v13530_v22 = vld [vmem:[%s18918_s12 + $0x390] ss:$8 sps:$4 sm:$0xff]   ;;  %v13533_v20 = vld [vmem:[%s18918_s12 + $0x280] ss:$8 sps:$4 sm:$0xff]  }
0x1ebb   : > { %9175 = vmatprep.subr.bf16.mxu1 %v13481_v1  ;;  %9234 = vmatprep.subr.bf16.mxu0 %v13484_v3 }
0x1ebc   : > { %v7943_v38 = vadd.f32 %v7921_v39, %v7920_v19  ;;  %v13535_v19 = vld [vmem:[%s18918_s12 + $0x284] ss:$8 sps:$4 sm:$0xff]   ;;  %v13536_v39 = vld [vmem:[%s18918_s12 + $0x380] ss:$8 sps:$4 sm:$0xff]  }
0x1ebd   : > { %9176 = vmatpush1.bf16.msra.mxu1 %v13479_v36 }
0x1ebe   : > { %7944 = vadd.xlane.f32.xlu1 %v7943_v38  ;;  %9235 = vmatpush1.bf16.msra.mxu0 %v13482_v40  ;;  %v13538_v38 = vld [vmem:[%s18918_s12 + $0x384] ss:$8 sps:$4 sm:$0xff]  }
0x1ebf   : > { %9177 = vmatprep.subr.bf16.mxu1 %v13487_v21  ;;  %9236 = vmatprep.subr.bf16.mxu0 %v13490_v63 }
0x1ec1   : > { %9178 = vmatpush1.bf16.msra.mxu1 %v13485_v9 }
0x1ec2   : > { %9237 = vmatpush1.bf16.msra.mxu0 %v13488_v35  ;;  %9179 = vmatprep.subr.bf16.mxu1 %v13493_v59 }
0x1ec3   : > { %9238 = vmatprep.subr.bf16.mxu0 %v13496_v15 }
0x1ec5   : > { %9180 = vmatpush2.bf16.msra.mxu1 %v13491_v11 }
0x1ec6   : > { %9239 = vmatpush2.bf16.msra.mxu0 %v13494_v28  ;;  %9181 = vmatprep.subr.bf16.mxu1 %v13499_v44 }
0x1ec7   : > { %9240 = vmatprep.subr.bf16.mxu0 %v13502_v13 }
0x1ec9   : > { %9182 = vmatpush2.bf16.msra.mxu1 %v13497_v17 }
0x1eca   : > { %9241 = vmatpush2.bf16.msra.mxu0 %v13500_v48  ;;  %9183 = vmatprep.subr.bf16.mxu1 %v13505_v51 }
0x1ecb   : > { %9242 = vmatprep.subr.bf16.mxu0 %v13508_v33 }
0x1ecd   : > { %9184 = vmatpush2.bf16.msra.mxu1 %v13503_v2  ;;  %v11786_v2 = vld [vmem:[%s18917_s11 + $0x4] sm:$0xf] }
0x1ece   : > { %9243 = vmatpush2.bf16.msra.mxu0 %v13506_v16  ;;  %9185 = vmatprep.subr.bf16.mxu1 %v13511_v57 }
0x1ecf   : > { %9244 = vmatprep.subr.bf16.mxu0 %v13514_v42  ;;  %v18261_v42 = vrot.slane %v11786_v2, %v14818_v46 }
0x1ed1   : > { %9186 = vmatpush2.bf16.msra.mxu1 %v13509_v0 }
0x1ed2   : > { %9245 = vmatpush2.bf16.msra.mxu0 %v13512_v14  ;;  %9187 = vmatprep.subr.bf16.mxu1 %v13517_v32 }
0x1ed3   : > { %9246 = vmatprep.subr.bf16.mxu0 %v13520_v26 }
0x1ed5   : > { %9188 = vmatpush2.bf16.msra.mxu1 %v13515_v53  ;;  %v18264_v53 = vrot.slane %v11786_v2, %v14815_v43 }
0x1ed6   : > { %9247 = vmatpush2.bf16.msra.mxu0 %v13518_v34  ;;  %9189 = vmatprep.subr.bf16.mxu1 %v13523_v58  ;;  %v19110_v34 = vld [vmem:[#allocation27_spill] sm:$0xff] }
0x1ed7   : > { %9248 = vmatprep.subr.bf16.mxu0 %v13526_v7  ;;  %v18267_v58 = vrot.slane %v11786_v2, %v19110_v34 }
0x1ed9   : > { %9190 = vmatpush2.bf16.msra.mxu1 %v13521_v56 }
0x1eda   : > { %9249 = vmatpush2.bf16.msra.mxu0 %v13524_v62  ;;  %9191 = vmatprep.subr.bf16.mxu1 %v13529_v47 }
0x1edb   : > { %9250 = vmatprep.subr.bf16.mxu0 %v13532_v24 }
0x1edd   : > { %9192 = vmatpush2.bf16.msra.mxu1 %v13527_v54  ;;  %v19111_v54 = vld [vmem:[#allocation26_spill] sm:$0xff] }
0x1ede   : > { %9251 = vmatpush2.bf16.msra.mxu0 %v13530_v22  ;;  %9193 = vmatprep.subr.bf16.mxu1 %v13535_v19  ;;  %v18274_v22 = vrot.slane %v11786_v2, %v19111_v54 }
0x1edf   : > { %9252 = vmatprep.subr.bf16.mxu0 %v13538_v38 }
0x1ee1   : > { %9194 = vmatpush2.bf16.msra.mxu1 %v13533_v20 }
0x1ee2   : > { %9253 = vmatpush2.bf16.msra.mxu0 %v13536_v39 }
0x1efc   : > { %v7930_v49 = vpop.xlane.xlu0 %7929 }
0x1efd   : > { %v7948_v52 = vmul.f32 0.00390625, %v7930_v49 }
0x1eff   : > { %v7956_v4 = vadd.f32 1e-05, %v7948_v52 }
0x1f00   : > { %v7933_v27 = vpop.xlane.xlu1 %7932 }
0x1f01   : > { %13975 = vrsqrt.f32 %v7956_v4  ;;  %v7949_v1 = vmul.f32 0.00390625, %v7933_v27 }
0x1f03   : > { %v7957_v3 = vadd.f32 1e-05, %v7949_v1 }
0x1f05   : > { %13977 = vrsqrt.f32 %v7957_v3 }
0x1f0e   : > { %v13976_v36 = vpop.eup %13975 }
0x1f0f   : > { %v7975_v40 = vmul.f32 %v13976_v36, %v17967_v55  ;;  %v7974_v21 = vmul.f32 %v13976_v36, %v17964_v41 }
0x1f11   : > { %v8002_v35 = vmul.f32 %v17995_v30, %v7975_v40  ;;  %v8001_v15 = vmul.f32 %v17987_v10, %v7974_v21 }
0x1f12   : > { %v13978_v63 = vpop.eup %13977 }
0x1f13   : > { %v7977_v9 = vmul.f32 %v13978_v63, %v17977_v29  ;;  %v7976_v59 = vmul.f32 %v13978_v63, %v17974_v45  ;;  %v8029_v44 = vadd.f32 %v18001_v50, %v8002_v35  ;;  %v8028_v55 = vadd.f32 %v17998_v5, %v8001_v15 }
0x1f15   : > { %v8004_v11 = vmul.f32 %v17995_v30, %v7977_v9  ;;  %v8003_v28 = vmul.f32 %v17987_v10, %v7976_v59 }
0x1f17   : > { %v8031_v13 = vadd.f32 %v18001_v50, %v8004_v11  ;;  %v8030_v41 = vadd.f32 %v17998_v5, %v8003_v28 }
0x1f19   : > { %v8043_v17 = vpack.c.bf16 %v8031_v13, %v8029_v44  ;;  %v8042_v29 = vpack.c.bf16 %v8030_v41, %v8028_v55 }
0x1f1b   : > { %8498 = vmatprep.mubr.bf16.mxu1 %v8043_v17  ;;  %8571 = vmatprep.mubr.bf16.mxu0 %v8043_v17 }
0x1f1c   : > { %8499 = vmatmul.mubr.bf16.gmra.mxu1 %v8042_v29  ;;  %8572 = vmatmul.mubr.bf16.gmra.mxu0 %v8042_v29 }
0x1f3b   : > { %v7936_v45 = vpop.xlane.xlu0 %7935 }
0x1f3c   : > { %v7950_v48 = vmul.f32 0.00390625, %v7936_v45 }
0x1f3e   : > { %v7958_v51 = vadd.f32 1e-05, %v7950_v48 }
0x1f3f   : > { %v7939_v33 = vpop.xlane.xlu1 %7938 }
0x1f40   : > { %13979 = vrsqrt.f32 %v7958_v51  ;;  %v7951_v16 = vmul.f32 0.00390625, %v7939_v33 }
0x1f42   : > { %v7959_v57 = vadd.f32 1e-05, %v7951_v16 }
0x1f43   : > { %v7942_v0 = vpop.xlane.xlu0 %7941 }
0x1f44   : > { %13981 = vrsqrt.f32 %v7959_v57  ;;  %v7952_v14 = vmul.f32 0.00390625, %v7942_v0 }
0x1f46   : > { %v8490_v32 = vpop.f32.mrf.mxu1  ;;  %v8563_v26 = vpop.f32.mrf.mxu0  ;;  %v7960_v7 = vadd.f32 1e-05, %v7952_v14 }
0x1f47   : > { %v18270_v56 = vadd.f32 %v8490_v32, %v18261_v42  ;;  %v7945_v62 = vpop.xlane.xlu1 %7944  ;;  %v18287_v36 = vadd.f32 %v8563_v26, %v18274_v22 }
0x1f48   : > { %v8492_v47 = vpop.f32.mrf.mxu1  ;;  %13983 = vrsqrt.f32 %v7960_v7  ;;  %v8565_v20 = vpop.f32.mrf.mxu0  ;;  %v7953_v19 = vmul.f32 0.00390625, %v7945_v62 }
0x1f49   : > { %v8634_v24 = vmul.f32 0.70710677, %v18270_v56  ;;  %v18277_v39 = vadd.f32 %v8492_v47, %v18264_v53  ;;  %v18280_v38 = vadd.f32 %v8565_v20, %v18267_v58  ;;  %v8636_v13 = vmul.f32 0.70710677, %v18287_v36 }
0x1f4a   : > { %v8494_v49 = vpop.f32.mrf.mxu1  ;;  %v8567_v4 = vpop.f32.mrf.mxu0  ;;  %v7961_v27 = vadd.f32 1e-05, %v7953_v19 }
0x1f4b   : > { %v18283_v52 = vadd.f32 %v8494_v49, %v18261_v42  ;;  %v8635_v1 = vmul.f32 0.70710677, %v18277_v39  ;;  %13985 = verf.f32 %v8634_v24  ;;  %v8637_v40 = vmul.f32 0.70710677, %v18280_v38 }
0x1f4c   : > { %v8496_v3 = vpop.f32.mrf.mxu1  ;;  %v8569_v63 = vpop.f32.mrf.mxu0  ;;  %13987 = vrsqrt.f32 %v7961_v27  ;;  %v18292_v35 = vadd.f32 %v8567_v4, %v18274_v22 }
0x1f4d   : > { %v8638_v21 = vmul.f32 0.70710677, %v18283_v52  ;;  %v13980_v9 = vpop.eup %13979  ;;  %v8497_v59 = vadd.f32 %v8496_v3, %v18264_v53  ;;  %v8570_v15 = vadd.f32 %v8569_v63, %v18267_v58  ;;  %13989 = verf.f32 %v8635_v1 }
0x1f4e   : > { %v7979_v11 = vmul.f32 %v13980_v9, %v18077_v25  ;;  %v7978_v28 = vmul.f32 %v13980_v9, %v18074_v18  ;;  %13991 = verf.f32 %v8637_v40  ;;  %v8640_v44 = vmul.f32 0.70710677, %v18292_v35 }
0x1f4f   : > { %13993 = verf.f32 %v8638_v21  ;;  %v8639_v55 = vmul.f32 0.70710677, %v8497_v59  ;;  %v8641_v41 = vmul.f32 0.70710677, %v8570_v15 }
0x1f50   : > { %13995 = verf.f32 %v8640_v44  ;;  %v8006_v29 = vmul.f32 %v17995_v30, %v7979_v11  ;;  %v8005_v25 = vmul.f32 %v17987_v10, %v7978_v28  ;;  %v8603_v11 = vmul.f32 0.5, %v18277_v39 }
0x1f51   : > { %v13982_v17 = vpop.eup %13981  ;;  %13997 = verf.f32 %v8639_v55  ;;  %v8605_v28 = vmul.f32 0.5, %v18280_v38  ;;  %v8608_v38 = vmul.f32 0.5, %v18292_v35 }
0x1f52   : > { %v7981_v45 = vmul.f32 %v13982_v17, %v18087_v12  ;;  %v7980_v48 = vmul.f32 %v13982_v17, %v18084_v23  ;;  %13999 = verf.f32 %v8641_v41  ;;  %v8033_v2 = vadd.f32 %v18001_v50, %v8006_v29 }
0x1f53   : > { %14001 = verf.f32 %v8636_v13  ;;  %v8032_v57 = vadd.f32 %v17998_v5, %v8005_v25  ;;  %v8609_v13 = vmul.f32 0.5, %v8570_v15 }
0x1f54   : > { %v8008_v18 = vmul.f32 %v17995_v30, %v7981_v45  ;;  %v8007_v51 = vmul.f32 %v17987_v10, %v7980_v48 }
0x1f55   : > { %v13984_v33 = vpop.eup %13983 }
0x1f56   : > { %v8035_v16 = vadd.f32 %v18001_v50, %v8008_v18  ;;  %v8034_v0 = vadd.f32 %v17998_v5, %v8007_v51  ;;  %v7983_v12 = vmul.f32 %v13984_v33, %v18097_v31  ;;  %v7982_v23 = vmul.f32 %v13984_v33, %v18094_v61 }
0x1f57   : > { %v8606_v18 = vmul.f32 0.5, %v18283_v52  ;;  %v8602_v33 = vmul.f32 0.5, %v18270_v56 }
0x1f58   : > { %v8045_v14 = vpack.c.bf16 %v8035_v16, %v8033_v2  ;;  %v8044_v32 = vpack.c.bf16 %v8034_v0, %v8032_v57  ;;  %v13986_v26 = vpop.eup %13985  ;;  %v8010_v62 = vmul.f32 %v17995_v30, %v7983_v12  ;;  %v8009_v19 = vmul.f32 %v17987_v10, %v7982_v23 }
0x1f59   : > { %v13988_v7 = vpop.eup %13987  ;;  %v8698_v39 = vadd.f32 1.0, %v13986_v26  ;;  %v8604_v2 = vmul.f32 0.5, %v18287_v36 }
0x1f5a   : > { %8508 = vmatprep.mubr.bf16.mxu1 %v8045_v14  ;;  %8581 = vmatprep.mubr.bf16.mxu0 %v8045_v14  ;;  %v13990_v47 = vpop.eup %13989  ;;  %v7985_v24 = vmul.f32 %v13988_v7, %v18107_v6  ;;  %v7984_v20 = vmul.f32 %v13988_v7, %v18104_v60  ;;  %v8037_v3 = vadd.f32 %v18001_v50, %v8010_v62 }
0x1f5b   : > { %8509 = vmatmul.mubr.bf16.gmra.mxu1 %v8044_v32  ;;  %8582 = vmatmul.mubr.bf16.gmra.mxu0 %v8044_v32  ;;  %v13992_v31 = vpop.eup %13991  ;;  %v8699_v1 = vadd.f32 1.0, %v13990_v47  ;;  %v8036_v6 = vadd.f32 %v17998_v5, %v8009_v19  ;;  %v8730_v52 = vmul.f32 %v8698_v39, %v8602_v33 }
0x1f5c   : > { %v13994_v49 = vpop.eup %13993  ;;  %v8012_v61 = vmul.f32 %v17995_v30, %v7985_v24  ;;  %v8011_v4 = vmul.f32 %v17987_v10, %v7984_v20  ;;  %v8701_v21 = vadd.f32 1.0, %v13992_v31  ;;  %v8607_v30 = vmul.f32 0.5, %v8497_v59 }
0x1f5d   : > { %v13996_v27 = vpop.eup %13995  ;;  %v8731_v29 = vmul.f32 %v8699_v1, %v8603_v11  ;;  %v8702_v45 = vadd.f32 1.0, %v13994_v49 }
0x1f5e   : > { %v13998_v40 = vpop.eup %13997  ;;  %v8039_v63 = vadd.f32 %v18001_v50, %v8012_v61  ;;  %v8038_v60 = vadd.f32 %v17998_v5, %v8011_v4  ;;  %v8704_v48 = vadd.f32 1.0, %v13996_v27  ;;  %v8733_v25 = vmul.f32 %v8701_v21, %v8605_v28 }
0x1f5f   : > { %v14000_v9 = vpop.eup %13999  ;;  %v8703_v44 = vadd.f32 1.0, %v13998_v40  ;;  %v8734_v16 = vmul.f32 %v8702_v45, %v8606_v18 }
0x1f60   : > { %v14002_v10 = vpop.eup %14001  ;;  %v8705_v55 = vadd.f32 1.0, %v14000_v9  ;;  %v8047_v41 = vpack.c.bf16 %v8039_v63, %v8037_v3  ;;  %v8046_v17 = vpack.c.bf16 %v8038_v60, %v8036_v6  ;;  %v8736_v57 = vmul.f32 %v8704_v48, %v8608_v38 }
0x1f61   : > { %v8735_v50 = vmul.f32 %v8703_v44, %v8607_v30  ;;  %v8700_v51 = vadd.f32 1.0, %v14002_v10  ;;  %v8762_v12 = vpack.c.bf16 %v8734_v16, %v8730_v52 }
0x1f62   : > { %v8737_v5 = vmul.f32 %v8705_v55, %v8609_v13  ;;  %8518 = vmatprep.mubr.bf16.mxu1 %v8047_v41  ;;  %8591 = vmatprep.mubr.bf16.mxu0 %v8047_v41 }
0x1f63   : > { %8519 = vmatmul.mubr.bf16.gmra.mxu1 %v8046_v17  ;;  %8592 = vmatmul.mubr.bf16.gmra.mxu0 %v8046_v17  ;;  %v8763_v59 = vpack.c.bf16 %v8735_v50, %v8731_v29  ;;  %v8732_v0 = vmul.f32 %v8700_v51, %v8604_v2 }
0x1f64   : > { %v8765_v15 = vpack.c.bf16 %v8737_v5, %v8733_v25 }
0x1f65   : > { %9195 = vmatprep.mubr.bf16.mxu1 %v8763_v59  ;;  %v8764_v23 = vpack.c.bf16 %v8736_v57, %v8732_v0 }
0x1f66   : > { %9254 = vmatprep.mubr.bf16.mxu0 %v8765_v15 }
0x1f6b   : > { %9196 = vmatmul.mubr.bf16.vlgmr.msra.gmra.mxu1 %v8762_v12  ;;  %9255 = vmatmul.mubr.bf16.vlgmr.msra.gmra.mxu0 %v8764_v23 }
0x1fdc   : > { %v8500_v14 = vpop.f32.mrf.mxu1  ;;  %v8573_v35 = vpop.f32.mrf.mxu0 }
0x1fdd   : > { %v8501_v32 = vadd.f32 %v8500_v14, %v18261_v42  ;;  %v8574_v26 = vadd.f32 %v8573_v35, %v18274_v22 }
0x1fde   : > { %v8502_v7 = vpop.f32.mrf.mxu1  ;;  %v8575_v56 = vpop.f32.mrf.mxu0 }
0x1fdf   : > { %v8642_v62 = vmul.f32 0.70710677, %v8501_v32  ;;  %v8644_v36 = vmul.f32 0.70710677, %v8574_v26  ;;  %v8503_v47 = vadd.f32 %v8502_v7, %v18264_v53  ;;  %v8576_v24 = vadd.f32 %v8575_v56, %v18267_v58 }
0x1fe0   : > { %v8504_v20 = vpop.f32.mrf.mxu1  ;;  %v8577_v19 = vpop.f32.mrf.mxu0  ;;  %v8610_v13 = vmul.f32 0.5, %v8501_v32  ;;  %v8612_v16 = vmul.f32 0.5, %v8574_v26 }
0x1fe1   : > { %v8505_v31 = vadd.f32 %v8504_v20, %v18261_v42  ;;  %v8578_v49 = vadd.f32 %v8577_v19, %v18274_v22  ;;  %14003 = verf.f32 %v8642_v62  ;;  %v8643_v61 = vmul.f32 0.70710677, %v8503_v47 }
0x1fe2   : > { %v8506_v4 = vpop.f32.mrf.mxu1  ;;  %v8579_v27 = vpop.f32.mrf.mxu0  ;;  %14005 = verf.f32 %v8644_v36  ;;  %v8645_v1 = vmul.f32 0.70710677, %v8576_v24  ;;  %v8611_v55 = vmul.f32 0.5, %v8503_v47  ;;  %v8613_v59 = vmul.f32 0.5, %v8576_v24 }
0x1fe3   : > { %v8646_v3 = vmul.f32 0.70710677, %v8505_v31  ;;  %14007 = verf.f32 %v8643_v61  ;;  %v8648_v40 = vmul.f32 0.70710677, %v8578_v49  ;;  %v8507_v21 = vadd.f32 %v8506_v4, %v18264_v53 }
0x1fe4   : > { %v8580_v63 = vadd.f32 %v8579_v27, %v18267_v58  ;;  %14009 = verf.f32 %v8645_v1  ;;  %v8614_v50 = vmul.f32 0.5, %v8505_v31  ;;  %v8616_v39 = vmul.f32 0.5, %v8578_v49 }
0x1fe5   : > { %14011 = verf.f32 %v8646_v3  ;;  %v8647_v6 = vmul.f32 0.70710677, %v8507_v21  ;;  %v8615_v51 = vmul.f32 0.5, %v8507_v21 }
0x1fe6   : > { %14013 = verf.f32 %v8648_v40  ;;  %v8649_v60 = vmul.f32 0.70710677, %v8580_v63  ;;  %v8617_v33 = vmul.f32 0.5, %v8580_v63 }
0x1fe7   : > { %14015 = verf.f32 %v8647_v6 }
0x1fe8   : > { %14017 = verf.f32 %v8649_v60 }
0x1fee   : > { %v14004_v9 = vpop.eup %14003 }
0x1fef   : > { %v14006_v11 = vpop.eup %14005  ;;  %v8706_v45 = vadd.f32 1.0, %v14004_v9 }
0x1ff0   : > { %v14008_v28 = vpop.eup %14007  ;;  %v8708_v5 = vadd.f32 1.0, %v14006_v11 }
0x1ff1   : > { %v14010_v30 = vpop.eup %14009  ;;  %v8707_v41 = vadd.f32 1.0, %v14008_v28  ;;  %v8738_v12 = vmul.f32 %v8706_v45, %v8610_v13 }
0x1ff2   : > { %v14012_v44 = vpop.eup %14011  ;;  %v8709_v48 = vadd.f32 1.0, %v14010_v30  ;;  %v8740_v35 = vmul.f32 %v8708_v5, %v8612_v16 }
0x1ff3   : > { %v14014_v10 = vpop.eup %14013  ;;  %v8710_v17 = vadd.f32 1.0, %v14012_v44  ;;  %v8739_v57 = vmul.f32 %v8707_v41, %v8611_v55 }
0x1ff4   : > { %v14016_v29 = vpop.eup %14015  ;;  %v8712_v25 = vadd.f32 1.0, %v14014_v10  ;;  %v8741_v23 = vmul.f32 %v8709_v48, %v8613_v59 }
0x1ff5   : > { %v14018_v18 = vpop.eup %14017  ;;  %v8711_v38 = vadd.f32 1.0, %v14016_v29  ;;  %v8742_v15 = vmul.f32 %v8710_v17, %v8614_v50 }
0x1ff6   : > { %v8713_v2 = vadd.f32 1.0, %v14018_v18  ;;  %v8744_v52 = vmul.f32 %v8712_v25, %v8616_v39 }
0x1ff7   : > { %v8743_v0 = vmul.f32 %v8711_v38, %v8615_v51  ;;  %v8766_v7 = vpack.c.bf16 %v8742_v15, %v8738_v12 }
0x1ff8   : > { %v8745_v14 = vmul.f32 %v8713_v2, %v8617_v33  ;;  %v8768_v62 = vpack.c.bf16 %v8744_v52, %v8740_v35 }
0x1ff9   : > { %v8767_v32 = vpack.c.bf16 %v8743_v0, %v8739_v57 }
0x1ffa   : > { %v8769_v56 = vpack.c.bf16 %v8745_v14, %v8741_v23 }
0x1ffb   : > { %9203 = vmatprep.mubr.bf16.mxu1 %v8767_v32 }
0x1ffc   : > { %9262 = vmatprep.mubr.bf16.mxu0 %v8769_v56  ;;  %9204 = vmatmul.mubr.bf16.gmra.mxu1 %v8766_v7 }
0x1ffd   : > { %9263 = vmatmul.mubr.bf16.gmra.mxu0 %v8768_v62 }
0x201b   : > { %v8510_v36 = vpop.f32.mrf.mxu1  ;;  %v8583_v47 = vpop.f32.mrf.mxu0 }
0x201c   : > { %v18337_v24 = vadd.f32 %v8510_v36, %v18261_v42  ;;  %v18340_v26 = vadd.f32 %v8583_v47, %v18274_v22 }
0x201d   : > { %v8512_v20 = vpop.f32.mrf.mxu1  ;;  %v8585_v19 = vpop.f32.mrf.mxu0 }
0x201e   : > { %v8650_v31 = vmul.f32 0.70710677, %v18337_v24  ;;  %v8652_v49 = vmul.f32 0.70710677, %v18340_v26  ;;  %v18345_v61 = vadd.f32 %v8512_v20, %v18264_v53  ;;  %v18348_v4 = vadd.f32 %v8585_v19, %v18267_v58 }
0x201f   : > { %v8514_v27 = vpop.f32.mrf.mxu1  ;;  %v8587_v1 = vpop.f32.mrf.mxu0 }
0x2020   : > { %v18351_v3 = vadd.f32 %v8514_v27, %v18261_v42  ;;  %v18354_v40 = vadd.f32 %v8587_v1, %v18274_v22  ;;  %14019 = verf.f32 %v8650_v31  ;;  %v8651_v21 = vmul.f32 0.70710677, %v18345_v61 }
0x2021   : > { %v8516_v63 = vpop.f32.mrf.mxu1  ;;  %v8589_v6 = vpop.f32.mrf.mxu0  ;;  %14021 = verf.f32 %v8652_v49  ;;  %v8653_v60 = vmul.f32 0.70710677, %v18348_v4  ;;  %v8618_v49 = vmul.f32 0.5, %v18337_v24  ;;  %v8620_v27 = vmul.f32 0.5, %v18340_v26 }
0x2022   : > { %v8654_v9 = vmul.f32 0.70710677, %v18351_v3  ;;  %14023 = verf.f32 %v8651_v21  ;;  %v8656_v11 = vmul.f32 0.70710677, %v18354_v40  ;;  %v18361_v28 = vadd.f32 %v8516_v63, %v18264_v53 }
0x2023   : > { %v18364_v30 = vadd.f32 %v8589_v6, %v18267_v58  ;;  %14025 = verf.f32 %v8653_v60  ;;  %v8520_v44 = vpop.f32.mrf.mxu1  ;;  %v8593_v10 = vpop.f32.mrf.mxu0  ;;  %v8619_v63 = vmul.f32 0.5, %v18345_v61  ;;  %v8621_v6 = vmul.f32 0.5, %v18348_v4 }
0x2024   : > { %14027 = verf.f32 %v8654_v9  ;;  %v8655_v13 = vmul.f32 0.70710677, %v18361_v28  ;;  %v18369_v41 = vadd.f32 %v8520_v44, %v18261_v42  ;;  %v18372_v17 = vadd.f32 %v8593_v10, %v18274_v22 }
0x2025   : > { %14029 = verf.f32 %v8656_v11  ;;  %v8657_v55 = vmul.f32 0.70710677, %v18364_v30  ;;  %v8522_v29 = vpop.f32.mrf.mxu1  ;;  %v8595_v45 = vpop.f32.mrf.mxu0  ;;  %v8622_v60 = vmul.f32 0.5, %v18351_v3  ;;  %v8624_v24 = vmul.f32 0.5, %v18354_v40 }
0x2026   : > { %14031 = verf.f32 %v8655_v13  ;;  %v18375_v48 = vadd.f32 %v8522_v29, %v18264_v53  ;;  %v18378_v50 = vadd.f32 %v8595_v45, %v18267_v58  ;;  %v8658_v25 = vmul.f32 0.70710677, %v18369_v41 }
0x2027   : > { %14033 = verf.f32 %v8657_v55  ;;  %v8524_v18 = vpop.f32.mrf.mxu1  ;;  %v8597_v5 = vpop.f32.mrf.mxu0  ;;  %v8660_v39 = vmul.f32 0.70710677, %v18372_v17  ;;  %v8623_v3 = vmul.f32 0.5, %v18361_v28 }
0x2028   : > { %v8659_v51 = vmul.f32 0.70710677, %v18375_v48  ;;  %14035 = verf.f32 %v8658_v25  ;;  %v8661_v38 = vmul.f32 0.70710677, %v18378_v50  ;;  %v18385_v59 = vadd.f32 %v8524_v18, %v18261_v42  ;;  %v11979_v42 = vld [vmem:[%s18919_s13 + $0x2] sm:$0x3] }
0x2029   : > { %v18388_v15 = vadd.f32 %v8597_v5, %v18274_v22  ;;  %v8526_v33 = vpop.f32.mrf.mxu1  ;;  %v8599_v2 = vpop.f32.mrf.mxu0  ;;  %14037 = verf.f32 %v8660_v39  ;;  %v9289_v56 = vrot.slane %v11979_v42, %v14818_v46  ;;  %v9293_v47 = vrot.slane %v11979_v42, %v14815_v43 }
0x202a   : > { %v18391_v16 = vadd.f32 %v8526_v33, %v18264_v53  ;;  %v18394_v57 = vadd.f32 %v8599_v2, %v18267_v58  ;;  %14039 = verf.f32 %v8659_v51  ;;  %v8662_v52 = vmul.f32 0.70710677, %v18385_v59 }
0x202b   : > { %v9197_v0 = vpop.f32.mrf.mxu1  ;;  %v9256_v12 = vpop.f32.mrf.mxu0  ;;  %14041 = verf.f32 %v8661_v38  ;;  %v8664_v22 = vmul.f32 0.70710677, %v18388_v15  ;;  %v8625_v5 = vmul.f32 0.5, %v18364_v30 }
0x202c   : > { %v8663_v23 = vmul.f32 0.70710677, %v18391_v16  ;;  %14043 = verf.f32 %v8662_v52  ;;  %v8665_v53 = vmul.f32 0.70710677, %v18394_v57  ;;  %v9257_v7 = vadd.f32 %v9256_v12, %v9197_v0 }
0x202d   : > { %v14020_v14 = vpop.eup %14019  ;;  %v9199_v58 = vpop.f32.mrf.mxu1  ;;  %14045 = verf.f32 %v8664_v22 }
0x202e   : > { %v9258_v35 = vpop.f32.mrf.mxu0  ;;  %v14022_v32 = vpop.eup %14021  ;;  %14047 = verf.f32 %v8663_v23  ;;  %v9281_v1 = vadd.f32 %v9257_v7, %v17656_v8  ;;  %v8714_v8 = vadd.f32 1.0, %v14020_v14 }
0x202f   : > { %v9259_v62 = vadd.f32 %v9258_v35, %v9199_v58  ;;  %v14024_v36 = vpop.eup %14023  ;;  %v9201_v20 = vpop.f32.mrf.mxu1  ;;  %14049 = verf.f32 %v8665_v53  ;;  %v8716_v18 = vadd.f32 1.0, %v14022_v32 }
0x2030   : > { %v9260_v19 = vpop.f32.mrf.mxu0  ;;  %v14026_v31 = vpop.eup %14025  ;;  %v8715_v13 = vadd.f32 1.0, %v14024_v36  ;;  %v18413_v26 = vadd.f32 %v9289_v56, %v9281_v1  ;;  %v8746_v22 = vmul.f32 %v8714_v8, %v8618_v49  ;;  %v8626_v36 = vmul.f32 0.5, %v18369_v41 }
0x2031   : > { %v14028_v21 = vpop.eup %14027  ;;  %v9282_v9 = vadd.f32 %v9259_v62, %v17659_v37  ;;  %v9202_v11 = vpop.f32.mrf.mxu1  ;;  %v8717_v45 = vadd.f32 1.0, %v14026_v31  ;;  %v8748_v53 = vmul.f32 %v8716_v18, %v8620_v27  ;;  %v8630_v1 = vmul.f32 0.5, %v18385_v59 }
0x2032   : > { %v9261_v44 = vpop.f32.mrf.mxu0  ;;  %v14030_v10 = vpop.eup %14029  ;;  %v8718_v55 = vadd.f32 1.0, %v14028_v21  ;;  %v9301_v40 = vsel %vm9300_vm2, %v18413_v26, 0.0  ;;  %v8747_v2 = vmul.f32 %v8715_v13, %v8619_v63  ;;  %v8628_v13 = vmul.f32 0.5, %v18372_v17  ;;  %v9409_v17 = vld [vmem:[%s18922_s16 + $0x1e0] sm:$0xff] }
0x2033   : > { %v14032_v29 = vpop.eup %14031  ;;  %v8720_v25 = vadd.f32 1.0, %v14030_v10  ;;  %v18415_v61 = vadd.f32 %v9293_v47, %v9282_v9  ;;  %v8749_v23 = vmul.f32 %v8717_v45, %v8621_v6  ;;  %v8627_v47 = vmul.f32 0.5, %v18375_v48 }
0x2034   : > { %v14034_v4 = vpop.eup %14033  ;;  %v8719_v37 = vadd.f32 1.0, %v14032_v29  ;;  %v8750_v39 = vmul.f32 %v8718_v55, %v8622_v60  ;;  %v8632_v60 = vmul.f32 0.5, %v18388_v15  ;;  %v8631_v9 = vmul.f32 0.5, %v18391_v16 }
0x2035   : > { %v8721_v51 = vadd.f32 1.0, %v14034_v4  ;;  %v9302_v38 = vsel %vm9300_vm2, %v18415_v61, 0.0  ;;  %v14036_v33 = vpop.eup %14035  ;;  %v8752_v52 = vmul.f32 %v8720_v25, %v8624_v24  ;;  %v8629_v48 = vmul.f32 0.5, %v18378_v50  ;;  %v9405_v50 = vld [vmem:[%s18922_s16 + $0x1c0] sm:$0xff] }
0x2036   : > { %v8751_v0 = vmul.f32 %v8719_v37, %v8623_v3  ;;  %v9303_v12 = vadd.f32 %v9302_v38, %v9301_v40  ;;  %v14038_v42 = vpop.eup %14037  ;;  %v8770_v35 = vpack.c.bf16 %v8750_v39, %v8746_v22  ;;  %v8722_v49 = vadd.f32 1.0, %v14036_v33  ;;  %v9397_v39 = vld [vmem:[%s18922_s16 + $0x180] sm:$0xff]  ;;  %v9390_v22 = vld [vmem:[%s18922_s16 + $0x148] sm:$0xff] }
0x2037   : > { %v8753_v28 = vmul.f32 %v8721_v51, %v8625_v5  ;;  %v14040_v14 = vpop.eup %14039  ;;  %v8772_v56 = vpack.c.bf16 %v8752_v52, %v8748_v53  ;;  %v8724_v6 = vadd.f32 1.0, %v14038_v42  ;;  %v8633_v44 = vmul.f32 0.5, %v18394_v57  ;;  %v9406_v57 = vld [vmem:[%s18922_s16 + $0x1c8] sm:$0xff]  ;;  %v9401_v51 = vld [vmem:[%s18922_s16 + $0x1a0] sm:$0xff] }
0x2038   : > { %9304 = vadd.xlane.f32.xlu0 %v9303_v12  ;;  %v8771_v30 = vpack.c.bf16 %v8751_v0, %v8747_v2  ;;  %v14042_v58 = vpop.eup %14041  ;;  %v8723_v20 = vadd.f32 1.0, %v14040_v14  ;;  %v8754_v29 = vmul.f32 %v8722_v49, %v8626_v36  ;;  %v12036_v3 = vcombine.low %v9405_v50, %v9409_v17  ;;  %v9410_v5 = vld [vmem:[%s18922_s16 + $0x1e8] sm:$0xff]  ;;  %v9389_v0 = vld [vmem:[%s18922_s16 + $0x140] sm:$0xff] }
0x2039   : > { %v8773_v32 = vpack.c.bf16 %v8753_v28, %v8749_v23  ;;  %v14044_v7 = vpop.eup %14043  ;;  %v8725_v27 = vadd.f32 1.0, %v14042_v58  ;;  %v8756_v25 = vmul.f32 %v8724_v6, %v8628_v13  ;;  %v12037_v37 = vcombine.high %v9405_v50, %v9409_v17  ;;  %v9398_v2 = vld [vmem:[%s18922_s16 + $0x188] sm:$0xff]  ;;  %v9393_v42 = vld [vmem:[%s18922_s16 + $0x160] sm:$0xff] }
0x203a   : > { %9209 = vmatprep.mubr.bf16.mxu1 %v8771_v30  ;;  %v14046_v62 = vpop.eup %14045  ;;  %v8726_v19 = vadd.f32 1.0, %v14044_v7  ;;  %v8755_v55 = vmul.f32 %v8723_v20, %v8627_v47  ;;  %v12038_v40 = vcombine.low %v9406_v57, %v9410_v5  ;;  %v12039_v38 = vcombine.high %v9406_v57, %v9410_v5  ;;  %v9402_v52 = vld [vmem:[%s18922_s16 + $0x1a8] sm:$0xff]  ;;  %v9381_v58 = vld [vmem:[%s18922_s16 + $0x100] sm:$0xff] }
0x203b   : > { %9268 = vmatprep.mubr.bf16.mxu0 %v8773_v32  ;;  %9210 = vmatmul.mubr.bf16.gmra.mxu1 %v8770_v35  ;;  %v14048_v31 = vpop.eup %14047  ;;  %v8728_v21 = vadd.f32 1.0, %v14046_v62  ;;  %v8757_v8 = vmul.f32 %v8725_v27, %v8629_v48  ;;  %v12029_v33 = vcombine.high %v9397_v39, %v9401_v51  ;;  %v12031_v12 = vcombine.high %v9398_v2, %v9402_v52  ;;  %v9394_v23 = vld [vmem:[%s18922_s16 + $0x168] sm:$0xff]  ;;  %v9385_v35 = vld [vmem:[%s18922_s16 + $0x120] sm:$0xff] }
0x203c   : > { %9269 = vmatmul.mubr.bf16.gmra.mxu0 %v8772_v56  ;;  %v14050_v63 = vpop.eup %14049  ;;  %v8727_v41 = vadd.f32 1.0, %v14048_v31  ;;  %v8758_v11 = vmul.f32 %v8726_v19, %v8630_v1  ;;  %10159 = vmatprep.subr.bf16.mxu1 %v12037_v37  ;;  %v12028_v28 = vcombine.low %v9397_v39, %v9401_v51  ;;  %v12030_v14 = vcombine.low %v9398_v2, %v9402_v52  ;;  %v9382_v32 = vld [vmem:[%s18922_s16 + $0x108] sm:$0xff]  ;;  %v9373_v20 = vld [vmem:[%s18922_s16 + $0xc0] sm:$0xff] }
0x203d   : > { %v8729_v10 = vadd.f32 1.0, %v14050_v63  ;;  %v8760_v24 = vmul.f32 %v8728_v21, %v8632_v60  ;;  %10200 = vmatprep.subr.bf16.mxu0 %v12039_v38  ;;  %10160 = vmatpush1.bf16.msra.mxu1 %v12036_v3  ;;  %v12021_v53 = vcombine.high %v9389_v0, %v9393_v42  ;;  %v12023_v30 = vcombine.high %v9390_v22, %v9394_v23  ;;  %v9386_v7 = vld [vmem:[%s18922_s16 + $0x128] sm:$0xff]  ;;  %v9377_v19 = vld [vmem:[%s18922_s16 + $0xe0] sm:$0xff] }
0x203e   : > { %v8759_v59 = vmul.f32 %v8727_v41, %v8631_v9  ;;  %v8774_v15 = vpack.c.bf16 %v8758_v11, %v8754_v29  ;;  %10201 = vmatpush1.bf16.msra.mxu0 %v12038_v40  ;;  %10161 = vmatprep.subr.bf16.mxu1 %v12029_v33  ;;  %v12020_v56 = vcombine.low %v9389_v0, %v9393_v42  ;;  %v9374_v31 = vld [vmem:[%s18922_s16 + $0xc8] sm:$0xff]  ;;  %v9365_v6 = vld [vmem:[%s18922_s16 + $0x80] sm:$0xff] }
0x203f   : > { %v8761_v45 = vmul.f32 %v8729_v10, %v8633_v44  ;;  %v8776_v16 = vpack.c.bf16 %v8760_v24, %v8756_v25  ;;  %10202 = vmatprep.subr.bf16.mxu0 %v12031_v12  ;;  %v12022_v62 = vcombine.low %v9390_v22, %v9394_v23  ;;  %v12013_v36 = vcombine.high %v9381_v58, %v9385_v35  ;;  %v9378_v49 = vld [vmem:[%s18922_s16 + $0xe8] sm:$0xff]  ;;  %v9369_v60 = vld [vmem:[%s18922_s16 + $0xa0] sm:$0xff] }
0x2040   : > { %v8775_v4 = vpack.c.bf16 %v8759_v59, %v8755_v55  ;;  %v12015_v47 = vcombine.high %v9382_v32, %v9386_v7  ;;  %v12012_v27 = vcombine.low %v9381_v58, %v9385_v35  ;;  %v12014_v1 = vcombine.low %v9382_v32, %v9386_v7  ;;  %v9366_v9 = vld [vmem:[%s18922_s16 + $0x88] sm:$0xff]  ;;  %v9357_v13 = vld [vmem:[%s18922_s16 + $0x40] sm:$0xff] }
0x2041   : > { %v8777_v18 = vpack.c.bf16 %v8761_v45, %v8757_v8  ;;  %10162 = vmatpush1.bf16.msra.mxu1 %v12028_v28  ;;  %v12005_v21 = vcombine.high %v9373_v20, %v9377_v19  ;;  %v12007_v63 = vcombine.high %v9374_v31, %v9378_v49  ;;  %v9370_v41 = vld [vmem:[%s18922_s16 + $0xa8] sm:$0xff]  ;;  %v12004_v48 = vcombine.low %v9373_v20, %v9377_v19  ;;  %v9361_v55 = vld [vmem:[%s18922_s16 + $0x60] sm:$0xff] }
0x2042   : > { %9215 = vmatprep.mubr.bf16.mxu1 %v8775_v4  ;;  %10203 = vmatpush1.bf16.msra.mxu0 %v12030_v14  ;;  %v12006_v11 = vcombine.low %v9374_v31, %v9378_v49  ;;  %v11997_v44 = vcombine.high %v9365_v6, %v9369_v60  ;;  %v11999_v10 = vcombine.high %v9366_v9, %v9370_v41  ;;  %v9358_v24 = vld [vmem:[%s18922_s16 + $0x48] sm:$0xff]  ;;  %v9349_v4 = vld [vmem:[%s18922_s16] sm:$0xff] }
0x2043   : > { %9274 = vmatprep.mubr.bf16.mxu0 %v8777_v18  ;;  %9216 = vmatmul.mubr.bf16.gmra.mxu1 %v8774_v15  ;;  %v9362_v59 = vld [vmem:[%s18922_s16 + $0x68] sm:$0xff]  ;;  %v11996_v29 = vcombine.low %v9365_v6, %v9369_v60  ;;  %v11998_v8 = vcombine.low %v9366_v9, %v9370_v41  ;;  %v11989_v45 = vcombine.high %v9357_v13, %v9361_v55  ;;  %v9353_v15 = vld [vmem:[%s18922_s16 + $0x20] sm:$0xff] }
0x2044   : > { %9275 = vmatmul.mubr.bf16.gmra.mxu0 %v8776_v16  ;;  %10163 = vmatprep.subr.bf16.mxu1 %v12021_v53  ;;  %v11991_v25 = vcombine.high %v9358_v24, %v9362_v59  ;;  %v9350_v18 = vld [vmem:[%s18922_s16 + $0x8] sm:$0xff]  ;;  %v11988_v50 = vcombine.low %v9357_v13, %v9361_v55  ;;  %v11990_v17 = vcombine.low %v9358_v24, %v9362_v59  ;;  %v9469_v37 = vld [vmem:[%s18922_s16 + $0x3c0] sm:$0xff] }
0x2045   : > { %10204 = vmatprep.subr.bf16.mxu0 %v12023_v30  ;;  %10164 = vmatpush1.bf16.msra.mxu1 %v12020_v56  ;;  %v9354_v16 = vld [vmem:[%s18922_s16 + $0x28] sm:$0xff]  ;;  %v11981_v57 = vcombine.high %v9349_v4, %v9353_v15  ;;  %v9473_v5 = vld [vmem:[%s18922_s16 + $0x3e0] sm:$0xff]  ;;  %v11980_v40 = vcombine.low %v9349_v4, %v9353_v15 }
0x2046   : > { %10205 = vmatpush1.bf16.msra.mxu0 %v12022_v62  ;;  %10165 = vmatprep.subr.bf16.mxu1 %v12013_v36  ;;  %v11983_v3 = vcombine.high %v9350_v18, %v9354_v16  ;;  %v9470_v39 = vld [vmem:[%s18922_s16 + $0x3c8] sm:$0xff]  ;;  %v11982_v38 = vcombine.low %v9350_v18, %v9354_v16  ;;  %v12101_v33 = vcombine.high %v9469_v37, %v9473_v5  ;;  %v9461_v52 = vld [vmem:[%s18922_s16 + $0x380] sm:$0xff] }
0x2047   : > { %10206 = vmatprep.subr.bf16.mxu0 %v12015_v47  ;;  %v9474_v51 = vld [vmem:[%s18922_s16 + $0x3e8] sm:$0xff]  ;;  %v9465_v0 = vld [vmem:[%s18922_s16 + $0x3a0] sm:$0xff]  ;;  %v12100_v22 = vcombine.low %v9469_v37, %v9473_v5 }
0x2048   : > { %v12103_v2 = vcombine.high %v9470_v39, %v9474_v51  ;;  %v9462_v12 = vld [vmem:[%s18922_s16 + $0x388] sm:$0xff]  ;;  %v12102_v23 = vcombine.low %v9470_v39, %v9474_v51  ;;  %v12093_v28 = vcombine.high %v9461_v52, %v9465_v0  ;;  %v12092_v53 = vcombine.low %v9461_v52, %v9465_v0  ;;  %v9449_v13 = vld [vmem:[%s18922_s16 + $0x320] sm:$0xff] }
0x2049   : > { %10166 = vmatpush1.bf16.msra.mxu1 %v12012_v27  ;;  %v9466_v42 = vld [vmem:[%s18922_s16 + $0x3a8] sm:$0xff]  ;;  %v9441_v4 = vld [vmem:[%s18922_s16 + $0x2e0] sm:$0xff] }
0x204a   : > { %10207 = vmatpush1.bf16.msra.mxu0 %v12014_v1  ;;  %10167 = vmatprep.subr.bf16.mxu1 %v12005_v21  ;;  %v12095_v14 = vcombine.high %v9462_v12, %v9466_v42  ;;  %v12094_v30 = vcombine.low %v9462_v12, %v9466_v42  ;;  %v9454_v60 = vld [vmem:[%s18922_s16 + $0x348] sm:$0xff]  ;;  %v9433_v37 = vld [vmem:[%s18922_s16 + $0x2a0] sm:$0xff] }
0x204b   : > { %10208 = vmatprep.subr.bf16.mxu0 %v12007_v63  ;;  %v9458_v41 = vld [vmem:[%s18922_s16 + $0x368] sm:$0xff]  ;;  %v9425_v52 = vld [vmem:[%s18922_s16 + $0x260] sm:$0xff] }
0x204c   : > { %v9446_v55 = vld [vmem:[%s18922_s16 + $0x308] sm:$0xff] }
0x204d   : > { %10168 = vmatpush1.bf16.msra.mxu1 %v12004_v48  ;;  %v9450_v59 = vld [vmem:[%s18922_s16 + $0x328] sm:$0xff] }
0x204e   : > { %10209 = vmatpush1.bf16.msra.mxu0 %v12006_v11  ;;  %10169 = vmatprep.subr.bf16.mxu1 %v11997_v44  ;;  %v12086_v11 = vcombine.low %v9454_v60, %v9458_v41  ;;  %v12087_v44 = vcombine.high %v9454_v60, %v9458_v41  ;;  %v9438_v15 = vld [vmem:[%s18922_s16 + $0x2c8] sm:$0xff] }
0x204f   : > { %10210 = vmatprep.subr.bf16.mxu0 %v11999_v10  ;;  %v9445_v10 = vld [vmem:[%s18922_s16 + $0x300] sm:$0xff]  ;;  %v9442_v16 = vld [vmem:[%s18922_s16 + $0x2e8] sm:$0xff] }
0x2050   : > { %v12077_v24 = vcombine.high %v9445_v10, %v9449_v13  ;;  %v9430_v5 = vld [vmem:[%s18922_s16 + $0x288] sm:$0xff] }
0x2051   : > { %10170 = vmatpush1.bf16.msra.mxu1 %v11996_v29  ;;  %v12076_v29 = vcombine.low %v9445_v10, %v9449_v13  ;;  %v9434_v51 = vld [vmem:[%s18922_s16 + $0x2a8] sm:$0xff] }
0x2052   : > { %10211 = vmatpush1.bf16.msra.mxu0 %v11998_v8  ;;  %10171 = vmatprep.subr.bf16.mxu1 %v11989_v45  ;;  %v12078_v8 = vcombine.low %v9446_v55, %v9450_v59  ;;  %v12079_v45 = vcombine.high %v9446_v55, %v9450_v59  ;;  %v9422_v0 = vld [vmem:[%s18922_s16 + $0x248] sm:$0xff] }
0x2053   : > { %10212 = vmatprep.subr.bf16.mxu0 %v11991_v25  ;;  %v9437_v25 = vld [vmem:[%s18922_s16 + $0x2c0] sm:$0xff]  ;;  %v9426_v42 = vld [vmem:[%s18922_s16 + $0x268] sm:$0xff] }
0x2054   : > { %v12069_v18 = vcombine.high %v9437_v25, %v9441_v4 }
0x2055   : > { %10172 = vmatpush1.bf16.msra.mxu1 %v11988_v50  ;;  %v12068_v50 = vcombine.low %v9437_v25, %v9441_v4  ;;  %v9298_v4 = vld [vmem:[%s18920_s14] sm:$0x3] }
0x2056   : > { %10213 = vmatpush1.bf16.msra.mxu0 %v11990_v17  ;;  %10173 = vmatprep.subr.bf16.mxu1 %v11981_v57  ;;  %v12070_v17 = vcombine.low %v9438_v15, %v9442_v16  ;;  %v12071_v57 = vcombine.high %v9438_v15, %v9442_v16  ;;  %v9299_v15 = vld [vmem:[%s18921_s15] sm:$0x3]  ;;  %v9329_v16 = vrot.slane %v9298_v4, %v14815_v43 }
0x2057   : > { %10214 = vmatprep.subr.bf16.mxu0 %v11983_v3  ;;  %v9429_v3 = vld [vmem:[%s18922_s16 + $0x280] sm:$0xff] }
0x2058   : > { %v12061_v39 = vcombine.high %v9429_v3, %v9433_v37 }
0x2059   : > { %10174 = vmatpush1.bf16.msra.mxu1 %v11980_v40  ;;  %v12060_v40 = vcombine.low %v9429_v3, %v9433_v37  ;;  %v9338_v3 = vrot.slane %v9299_v15, %v14818_v46  ;;  %v9342_v37 = vrot.slane %v9299_v15, %v14815_v43  ;;  %v9351_v15 = vld [vmem:[%s18922_s16 + $0x10] sm:$0xff] }
0x205a   : > { %10215 = vmatpush1.bf16.msra.mxu0 %v11982_v38  ;;  %10175 = vmatprep.subr.bf16.mxu1 %v12101_v33  ;;  %v12062_v38 = vcombine.low %v9430_v5, %v9434_v51  ;;  %v12063_v33 = vcombine.high %v9430_v5, %v9434_v51 }
0x205b   : > { %10216 = vmatprep.subr.bf16.mxu0 %v12103_v2  ;;  %v9421_v2 = vld [vmem:[%s18922_s16 + $0x240] sm:$0xff] }
0x205c   : > { %v12053_v12 = vcombine.high %v9421_v2, %v9425_v52 }
0x205d   : > { %10176 = vmatpush2.bf16.msra.mxu1 %v12100_v22  ;;  %v12052_v22 = vcombine.low %v9421_v2, %v9425_v52 }
0x205e   : > { %10217 = vmatpush2.bf16.msra.mxu0 %v12102_v23  ;;  %10177 = vmatprep.subr.bf16.mxu1 %v12093_v28  ;;  %v12054_v23 = vcombine.low %v9422_v0, %v9426_v42  ;;  %v12055_v28 = vcombine.high %v9422_v0, %v9426_v42  ;;  %v9391_v0 = vld [vmem:[%s18922_s16 + $0x150] sm:$0xff] }
0x205f   : > { %10218 = vmatprep.subr.bf16.mxu0 %v12095_v14  ;;  %v9413_v14 = vld [vmem:[%s18922_s16 + $0x200] sm:$0xff] }
0x2061   : > { %10178 = vmatpush2.bf16.msra.mxu1 %v12092_v53  ;;  %v9417_v53 = vld [vmem:[%s18922_s16 + $0x220] sm:$0xff] }
0x2062   : > { %10219 = vmatpush2.bf16.msra.mxu0 %v12094_v30  ;;  %v9414_v30 = vld [vmem:[%s18922_s16 + $0x208] sm:$0xff] }
0x2063   : > { %10220 = vmatprep.subr.bf16.mxu0 %v12087_v44 }
0x2066   : > { %10221 = vmatpush2.bf16.msra.mxu0 %v12086_v11 }
0x2067   : > { %10222 = vmatprep.subr.bf16.mxu0 %v12079_v45 }
0x206a   : > { %10223 = vmatpush2.bf16.msra.mxu0 %v12078_v8 }
0x206b   : > { %10224 = vmatprep.subr.bf16.mxu0 %v12071_v57 }
0x206e   : > { %10225 = vmatpush2.bf16.msra.mxu0 %v12070_v17 }
0x206f   : > { %10226 = vmatprep.subr.bf16.mxu0 %v12063_v33  ;;  %v9403_v33 = vld [vmem:[%s18922_s16 + $0x1b0] sm:$0xff] }
0x2072   : > { %10227 = vmatpush2.bf16.msra.mxu0 %v12062_v38  ;;  %v9399_v38 = vld [vmem:[%s18922_s16 + $0x190] sm:$0xff] }
0x2073   : > { %10228 = vmatprep.subr.bf16.mxu0 %v12055_v28  ;;  %v9396_v28 = vld [vmem:[%s18922_s16 + $0x178] sm:$0xff] }
0x2076   : > { %10229 = vmatpush2.bf16.msra.mxu0 %v12054_v23  ;;  %v9392_v23 = vld [vmem:[%s18922_s16 + $0x158] sm:$0xff] }
0x20bc   : > { %v9205_v58 = vpop.f32.mrf.mxu1 }
0x20bd   : > { %v9264_v35 = vpop.f32.mrf.mxu0  ;;  %v12045_v58 = vcombine.high %v9413_v14, %v9417_v53 }
0x20be   : > { %v9206_v32 = vpop.f32.mrf.mxu1  ;;  %v9418_v35 = vld [vmem:[%s18922_s16 + $0x228] sm:$0xff] }
0x20bf   : > { %v9265_v7 = vpop.f32.mrf.mxu0  ;;  %v12044_v32 = vcombine.low %v9413_v14, %v9417_v53  ;;  %v12032_v14 = vcombine.low %v9399_v38, %v9403_v33 }
0x20c0   : > { %v9207_v56 = vpop.f32.mrf.mxu1  ;;  %v12047_v7 = vcombine.high %v9414_v30, %v9418_v35 }
0x20c1   : > { %v9266_v62 = vpop.f32.mrf.mxu0  ;;  %v9305_v36 = vpop.xlane.xlu0 %9304  ;;  %v12046_v56 = vcombine.low %v9414_v30, %v9418_v35  ;;  %v9383_v35 = vld [vmem:[%s18922_s16 + $0x110] sm:$0xff] }
0x20c2   : > { %v9208_v47 = vpop.f32.mrf.mxu1  ;;  %v9306_v20 = vmul.f32 0.00390625, %v9305_v36  ;;  %10230 = vmatprep.subr.bf16.mxu0 %v12047_v7  ;;  %v9407_v62 = vld [vmem:[%s18922_s16 + $0x1d0] sm:$0xff]  ;;  %v9384_v7 = vld [vmem:[%s18922_s16 + $0x118] sm:$0xff] }
0x20c3   : > { %v9267_v19 = vpop.f32.mrf.mxu0  ;;  %v9411_v36 = vld [vmem:[%s18922_s16 + $0x1f0] sm:$0xff]  ;;  %v9408_v47 = vld [vmem:[%s18922_s16 + $0x1d8] sm:$0xff]  ;;  %10231 = vmatpush2.bf16.msra.mxu0 %v12046_v56 }
0x20c4   : > { %v18552_v31 = vsub.f32 %v18413_v26, %v9306_v20  ;;  %v18555_v49 = vsub.f32 %v18415_v61, %v9306_v20  ;;  %v9453_v26 = vld [vmem:[%s18922_s16 + $0x340] sm:$0xff]  ;;  %v12041_v20 = vcombine.high %v9407_v62, %v9411_v36  ;;  %v9412_v19 = vld [vmem:[%s18922_s16 + $0x1f8] sm:$0xff] }
0x20c5   : > { %v9457_v61 = vld [vmem:[%s18922_s16 + $0x360] sm:$0xff]  ;;  %v9388_v56 = vld [vmem:[%s18922_s16 + $0x138] sm:$0xff] }
0x20c6   : > { %v9309_v27 = vmul.f32 %v18552_v31, %v18552_v31  ;;  %v9310_v1 = vmul.f32 %v18555_v49, %v18555_v49  ;;  %v12085_v9 = vcombine.high %v9453_v26, %v9457_v61  ;;  %v12084_v48 = vcombine.low %v9453_v26, %v9457_v61 }
0x20c8   : > { %v9311_v21 = vsel %vm9300_vm2, %v9309_v27, 0.0  ;;  %v9312_v63 = vsel %vm9300_vm2, %v9310_v1, 0.0  ;;  %10179 = vmatprep.subr.bf16.mxu1 %v12085_v9  ;;  %v12040_v27 = vcombine.low %v9407_v62, %v9411_v36  ;;  %v12042_v1 = vcombine.low %v9408_v47, %v9412_v19 }
0x20c9   : > { %v9313_v6 = vadd.f32 %v9312_v63, %v9311_v21  ;;  %10180 = vmatpush2.bf16.msra.mxu1 %v12084_v48  ;;  %v12043_v21 = vcombine.high %v9408_v47, %v9412_v19  ;;  %v12026_v36 = vcombine.low %v9392_v23, %v9396_v28  ;;  %v9375_v19 = vld [vmem:[%s18922_s16 + $0xd0] sm:$0xff] }
0x20ca   : > { %10181 = vmatprep.subr.bf16.mxu1 %v12077_v24 }
0x20cb   : > { %9314 = vadd.xlane.f32.xlu1 %v9313_v6  ;;  %10282 = vmatprep.subr.bf16.mxu0 %v12043_v21  ;;  %v9380_v21 = vld [vmem:[%s18922_s16 + $0xf8] sm:$0xff] }
0x20cd   : > { %10182 = vmatpush2.bf16.msra.mxu1 %v12076_v29 }
0x20ce   : > { %10183 = vmatprep.subr.bf16.mxu1 %v12069_v18  ;;  %v9325_v18 = vrot.slane %v9298_v4, %v14818_v46 }
0x20d1   : > { %10184 = vmatpush2.bf16.msra.mxu1 %v12068_v50 }
0x20d2   : > { %10185 = vmatprep.subr.bf16.mxu1 %v12061_v39 }
0x20d5   : > { %10186 = vmatpush2.bf16.msra.mxu1 %v12060_v40 }
0x20d6   : > { %10187 = vmatprep.subr.bf16.mxu1 %v12053_v12  ;;  %v12033_v12 = vcombine.high %v9399_v38, %v9403_v33 }
0x20d9   : > { %10188 = vmatpush2.bf16.msra.mxu1 %v12052_v22  ;;  %v9395_v22 = vld [vmem:[%s18922_s16 + $0x170] sm:$0xff] }
0x20da   : > { %10189 = vmatprep.subr.bf16.mxu1 %v12045_v58  ;;  %v12025_v30 = vcombine.high %v9391_v0, %v9395_v22  ;;  %v12027_v58 = vcombine.high %v9392_v23, %v9396_v28  ;;  %v12024_v62 = vcombine.low %v9391_v0, %v9395_v22  ;;  %v9467_v0 = vld [vmem:[%s18922_s16 + $0x3b0] sm:$0xff] }
0x20dd   : > { %10190 = vmatpush2.bf16.msra.mxu1 %v12044_v32  ;;  %v9387_v32 = vld [vmem:[%s18922_s16 + $0x130] sm:$0xff] }
0x20de   : > { %10241 = vmatprep.subr.bf16.mxu1 %v12041_v20  ;;  %v12017_v47 = vcombine.high %v9383_v35, %v9387_v32  ;;  %v12019_v20 = vcombine.high %v9384_v7, %v9388_v56 }
0x20fb   : > { %v9211_v63 = vpop.f32.mrf.mxu1 }
0x20fc   : > { %v9270_v6 = vpop.f32.mrf.mxu0  ;;  %v12016_v63 = vcombine.low %v9383_v35, %v9387_v32  ;;  %v9460_v35 = vld [vmem:[%s18922_s16 + $0x378] sm:$0xff] }
0x20fd   : > { %v9212_v26 = vpop.f32.mrf.mxu1  ;;  %v12018_v6 = vcombine.low %v9384_v7, %v9388_v56 }
0x20fe   : > { %v9271_v61 = vpop.f32.mrf.mxu0 }
0x20ff   : > { %v9213_v60 = vpop.f32.mrf.mxu1 }
0x2100   : > { %v9272_v9 = vpop.f32.mrf.mxu0  ;;  %v9367_v60 = vld [vmem:[%s18922_s16 + $0x90] sm:$0xff] }
0x2101   : > { %v9214_v41 = vpop.f32.mrf.mxu1  ;;  %v9371_v9 = vld [vmem:[%s18922_s16 + $0xb0] sm:$0xff] }
0x2102   : > { %v9273_v48 = vpop.f32.mrf.mxu0  ;;  %v9368_v41 = vld [vmem:[%s18922_s16 + $0x98] sm:$0xff] }
0x2103   : > { %v9217_v11 = vpop.f32.mrf.mxu1  ;;  %v9372_v48 = vld [vmem:[%s18922_s16 + $0xb8] sm:$0xff] }
0x2104   : > { %v9276_v44 = vpop.f32.mrf.mxu0 }
0x2105   : > { %v9218_v10 = vpop.f32.mrf.mxu1 }
0x2106   : > { %v9277_v13 = vpop.f32.mrf.mxu0  ;;  %v12001_v10 = vcombine.high %v9367_v60, %v9371_v9 }
0x2107   : > { %v9219_v55 = vpop.f32.mrf.mxu1  ;;  %v12003_v13 = vcombine.high %v9368_v41, %v9372_v48 }
0x2108   : > { %v9278_v24 = vpop.f32.mrf.mxu0  ;;  %v9359_v55 = vld [vmem:[%s18922_s16 + $0x50] sm:$0xff] }
0x2109   : > { %v9220_v59 = vpop.f32.mrf.mxu1  ;;  %v9363_v24 = vld [vmem:[%s18922_s16 + $0x70] sm:$0xff] }
0x210a   : > { %v9279_v29 = vpop.f32.mrf.mxu0  ;;  %v9360_v59 = vld [vmem:[%s18922_s16 + $0x58] sm:$0xff] }
0x210b   : > { %v9364_v29 = vld [vmem:[%s18922_s16 + $0x78] sm:$0xff] }
0x210c   : > { %v11995_v4 = vcombine.high %v9360_v59, %v9364_v29 }
0x2154   : > { %v9315_v8 = vpop.xlane.xlu1 %9314 }
0x2155   : > { %v9316_v45 = vmul.f32 0.00390625, %v9315_v8  ;;  %v12000_v8 = vcombine.low %v9367_v60, %v9371_v9  ;;  %v9444_v60 = vld [vmem:[%s18922_s16 + $0x2f8] sm:$0xff] }
0x2157   : > { %v9317_v25 = vadd.f32 1e-05, %v9316_v45  ;;  %v12002_v45 = vcombine.low %v9368_v41, %v9372_v48 }
0x2159   : > { %14051 = vrsqrt.f32 %v9317_v25  ;;  %v11993_v25 = vcombine.high %v9359_v55, %v9363_v24 }
0x2166   : > { %v14052_v50 = vpop.eup %14051 }
0x2167   : > { %v9319_v17 = vmul.f32 %v14052_v50, %v18552_v31  ;;  %v9320_v57 = vmul.f32 %v14052_v50, %v18555_v49  ;;  %v9400_v31 = vld [vmem:[%s18922_s16 + $0x198] sm:$0xff] }
0x2168   : > { %v9404_v49 = vld [vmem:[%s18922_s16 + $0x1b8] sm:$0xff] }
0x2169   : > { %v9332_v5 = vmul.f32 %v9325_v18, %v9319_v17  ;;  %v9333_v39 = vmul.f32 %v9329_v16, %v9320_v57  ;;  %v12035_v42 = vcombine.high %v9400_v31, %v9404_v49  ;;  %v12034_v53 = vcombine.low %v9400_v31, %v9404_v49  ;;  %v9355_v18 = vld [vmem:[%s18922_s16 + $0x30] sm:$0xff]  ;;  %v9352_v16 = vld [vmem:[%s18922_s16 + $0x18] sm:$0xff] }
0x216a   : > { %v9356_v50 = vld [vmem:[%s18922_s16 + $0x38] sm:$0xff]  ;;  %v11992_v17 = vcombine.low %v9359_v55, %v9363_v24  ;;  %v11994_v57 = vcombine.low %v9360_v59, %v9364_v29  ;;  %v11984_v38 = vcombine.low %v9351_v15, %v9355_v18 }
0x216b   : > { %v9345_v51 = vadd.f32 %v9338_v3, %v9332_v5  ;;  %v9346_v40 = vadd.f32 %v9342_v37, %v9333_v39  ;;  %v11985_v3 = vcombine.high %v9351_v15, %v9355_v18  ;;  %v11987_v37 = vcombine.high %v9352_v16, %v9356_v50  ;;  %v9471_v5 = vld [vmem:[%s18922_s16 + $0x3d0] sm:$0xff]  ;;  %v9436_v55 = vld [vmem:[%s18922_s16 + $0x2b8] sm:$0xff] }
0x216c   : > { %v9475_v39 = vld [vmem:[%s18922_s16 + $0x3f0] sm:$0xff]  ;;  %v11986_v33 = vcombine.low %v9352_v16, %v9356_v50  ;;  %v9428_v15 = vld [vmem:[%s18922_s16 + $0x278] sm:$0xff] }
0x216d   : > { %v18671_v2 = vpack.c.bf16 %v9345_v51, %v9345_v51  ;;  %v9348_v52 = vpack.c.bf16 %v9346_v40, %v9346_v40  ;;  %v9472_v51 = vld [vmem:[%s18922_s16 + $0x3d8] sm:$0xff]  ;;  %v12105_v31 = vcombine.high %v9471_v5, %v9475_v39  ;;  %v12104_v22 = vcombine.low %v9471_v5, %v9475_v39 }
0x216e   : > { %v9476_v40 = vld [vmem:[%s18922_s16 + $0x3f8] sm:$0xff] }
0x216f   : > { %10191 = vmatprep.mubr.bf16.mxu1 %v9348_v52  ;;  %10232 = vmatprep.mubr.bf16.mxu0 %v9348_v52  ;;  %v12107_v49 = vcombine.high %v9472_v51, %v9476_v40  ;;  %v12106_v23 = vcombine.low %v9472_v51, %v9476_v40  ;;  %v9420_v5 = vld [vmem:[%s18922_s16 + $0x238] sm:$0xff] }
0x2170   : > { %10192 = vmatmul.mubr.bf16.vlgmr.msra.gmra.mxu1 %v18671_v2  ;;  %10233 = vmatmul.mubr.bf16.vlgmr.msra.gmra.mxu0 %v18671_v2 }
0x2171   : > { %10242 = vmatpush1.bf16.msra.mxu1 %v12040_v27  ;;  %10283 = vmatpush1.bf16.msra.mxu0 %v12042_v1  ;;  %v9379_v27 = vld [vmem:[%s18922_s16 + $0xf0] sm:$0xff]  ;;  %v9376_v1 = vld [vmem:[%s18922_s16 + $0xd8] sm:$0xff] }
0x2172   : > { %10273 = vmatprep.mubr.bf16.mxu1 %v9348_v52  ;;  %10314 = vmatprep.mubr.bf16.mxu0 %v9348_v52  ;;  %v12009_v26 = vcombine.high %v9375_v19, %v9379_v27  ;;  %v12011_v61 = vcombine.high %v9376_v1, %v9380_v21  ;;  %v12008_v11 = vcombine.low %v9375_v19, %v9379_v27  ;;  %v9463_v52 = vld [vmem:[%s18922_s16 + $0x390] sm:$0xff]  ;;  %v9452_v19 = vld [vmem:[%s18922_s16 + $0x338] sm:$0xff] }
0x2173   : > { %10243 = vmatprep.subr.bf16.mxu1 %v12033_v12  ;;  %10284 = vmatprep.subr.bf16.mxu0 %v12035_v42  ;;  %v12010_v44 = vcombine.low %v9376_v1, %v9380_v21  ;;  %v9464_v12 = vld [vmem:[%s18922_s16 + $0x398] sm:$0xff]  ;;  %v12097_v28 = vcombine.high %v9463_v52, %v9467_v0  ;;  %v12096_v32 = vcombine.low %v9463_v52, %v9467_v0 }
0x2174   : > { %v9468_v42 = vld [vmem:[%s18922_s16 + $0x3b8] sm:$0xff] }
0x2175   : > { %10244 = vmatpush1.bf16.msra.mxu1 %v12032_v14  ;;  %10285 = vmatpush1.bf16.msra.mxu0 %v12034_v53  ;;  %v12099_v14 = vcombine.high %v9464_v12, %v9468_v42  ;;  %v9455_v53 = vld [vmem:[%s18922_s16 + $0x350] sm:$0xff]  ;;  %v12098_v7 = vcombine.low %v9464_v12, %v9468_v42  ;;  %v13540_v52 = vld [vmem:[#allocation5 + $0xf8] sm:$0xff]  }
0x2176   : > { %10245 = vmatprep.subr.bf16.mxu1 %v12025_v30  ;;  %10286 = vmatprep.subr.bf16.mxu0 %v12027_v58  ;;  %v9459_v30 = vld [vmem:[%s18922_s16 + $0x370] sm:$0xff]  ;;  %v9456_v58 = vld [vmem:[%s18922_s16 + $0x358] sm:$0xff] }
0x2177   : > { %v12089_v56 = vcombine.high %v9455_v53, %v9459_v30  ;;  %v12088_v27 = vcombine.low %v9455_v53, %v9459_v30  ;;  %v12090_v1 = vcombine.low %v9456_v58, %v9460_v35  ;;  %v13541_v0 = vld [vmem:[#allocation5 + $0x38] sm:$0xff]   ;;  %v13543_v42 = vld [vmem:[#allocation5 + $0x70] sm:$0xff]   ;;  %v13548_v53 = vld [vmem:[#allocation5 + $0xe8] sm:$0xff]  }
0x2178   : > { %v13542_v12 = vld [vmem:[#allocation5 + $0xb8] sm:$0xff]   ;;  %v13549_v30 = vld [vmem:[#allocation5 + $0x28] sm:$0xff]  }
0x2179   : > { %10246 = vmatpush1.bf16.msra.mxu1 %v12024_v62  ;;  %10287 = vmatpush1.bf16.msra.mxu0 %v12026_v36  ;;  %v12091_v62 = vcombine.high %v9456_v58, %v9460_v35  ;;  %v9447_v36 = vld [vmem:[%s18922_s16 + $0x310] sm:$0xff]  ;;  %v13550_v58 = vld [vmem:[#allocation5 + $0xa8] sm:$0xff]   ;;  %v13551_v35 = vld [vmem:[#allocation5 + $0x60] sm:$0xff]  }
0x217a   : > { %10247 = vmatprep.subr.bf16.mxu1 %v12017_v47  ;;  %10288 = vmatprep.subr.bf16.mxu0 %v12019_v20  ;;  %v9451_v47 = vld [vmem:[%s18922_s16 + $0x330] sm:$0xff]  ;;  %v9448_v20 = vld [vmem:[%s18922_s16 + $0x318] sm:$0xff] }
0x217b   : > { %v12081_v21 = vcombine.high %v9447_v36, %v9451_v47  ;;  %v12080_v9 = vcombine.low %v9447_v36, %v9451_v47  ;;  %v12082_v41 = vcombine.low %v9448_v20, %v9452_v19  ;;  %v13557_v36 = vld [vmem:[#allocation5 + $0x18] sm:$0xff]  }
0x217c   : > { %v13558_v47 = vld [vmem:[#allocation5 + $0x98] sm:$0xff]  }
0x217d   : > { %10248 = vmatpush1.bf16.msra.mxu1 %v12016_v63  ;;  %10289 = vmatpush1.bf16.msra.mxu0 %v12018_v6  ;;  %v12083_v63 = vcombine.high %v9448_v20, %v9452_v19  ;;  %v9439_v6 = vld [vmem:[%s18922_s16 + $0x2d0] sm:$0xff] }
0x217e   : > { %10249 = vmatprep.subr.bf16.mxu1 %v12009_v26  ;;  %10290 = vmatprep.subr.bf16.mxu0 %v12011_v61  ;;  %v9443_v26 = vld [vmem:[%s18922_s16 + $0x2f0] sm:$0xff]  ;;  %v9440_v61 = vld [vmem:[%s18922_s16 + $0x2d8] sm:$0xff] }
0x217f   : > { %v12073_v48 = vcombine.high %v9439_v6, %v9443_v26  ;;  %v12072_v24 = vcombine.low %v9439_v6, %v9443_v26  ;;  %v12074_v59 = vcombine.low %v9440_v61, %v9444_v60  ;;  %v13559_v20 = vld [vmem:[#allocation5 + $0x50] sm:$0xff]   ;;  %v13565_v6 = vld [vmem:[#allocation5 + $0x8] sm:$0xff]  }
0x2180   : > { %v13560_v19 = vld [vmem:[#allocation5 + $0xd0] sm:$0xff]   ;;  %v13566_v26 = vld [vmem:[#allocation5 + $0x88] sm:$0xff]  }
0x2181   : > { %10250 = vmatpush1.bf16.msra.mxu1 %v12008_v11  ;;  %10291 = vmatpush1.bf16.msra.mxu0 %v12010_v44  ;;  %v12075_v11 = vcombine.high %v9440_v61, %v9444_v60  ;;  %v9431_v44 = vld [vmem:[%s18922_s16 + $0x290] sm:$0xff]  ;;  %v13567_v61 = vld [vmem:[#allocation5 + $0x40] sm:$0xff]  }
0x2182   : > { %10251 = vmatprep.subr.bf16.mxu1 %v12001_v10  ;;  %10292 = vmatprep.subr.bf16.mxu0 %v12003_v13  ;;  %v9435_v10 = vld [vmem:[%s18922_s16 + $0x2b0] sm:$0xff]  ;;  %v9432_v13 = vld [vmem:[%s18922_s16 + $0x298] sm:$0xff]  ;;  %v13568_v60 = vld [vmem:[#allocation5 + $0xc0] sm:$0xff]  }
0x2183   : > { %v12065_v29 = vcombine.high %v9431_v44, %v9435_v10  ;;  %v12064_v18 = vcombine.low %v9431_v44, %v9435_v10  ;;  %v12066_v16 = vcombine.low %v9432_v13, %v9436_v55  ;;  %v18848_v44 = vld [vmem:[%s18923_s17] sm:$0xff] }
0x2184   : > { %v10122_v10 = vrot.slane %v18848_v44, %v14818_v46 }
0x2185   : > { %10252 = vmatpush1.bf16.msra.mxu1 %v12000_v8  ;;  %10293 = vmatpush1.bf16.msra.mxu0 %v12002_v45  ;;  %v12067_v8 = vcombine.high %v9432_v13, %v9436_v55  ;;  %v9423_v45 = vld [vmem:[%s18922_s16 + $0x250] sm:$0xff]  ;;  %v10130_v13 = vrot.slane %v18848_v44, %v19111_v54  ;;  %v10126_v55 = vrot.slane %v18848_v44, %v14815_v43 }
0x2186   : > { %10253 = vmatprep.subr.bf16.mxu1 %v11993_v25  ;;  %10294 = vmatprep.subr.bf16.mxu0 %v11995_v4  ;;  %v9427_v25 = vld [vmem:[%s18922_s16 + $0x270] sm:$0xff]  ;;  %v9424_v4 = vld [vmem:[%s18922_s16 + $0x258] sm:$0xff] }
0x2187   : > { %v12057_v50 = vcombine.high %v9423_v45, %v9427_v25  ;;  %v12056_v39 = vcombine.low %v9423_v45, %v9427_v25  ;;  %v12058_v51 = vcombine.low %v9424_v4, %v9428_v15 }
0x2189   : > { %10254 = vmatpush1.bf16.msra.mxu1 %v11992_v17  ;;  %10295 = vmatpush1.bf16.msra.mxu0 %v11994_v57  ;;  %v12059_v17 = vcombine.high %v9424_v4, %v9428_v15  ;;  %v9415_v57 = vld [vmem:[%s18922_s16 + $0x210] sm:$0xff] }
0x218a   : > { %10255 = vmatprep.subr.bf16.mxu1 %v11985_v3  ;;  %10296 = vmatprep.subr.bf16.mxu0 %v11987_v37  ;;  %v9419_v3 = vld [vmem:[%s18922_s16 + $0x230] sm:$0xff]  ;;  %v9416_v37 = vld [vmem:[%s18922_s16 + $0x218] sm:$0xff] }
0x218b   : > { %v12049_v40 = vcombine.high %v9415_v57, %v9419_v3 }
0x218d   : > { %10256 = vmatpush1.bf16.msra.mxu1 %v11984_v38  ;;  %10297 = vmatpush1.bf16.msra.mxu0 %v11986_v33  ;;  %v12051_v38 = vcombine.high %v9416_v37, %v9420_v5  ;;  %v12048_v33 = vcombine.low %v9415_v57, %v9419_v3 }
0x218e   : > { %10257 = vmatprep.subr.bf16.mxu1 %v12105_v31  ;;  %10298 = vmatprep.subr.bf16.mxu0 %v12107_v49  ;;  %v12050_v31 = vcombine.low %v9416_v37, %v9420_v5  ;;  %v13539_v49 = vld [vmem:[#allocation5 + $0x78] sm:$0xff]  }
0x2191   : > { %10258 = vmatpush2.bf16.msra.mxu1 %v12104_v22  ;;  %10299 = vmatpush2.bf16.msra.mxu0 %v12106_v23  ;;  %v13544_v22 = vld [vmem:[#allocation5 + $0xf0] sm:$0xff]  }
0x2192   : > { %10259 = vmatprep.subr.bf16.mxu1 %v12097_v28  ;;  %10300 = vmatprep.subr.bf16.mxu0 %v12099_v14  ;;  %v13545_v23 = vld [vmem:[#allocation5 + $0x30] sm:$0xff]   ;;  %v13547_v14 = vld [vmem:[#allocation5 + $0x68] sm:$0xff]  }
0x2193   : > { %v13546_v28 = vld [vmem:[#allocation5 + $0xb0] sm:$0xff]  }
0x2195   : > { %10260 = vmatpush2.bf16.msra.mxu1 %v12096_v32  ;;  %10301 = vmatpush2.bf16.msra.mxu0 %v12098_v7  ;;  %v13552_v32 = vld [vmem:[#allocation5 + $0xe0] sm:$0xff]  }
0x2196   : > { %10261 = vmatprep.subr.bf16.mxu1 %v12089_v56  ;;  %10302 = vmatprep.subr.bf16.mxu0 %v12091_v62  ;;  %v13553_v7 = vld [vmem:[#allocation5 + $0x20] sm:$0xff]   ;;  %v13555_v56 = vld [vmem:[#allocation5 + $0x58] sm:$0xff]  }
0x2197   : > { %v13556_v62 = vld [vmem:[#allocation5 + $0xd8] sm:$0xff]  }
0x2199   : > { %10262 = vmatpush2.bf16.msra.mxu1 %v12088_v27  ;;  %10303 = vmatpush2.bf16.msra.mxu0 %v12090_v1  ;;  %v13561_v27 = vld [vmem:[#allocation5 + $0x10] sm:$0xff]  }
0x219a   : > { %10263 = vmatprep.subr.bf16.mxu1 %v12081_v21  ;;  %10304 = vmatprep.subr.bf16.mxu0 %v12083_v63  ;;  %v13562_v1 = vld [vmem:[#allocation5 + $0x90] sm:$0xff]   ;;  %v13563_v21 = vld [vmem:[#allocation5 + $0x48] sm:$0xff]  }
0x219b   : > { %v13564_v63 = vld [vmem:[#allocation5 + $0xc8] sm:$0xff]  }
0x219d   : > { %10264 = vmatpush2.bf16.msra.mxu1 %v12080_v9  ;;  %10305 = vmatpush2.bf16.msra.mxu0 %v12082_v41  ;;  %v13569_v9 = vld [vmem:[#allocation5] sm:$0xff]  }
0x219e   : > { %10265 = vmatprep.subr.bf16.mxu1 %v12073_v48  ;;  %10306 = vmatprep.subr.bf16.mxu0 %v12075_v11  ;;  %v13570_v41 = vld [vmem:[#allocation5 + $0x80] sm:$0xff]   ;;  %v13571_v48 = vld [vmem:[#allocation5 + $0x178] sm:$0xff]  }
0x219f   : > { %v13572_v11 = vld [vmem:[#allocation5 + $0x1f8] sm:$0xff]  }
0x21a1   : > { %10266 = vmatpush2.bf16.msra.mxu1 %v12072_v24  ;;  %10307 = vmatpush2.bf16.msra.mxu0 %v12074_v59  ;;  %v10134_v24 = vrot.slane %v18848_v44, %v19110_v34  ;;  %v13574_v34 = vld [vmem:[#allocation5 + $0x1b8] sm:$0xff]  }
0x21a2   : > { %10267 = vmatprep.subr.bf16.mxu1 %v12065_v29  ;;  %10308 = vmatprep.subr.bf16.mxu0 %v12067_v8 }
0x21a5   : > { %10268 = vmatpush2.bf16.msra.mxu1 %v12064_v18  ;;  %10309 = vmatpush2.bf16.msra.mxu0 %v12066_v16 }
0x21a6   : > { %10269 = vmatprep.subr.bf16.mxu1 %v12057_v50  ;;  %10310 = vmatprep.subr.bf16.mxu0 %v12059_v17 }
0x21a9   : > { %10270 = vmatpush2.bf16.msra.mxu1 %v12056_v39  ;;  %10311 = vmatpush2.bf16.msra.mxu0 %v12058_v51  ;;  %v13573_v39 = vld [vmem:[#allocation5 + $0x138] sm:$0xff]  }
0x21aa   : > { %10271 = vmatprep.subr.bf16.mxu1 %v12049_v40  ;;  %10312 = vmatprep.subr.bf16.mxu0 %v12051_v38  ;;  %v13575_v38 = vld [vmem:[#allocation5 + $0x170] sm:$0xff]  }
0x21ad   : > { %10272 = vmatpush2.bf16.msra.mxu1 %v12048_v33  ;;  %10313 = vmatpush2.bf16.msra.mxu0 %v12050_v31  ;;  %v13576_v33 = vld [vmem:[#allocation5 + $0x1f0] sm:$0xff]  }
0x21ae   : > { %12304 = vmatprep.subr.bf16.mxu1 %v13539_v49  ;;  %12326 = vmatprep.subr.bf16.mxu0 %v13540_v52  ;;  %v13577_v31 = vld [vmem:[#allocation5 + $0x130] sm:$0xff]   ;;  %v13579_v52 = vld [vmem:[#allocation5 + $0x168] sm:$0xff]  }
0x21af   : > { %v13578_v49 = vld [vmem:[#allocation5 + $0x1b0] sm:$0xff]  }
0x21b0   : > { %10274 = vmatmul.mubr.bf16.vlgmr.msra.gmra.mxu1 %v18671_v2  ;;  %10315 = vmatmul.mubr.bf16.vlgmr.msra.gmra.mxu0 %v18671_v2  ;;  %v13554_v2 = vld [vmem:[#allocation5 + $0xa0] sm:$0xff]  }
0x21b1   : > { %12305 = vmatpush3.bf16.msra.mxu1 %v13541_v0  ;;  %12327 = vmatpush3.bf16.msra.mxu0 %v13542_v12  ;;  %v13580_v0 = vld [vmem:[#allocation5 + $0x1e8] sm:$0xff]  }
0x21b2   : > { %12306 = vmatprep.subr.bf16.mxu1 %v13543_v42  ;;  %12328 = vmatprep.subr.bf16.mxu0 %v13544_v22  ;;  %v13581_v12 = vld [vmem:[#allocation5 + $0x128] sm:$0xff]   ;;  %v13583_v22 = vld [vmem:[#allocation5 + $0x160] sm:$0xff]  }
0x21b3   : > { %v13582_v42 = vld [vmem:[#allocation5 + $0x1a8] sm:$0xff]  }
0x21b5   : > { %12307 = vmatpush3.bf16.msra.mxu1 %v13545_v23  ;;  %12329 = vmatpush3.bf16.msra.mxu0 %v13546_v28  ;;  %v13584_v23 = vld [vmem:[#allocation5 + $0x1e0] sm:$0xff]  }
0x21b6   : > { %12308 = vmatprep.subr.bf16.mxu1 %v13547_v14  ;;  %12330 = vmatprep.subr.bf16.mxu0 %v13548_v53  ;;  %v13585_v28 = vld [vmem:[#allocation5 + $0x120] sm:$0xff]   ;;  %v13587_v53 = vld [vmem:[#allocation5 + $0x158] sm:$0xff]  }
0x21b7   : > { %v13586_v14 = vld [vmem:[#allocation5 + $0x1a0] sm:$0xff]  }
0x21b9   : > { %12309 = vmatpush3.bf16.msra.mxu1 %v13549_v30  ;;  %12331 = vmatpush3.bf16.msra.mxu0 %v13550_v58  ;;  %v13588_v30 = vld [vmem:[#allocation5 + $0x1d8] sm:$0xff]  }
0x21ba   : > { %12310 = vmatprep.subr.bf16.mxu1 %v13551_v35  ;;  %12332 = vmatprep.subr.bf16.mxu0 %v13552_v32  ;;  %v13589_v58 = vld [vmem:[#allocation5 + $0x118] sm:$0xff]   ;;  %v13591_v32 = vld [vmem:[#allocation5 + $0x150] sm:$0xff]  }
0x21bb   : > { %v13590_v35 = vld [vmem:[#allocation5 + $0x198] sm:$0xff]  }
0x21bd   : > { %12311 = vmatpush3.bf16.msra.mxu1 %v13553_v7  ;;  %12333 = vmatpush3.bf16.msra.mxu0 %v13554_v2  ;;  %v13592_v7 = vld [vmem:[#allocation5 + $0x1d0] sm:$0xff]  }
0x21be   : > { %12312 = vmatprep.subr.bf16.mxu1 %v13555_v56  ;;  %12334 = vmatprep.subr.bf16.mxu0 %v13556_v62  ;;  %v13593_v2 = vld [vmem:[#allocation5 + $0x110] sm:$0xff]   ;;  %v13595_v62 = vld [vmem:[#allocation5 + $0x148] sm:$0xff]  }
0x21bf   : > { %v13594_v56 = vld [vmem:[#allocation5 + $0x190] sm:$0xff]  }
0x21c1   : > { %12313 = vmatpush3.bf16.msra.mxu1 %v13557_v36  ;;  %12335 = vmatpush3.bf16.msra.mxu0 %v13558_v47  ;;  %v13596_v36 = vld [vmem:[#allocation5 + $0x1c8] sm:$0xff]  }
0x21c2   : > { %12314 = vmatprep.subr.bf16.mxu1 %v13559_v20  ;;  %12336 = vmatprep.subr.bf16.mxu0 %v13560_v19  ;;  %v13597_v47 = vld [vmem:[#allocation5 + $0x108] sm:$0xff]   ;;  %v13599_v19 = vld [vmem:[#allocation5 + $0x140] sm:$0xff]  }
0x21c3   : > { %v13598_v20 = vld [vmem:[#allocation5 + $0x188] sm:$0xff]  }
0x21c5   : > { %12315 = vmatpush3.bf16.msra.mxu1 %v13561_v27  ;;  %12337 = vmatpush3.bf16.msra.mxu0 %v13562_v1  ;;  %v13600_v27 = vld [vmem:[#allocation5 + $0x1c0] sm:$0xff]  }
0x21c6   : > { %12316 = vmatprep.subr.bf16.mxu1 %v13563_v21  ;;  %12338 = vmatprep.subr.bf16.mxu0 %v13564_v63  ;;  %v13601_v1 = vld [vmem:[#allocation5 + $0x100] sm:$0xff]   ;;  %v19112_v63 = vld [vmem:[#allocation31_spill] sm:$0xff] }
0x21c7   : > { %v13602_v21 = vld [vmem:[#allocation5 + $0x180] sm:$0xff]  }
0x21c9   : > { %12317 = vmatpush3.bf16.msra.mxu1 %v13565_v6  ;;  %12339 = vmatpush3.bf16.msra.mxu0 %v13566_v26  ;;  %v10137_v6 = vsub.s32 4, %v19112_v63  ;;  %v10145_v26 = vsub.s32 6, %v19112_v63 }
0x21ca   : > { %12318 = vmatprep.subr.bf16.mxu1 %v13567_v61  ;;  %12340 = vmatprep.subr.bf16.mxu0 %v13568_v60  ;;  %v10141_v61 = vsub.s32 5, %v19112_v63  ;;  %v10149_v60 = vsub.s32 7, %v19112_v63 }
0x21cd   : > { %12319 = vmatpush3.bf16.msra.mxu1 %v13569_v9  ;;  %12341 = vmatpush3.bf16.msra.mxu0 %v13570_v41  ;;  %v10138_v9 = vrot.slane %v18848_v44, %v10137_v6  ;;  %v10146_v41 = vrot.slane %v18848_v44, %v10145_v26 }
0x21ce   : > { %12348 = vmatprep.subr.bf16.mxu1 %v13571_v48  ;;  %12370 = vmatprep.subr.bf16.mxu0 %v13572_v11  ;;  %v10142_v48 = vrot.slane %v18848_v44, %v10141_v61  ;;  %v10150_v11 = vrot.slane %v18848_v44, %v10149_v60 }
0x2230   : > { %v10193_v59 = vpop.f32.mrf.mxu1  ;;  %v10234_v29 = vpop.f32.mrf.mxu0 }
0x2231   : > { %v10194_v8 = vadd.f32 %v10193_v59, %v10122_v10  ;;  %v10235_v45 = vadd.f32 %v10234_v29, %v10130_v13 }
0x2232   : > { %v10195_v25 = vpop.f32.mrf.mxu1  ;;  %v10236_v4 = vpop.f32.mrf.mxu0 }
0x2233   : > { %v10196_v15 = vadd.f32 %v10195_v25, %v10126_v55  ;;  %v10237_v18 = vadd.f32 %v10236_v4, %v10134_v24  ;;  %v10323_v16 = vmax.f32 %v10194_v8, 0.0  ;;  %v10325_v50 = vmax.f32 %v10235_v45, 0.0 }
0x2234   : > { %v10197_v46 = vpop.f32.mrf.mxu1  ;;  %v10238_v17 = vpop.f32.mrf.mxu0 }
0x2235   : > { %v10324_v57 = vmax.f32 %v10196_v15, 0.0  ;;  %v10326_v54 = vmax.f32 %v10237_v18, 0.0  ;;  %v10331_v51 = vpack.c.bf16 %v10323_v16, %v10323_v16  ;;  %v10333_v40 = vpack.c.bf16 %v10325_v50, %v10325_v50 }
0x2236   : > { %v10198_v3 = vpop.f32.mrf.mxu1  ;;  %v10239_v37 = vpop.f32.mrf.mxu0 }
0x2237   : > { %v10332_v43 = vpack.c.bf16 %v10324_v57, %v10324_v57  ;;  %v10334_v5 = vpack.c.bf16 %v10326_v54, %v10326_v54 }
0x2239   : > { %10884 = vmatprep.mubr.bf16.mxu1 %v10332_v43  ;;  %10924 = vmatprep.mubr.bf16.mxu0 %v10334_v5 }
0x223a   : > { %10885 = vmatmul.mubr.bf16.vlgmr.msra.gmra.mxu1 %v10331_v51  ;;  %10925 = vmatmul.mubr.bf16.vlgmr.msra.gmra.mxu0 %v10333_v40 }
0x223b   : > { %12349 = vmatpush3.bf16.msra.mxu1 %v13573_v39  ;;  %12371 = vmatpush3.bf16.msra.mxu0 %v13574_v34 }
0x223c   : > { %12350 = vmatprep.subr.bf16.mxu1 %v13575_v38  ;;  %12372 = vmatprep.subr.bf16.mxu0 %v13576_v33 }
0x223f   : > { %12351 = vmatpush3.bf16.msra.mxu1 %v13577_v31  ;;  %12373 = vmatpush3.bf16.msra.mxu0 %v13578_v49  ;;  %v10467_v31 = vld [vmem:[%s18925_s19] sm:$0x1] }
0x2240   : > { %12352 = vmatprep.subr.bf16.mxu1 %v13579_v52  ;;  %12374 = vmatprep.subr.bf16.mxu0 %v13580_v0 }
0x2243   : > { %12353 = vmatpush3.bf16.msra.mxu1 %v13581_v12  ;;  %12375 = vmatpush3.bf16.msra.mxu0 %v13582_v42 }
0x2244   : > { %12354 = vmatprep.subr.bf16.mxu1 %v13583_v22  ;;  %12376 = vmatprep.subr.bf16.mxu0 %v13584_v23 }
0x2247   : > { %12355 = vmatpush3.bf16.msra.mxu1 %v13585_v28  ;;  %12377 = vmatpush3.bf16.msra.mxu0 %v13586_v14 }
0x2248   : > { %12356 = vmatprep.subr.bf16.mxu1 %v13587_v53  ;;  %12378 = vmatprep.subr.bf16.mxu0 %v13588_v30 }
0x224b   : > { %12357 = vmatpush3.bf16.msra.mxu1 %v13589_v58  ;;  %12379 = vmatpush3.bf16.msra.mxu0 %v13590_v35 }
0x224c   : > { %12358 = vmatprep.subr.bf16.mxu1 %v13591_v32  ;;  %12380 = vmatprep.subr.bf16.mxu0 %v13592_v7 }
0x224f   : > { %12359 = vmatpush3.bf16.msra.mxu1 %v13593_v2  ;;  %12381 = vmatpush3.bf16.msra.mxu0 %v13594_v56 }
0x2250   : > { %12360 = vmatprep.subr.bf16.mxu1 %v13595_v62  ;;  %12382 = vmatprep.subr.bf16.mxu0 %v13596_v36 }
0x2253   : > { %12361 = vmatpush3.bf16.msra.mxu1 %v13597_v47  ;;  %12383 = vmatpush3.bf16.msra.mxu0 %v13598_v20 }
0x2254   : > { %12362 = vmatprep.subr.bf16.mxu1 %v13599_v19  ;;  %12384 = vmatprep.subr.bf16.mxu0 %v13600_v27 }
0x2257   : > { %12363 = vmatpush3.bf16.msra.mxu1 %v13601_v1  ;;  %12385 = vmatpush3.bf16.msra.mxu0 %v13602_v21 }
0x2270   : > { %v10275_v10 = vpop.f32.mrf.mxu1  ;;  %v10316_v13 = vpop.f32.mrf.mxu0 }
0x2271   : > { %v10276_v55 = vadd.f32 %v10275_v10, %v10138_v9  ;;  %v10317_v24 = vadd.f32 %v10316_v13, %v10146_v41 }
0x2272   : > { %v10277_v59 = vpop.f32.mrf.mxu1  ;;  %v10318_v29 = vpop.f32.mrf.mxu0 }
0x2273   : > { %v10278_v8 = vadd.f32 %v10277_v59, %v10142_v48  ;;  %v10319_v45 = vadd.f32 %v10318_v29, %v10150_v11  ;;  %v10327_v25 = vmax.f32 %v10276_v55, 0.0  ;;  %v10329_v4 = vmax.f32 %v10317_v24, 0.0 }
0x2274   : > { %v10279_v15 = vpop.f32.mrf.mxu1  ;;  %v10320_v18 = vpop.f32.mrf.mxu0 }
0x2275   : > { %v10328_v16 = vmax.f32 %v10278_v8, 0.0  ;;  %v10330_v50 = vmax.f32 %v10319_v45, 0.0  ;;  %v10335_v3 = vpack.c.bf16 %v10327_v25, %v10327_v25  ;;  %v10337_v44 = vpack.c.bf16 %v10329_v4, %v10329_v4 }
0x2276   : > { %v10280_v46 = vpop.f32.mrf.mxu1  ;;  %v10321_v17 = vpop.f32.mrf.mxu0 }
0x2277   : > { %v10336_v57 = vpack.c.bf16 %v10328_v16, %v10328_v16  ;;  %v10338_v54 = vpack.c.bf16 %v10330_v50, %v10330_v50 }
0x2279   : > { %10964 = vmatprep.mubr.bf16.mxu1 %v10336_v57  ;;  %11004 = vmatprep.mubr.bf16.mxu0 %v10338_v54 }
0x227a   : > { %10965 = vmatmul.mubr.bf16.vlgmr.msra.gmra.mxu1 %v10335_v3  ;;  %11005 = vmatmul.mubr.bf16.vlgmr.msra.gmra.mxu0 %v10337_v44 }
0x22fa   : > { %v12320_v37 = vpop.f32.mrf.mxu1  ;;  %v12342_v43 = vpop.f32.mrf.mxu0 }
0x22fc   : > { %v12321_v5 = vpop.f32.mrf.mxu1  ;;  %v12343_v39 = vpop.f32.mrf.mxu0 }
0x22fd   : > { %v12322_v33 = vadd.f32 %v12321_v5, %v12320_v37  ;;  %v12344_v12 = vadd.f32 %v12343_v39, %v12342_v43 }
0x22fe   : > { %v12323_v34 = vpop.f32.mrf.mxu1  ;;  %v12345_v51 = vpop.f32.mrf.mxu0 }
0x22ff   : > { %v10887_v49 = vadd.f32 %v12322_v33, %v10467_v31 }
0x2300   : > { %v12324_v40 = vpop.f32.mrf.mxu1  ;;  %v12346_v38 = vpop.f32.mrf.mxu0 }
0x2301   : > { %v10927_v23 = vadd.f32 %v12344_v12, %v10887_v49 }
0x233a   : > { %v12364_v52 = vpop.f32.mrf.mxu1  ;;  %v12386_v0 = vpop.f32.mrf.mxu0 }
0x233c   : > { %v12365_v42 = vpop.f32.mrf.mxu1  ;;  %v12387_v22 = vpop.f32.mrf.mxu0 }
0x233d   : > { %v12366_v28 = vadd.f32 %v12365_v42, %v12364_v52  ;;  %v12388_v58 = vadd.f32 %v12387_v22, %v12386_v0 }
0x233e   : > { %v12367_v14 = vpop.f32.mrf.mxu1  ;;  %v12389_v53 = vpop.f32.mrf.mxu0 }
0x233f   : > { %v10967_v30 = vadd.f32 %v12366_v28, %v10927_v23 }
0x2340   : > { %v12368_v35 = vpop.f32.mrf.mxu1  ;;  %v12390_v32 = vpop.f32.mrf.mxu0 }
0x2341   : > { %v11007_v7 = vadd.f32 %v12388_v58, %v10967_v30 }
0x2343   : > { %v11013_v2 = vsel %vm11012_vm3, %v11007_v7, -inf }
0x2344   : > { %11014 = vmax.xlane.f32.xlu0 %v11013_v2 }
0x23cd   : > { %v11015_v56 = vpop.xlane.xlu0 %11014 }
0x23ce   : > { %v11016_v62 = vsub.f32 %v11007_v7, %v11015_v56 }
0x23d0   : > { %v11017_v36 = vmul.f32 1.442695, %v11016_v62 }
0x23d2   : > { %14053 = vpow2.f32 %v11017_v36 }
0x23df   : > { %v14054_v47 = vpop.eup %14053 }
0x23e0   : > { %v11019_v20 = vsel %vm11012_vm3, %v14054_v47, 0.0 }
0x23e1   : > { %11020 = vadd.xlane.f32.xlu1 %v11019_v20 }
0x246a   : > { %v11021_v19 = vpop.xlane.xlu1 %11020 }
0x246b   : > { %14055 = vrcp.f32 %v11021_v19 }
0x2478   : > { %v14056_v27 = vpop.eup %14055 }
0x2479   : > { %v11023_v1 = vmul.f32 %v14056_v27, %v14054_v47 }
0x247b   : > { %11024 = vst.msk [vmem:[%s651_s1] sm:$0x1] %vm11012_vm3, %v11023_v1 }
0x247c   : > { %14122 = shalt.err (!%p14119_p3)
}
0x247d   : > { %s14123_s28 = scalar_lea.hbm %s11036_s21, 16  ;;  %s14127_s1 = scalar_lea.hbm %s19114_s3, 32 }
0x247e   : > { %p14124_p2 = scmp.ne.s32.totalorder %s11036_s21, %s14123_s28  ;;  %p14128_p6 = scmp.lt.s32.totalorder %s11036_s21, %s19114_s3 }
0x247f   : > { %p14129_p9 = scmp.lt.s32.totalorder %s14127_s1, %s14123_s28 }
0x2480   : > { %p14125_p4 = pnand %p14124_p2, %p14332_p5 }
0x2481   : > { %p14130_p10 = por %p14129_p9, %p14128_p6 }
0x2482   : > { %p14126_p13 = pneg %p14125_p4 }
0x2484   : > { %p14131_p12 = pnand %p14130_p10, %p14126_p13 }
0x2486   : > { %14134 = shalt.err (!%p14131_p12)
}
0x2487   : > { %12688 = dma.vmem_to_hbm [thread:$0]  (%p14332_p5), %s11039_s23, 16, %s11036_s21, %s11026_s25  }
0x2488 PF: > { %s19115_s5 = sld [smem:[#allocation13_spill]] }
0x2489   : > { %s19116_s6 = sld [smem:[#allocation11_spill]] }
0x248a   : > { %s19117_s27 = sld [smem:[#allocation16_spill]] }
0x248e   : > { %p12705_p7 = scmp.ge.s32.totalorder %s19115_s5, 2 }
0x248f   : > { %s11050_s2 = sand.u32 1, %s19116_s6  }
0x2490   : > { %p19118_p8 = scmp.ne.s32.totalorder %s19117_s27, 0  ;;  %s11051_s0 = scalar_lea.sflag [#allocation4], %s11050_s2 }
0x2492   : > { %p12698_p11 = pnand %p12705_p7, %p19118_p8 }
0x2494   : > { %p12699_p0 = pneg %p12698_p11 }
0x2496   : > { %14160 = dma.done.wait (%p12699_p0), %s11051_s0, 16  }
0x2497   : > { %14162 = vsyncadd (%p12699_p0), %s11051_s0, 4294967280  ;;  %s19119_s24 = sld [smem:[#allocation14_spill]]  ;;  %s19122_s1 = smov %s14169_s22 }
0x2498   : > { %s19120_s28 = sld [smem:[#allocation12_spill]] }
0x2499   : > { %s19121_s23 = sld [smem:[#allocation15_spill]] }
0x249d   : > { %p32_p1 = scmp.ge.s32.totalorder %s19119_s24, 4  }
0x249e   : > { %s19123_s22 = smov %s19120_s28 }
0x249f   :  { %34 = sbr.rel (!%p32_p1) target bundleno = 14 (0xe), region = 155 }
0x24a4   :  { %11055 = vsyncpa [#allocation3], 1 }
0x24a5   :  { %11057 = vsyncpa [#allocation3 + $0x1], 1 }
0x24a6   :  { %11058 = vsyncpa [#allocation6], 1 }
0x24a7   :  { %11059 = vsyncpa [#allocation4], 1 }
0x24a8   :  { %11061 = vsyncpa [#allocation4 + $0x1], 1 }

</bundles_post_ra>
